<compile_context>
chip_gen: v5e
topology: v5e:2x2
jax: 0.10.0
libtpu: 0.0.40
codegen_flags: <defaults>
</compile_context>

<pallas_src>
import math

import jax
import jax.numpy as jnp
from jax.experimental import pallas as pl
from jax.experimental.pallas import tpu as pltpu

LN_EPS = 1e-5


def _layer_norm(x, gamma, beta):
    mu = jnp.mean(x, axis=-1, keepdims=True)
    var = jnp.mean((x - mu) ** 2, axis=-1, keepdims=True)
    return (x - mu) * jax.lax.rsqrt(var + LN_EPS) * gamma + beta


def _gates_to_hc(gates, c_prev, g_ho, beta_ho, H):
    i_ = jax.nn.sigmoid(gates[:, 0:H])
    f_ = jax.nn.sigmoid(gates[:, H:2 * H])
    g_ = jnp.tanh(gates[:, 2 * H:3 * H])
    o_ = jax.nn.sigmoid(gates[:, 3 * H:4 * H])
    c_new = f_ * c_prev + i_ * g_
    h_new = o_ * _layer_norm(jnp.tanh(c_new), g_ho, beta_ho)
    return h_new, c_new


def _make_kernel(num_layers, hidden_size, batch, time_block):
    L, H, B, TT = num_layers, hidden_size, batch, time_block
    n_params = 6 + 10 * (L - 1)   # layer 0: ih-projection hoisted out of the kernel

    def kernel(bhl_ref, g0_ref, sl_ref, *rest):
        param_refs = rest[:n_params]
        y_ref, hy_ref, cy_ref = rest[n_params:n_params + 3]
        h_st, c_st = rest[n_params + 3:]

        tb = pl.program_id(0)

        @pl.when(tb == 0)
        def _():
            h_st[...] = jnp.zeros_like(h_st)
            c_st[...] = jnp.zeros_like(c_st)
            hy_ref[...] = jnp.zeros_like(hy_ref)
            cy_ref[...] = jnp.zeros_like(cy_ref)

        seq_lens = sl_ref[...]                 # (B, 1) int32, VMEM-resident
        block_has_last = bhl_ref[tb] > 0       # scalar (SMEM, scalar prefetch)

        # Hoist all parameter loads (and the ih+hh beta sums) out of the time loop.
        loaded = []
        w_hh0, b_hh0, g_hh0, be_hh0, g_ho0, be_ho0 = (r[...] for r in param_refs[0:6])
        loaded.append((w_hh0, b_hh0, g_hh0, be_hh0, g_ho0, be_ho0))
        off = 6
        for l in range(1, L):
            (w_ih, w_hh, b_ih, b_hh, g_ih, be_ih,
             g_hh, be_hh, g_ho, be_ho) = (r[...] for r in param_refs[off:off + 10])
            off += 10
            loaded.append((w_ih, w_hh, b_ih, b_hh, g_ih, g_hh, be_ih + be_hh, g_ho, be_ho))

        for tt in range(TT):
            t = tb * TT + tt
            mask = (t < seq_lens).astype(jnp.float32)   # (B, 1)
            last = (t == seq_lens - 1)                  # (B, 1) bool

            new_h, new_c = [], []

            # ---- layer 0: ln_ih(x @ W_ih + b_ih) precomputed outside the kernel ----
            w_hh, b_hh, g_hh, be_hh, g_ho, be_ho = loaded[0]
            h_prev = h_st[0]
            c_prev = c_st[0]
            gh = jnp.dot(h_prev.astype(jnp.bfloat16), w_hh,
                         preferred_element_type=jnp.float32) + b_hh
            gates = g0_ref[tt] + _layer_norm(gh, g_hh, be_hh)
            h_new, c_new = _gates_to_hc(gates, c_prev, g_ho, be_ho, H)
            h_new = h_new * mask
            c_new = c_new * mask
            h_st[0] = h_new
            c_st[0] = c_new
            new_h.append(h_new)
            new_c.append(c_new)
            x_cur = h_new

            # ---- layers 1..L-1: fused ih/hh LayerNorm statistics (one reduce pass) ----
            for l in range(1, L):
                (w_ih, w_hh, b_ih, b_hh, g_ih, g_hh,
                 beta_sum, g_ho, be_ho) = loaded[l]
                h_prev = h_st[l]
                c_prev = c_st[l]
                gi = jnp.dot(x_cur.astype(jnp.bfloat16), w_ih,
                             preferred_element_type=jnp.float32) + b_ih
                gh = jnp.dot(h_prev.astype(jnp.bfloat16), w_hh,
                             preferred_element_type=jnp.float32) + b_hh
                stacked = jnp.concatenate([gi, gh], axis=0)          # (2B, 4H)
                mu = jnp.mean(stacked, axis=-1, keepdims=True)
                var = jnp.mean((stacked - mu) ** 2, axis=-1, keepdims=True)
                norm = (stacked - mu) * jax.lax.rsqrt(var + LN_EPS)
                gates = norm[:B] * g_ih + norm[B:] * g_hh + beta_sum
                h_new, c_new = _gates_to_hc(gates, c_prev, g_ho, be_ho, H)
                h_new = h_new * mask
                c_new = c_new * mask
                h_st[l] = h_new
                c_st[l] = c_new
                new_h.append(h_new)
                new_c.append(c_new)
                x_cur = h_new

            # dropout_mask is all-ones in eval / dropout == 0
            y_ref[tt] = x_cur.astype(y_ref.dtype)

            # hy/cy capture at t == seq_lens - 1; skipped for blocks where no
            # sequence ends (saves the VMEM read-modify-write on most steps).
            @pl.when(block_has_last)
            def _():
                for l in range(L):
                    hy_ref[l] = jnp.where(last, new_h[l], hy_ref[l])
                    cy_ref[l] = jnp.where(last, new_c[l], cy_ref[l])

    return kernel


def _round_up(v, m):
    return ((v + m - 1) // m) * m


def layer_norm_lstm_forward(x, seq_lens, params, *, hidden_size, time_block=8):
    """x: (T, B, D_in) f32; seq_lens: (B,) int32; params: per-layer 10-tuples."""
    T, B, D_in = x.shape
    L = len(params)
    H = hidden_size

    TT = int(time_block)
    B_pad = _round_up(max(B, 1), 8)
    T_pad = _round_up(max(T, 1), TT)
    num_blocks = T_pad // TT

    x_p = jnp.zeros((T_pad, B_pad, D_in), jnp.float32).at[:T, :B].set(x.astype(jnp.float32))
    sl_p = jnp.zeros((B_pad,), jnp.int32).at[:B].set(seq_lens.astype(jnp.int32))

    # ---- hoist layer-0 input projection + ln_ih out of the serial recurrence ----
    (w_ih0, w_hh0, b_ih0, b_hh0, g_ih0, be_ih0, g_hh0, be_hh0, g_ho0, be_ho0) = params[0]
    gi0 = jnp.dot(x_p.reshape(T_pad * B_pad, D_in).astype(jnp.bfloat16),
                  w_ih0.astype(jnp.bfloat16),
                  preferred_element_type=jnp.float32) + b_ih0
    gi0 = _layer_norm(gi0, g_ih0, be_ih0).reshape(T_pad, B_pad, 4 * H)

    # bf16 weights for the MXU; bias/LayerNorm params stay f32 (elementwise math in f32).
    flat_params = [w_hh0.astype(jnp.bfloat16), b_hh0, g_hh0, be_hh0, g_ho0, be_ho0]
    for l in range(1, L):
        (w_ih, w_hh, b_ih, b_hh, g_ih, be_ih, g_hh, be_hh, g_ho, be_ho) = params[l]
        flat_params += [w_ih.astype(jnp.bfloat16), w_hh.astype(jnp.bfloat16),
                        b_ih, b_hh, g_ih, be_ih, g_hh, be_hh, g_ho, be_ho]

    seq_lens_2d = sl_p[:, None]                                  # (B_pad, 1) int32
    t_idx = jnp.arange(T_pad, dtype=jnp.int32)[:, None]          # (T_pad, 1)
    block_has_last = ((t_idx == sl_p[None, :] - 1)
                      .reshape(num_blocks, TT * B_pad)
                      .any(axis=1).astype(jnp.int32))            # (num_blocks,)

    kernel = _make_kernel(L, H, B_pad, TT)

    out_shape = (
        jax.ShapeDtypeStruct((T_pad, B_pad, H), x.dtype),   # y
        jax.ShapeDtypeStruct((L, B_pad, H), x.dtype),       # hy
        jax.ShapeDtypeStruct((L, B_pad, H), x.dtype),       # cy
    )

    # Explicit VMEM budget (weights single-buffered, activation slabs double-buffered).
    param_bytes = sum(int(p.size) * p.dtype.itemsize for p in flat_params)
    act_bytes = 2 * (TT * B_pad * 4 * H * 4) + 2 * (TT * B_pad * H * 4)
    state_bytes = 2 * L * B_pad * H * 4 + 2 * (2 * L * B_pad * H * 4)
    needed = param_bytes + act_bytes + state_bytes + (1 << 20)
    vmem_limit = int(max(8 << 20, min(96 << 20, 2 * needed)))

    def build(single_buffer_weights):
        def const_spec(shape):
            if single_buffer_weights:
                return pl.BlockSpec(shape, lambda tb, bhl: tuple(0 for _ in shape),
                                    pipeline_mode=pl.Buffered(1))
            return pl.BlockSpec(shape, lambda tb, bhl: tuple(0 for _ in shape))

        in_specs = [
            pl.BlockSpec((TT, B_pad, 4 * H), lambda tb, bhl: (tb, 0, 0)),  # hoisted layer-0 gates
            const_spec((B_pad, 1)),                                         # seq_lens (resident)
        ]
        in_specs += [const_spec(p.shape) for p in flat_params]

        out_specs = (
            pl.BlockSpec((TT, B_pad, H), lambda tb, bhl: (tb, 0, 0)),      # y, time-blocked slab
            pl.BlockSpec((L, B_pad, H), lambda tb, bhl: (0, 0, 0)),        # hy accumulator
            pl.BlockSpec((L, B_pad, H), lambda tb, bhl: (0, 0, 0)),        # cy accumulator
        )

        return pl.pallas_call(
            kernel,
            out_shape=out_shape,
            grid_spec=pltpu.PrefetchScalarGridSpec(
                num_scalar_prefetch=1,
                grid=(num_blocks,),
                in_specs=in_specs,
                out_specs=out_specs,
                scratch_shapes=[
                    pltpu.VMEM((L, B_pad, H), jnp.float32),   # h state
                    pltpu.VMEM((L, B_pad, H), jnp.float32),   # c state
                ],
            ),
            compiler_params=pltpu.CompilerParams(
                dimension_semantics=("arbitrary",),   # serial recurrence over time blocks
                vmem_limit_bytes=vmem_limit,
            ),
        )

    args = (block_has_last, gi0, seq_lens_2d, *flat_params)
    try:
        y_p, hy_p, cy_p = build(True)(*args)
    except Exception:
        # Fallback in case single-buffered (Buffered(1)) weight specs are unsupported.
        y_p, hy_p, cy_p = build(False)(*args)

    return y_p[:T, :B], hy_p[:, :B], cy_p[:, :B]


def init_params(key, input_size, hidden_size, num_layers):
    """Deterministic init matching nn.LSTMCell (uniform +-1/sqrt(H)) + LayerNorm(1, 0)."""
    H = hidden_size
    bound = 1.0 / math.sqrt(H)
    params = []
    for l in range(num_layers):
        in_dim = input_size if l == 0 else H
        key, k1, k2, k3, k4 = jax.random.split(key, 5)
        w_ih_T = jax.random.uniform(k1, (in_dim, 4 * H), jnp.float32, -bound, bound)
        w_hh_T = jax.random.uniform(k2, (H, 4 * H), jnp.float32, -bound, bound)
        b_ih = jax.random.uniform(k3, (1, 4 * H), jnp.float32, -bound, bound)
        b_hh = jax.random.uniform(k4, (1, 4 * H), jnp.float32, -bound, bound)
        g_ih = jnp.ones((1, 4 * H), jnp.float32)
        beta_ih = jnp.zeros((1, 4 * H), jnp.float32)
        g_hh = jnp.ones((1, 4 * H), jnp.float32)
        beta_hh = jnp.zeros((1, 4 * H), jnp.float32)
        g_ho = jnp.ones((1, H), jnp.float32)
        beta_ho = jnp.zeros((1, H), jnp.float32)
        params.append((w_ih_T, w_hh_T, b_ih, b_hh, g_ih, beta_ih, g_hh, beta_hh, g_ho, beta_ho))
    return params


def ref_forward(x, seq_lens, params, hidden_size):
    """Pure-JAX f32 reference replicating the PyTorch semantics (eval, unidirectional)."""
    T, B, _ = x.shape
    L = len(params)
    H = hidden_size
    h = jnp.zeros((L, B, H), jnp.float32)
    c = jnp.zeros((L, B, H), jnp.float32)
    hy = jnp.zeros((L, B, H), jnp.float32)
    cy = jnp.zeros((L, B, H), jnp.float32)
    ys = []
    for t in range(T):
        m = (t < seq_lens).astype(jnp.float32)[:, None]
        last = (t == seq_lens - 1).astype(jnp.float32)[:, None]
        xt = x[t]
        new_h, new_c = [], []
        for l in range(L):
            (w_ih_T, w_hh_T, b_ih, b_hh, g_ih, beta_ih, g_hh, beta_hh, g_ho, beta_ho) = params[l]
            gates = (_layer_norm(xt @ w_ih_T + b_ih, g_ih, beta_ih)
                     + _layer_norm(h[l] @ w_hh_T + b_hh, g_hh, beta_hh))
            i_ = jax.nn.sigmoid(gates[:, 0:H])
            f_ = jax.nn.sigmoid(gates[:, H:2 * H])
            g_ = jnp.tanh(gates[:, 2 * H:3 * H])
            o_ = jax.nn.sigmoid(gates[:, 3 * H:4 * H])
            c_new = f_ * c[l] + i_ * g_
            h_new = o_ * _layer_norm(jnp.tanh(c_new), g_ho, beta_ho)
            h_new = h_new * m
            c_new = c_new * m
            hy = hy.at[l].set(jnp.where(last > 0, h_new, hy[l]))
            cy = cy.at[l].set(jnp.where(last > 0, c_new, cy[l]))
            new_h.append(h_new)
            new_c.append(c_new)
            xt = h_new
        h = jnp.stack(new_h)
        c = jnp.stack(new_c)
        ys.append(xt)
    return jnp.stack(ys), hy, cy


if __name__ == "__main__":
    T, B, D_IN, H, L = 8, 2, 16, 32, 2

    key = jax.random.PRNGKey(0)
    key, kx = jax.random.split(key)
    x = jax.random.normal(kx, (T, B, D_IN), jnp.float32)
    seq_lens = jnp.array([T, 5], dtype=jnp.int32)
    params = init_params(key, D_IN, H, L)

    y, hy, cy = layer_norm_lstm_forward(x, seq_lens, params, hidden_size=H, time_block=4)
    jax.block_until_ready((y, hy, cy))

    y_ref, hy_ref, cy_ref = ref_forward(x, seq_lens, params, H)
    # bf16 weights on the MXU -> small drift vs. the f32 reference, so tolerances are loosened.
    assert jnp.allclose(y, y_ref, atol=3e-2, rtol=3e-2), float(jnp.max(jnp.abs(y - y_ref)))
    assert jnp.allclose(hy, hy_ref, atol=3e-2, rtol=3e-2), float(jnp.max(jnp.abs(hy - hy_ref)))
    assert jnp.allclose(cy, cy_ref, atol=3e-2, rtol=3e-2), float(jnp.max(jnp.abs(cy - cy_ref)))

    print("KERNEL_OK")
</pallas_src>

<mosaic_0001>
module attributes {stable_mosaic.version = 11 : i64} {
  func.func @kernel(%arg0: i32, %arg1: memref<2xi32, #tpu.memory_space<smem>>, %arg2: memref<4x8x128xf32, #tpu.memory_space<vmem>>, %arg3: memref<8x1xi32, #tpu.memory_space<vmem>>, %arg4: memref<32x128xbf16, #tpu.memory_space<vmem>>, %arg5: memref<1x128xf32, #tpu.memory_space<vmem>>, %arg6: memref<1x128xf32, #tpu.memory_space<vmem>>, %arg7: memref<1x128xf32, #tpu.memory_space<vmem>>, %arg8: memref<1x32xf32, #tpu.memory_space<vmem>>, %arg9: memref<1x32xf32, #tpu.memory_space<vmem>>, %arg10: memref<32x128xbf16, #tpu.memory_space<vmem>>, %arg11: memref<32x128xbf16, #tpu.memory_space<vmem>>, %arg12: memref<1x128xf32, #tpu.memory_space<vmem>>, %arg13: memref<1x128xf32, #tpu.memory_space<vmem>>, %arg14: memref<1x128xf32, #tpu.memory_space<vmem>>, %arg15: memref<1x128xf32, #tpu.memory_space<vmem>>, %arg16: memref<1x128xf32, #tpu.memory_space<vmem>>, %arg17: memref<1x128xf32, #tpu.memory_space<vmem>>, %arg18: memref<1x32xf32, #tpu.memory_space<vmem>>, %arg19: memref<1x32xf32, #tpu.memory_space<vmem>>, %arg20: memref<4x8x32xf32, #tpu.memory_space<vmem>>, %arg21: memref<2x8x32xf32, #tpu.memory_space<vmem>>, %arg22: memref<2x8x32xf32, #tpu.memory_space<vmem>>, %arg23: memref<2x8x32xf32, #tpu.memory_space<vmem>>, %arg24: memref<2x8x32xf32, #tpu.memory_space<vmem>>) attributes {dimension_semantics = [#tpu.dimension_semantics<arbitrary>], iteration_bounds = array<i64: 2>, scalar_prefetch = 1 : i64, scratch_operands = 2 : i64, tpu.core_type = #tpu.core_type<tc>, window_params = [{transform_indices = @transform_0, window_bounds = array<i64: 4, 8, 128>}, {pipeline_mode = #tpu.pipeline_mode<synchronous>, transform_indices = @transform_1, window_bounds = array<i64: 8, 1>}, {pipeline_mode = #tpu.pipeline_mode<synchronous>, transform_indices = @transform_2, window_bounds = array<i64: 32, 128>}, {pipeline_mode = #tpu.pipeline_mode<synchronous>, transform_indices = @transform_3, window_bounds = array<i64: 1, 128>}, {pipeline_mode = #tpu.pipeline_mode<synchronous>, transform_indices = @transform_4, window_bounds = array<i64: 1, 128>}, {pipeline_mode = #tpu.pipeline_mode<synchronous>, transform_indices = @transform_5, window_bounds = array<i64: 1, 128>}, {pipeline_mode = #tpu.pipeline_mode<synchronous>, transform_indices = @transform_6, window_bounds = array<i64: 1, 32>}, {pipeline_mode = #tpu.pipeline_mode<synchronous>, transform_indices = @transform_7, window_bounds = array<i64: 1, 32>}, {pipeline_mode = #tpu.pipeline_mode<synchronous>, transform_indices = @transform_8, window_bounds = array<i64: 32, 128>}, {pipeline_mode = #tpu.pipeline_mode<synchronous>, transform_indices = @transform_9, window_bounds = array<i64: 32, 128>}, {pipeline_mode = #tpu.pipeline_mode<synchronous>, transform_indices = @transform_10, window_bounds = array<i64: 1, 128>}, {pipeline_mode = #tpu.pipeline_mode<synchronous>, transform_indices = @transform_11, window_bounds = array<i64: 1, 128>}, {pipeline_mode = #tpu.pipeline_mode<synchronous>, transform_indices = @transform_12, window_bounds = array<i64: 1, 128>}, {pipeline_mode = #tpu.pipeline_mode<synchronous>, transform_indices = @transform_13, window_bounds = array<i64: 1, 128>}, {pipeline_mode = #tpu.pipeline_mode<synchronous>, transform_indices = @transform_14, window_bounds = array<i64: 1, 128>}, {pipeline_mode = #tpu.pipeline_mode<synchronous>, transform_indices = @transform_15, window_bounds = array<i64: 1, 128>}, {pipeline_mode = #tpu.pipeline_mode<synchronous>, transform_indices = @transform_16, window_bounds = array<i64: 1, 32>}, {pipeline_mode = #tpu.pipeline_mode<synchronous>, transform_indices = @transform_17, window_bounds = array<i64: 1, 32>}, {transform_indices = @transform_18, window_bounds = array<i64: 4, 8, 32>}, {pipeline_mode = #tpu.pipeline_mode<synchronous>, transform_indices = @transform_19, window_bounds = array<i64: 2, 8, 32>}, {pipeline_mode = #tpu.pipeline_mode<synchronous>, transform_indices = @transform_20, window_bounds = array<i64: 2, 8, 32>}]} {
    %c0_i32 = arith.constant 0 : i32
    %0 = arith.cmpi eq, %arg0, %c0_i32 : i32
    %1 = arith.extui %0 : i1 to i32
    %c0_i32_0 = arith.constant 0 : i32
    %2 = arith.cmpi ne, %1, %c0_i32_0 : i32
    scf.if %2 {
      %cst_279 = arith.constant 0.000000e+00 : f32
      %832 = vector.broadcast %cst_279 : f32 to vector<2x8x32xf32>
      %c0_280 = arith.constant 0 : index
      %c0_281 = arith.constant 0 : index
      %c0_282 = arith.constant 0 : index
      %833 = vector.load %arg23[%c0_280, %c0_281, %c0_282] : memref<2x8x32xf32, #tpu.memory_space<vmem>>, vector<2x8x32xf32>
      tpu.vector_store %arg23[%c0_280, %c0_281, %c0_282], %832 {strides = array<i32>} : memref<2x8x32xf32, #tpu.memory_space<vmem>>, vector<2x8x32xf32>,
      %cst_283 = arith.constant 0.000000e+00 : f32
      %834 = vector.broadcast %cst_283 : f32 to vector<2x8x32xf32>
      %c0_284 = arith.constant 0 : index
      %c0_285 = arith.constant 0 : index
      %c0_286 = arith.constant 0 : index
      %835 = vector.load %arg24[%c0_284, %c0_285, %c0_286] : memref<2x8x32xf32, #tpu.memory_space<vmem>>, vector<2x8x32xf32>
      tpu.vector_store %arg24[%c0_284, %c0_285, %c0_286], %834 {strides = array<i32>} : memref<2x8x32xf32, #tpu.memory_space<vmem>>, vector<2x8x32xf32>,
      %cst_287 = arith.constant 0.000000e+00 : f32
      %836 = vector.broadcast %cst_287 : f32 to vector<2x8x32xf32>
      %c0_288 = arith.constant 0 : index
      %c0_289 = arith.constant 0 : index
      %c0_290 = arith.constant 0 : index
      %837 = vector.load %arg21[%c0_288, %c0_289, %c0_290] : memref<2x8x32xf32, #tpu.memory_space<vmem>>, vector<2x8x32xf32>
      tpu.vector_store %arg21[%c0_288, %c0_289, %c0_290], %836 {strides = array<i32>} : memref<2x8x32xf32, #tpu.memory_space<vmem>>, vector<2x8x32xf32>,
      %cst_291 = arith.constant 0.000000e+00 : f32
      %838 = vector.broadcast %cst_291 : f32 to vector<2x8x32xf32>
      %c0_292 = arith.constant 0 : index
      %c0_293 = arith.constant 0 : index
      %c0_294 = arith.constant 0 : index
      %839 = vector.load %arg22[%c0_292, %c0_293, %c0_294] : memref<2x8x32xf32, #tpu.memory_space<vmem>>, vector<2x8x32xf32>
      tpu.vector_store %arg22[%c0_292, %c0_293, %c0_294], %838 {strides = array<i32>} : memref<2x8x32xf32, #tpu.memory_space<vmem>>, vector<2x8x32xf32>,
    } else {
    }
    %c0 = arith.constant 0 : index
    %c0_1 = arith.constant 0 : index
    %3 = vector.load %arg3[%c0, %c0_1] : memref<8x1xi32, #tpu.memory_space<vmem>>, vector<8x1xi32>
    %4 = arith.index_cast %arg0 : i32 to index
    %5 = memref.load %arg1[%4] : memref<2xi32, #tpu.memory_space<smem>>
    %c0_i32_2 = arith.constant 0 : i32
    %6 = arith.cmpi sgt, %5, %c0_i32_2 : i32
    %c0_3 = arith.constant 0 : index
    %c0_4 = arith.constant 0 : index
    %7 = vector.load %arg4[%c0_3, %c0_4] : memref<32x128xbf16, #tpu.memory_space<vmem>>, vector<32x128xbf16>
    %c0_5 = arith.constant 0 : index
    %c0_6 = arith.constant 0 : index
    %8 = vector.load %arg5[%c0_5, %c0_6] : memref<1x128xf32, #tpu.memory_space<vmem>>, vector<1x128xf32>
    %c0_7 = arith.constant 0 : index
    %c0_8 = arith.constant 0 : index
    %9 = vector.load %arg6[%c0_7, %c0_8] : memref<1x128xf32, #tpu.memory_space<vmem>>, vector<1x128xf32>
    %c0_9 = arith.constant 0 : index
    %c0_10 = arith.constant 0 : index
    %10 = vector.load %arg7[%c0_9, %c0_10] : memref<1x128xf32, #tpu.memory_space<vmem>>, vector<1x128xf32>
    %c0_11 = arith.constant 0 : index
    %c0_12 = arith.constant 0 : index
    %11 = vector.load %arg8[%c0_11, %c0_12] : memref<1x32xf32, #tpu.memory_space<vmem>>, vector<1x32xf32>
    %c0_13 = arith.constant 0 : index
    %c0_14 = arith.constant 0 : index
    %12 = vector.load %arg9[%c0_13, %c0_14] : memref<1x32xf32, #tpu.memory_space<vmem>>, vector<1x32xf32>
    %c0_15 = arith.constant 0 : index
    %c0_16 = arith.constant 0 : index
    %13 = vector.load %arg10[%c0_15, %c0_16] : memref<32x128xbf16, #tpu.memory_space<vmem>>, vector<32x128xbf16>
    %c0_17 = arith.constant 0 : index
    %c0_18 = arith.constant 0 : index
    %14 = vector.load %arg11[%c0_17, %c0_18] : memref<32x128xbf16, #tpu.memory_space<vmem>>, vector<32x128xbf16>
    %c0_19 = arith.constant 0 : index
    %c0_20 = arith.constant 0 : index
    %15 = vector.load %arg12[%c0_19, %c0_20] : memref<1x128xf32, #tpu.memory_space<vmem>>, vector<1x128xf32>
    %c0_21 = arith.constant 0 : index
    %c0_22 = arith.constant 0 : index
    %16 = vector.load %arg13[%c0_21, %c0_22] : memref<1x128xf32, #tpu.memory_space<vmem>>, vector<1x128xf32>
    %c0_23 = arith.constant 0 : index
    %c0_24 = arith.constant 0 : index
    %17 = vector.load %arg14[%c0_23, %c0_24] : memref<1x128xf32, #tpu.memory_space<vmem>>, vector<1x128xf32>
    %c0_25 = arith.constant 0 : index
    %c0_26 = arith.constant 0 : index
    %18 = vector.load %arg15[%c0_25, %c0_26] : memref<1x128xf32, #tpu.memory_space<vmem>>, vector<1x128xf32>
    %c0_27 = arith.constant 0 : index
    %c0_28 = arith.constant 0 : index
    %19 = vector.load %arg16[%c0_27, %c0_28] : memref<1x128xf32, #tpu.memory_space<vmem>>, vector<1x128xf32>
    %c0_29 = arith.constant 0 : index
    %c0_30 = arith.constant 0 : index
    %20 = vector.load %arg17[%c0_29, %c0_30] : memref<1x128xf32, #tpu.memory_space<vmem>>, vector<1x128xf32>
    %c0_31 = arith.constant 0 : index
    %c0_32 = arith.constant 0 : index
    %21 = vector.load %arg18[%c0_31, %c0_32] : memref<1x32xf32, #tpu.memory_space<vmem>>, vector<1x32xf32>
    %c0_33 = arith.constant 0 : index
    %c0_34 = arith.constant 0 : index
    %22 = vector.load %arg19[%c0_33, %c0_34] : memref<1x32xf32, #tpu.memory_space<vmem>>, vector<1x32xf32>
    %23 = arith.addf %18, %20 : vector<1x128xf32>
    %c4_i32 = arith.constant 4 : i32
    %24 = arith.muli %arg0, %c4_i32 : i32
    %c0_i32_35 = arith.constant 0 : i32
    %25 = arith.addi %24, %c0_i32_35 : i32
    %26 = vector.broadcast %25 : i32 to vector<8x1xi32>
    %27 = arith.cmpi slt, %26, %3 : vector<8x1xi32>
    %28 = arith.extui %27 : vector<8x1xi1> to vector<8x1xi32>
    %29 = arith.sitofp %28 : vector<8x1xi32> to vector<8x1xf32>
    %c1_i32 = arith.constant 1 : i32
    %30 = vector.broadcast %c1_i32 : i32 to vector<8x1xi32>
    %31 = arith.subi %3, %30 : vector<8x1xi32>
    %32 = vector.broadcast %25 : i32 to vector<8x1xi32>
    %33 = arith.cmpi eq, %32, %31 : vector<8x1xi32>
    %c0_36 = arith.constant 0 : index
    %c0_37 = arith.constant 0 : index
    %c0_38 = arith.constant 0 : index
    %34 = vector.load %arg23[%c0_36, %c0_37, %c0_38] : memref<2x8x32xf32, #tpu.memory_space<vmem>>, vector<1x8x32xf32>
    %35 = vector.shape_cast %34 : vector<1x8x32xf32> to vector<8x32xf32>
    %c0_39 = arith.constant 0 : index
    %c0_40 = arith.constant 0 : index
    %c0_41 = arith.constant 0 : index
    %36 = vector.load %arg24[%c0_39, %c0_40, %c0_41] : memref<2x8x32xf32, #tpu.memory_space<vmem>>, vector<1x8x32xf32>
    %37 = vector.shape_cast %36 : vector<1x8x32xf32> to vector<8x32xf32>
    %38 = arith.truncf %35 : vector<8x32xf32> to vector<8x32xbf16>
    %cst = arith.constant dense<0.000000e+00> : vector<8x128xf32>
    %39 = tpu.matmul %38, %7, %cst {dimension_numbers = #tpu.dot_dimension_numbers<[1], [0], [0], [1], [0, 0, 1, 1], [], []>} : vector<8x32xbf16>, vector<32x128xbf16>, vector<8x128xf32> -> vector<8x128xf32>
    %40 = vector.broadcast %8 : vector<1x128xf32> to vector<8x128xf32>
    %41 = arith.addf %39, %40 : vector<8x128xf32>
    %c0_42 = arith.constant 0 : index
    %c0_43 = arith.constant 0 : index
    %c0_44 = arith.constant 0 : index
    %42 = vector.load %arg2[%c0_42, %c0_43, %c0_44] : memref<4x8x128xf32, #tpu.memory_space<vmem>>, vector<1x8x128xf32>
    %43 = vector.shape_cast %42 : vector<1x8x128xf32> to vector<8x128xf32>
    %cst_45 = arith.constant dense<0.000000e+00> : vector<8xf32>
    %44 = vector.multi_reduction <add>, %41, %cst_45 [1] : vector<8x128xf32> to vector<8xf32>
    %45 = vector.shape_cast %44 : vector<8xf32> to vector<8x1xf32>
    %cst_46 = arith.constant 1.280000e+02 : f32
    %46 = vector.broadcast %cst_46 : f32 to vector<8x1xf32>
    %47 = arith.divf %45, %46 : vector<8x1xf32>
    %48 = vector.broadcast %47 : vector<8x1xf32> to vector<8x128xf32>
    %49 = arith.subf %41, %48 : vector<8x128xf32>
    %50 = arith.mulf %49, %49 : vector<8x128xf32>
    %cst_47 = arith.constant dense<0.000000e+00> : vector<8xf32>
    %51 = vector.multi_reduction <add>, %50, %cst_47 [1] : vector<8x128xf32> to vector<8xf32>
    %52 = vector.shape_cast %51 : vector<8xf32> to vector<8x1xf32>
    %cst_48 = arith.constant 1.280000e+02 : f32
    %53 = vector.broadcast %cst_48 : f32 to vector<8x1xf32>
    %54 = arith.divf %52, %53 : vector<8x1xf32>
    %55 = vector.broadcast %47 : vector<8x1xf32> to vector<8x128xf32>
    %56 = arith.subf %41, %55 : vector<8x128xf32>
    %cst_49 = arith.constant 9.99999974E-6 : f32
    %57 = vector.broadcast %cst_49 : f32 to vector<8x1xf32>
    %58 = arith.addf %54, %57 : vector<8x1xf32>
    %59 = math.rsqrt %58 : vector<8x1xf32>
    %60 = vector.broadcast %59 : vector<8x1xf32> to vector<8x128xf32>
    %61 = arith.mulf %56, %60 : vector<8x128xf32>
    %62 = vector.broadcast %9 : vector<1x128xf32> to vector<8x128xf32>
    %63 = arith.mulf %61, %62 : vector<8x128xf32>
    %64 = vector.broadcast %10 : vector<1x128xf32> to vector<8x128xf32>
    %65 = arith.addf %63, %64 : vector<8x128xf32>
    %66 = arith.addf %43, %65 : vector<8x128xf32>
    %67 = vector.extract_strided_slice %66 {offsets = [0, 0], sizes = [8, 32], strides = [1, 1]} : vector<8x128xf32> to vector<8x32xf32>
    %68 = arith.negf %67 : vector<8x32xf32>
    %69 = math.exp %68 : vector<8x32xf32>
    %cst_50 = arith.constant 1.000000e+00 : f32
    %70 = vector.broadcast %cst_50 : f32 to vector<8x32xf32>
    %71 = arith.addf %70, %69 : vector<8x32xf32>
    %72 = arith.divf %70, %71 : vector<8x32xf32>
    %73 = vector.extract_strided_slice %66 {offsets = [0, 32], sizes = [8, 32], strides = [1, 1]} : vector<8x128xf32> to vector<8x32xf32>
    %74 = arith.negf %73 : vector<8x32xf32>
    %75 = math.exp %74 : vector<8x32xf32>
    %cst_51 = arith.constant 1.000000e+00 : f32
    %76 = vector.broadcast %cst_51 : f32 to vector<8x32xf32>
    %77 = arith.addf %76, %75 : vector<8x32xf32>
    %78 = arith.divf %76, %77 : vector<8x32xf32>
    %79 = vector.extract_strided_slice %66 {offsets = [0, 64], sizes = [8, 32], strides = [1, 1]} : vector<8x128xf32> to vector<8x32xf32>
    %80 = math.tanh %79 : vector<8x32xf32>
    %81 = vector.extract_strided_slice %66 {offsets = [0, 96], sizes = [8, 32], strides = [1, 1]} : vector<8x128xf32> to vector<8x32xf32>
    %82 = arith.negf %81 : vector<8x32xf32>
    %83 = math.exp %82 : vector<8x32xf32>
    %cst_52 = arith.constant 1.000000e+00 : f32
    %84 = vector.broadcast %cst_52 : f32 to vector<8x32xf32>
    %85 = arith.addf %84, %83 : vector<8x32xf32>
    %86 = arith.divf %84, %85 : vector<8x32xf32>
    %87 = arith.mulf %78, %37 : vector<8x32xf32>
    %88 = arith.mulf %72, %80 : vector<8x32xf32>
    %89 = arith.addf %87, %88 : vector<8x32xf32>
    %90 = math.tanh %89 : vector<8x32xf32>
    %cst_53 = arith.constant dense<0.000000e+00> : vector<8xf32>
    %91 = vector.multi_reduction <add>, %90, %cst_53 [1] : vector<8x32xf32> to vector<8xf32>
    %92 = vector.shape_cast %91 : vector<8xf32> to vector<8x1xf32>
    %cst_54 = arith.constant 3.200000e+01 : f32
    %93 = vector.broadcast %cst_54 : f32 to vector<8x1xf32>
    %94 = arith.divf %92, %93 : vector<8x1xf32>
    %95 = vector.broadcast %94 : vector<8x1xf32> to vector<8x32xf32>
    %96 = arith.subf %90, %95 : vector<8x32xf32>
    %97 = arith.mulf %96, %96 : vector<8x32xf32>
    %cst_55 = arith.constant dense<0.000000e+00> : vector<8xf32>
    %98 = vector.multi_reduction <add>, %97, %cst_55 [1] : vector<8x32xf32> to vector<8xf32>
    %99 = vector.shape_cast %98 : vector<8xf32> to vector<8x1xf32>
    %cst_56 = arith.constant 3.200000e+01 : f32
    %100 = vector.broadcast %cst_56 : f32 to vector<8x1xf32>
    %101 = arith.divf %99, %100 : vector<8x1xf32>
    %102 = vector.broadcast %94 : vector<8x1xf32> to vector<8x32xf32>
    %103 = arith.subf %90, %102 : vector<8x32xf32>
    %cst_57 = arith.constant 9.99999974E-6 : f32
    %104 = vector.broadcast %cst_57 : f32 to vector<8x1xf32>
    %105 = arith.addf %101, %104 : vector<8x1xf32>
    %106 = math.rsqrt %105 : vector<8x1xf32>
    %107 = vector.broadcast %106 : vector<8x1xf32> to vector<8x32xf32>
    %108 = arith.mulf %103, %107 : vector<8x32xf32>
    %109 = vector.broadcast %11 : vector<1x32xf32> to vector<8x32xf32>
    %110 = arith.mulf %108, %109 : vector<8x32xf32>
    %111 = vector.broadcast %12 : vector<1x32xf32> to vector<8x32xf32>
    %112 = arith.addf %110, %111 : vector<8x32xf32>
    %113 = arith.mulf %86, %112 : vector<8x32xf32>
    %114 = vector.broadcast %29 : vector<8x1xf32> to vector<8x32xf32>
    %115 = arith.mulf %113, %114 : vector<8x32xf32>
    %116 = vector.broadcast %29 : vector<8x1xf32> to vector<8x32xf32>
    %117 = arith.mulf %89, %116 : vector<8x32xf32>
    %c0_58 = arith.constant 0 : index
    %c0_59 = arith.constant 0 : index
    %c0_60 = arith.constant 0 : index
    %118 = vector.load %arg23[%c0_58, %c0_59, %c0_60] : memref<2x8x32xf32, #tpu.memory_space<vmem>>, vector<1x8x32xf32>
    %119 = vector.shape_cast %118 : vector<1x8x32xf32> to vector<8x32xf32>
    %120 = vector.shape_cast %115 : vector<8x32xf32> to vector<1x8x32xf32>
    tpu.vector_store %arg23[%c0_58, %c0_59, %c0_60], %120 {strides = array<i32>} : memref<2x8x32xf32, #tpu.memory_space<vmem>>, vector<1x8x32xf32>,
    %c0_61 = arith.constant 0 : index
    %c0_62 = arith.constant 0 : index
    %c0_63 = arith.constant 0 : index
    %121 = vector.load %arg24[%c0_61, %c0_62, %c0_63] : memref<2x8x32xf32, #tpu.memory_space<vmem>>, vector<1x8x32xf32>
    %122 = vector.shape_cast %121 : vector<1x8x32xf32> to vector<8x32xf32>
    %123 = vector.shape_cast %117 : vector<8x32xf32> to vector<1x8x32xf32>
    tpu.vector_store %arg24[%c0_61, %c0_62, %c0_63], %123 {strides = array<i32>} : memref<2x8x32xf32, #tpu.memory_space<vmem>>, vector<1x8x32xf32>,
    %c1 = arith.constant 1 : index
    %c0_64 = arith.constant 0 : index
    %c0_65 = arith.constant 0 : index
    %124 = vector.load %arg23[%c1, %c0_64, %c0_65] : memref<2x8x32xf32, #tpu.memory_space<vmem>>, vector<1x8x32xf32>
    %125 = vector.shape_cast %124 : vector<1x8x32xf32> to vector<8x32xf32>
    %c1_66 = arith.constant 1 : index
    %c0_67 = arith.constant 0 : index
    %c0_68 = arith.constant 0 : index
    %126 = vector.load %arg24[%c1_66, %c0_67, %c0_68] : memref<2x8x32xf32, #tpu.memory_space<vmem>>, vector<1x8x32xf32>
    %127 = vector.shape_cast %126 : vector<1x8x32xf32> to vector<8x32xf32>
    %128 = arith.truncf %115 : vector<8x32xf32> to vector<8x32xbf16>
    %cst_69 = arith.constant dense<0.000000e+00> : vector<8x128xf32>
    %129 = tpu.matmul %128, %13, %cst_69 {dimension_numbers = #tpu.dot_dimension_numbers<[1], [0], [0], [1], [0, 0, 1, 1], [], []>} : vector<8x32xbf16>, vector<32x128xbf16>, vector<8x128xf32> -> vector<8x128xf32>
    %130 = vector.broadcast %15 : vector<1x128xf32> to vector<8x128xf32>
    %131 = arith.addf %129, %130 : vector<8x128xf32>
    %132 = arith.truncf %125 : vector<8x32xf32> to vector<8x32xbf16>
    %cst_70 = arith.constant dense<0.000000e+00> : vector<8x128xf32>
    %133 = tpu.matmul %132, %14, %cst_70 {dimension_numbers = #tpu.dot_dimension_numbers<[1], [0], [0], [1], [0, 0, 1, 1], [], []>} : vector<8x32xbf16>, vector<32x128xbf16>, vector<8x128xf32> -> vector<8x128xf32>
    %134 = vector.broadcast %16 : vector<1x128xf32> to vector<8x128xf32>
    %135 = arith.addf %133, %134 : vector<8x128xf32>
    %136 = tpu.concatenate %131, %135 in 0 : vector<8x128xf32>, vector<8x128xf32> -> vector<16x128xf32>
    %cst_71 = arith.constant dense<0.000000e+00> : vector<16xf32>
    %137 = vector.multi_reduction <add>, %136, %cst_71 [1] : vector<16x128xf32> to vector<16xf32>
    %138 = vector.shape_cast %137 : vector<16xf32> to vector<16x1xf32>
    %cst_72 = arith.constant 1.280000e+02 : f32
    %139 = vector.broadcast %cst_72 : f32 to vector<16x1xf32>
    %140 = arith.divf %138, %139 : vector<16x1xf32>
    %141 = vector.broadcast %140 : vector<16x1xf32> to vector<16x128xf32>
    %142 = arith.subf %136, %141 : vector<16x128xf32>
    %143 = arith.mulf %142, %142 : vector<16x128xf32>
    %cst_73 = arith.constant dense<0.000000e+00> : vector<16xf32>
    %144 = vector.multi_reduction <add>, %143, %cst_73 [1] : vector<16x128xf32> to vector<16xf32>
    %145 = vector.shape_cast %144 : vector<16xf32> to vector<16x1xf32>
    %cst_74 = arith.constant 1.280000e+02 : f32
    %146 = vector.broadcast %cst_74 : f32 to vector<16x1xf32>
    %147 = arith.divf %145, %146 : vector<16x1xf32>
    %148 = vector.broadcast %140 : vector<16x1xf32> to vector<16x128xf32>
    %149 = arith.subf %136, %148 : vector<16x128xf32>
    %cst_75 = arith.constant 9.99999974E-6 : f32
    %150 = vector.broadcast %cst_75 : f32 to vector<16x1xf32>
    %151 = arith.addf %147, %150 : vector<16x1xf32>
    %152 = math.rsqrt %151 : vector<16x1xf32>
    %153 = vector.broadcast %152 : vector<16x1xf32> to vector<16x128xf32>
    %154 = arith.mulf %149, %153 : vector<16x128xf32>
    %155 = vector.extract_strided_slice %154 {offsets = [0, 0], sizes = [8, 128], strides = [1, 1]} : vector<16x128xf32> to vector<8x128xf32>
    %156 = vector.broadcast %17 : vector<1x128xf32> to vector<8x128xf32>
    %157 = arith.mulf %155, %156 : vector<8x128xf32>
    %158 = vector.extract_strided_slice %154 {offsets = [8, 0], sizes = [8, 128], strides = [1, 1]} : vector<16x128xf32> to vector<8x128xf32>
    %159 = vector.broadcast %19 : vector<1x128xf32> to vector<8x128xf32>
    %160 = arith.mulf %158, %159 : vector<8x128xf32>
    %161 = arith.addf %157, %160 : vector<8x128xf32>
    %162 = vector.broadcast %23 : vector<1x128xf32> to vector<8x128xf32>
    %163 = arith.addf %161, %162 : vector<8x128xf32>
    %164 = vector.extract_strided_slice %163 {offsets = [0, 0], sizes = [8, 32], strides = [1, 1]} : vector<8x128xf32> to vector<8x32xf32>
    %165 = arith.negf %164 : vector<8x32xf32>
    %166 = math.exp %165 : vector<8x32xf32>
    %cst_76 = arith.constant 1.000000e+00 : f32
    %167 = vector.broadcast %cst_76 : f32 to vector<8x32xf32>
    %168 = arith.addf %167, %166 : vector<8x32xf32>
    %169 = arith.divf %167, %168 : vector<8x32xf32>
    %170 = vector.extract_strided_slice %163 {offsets = [0, 32], sizes = [8, 32], strides = [1, 1]} : vector<8x128xf32> to vector<8x32xf32>
    %171 = arith.negf %170 : vector<8x32xf32>
    %172 = math.exp %171 : vector<8x32xf32>
    %cst_77 = arith.constant 1.000000e+00 : f32
    %173 = vector.broadcast %cst_77 : f32 to vector<8x32xf32>
    %174 = arith.addf %173, %172 : vector<8x32xf32>
    %175 = arith.divf %173, %174 : vector<8x32xf32>
    %176 = vector.extract_strided_slice %163 {offsets = [0, 64], sizes = [8, 32], strides = [1, 1]} : vector<8x128xf32> to vector<8x32xf32>
    %177 = math.tanh %176 : vector<8x32xf32>
    %178 = vector.extract_strided_slice %163 {offsets = [0, 96], sizes = [8, 32], strides = [1, 1]} : vector<8x128xf32> to vector<8x32xf32>
    %179 = arith.negf %178 : vector<8x32xf32>
    %180 = math.exp %179 : vector<8x32xf32>
    %cst_78 = arith.constant 1.000000e+00 : f32
    %181 = vector.broadcast %cst_78 : f32 to vector<8x32xf32>
    %182 = arith.addf %181, %180 : vector<8x32xf32>
    %183 = arith.divf %181, %182 : vector<8x32xf32>
    %184 = arith.mulf %175, %127 : vector<8x32xf32>
    %185 = arith.mulf %169, %177 : vector<8x32xf32>
    %186 = arith.addf %184, %185 : vector<8x32xf32>
    %187 = math.tanh %186 : vector<8x32xf32>
    %cst_79 = arith.constant dense<0.000000e+00> : vector<8xf32>
    %188 = vector.multi_reduction <add>, %187, %cst_79 [1] : vector<8x32xf32> to vector<8xf32>
    %189 = vector.shape_cast %188 : vector<8xf32> to vector<8x1xf32>
    %cst_80 = arith.constant 3.200000e+01 : f32
    %190 = vector.broadcast %cst_80 : f32 to vector<8x1xf32>
    %191 = arith.divf %189, %190 : vector<8x1xf32>
    %192 = vector.broadcast %191 : vector<8x1xf32> to vector<8x32xf32>
    %193 = arith.subf %187, %192 : vector<8x32xf32>
    %194 = arith.mulf %193, %193 : vector<8x32xf32>
    %cst_81 = arith.constant dense<0.000000e+00> : vector<8xf32>
    %195 = vector.multi_reduction <add>, %194, %cst_81 [1] : vector<8x32xf32> to vector<8xf32>
    %196 = vector.shape_cast %195 : vector<8xf32> to vector<8x1xf32>
    %cst_82 = arith.constant 3.200000e+01 : f32
    %197 = vector.broadcast %cst_82 : f32 to vector<8x1xf32>
    %198 = arith.divf %196, %197 : vector<8x1xf32>
    %199 = vector.broadcast %191 : vector<8x1xf32> to vector<8x32xf32>
    %200 = arith.subf %187, %199 : vector<8x32xf32>
    %cst_83 = arith.constant 9.99999974E-6 : f32
    %201 = vector.broadcast %cst_83 : f32 to vector<8x1xf32>
    %202 = arith.addf %198, %201 : vector<8x1xf32>
    %203 = math.rsqrt %202 : vector<8x1xf32>
    %204 = vector.broadcast %203 : vector<8x1xf32> to vector<8x32xf32>
    %205 = arith.mulf %200, %204 : vector<8x32xf32>
    %206 = vector.broadcast %21 : vector<1x32xf32> to vector<8x32xf32>
    %207 = arith.mulf %205, %206 : vector<8x32xf32>
    %208 = vector.broadcast %22 : vector<1x32xf32> to vector<8x32xf32>
    %209 = arith.addf %207, %208 : vector<8x32xf32>
    %210 = arith.mulf %183, %209 : vector<8x32xf32>
    %211 = vector.broadcast %29 : vector<8x1xf32> to vector<8x32xf32>
    %212 = arith.mulf %210, %211 : vector<8x32xf32>
    %213 = vector.broadcast %29 : vector<8x1xf32> to vector<8x32xf32>
    %214 = arith.mulf %186, %213 : vector<8x32xf32>
    %c1_84 = arith.constant 1 : index
    %c0_85 = arith.constant 0 : index
    %c0_86 = arith.constant 0 : index
    %215 = vector.load %arg23[%c1_84, %c0_85, %c0_86] : memref<2x8x32xf32, #tpu.memory_space<vmem>>, vector<1x8x32xf32>
    %216 = vector.shape_cast %215 : vector<1x8x32xf32> to vector<8x32xf32>
    %217 = vector.shape_cast %212 : vector<8x32xf32> to vector<1x8x32xf32>
    tpu.vector_store %arg23[%c1_84, %c0_85, %c0_86], %217 {strides = array<i32>} : memref<2x8x32xf32, #tpu.memory_space<vmem>>, vector<1x8x32xf32>,
    %c1_87 = arith.constant 1 : index
    %c0_88 = arith.constant 0 : index
    %c0_89 = arith.constant 0 : index
    %218 = vector.load %arg24[%c1_87, %c0_88, %c0_89] : memref<2x8x32xf32, #tpu.memory_space<vmem>>, vector<1x8x32xf32>
    %219 = vector.shape_cast %218 : vector<1x8x32xf32> to vector<8x32xf32>
    %220 = vector.shape_cast %214 : vector<8x32xf32> to vector<1x8x32xf32>
    tpu.vector_store %arg24[%c1_87, %c0_88, %c0_89], %220 {strides = array<i32>} : memref<2x8x32xf32, #tpu.memory_space<vmem>>, vector<1x8x32xf32>,
    %c0_90 = arith.constant 0 : index
    %c0_91 = arith.constant 0 : index
    %c0_92 = arith.constant 0 : index
    %221 = vector.load %arg20[%c0_90, %c0_91, %c0_92] : memref<4x8x32xf32, #tpu.memory_space<vmem>>, vector<1x8x32xf32>
    %222 = vector.shape_cast %221 : vector<1x8x32xf32> to vector<8x32xf32>
    %223 = vector.shape_cast %212 : vector<8x32xf32> to vector<1x8x32xf32>
    tpu.vector_store %arg20[%c0_90, %c0_91, %c0_92], %223 {strides = array<i32>} : memref<4x8x32xf32, #tpu.memory_space<vmem>>, vector<1x8x32xf32>,
    %224 = arith.extui %6 : i1 to i32
    %c0_i32_93 = arith.constant 0 : i32
    %225 = arith.cmpi ne, %224, %c0_i32_93 : i32
    scf.if %225 {
      %c0_279 = arith.constant 0 : index
      %c0_280 = arith.constant 0 : index
      %c0_281 = arith.constant 0 : index
      %832 = vector.load %arg21[%c0_279, %c0_280, %c0_281] : memref<2x8x32xf32, #tpu.memory_space<vmem>>, vector<1x8x32xf32>
      %833 = vector.shape_cast %832 : vector<1x8x32xf32> to vector<8x32xf32>
      %834 = vector.shape_cast %33 : vector<8x1xi1> to vector<8x1xi1>
      %835 = vector.broadcast %834 : vector<8x1xi1> to vector<8x32xi1>
      %836 = arith.select %835, %115, %833 : vector<8x32xi1>, vector<8x32xf32>
      %c0_282 = arith.constant 0 : index
      %c0_283 = arith.constant 0 : index
      %c0_284 = arith.constant 0 : index
      %837 = vector.load %arg21[%c0_282, %c0_283, %c0_284] : memref<2x8x32xf32, #tpu.memory_space<vmem>>, vector<1x8x32xf32>
      %838 = vector.shape_cast %837 : vector<1x8x32xf32> to vector<8x32xf32>
      %839 = vector.shape_cast %836 : vector<8x32xf32> to vector<1x8x32xf32>
      tpu.vector_store %arg21[%c0_282, %c0_283, %c0_284], %839 {strides = array<i32>} : memref<2x8x32xf32, #tpu.memory_space<vmem>>, vector<1x8x32xf32>,
      %c0_285 = arith.constant 0 : index
      %c0_286 = arith.constant 0 : index
      %c0_287 = arith.constant 0 : index
      %840 = vector.load %arg22[%c0_285, %c0_286, %c0_287] : memref<2x8x32xf32, #tpu.memory_space<vmem>>, vector<1x8x32xf32>
      %841 = vector.shape_cast %840 : vector<1x8x32xf32> to vector<8x32xf32>
      %842 = vector.shape_cast %33 : vector<8x1xi1> to vector<8x1xi1>
      %843 = vector.broadcast %842 : vector<8x1xi1> to vector<8x32xi1>
      %844 = arith.select %843, %117, %841 : vector<8x32xi1>, vector<8x32xf32>
      %c0_288 = arith.constant 0 : index
      %c0_289 = arith.constant 0 : index
      %c0_290 = arith.constant 0 : index
      %845 = vector.load %arg22[%c0_288, %c0_289, %c0_290] : memref<2x8x32xf32, #tpu.memory_space<vmem>>, vector<1x8x32xf32>
      %846 = vector.shape_cast %845 : vector<1x8x32xf32> to vector<8x32xf32>
      %847 = vector.shape_cast %844 : vector<8x32xf32> to vector<1x8x32xf32>
      tpu.vector_store %arg22[%c0_288, %c0_289, %c0_290], %847 {strides = array<i32>} : memref<2x8x32xf32, #tpu.memory_space<vmem>>, vector<1x8x32xf32>,
      %c1_291 = arith.constant 1 : index
      %c0_292 = arith.constant 0 : index
      %c0_293 = arith.constant 0 : index
      %848 = vector.load %arg21[%c1_291, %c0_292, %c0_293] : memref<2x8x32xf32, #tpu.memory_space<vmem>>, vector<1x8x32xf32>
      %849 = vector.shape_cast %848 : vector<1x8x32xf32> to vector<8x32xf32>
      %850 = vector.shape_cast %33 : vector<8x1xi1> to vector<8x1xi1>
      %851 = vector.broadcast %850 : vector<8x1xi1> to vector<8x32xi1>
      %852 = arith.select %851, %212, %849 : vector<8x32xi1>, vector<8x32xf32>
      %c1_294 = arith.constant 1 : index
      %c0_295 = arith.constant 0 : index
      %c0_296 = arith.constant 0 : index
      %853 = vector.load %arg21[%c1_294, %c0_295, %c0_296] : memref<2x8x32xf32, #tpu.memory_space<vmem>>, vector<1x8x32xf32>
      %854 = vector.shape_cast %853 : vector<1x8x32xf32> to vector<8x32xf32>
      %855 = vector.shape_cast %852 : vector<8x32xf32> to vector<1x8x32xf32>
      tpu.vector_store %arg21[%c1_294, %c0_295, %c0_296], %855 {strides = array<i32>} : memref<2x8x32xf32, #tpu.memory_space<vmem>>, vector<1x8x32xf32>,
      %c1_297 = arith.constant 1 : index
      %c0_298 = arith.constant 0 : index
      %c0_299 = arith.constant 0 : index
      %856 = vector.load %arg22[%c1_297, %c0_298, %c0_299] : memref<2x8x32xf32, #tpu.memory_space<vmem>>, vector<1x8x32xf32>
      %857 = vector.shape_cast %856 : vector<1x8x32xf32> to vector<8x32xf32>
      %858 = vector.shape_cast %33 : vector<8x1xi1> to vector<8x1xi1>
      %859 = vector.broadcast %858 : vector<8x1xi1> to vector<8x32xi1>
      %860 = arith.select %859, %214, %857 : vector<8x32xi1>, vector<8x32xf32>
      %c1_300 = arith.constant 1 : index
      %c0_301 = arith.constant 0 : index
      %c0_302 = arith.constant 0 : index
      %861 = vector.load %arg22[%c1_300, %c0_301, %c0_302] : memref<2x8x32xf32, #tpu.memory_space<vmem>>, vector<1x8x32xf32>
      %862 = vector.shape_cast %861 : vector<1x8x32xf32> to vector<8x32xf32>
      %863 = vector.shape_cast %860 : vector<8x32xf32> to vector<1x8x32xf32>
      tpu.vector_store %arg22[%c1_300, %c0_301, %c0_302], %863 {strides = array<i32>} : memref<2x8x32xf32, #tpu.memory_space<vmem>>, vector<1x8x32xf32>,
    } else {
    }
    %c4_i32_94 = arith.constant 4 : i32
    %226 = arith.muli %arg0, %c4_i32_94 : i32
    %c1_i32_95 = arith.constant 1 : i32
    %227 = arith.addi %226, %c1_i32_95 : i32
    %228 = vector.broadcast %227 : i32 to vector<8x1xi32>
    %229 = arith.cmpi slt, %228, %3 : vector<8x1xi32>
    %230 = arith.extui %229 : vector<8x1xi1> to vector<8x1xi32>
    %231 = arith.sitofp %230 : vector<8x1xi32> to vector<8x1xf32>
    %c1_i32_96 = arith.constant 1 : i32
    %232 = vector.broadcast %c1_i32_96 : i32 to vector<8x1xi32>
    %233 = arith.subi %3, %232 : vector<8x1xi32>
    %234 = vector.broadcast %227 : i32 to vector<8x1xi32>
    %235 = arith.cmpi eq, %234, %233 : vector<8x1xi32>
    %c0_97 = arith.constant 0 : index
    %c0_98 = arith.constant 0 : index
    %c0_99 = arith.constant 0 : index
    %236 = vector.load %arg23[%c0_97, %c0_98, %c0_99] : memref<2x8x32xf32, #tpu.memory_space<vmem>>, vector<1x8x32xf32>
    %237 = vector.shape_cast %236 : vector<1x8x32xf32> to vector<8x32xf32>
    %c0_100 = arith.constant 0 : index
    %c0_101 = arith.constant 0 : index
    %c0_102 = arith.constant 0 : index
    %238 = vector.load %arg24[%c0_100, %c0_101, %c0_102] : memref<2x8x32xf32, #tpu.memory_space<vmem>>, vector<1x8x32xf32>
    %239 = vector.shape_cast %238 : vector<1x8x32xf32> to vector<8x32xf32>
    %240 = arith.truncf %237 : vector<8x32xf32> to vector<8x32xbf16>
    %cst_103 = arith.constant dense<0.000000e+00> : vector<8x128xf32>
    %241 = tpu.matmul %240, %7, %cst_103 {dimension_numbers = #tpu.dot_dimension_numbers<[1], [0], [0], [1], [0, 0, 1, 1], [], []>} : vector<8x32xbf16>, vector<32x128xbf16>, vector<8x128xf32> -> vector<8x128xf32>
    %242 = vector.broadcast %8 : vector<1x128xf32> to vector<8x128xf32>
    %243 = arith.addf %241, %242 : vector<8x128xf32>
    %c1_104 = arith.constant 1 : index
    %c0_105 = arith.constant 0 : index
    %c0_106 = arith.constant 0 : index
    %244 = vector.load %arg2[%c1_104, %c0_105, %c0_106] : memref<4x8x128xf32, #tpu.memory_space<vmem>>, vector<1x8x128xf32>
    %245 = vector.shape_cast %244 : vector<1x8x128xf32> to vector<8x128xf32>
    %cst_107 = arith.constant dense<0.000000e+00> : vector<8xf32>
    %246 = vector.multi_reduction <add>, %243, %cst_107 [1] : vector<8x128xf32> to vector<8xf32>
    %247 = vector.shape_cast %246 : vector<8xf32> to vector<8x1xf32>
    %cst_108 = arith.constant 1.280000e+02 : f32
    %248 = vector.broadcast %cst_108 : f32 to vector<8x1xf32>
    %249 = arith.divf %247, %248 : vector<8x1xf32>
    %250 = vector.broadcast %249 : vector<8x1xf32> to vector<8x128xf32>
    %251 = arith.subf %243, %250 : vector<8x128xf32>
    %252 = arith.mulf %251, %251 : vector<8x128xf32>
    %cst_109 = arith.constant dense<0.000000e+00> : vector<8xf32>
    %253 = vector.multi_reduction <add>, %252, %cst_109 [1] : vector<8x128xf32> to vector<8xf32>
    %254 = vector.shape_cast %253 : vector<8xf32> to vector<8x1xf32>
    %cst_110 = arith.constant 1.280000e+02 : f32
    %255 = vector.broadcast %cst_110 : f32 to vector<8x1xf32>
    %256 = arith.divf %254, %255 : vector<8x1xf32>
    %257 = vector.broadcast %249 : vector<8x1xf32> to vector<8x128xf32>
    %258 = arith.subf %243, %257 : vector<8x128xf32>
    %cst_111 = arith.constant 9.99999974E-6 : f32
    %259 = vector.broadcast %cst_111 : f32 to vector<8x1xf32>
    %260 = arith.addf %256, %259 : vector<8x1xf32>
    %261 = math.rsqrt %260 : vector<8x1xf32>
    %262 = vector.broadcast %261 : vector<8x1xf32> to vector<8x128xf32>
    %263 = arith.mulf %258, %262 : vector<8x128xf32>
    %264 = vector.broadcast %9 : vector<1x128xf32> to vector<8x128xf32>
    %265 = arith.mulf %263, %264 : vector<8x128xf32>
    %266 = vector.broadcast %10 : vector<1x128xf32> to vector<8x128xf32>
    %267 = arith.addf %265, %266 : vector<8x128xf32>
    %268 = arith.addf %245, %267 : vector<8x128xf32>
    %269 = vector.extract_strided_slice %268 {offsets = [0, 0], sizes = [8, 32], strides = [1, 1]} : vector<8x128xf32> to vector<8x32xf32>
    %270 = arith.negf %269 : vector<8x32xf32>
    %271 = math.exp %270 : vector<8x32xf32>
    %cst_112 = arith.constant 1.000000e+00 : f32
    %272 = vector.broadcast %cst_112 : f32 to vector<8x32xf32>
    %273 = arith.addf %272, %271 : vector<8x32xf32>
    %274 = arith.divf %272, %273 : vector<8x32xf32>
    %275 = vector.extract_strided_slice %268 {offsets = [0, 32], sizes = [8, 32], strides = [1, 1]} : vector<8x128xf32> to vector<8x32xf32>
    %276 = arith.negf %275 : vector<8x32xf32>
    %277 = math.exp %276 : vector<8x32xf32>
    %cst_113 = arith.constant 1.000000e+00 : f32
    %278 = vector.broadcast %cst_113 : f32 to vector<8x32xf32>
    %279 = arith.addf %278, %277 : vector<8x32xf32>
    %280 = arith.divf %278, %279 : vector<8x32xf32>
    %281 = vector.extract_strided_slice %268 {offsets = [0, 64], sizes = [8, 32], strides = [1, 1]} : vector<8x128xf32> to vector<8x32xf32>
    %282 = math.tanh %281 : vector<8x32xf32>
    %283 = vector.extract_strided_slice %268 {offsets = [0, 96], sizes = [8, 32], strides = [1, 1]} : vector<8x128xf32> to vector<8x32xf32>
    %284 = arith.negf %283 : vector<8x32xf32>
    %285 = math.exp %284 : vector<8x32xf32>
    %cst_114 = arith.constant 1.000000e+00 : f32
    %286 = vector.broadcast %cst_114 : f32 to vector<8x32xf32>
    %287 = arith.addf %286, %285 : vector<8x32xf32>
    %288 = arith.divf %286, %287 : vector<8x32xf32>
    %289 = arith.mulf %280, %239 : vector<8x32xf32>
    %290 = arith.mulf %274, %282 : vector<8x32xf32>
    %291 = arith.addf %289, %290 : vector<8x32xf32>
    %292 = math.tanh %291 : vector<8x32xf32>
    %cst_115 = arith.constant dense<0.000000e+00> : vector<8xf32>
    %293 = vector.multi_reduction <add>, %292, %cst_115 [1] : vector<8x32xf32> to vector<8xf32>
    %294 = vector.shape_cast %293 : vector<8xf32> to vector<8x1xf32>
    %cst_116 = arith.constant 3.200000e+01 : f32
    %295 = vector.broadcast %cst_116 : f32 to vector<8x1xf32>
    %296 = arith.divf %294, %295 : vector<8x1xf32>
    %297 = vector.broadcast %296 : vector<8x1xf32> to vector<8x32xf32>
    %298 = arith.subf %292, %297 : vector<8x32xf32>
    %299 = arith.mulf %298, %298 : vector<8x32xf32>
    %cst_117 = arith.constant dense<0.000000e+00> : vector<8xf32>
    %300 = vector.multi_reduction <add>, %299, %cst_117 [1] : vector<8x32xf32> to vector<8xf32>
    %301 = vector.shape_cast %300 : vector<8xf32> to vector<8x1xf32>
    %cst_118 = arith.constant 3.200000e+01 : f32
    %302 = vector.broadcast %cst_118 : f32 to vector<8x1xf32>
    %303 = arith.divf %301, %302 : vector<8x1xf32>
    %304 = vector.broadcast %296 : vector<8x1xf32> to vector<8x32xf32>
    %305 = arith.subf %292, %304 : vector<8x32xf32>
    %cst_119 = arith.constant 9.99999974E-6 : f32
    %306 = vector.broadcast %cst_119 : f32 to vector<8x1xf32>
    %307 = arith.addf %303, %306 : vector<8x1xf32>
    %308 = math.rsqrt %307 : vector<8x1xf32>
    %309 = vector.broadcast %308 : vector<8x1xf32> to vector<8x32xf32>
    %310 = arith.mulf %305, %309 : vector<8x32xf32>
    %311 = vector.broadcast %11 : vector<1x32xf32> to vector<8x32xf32>
    %312 = arith.mulf %310, %311 : vector<8x32xf32>
    %313 = vector.broadcast %12 : vector<1x32xf32> to vector<8x32xf32>
    %314 = arith.addf %312, %313 : vector<8x32xf32>
    %315 = arith.mulf %288, %314 : vector<8x32xf32>
    %316 = vector.broadcast %231 : vector<8x1xf32> to vector<8x32xf32>
    %317 = arith.mulf %315, %316 : vector<8x32xf32>
    %318 = vector.broadcast %231 : vector<8x1xf32> to vector<8x32xf32>
    %319 = arith.mulf %291, %318 : vector<8x32xf32>
    %c0_120 = arith.constant 0 : index
    %c0_121 = arith.constant 0 : index
    %c0_122 = arith.constant 0 : index
    %320 = vector.load %arg23[%c0_120, %c0_121, %c0_122] : memref<2x8x32xf32, #tpu.memory_space<vmem>>, vector<1x8x32xf32>
    %321 = vector.shape_cast %320 : vector<1x8x32xf32> to vector<8x32xf32>
    %322 = vector.shape_cast %317 : vector<8x32xf32> to vector<1x8x32xf32>
    tpu.vector_store %arg23[%c0_120, %c0_121, %c0_122], %322 {strides = array<i32>} : memref<2x8x32xf32, #tpu.memory_space<vmem>>, vector<1x8x32xf32>,
    %c0_123 = arith.constant 0 : index
    %c0_124 = arith.constant 0 : index
    %c0_125 = arith.constant 0 : index
    %323 = vector.load %arg24[%c0_123, %c0_124, %c0_125] : memref<2x8x32xf32, #tpu.memory_space<vmem>>, vector<1x8x32xf32>
    %324 = vector.shape_cast %323 : vector<1x8x32xf32> to vector<8x32xf32>
    %325 = vector.shape_cast %319 : vector<8x32xf32> to vector<1x8x32xf32>
    tpu.vector_store %arg24[%c0_123, %c0_124, %c0_125], %325 {strides = array<i32>} : memref<2x8x32xf32, #tpu.memory_space<vmem>>, vector<1x8x32xf32>,
    %c1_126 = arith.constant 1 : index
    %c0_127 = arith.constant 0 : index
    %c0_128 = arith.constant 0 : index
    %326 = vector.load %arg23[%c1_126, %c0_127, %c0_128] : memref<2x8x32xf32, #tpu.memory_space<vmem>>, vector<1x8x32xf32>
    %327 = vector.shape_cast %326 : vector<1x8x32xf32> to vector<8x32xf32>
    %c1_129 = arith.constant 1 : index
    %c0_130 = arith.constant 0 : index
    %c0_131 = arith.constant 0 : index
    %328 = vector.load %arg24[%c1_129, %c0_130, %c0_131] : memref<2x8x32xf32, #tpu.memory_space<vmem>>, vector<1x8x32xf32>
    %329 = vector.shape_cast %328 : vector<1x8x32xf32> to vector<8x32xf32>
    %330 = arith.truncf %317 : vector<8x32xf32> to vector<8x32xbf16>
    %cst_132 = arith.constant dense<0.000000e+00> : vector<8x128xf32>
    %331 = tpu.matmul %330, %13, %cst_132 {dimension_numbers = #tpu.dot_dimension_numbers<[1], [0], [0], [1], [0, 0, 1, 1], [], []>} : vector<8x32xbf16>, vector<32x128xbf16>, vector<8x128xf32> -> vector<8x128xf32>
    %332 = vector.broadcast %15 : vector<1x128xf32> to vector<8x128xf32>
    %333 = arith.addf %331, %332 : vector<8x128xf32>
    %334 = arith.truncf %327 : vector<8x32xf32> to vector<8x32xbf16>
    %cst_133 = arith.constant dense<0.000000e+00> : vector<8x128xf32>
    %335 = tpu.matmul %334, %14, %cst_133 {dimension_numbers = #tpu.dot_dimension_numbers<[1], [0], [0], [1], [0, 0, 1, 1], [], []>} : vector<8x32xbf16>, vector<32x128xbf16>, vector<8x128xf32> -> vector<8x128xf32>
    %336 = vector.broadcast %16 : vector<1x128xf32> to vector<8x128xf32>
    %337 = arith.addf %335, %336 : vector<8x128xf32>
    %338 = tpu.concatenate %333, %337 in 0 : vector<8x128xf32>, vector<8x128xf32> -> vector<16x128xf32>
    %cst_134 = arith.constant dense<0.000000e+00> : vector<16xf32>
    %339 = vector.multi_reduction <add>, %338, %cst_134 [1] : vector<16x128xf32> to vector<16xf32>
    %340 = vector.shape_cast %339 : vector<16xf32> to vector<16x1xf32>
    %cst_135 = arith.constant 1.280000e+02 : f32
    %341 = vector.broadcast %cst_135 : f32 to vector<16x1xf32>
    %342 = arith.divf %340, %341 : vector<16x1xf32>
    %343 = vector.broadcast %342 : vector<16x1xf32> to vector<16x128xf32>
    %344 = arith.subf %338, %343 : vector<16x128xf32>
    %345 = arith.mulf %344, %344 : vector<16x128xf32>
    %cst_136 = arith.constant dense<0.000000e+00> : vector<16xf32>
    %346 = vector.multi_reduction <add>, %345, %cst_136 [1] : vector<16x128xf32> to vector<16xf32>
    %347 = vector.shape_cast %346 : vector<16xf32> to vector<16x1xf32>
    %cst_137 = arith.constant 1.280000e+02 : f32
    %348 = vector.broadcast %cst_137 : f32 to vector<16x1xf32>
    %349 = arith.divf %347, %348 : vector<16x1xf32>
    %350 = vector.broadcast %342 : vector<16x1xf32> to vector<16x128xf32>
    %351 = arith.subf %338, %350 : vector<16x128xf32>
    %cst_138 = arith.constant 9.99999974E-6 : f32
    %352 = vector.broadcast %cst_138 : f32 to vector<16x1xf32>
    %353 = arith.addf %349, %352 : vector<16x1xf32>
    %354 = math.rsqrt %353 : vector<16x1xf32>
    %355 = vector.broadcast %354 : vector<16x1xf32> to vector<16x128xf32>
    %356 = arith.mulf %351, %355 : vector<16x128xf32>
    %357 = vector.extract_strided_slice %356 {offsets = [0, 0], sizes = [8, 128], strides = [1, 1]} : vector<16x128xf32> to vector<8x128xf32>
    %358 = vector.broadcast %17 : vector<1x128xf32> to vector<8x128xf32>
    %359 = arith.mulf %357, %358 : vector<8x128xf32>
    %360 = vector.extract_strided_slice %356 {offsets = [8, 0], sizes = [8, 128], strides = [1, 1]} : vector<16x128xf32> to vector<8x128xf32>
    %361 = vector.broadcast %19 : vector<1x128xf32> to vector<8x128xf32>
    %362 = arith.mulf %360, %361 : vector<8x128xf32>
    %363 = arith.addf %359, %362 : vector<8x128xf32>
    %364 = vector.broadcast %23 : vector<1x128xf32> to vector<8x128xf32>
    %365 = arith.addf %363, %364 : vector<8x128xf32>
    %366 = vector.extract_strided_slice %365 {offsets = [0, 0], sizes = [8, 32], strides = [1, 1]} : vector<8x128xf32> to vector<8x32xf32>
    %367 = arith.negf %366 : vector<8x32xf32>
    %368 = math.exp %367 : vector<8x32xf32>
    %cst_139 = arith.constant 1.000000e+00 : f32
    %369 = vector.broadcast %cst_139 : f32 to vector<8x32xf32>
    %370 = arith.addf %369, %368 : vector<8x32xf32>
    %371 = arith.divf %369, %370 : vector<8x32xf32>
    %372 = vector.extract_strided_slice %365 {offsets = [0, 32], sizes = [8, 32], strides = [1, 1]} : vector<8x128xf32> to vector<8x32xf32>
    %373 = arith.negf %372 : vector<8x32xf32>
    %374 = math.exp %373 : vector<8x32xf32>
    %cst_140 = arith.constant 1.000000e+00 : f32
    %375 = vector.broadcast %cst_140 : f32 to vector<8x32xf32>
    %376 = arith.addf %375, %374 : vector<8x32xf32>
    %377 = arith.divf %375, %376 : vector<8x32xf32>
    %378 = vector.extract_strided_slice %365 {offsets = [0, 64], sizes = [8, 32], strides = [1, 1]} : vector<8x128xf32> to vector<8x32xf32>
    %379 = math.tanh %378 : vector<8x32xf32>
    %380 = vector.extract_strided_slice %365 {offsets = [0, 96], sizes = [8, 32], strides = [1, 1]} : vector<8x128xf32> to vector<8x32xf32>
    %381 = arith.negf %380 : vector<8x32xf32>
    %382 = math.exp %381 : vector<8x32xf32>
    %cst_141 = arith.constant 1.000000e+00 : f32
    %383 = vector.broadcast %cst_141 : f32 to vector<8x32xf32>
    %384 = arith.addf %383, %382 : vector<8x32xf32>
    %385 = arith.divf %383, %384 : vector<8x32xf32>
    %386 = arith.mulf %377, %329 : vector<8x32xf32>
    %387 = arith.mulf %371, %379 : vector<8x32xf32>
    %388 = arith.addf %386, %387 : vector<8x32xf32>
    %389 = math.tanh %388 : vector<8x32xf32>
    %cst_142 = arith.constant dense<0.000000e+00> : vector<8xf32>
    %390 = vector.multi_reduction <add>, %389, %cst_142 [1] : vector<8x32xf32> to vector<8xf32>
    %391 = vector.shape_cast %390 : vector<8xf32> to vector<8x1xf32>
    %cst_143 = arith.constant 3.200000e+01 : f32
    %392 = vector.broadcast %cst_143 : f32 to vector<8x1xf32>
    %393 = arith.divf %391, %392 : vector<8x1xf32>
    %394 = vector.broadcast %393 : vector<8x1xf32> to vector<8x32xf32>
    %395 = arith.subf %389, %394 : vector<8x32xf32>
    %396 = arith.mulf %395, %395 : vector<8x32xf32>
    %cst_144 = arith.constant dense<0.000000e+00> : vector<8xf32>
    %397 = vector.multi_reduction <add>, %396, %cst_144 [1] : vector<8x32xf32> to vector<8xf32>
    %398 = vector.shape_cast %397 : vector<8xf32> to vector<8x1xf32>
    %cst_145 = arith.constant 3.200000e+01 : f32
    %399 = vector.broadcast %cst_145 : f32 to vector<8x1xf32>
    %400 = arith.divf %398, %399 : vector<8x1xf32>
    %401 = vector.broadcast %393 : vector<8x1xf32> to vector<8x32xf32>
    %402 = arith.subf %389, %401 : vector<8x32xf32>
    %cst_146 = arith.constant 9.99999974E-6 : f32
    %403 = vector.broadcast %cst_146 : f32 to vector<8x1xf32>
    %404 = arith.addf %400, %403 : vector<8x1xf32>
    %405 = math.rsqrt %404 : vector<8x1xf32>
    %406 = vector.broadcast %405 : vector<8x1xf32> to vector<8x32xf32>
    %407 = arith.mulf %402, %406 : vector<8x32xf32>
    %408 = vector.broadcast %21 : vector<1x32xf32> to vector<8x32xf32>
    %409 = arith.mulf %407, %408 : vector<8x32xf32>
    %410 = vector.broadcast %22 : vector<1x32xf32> to vector<8x32xf32>
    %411 = arith.addf %409, %410 : vector<8x32xf32>
    %412 = arith.mulf %385, %411 : vector<8x32xf32>
    %413 = vector.broadcast %231 : vector<8x1xf32> to vector<8x32xf32>
    %414 = arith.mulf %412, %413 : vector<8x32xf32>
    %415 = vector.broadcast %231 : vector<8x1xf32> to vector<8x32xf32>
    %416 = arith.mulf %388, %415 : vector<8x32xf32>
    %c1_147 = arith.constant 1 : index
    %c0_148 = arith.constant 0 : index
    %c0_149 = arith.constant 0 : index
    %417 = vector.load %arg23[%c1_147, %c0_148, %c0_149] : memref<2x8x32xf32, #tpu.memory_space<vmem>>, vector<1x8x32xf32>
    %418 = vector.shape_cast %417 : vector<1x8x32xf32> to vector<8x32xf32>
    %419 = vector.shape_cast %414 : vector<8x32xf32> to vector<1x8x32xf32>
    tpu.vector_store %arg23[%c1_147, %c0_148, %c0_149], %419 {strides = array<i32>} : memref<2x8x32xf32, #tpu.memory_space<vmem>>, vector<1x8x32xf32>,
    %c1_150 = arith.constant 1 : index
    %c0_151 = arith.constant 0 : index
    %c0_152 = arith.constant 0 : index
    %420 = vector.load %arg24[%c1_150, %c0_151, %c0_152] : memref<2x8x32xf32, #tpu.memory_space<vmem>>, vector<1x8x32xf32>
    %421 = vector.shape_cast %420 : vector<1x8x32xf32> to vector<8x32xf32>
    %422 = vector.shape_cast %416 : vector<8x32xf32> to vector<1x8x32xf32>
    tpu.vector_store %arg24[%c1_150, %c0_151, %c0_152], %422 {strides = array<i32>} : memref<2x8x32xf32, #tpu.memory_space<vmem>>, vector<1x8x32xf32>,
    %c1_153 = arith.constant 1 : index
    %c0_154 = arith.constant 0 : index
    %c0_155 = arith.constant 0 : index
    %423 = vector.load %arg20[%c1_153, %c0_154, %c0_155] : memref<4x8x32xf32, #tpu.memory_space<vmem>>, vector<1x8x32xf32>
    %424 = vector.shape_cast %423 : vector<1x8x32xf32> to vector<8x32xf32>
    %425 = vector.shape_cast %414 : vector<8x32xf32> to vector<1x8x32xf32>
    tpu.vector_store %arg20[%c1_153, %c0_154, %c0_155], %425 {strides = array<i32>} : memref<4x8x32xf32, #tpu.memory_space<vmem>>, vector<1x8x32xf32>,
    %426 = arith.extui %6 : i1 to i32
    %c0_i32_156 = arith.constant 0 : i32
    %427 = arith.cmpi ne, %426, %c0_i32_156 : i32
    scf.if %427 {
      %c0_279 = arith.constant 0 : index
      %c0_280 = arith.constant 0 : index
      %c0_281 = arith.constant 0 : index
      %832 = vector.load %arg21[%c0_279, %c0_280, %c0_281] : memref<2x8x32xf32, #tpu.memory_space<vmem>>, vector<1x8x32xf32>
      %833 = vector.shape_cast %832 : vector<1x8x32xf32> to vector<8x32xf32>
      %834 = vector.shape_cast %235 : vector<8x1xi1> to vector<8x1xi1>
      %835 = vector.broadcast %834 : vector<8x1xi1> to vector<8x32xi1>
      %836 = arith.select %835, %317, %833 : vector<8x32xi1>, vector<8x32xf32>
      %c0_282 = arith.constant 0 : index
      %c0_283 = arith.constant 0 : index
      %c0_284 = arith.constant 0 : index
      %837 = vector.load %arg21[%c0_282, %c0_283, %c0_284] : memref<2x8x32xf32, #tpu.memory_space<vmem>>, vector<1x8x32xf32>
      %838 = vector.shape_cast %837 : vector<1x8x32xf32> to vector<8x32xf32>
      %839 = vector.shape_cast %836 : vector<8x32xf32> to vector<1x8x32xf32>
      tpu.vector_store %arg21[%c0_282, %c0_283, %c0_284], %839 {strides = array<i32>} : memref<2x8x32xf32, #tpu.memory_space<vmem>>, vector<1x8x32xf32>,
      %c0_285 = arith.constant 0 : index
      %c0_286 = arith.constant 0 : index
      %c0_287 = arith.constant 0 : index
      %840 = vector.load %arg22[%c0_285, %c0_286, %c0_287] : memref<2x8x32xf32, #tpu.memory_space<vmem>>, vector<1x8x32xf32>
      %841 = vector.shape_cast %840 : vector<1x8x32xf32> to vector<8x32xf32>
      %842 = vector.shape_cast %235 : vector<8x1xi1> to vector<8x1xi1>
      %843 = vector.broadcast %842 : vector<8x1xi1> to vector<8x32xi1>
      %844 = arith.select %843, %319, %841 : vector<8x32xi1>, vector<8x32xf32>
      %c0_288 = arith.constant 0 : index
      %c0_289 = arith.constant 0 : index
      %c0_290 = arith.constant 0 : index
      %845 = vector.load %arg22[%c0_288, %c0_289, %c0_290] : memref<2x8x32xf32, #tpu.memory_space<vmem>>, vector<1x8x32xf32>
      %846 = vector.shape_cast %845 : vector<1x8x32xf32> to vector<8x32xf32>
      %847 = vector.shape_cast %844 : vector<8x32xf32> to vector<1x8x32xf32>
      tpu.vector_store %arg22[%c0_288, %c0_289, %c0_290], %847 {strides = array<i32>} : memref<2x8x32xf32, #tpu.memory_space<vmem>>, vector<1x8x32xf32>,
      %c1_291 = arith.constant 1 : index
      %c0_292 = arith.constant 0 : index
      %c0_293 = arith.constant 0 : index
      %848 = vector.load %arg21[%c1_291, %c0_292, %c0_293] : memref<2x8x32xf32, #tpu.memory_space<vmem>>, vector<1x8x32xf32>
      %849 = vector.shape_cast %848 : vector<1x8x32xf32> to vector<8x32xf32>
      %850 = vector.shape_cast %235 : vector<8x1xi1> to vector<8x1xi1>
      %851 = vector.broadcast %850 : vector<8x1xi1> to vector<8x32xi1>
      %852 = arith.select %851, %414, %849 : vector<8x32xi1>, vector<8x32xf32>
      %c1_294 = arith.constant 1 : index
      %c0_295 = arith.constant 0 : index
      %c0_296 = arith.constant 0 : index
      %853 = vector.load %arg21[%c1_294, %c0_295, %c0_296] : memref<2x8x32xf32, #tpu.memory_space<vmem>>, vector<1x8x32xf32>
      %854 = vector.shape_cast %853 : vector<1x8x32xf32> to vector<8x32xf32>
      %855 = vector.shape_cast %852 : vector<8x32xf32> to vector<1x8x32xf32>
      tpu.vector_store %arg21[%c1_294, %c0_295, %c0_296], %855 {strides = array<i32>} : memref<2x8x32xf32, #tpu.memory_space<vmem>>, vector<1x8x32xf32>,
      %c1_297 = arith.constant 1 : index
      %c0_298 = arith.constant 0 : index
      %c0_299 = arith.constant 0 : index
      %856 = vector.load %arg22[%c1_297, %c0_298, %c0_299] : memref<2x8x32xf32, #tpu.memory_space<vmem>>, vector<1x8x32xf32>
      %857 = vector.shape_cast %856 : vector<1x8x32xf32> to vector<8x32xf32>
      %858 = vector.shape_cast %235 : vector<8x1xi1> to vector<8x1xi1>
      %859 = vector.broadcast %858 : vector<8x1xi1> to vector<8x32xi1>
      %860 = arith.select %859, %416, %857 : vector<8x32xi1>, vector<8x32xf32>
      %c1_300 = arith.constant 1 : index
      %c0_301 = arith.constant 0 : index
      %c0_302 = arith.constant 0 : index
      %861 = vector.load %arg22[%c1_300, %c0_301, %c0_302] : memref<2x8x32xf32, #tpu.memory_space<vmem>>, vector<1x8x32xf32>
      %862 = vector.shape_cast %861 : vector<1x8x32xf32> to vector<8x32xf32>
      %863 = vector.shape_cast %860 : vector<8x32xf32> to vector<1x8x32xf32>
      tpu.vector_store %arg22[%c1_300, %c0_301, %c0_302], %863 {strides = array<i32>} : memref<2x8x32xf32, #tpu.memory_space<vmem>>, vector<1x8x32xf32>,
    } else {
    }
    %c4_i32_157 = arith.constant 4 : i32
    %428 = arith.muli %arg0, %c4_i32_157 : i32
    %c2_i32 = arith.constant 2 : i32
    %429 = arith.addi %428, %c2_i32 : i32
    %430 = vector.broadcast %429 : i32 to vector<8x1xi32>
    %431 = arith.cmpi slt, %430, %3 : vector<8x1xi32>
    %432 = arith.extui %431 : vector<8x1xi1> to vector<8x1xi32>
    %433 = arith.sitofp %432 : vector<8x1xi32> to vector<8x1xf32>
    %c1_i32_158 = arith.constant 1 : i32
    %434 = vector.broadcast %c1_i32_158 : i32 to vector<8x1xi32>
    %435 = arith.subi %3, %434 : vector<8x1xi32>
    %436 = vector.broadcast %429 : i32 to vector<8x1xi32>
    %437 = arith.cmpi eq, %436, %435 : vector<8x1xi32>
    %c0_159 = arith.constant 0 : index
    %c0_160 = arith.constant 0 : index
    %c0_161 = arith.constant 0 : index
    %438 = vector.load %arg23[%c0_159, %c0_160, %c0_161] : memref<2x8x32xf32, #tpu.memory_space<vmem>>, vector<1x8x32xf32>
    %439 = vector.shape_cast %438 : vector<1x8x32xf32> to vector<8x32xf32>
    %c0_162 = arith.constant 0 : index
    %c0_163 = arith.constant 0 : index
    %c0_164 = arith.constant 0 : index
    %440 = vector.load %arg24[%c0_162, %c0_163, %c0_164] : memref<2x8x32xf32, #tpu.memory_space<vmem>>, vector<1x8x32xf32>
    %441 = vector.shape_cast %440 : vector<1x8x32xf32> to vector<8x32xf32>
    %442 = arith.truncf %439 : vector<8x32xf32> to vector<8x32xbf16>
    %cst_165 = arith.constant dense<0.000000e+00> : vector<8x128xf32>
    %443 = tpu.matmul %442, %7, %cst_165 {dimension_numbers = #tpu.dot_dimension_numbers<[1], [0], [0], [1], [0, 0, 1, 1], [], []>} : vector<8x32xbf16>, vector<32x128xbf16>, vector<8x128xf32> -> vector<8x128xf32>
    %444 = vector.broadcast %8 : vector<1x128xf32> to vector<8x128xf32>
    %445 = arith.addf %443, %444 : vector<8x128xf32>
    %c2 = arith.constant 2 : index
    %c0_166 = arith.constant 0 : index
    %c0_167 = arith.constant 0 : index
    %446 = vector.load %arg2[%c2, %c0_166, %c0_167] : memref<4x8x128xf32, #tpu.memory_space<vmem>>, vector<1x8x128xf32>
    %447 = vector.shape_cast %446 : vector<1x8x128xf32> to vector<8x128xf32>
    %cst_168 = arith.constant dense<0.000000e+00> : vector<8xf32>
    %448 = vector.multi_reduction <add>, %445, %cst_168 [1] : vector<8x128xf32> to vector<8xf32>
    %449 = vector.shape_cast %448 : vector<8xf32> to vector<8x1xf32>
    %cst_169 = arith.constant 1.280000e+02 : f32
    %450 = vector.broadcast %cst_169 : f32 to vector<8x1xf32>
    %451 = arith.divf %449, %450 : vector<8x1xf32>
    %452 = vector.broadcast %451 : vector<8x1xf32> to vector<8x128xf32>
    %453 = arith.subf %445, %452 : vector<8x128xf32>
    %454 = arith.mulf %453, %453 : vector<8x128xf32>
    %cst_170 = arith.constant dense<0.000000e+00> : vector<8xf32>
    %455 = vector.multi_reduction <add>, %454, %cst_170 [1] : vector<8x128xf32> to vector<8xf32>
    %456 = vector.shape_cast %455 : vector<8xf32> to vector<8x1xf32>
    %cst_171 = arith.constant 1.280000e+02 : f32
    %457 = vector.broadcast %cst_171 : f32 to vector<8x1xf32>
    %458 = arith.divf %456, %457 : vector<8x1xf32>
    %459 = vector.broadcast %451 : vector<8x1xf32> to vector<8x128xf32>
    %460 = arith.subf %445, %459 : vector<8x128xf32>
    %cst_172 = arith.constant 9.99999974E-6 : f32
    %461 = vector.broadcast %cst_172 : f32 to vector<8x1xf32>
    %462 = arith.addf %458, %461 : vector<8x1xf32>
    %463 = math.rsqrt %462 : vector<8x1xf32>
    %464 = vector.broadcast %463 : vector<8x1xf32> to vector<8x128xf32>
    %465 = arith.mulf %460, %464 : vector<8x128xf32>
    %466 = vector.broadcast %9 : vector<1x128xf32> to vector<8x128xf32>
    %467 = arith.mulf %465, %466 : vector<8x128xf32>
    %468 = vector.broadcast %10 : vector<1x128xf32> to vector<8x128xf32>
    %469 = arith.addf %467, %468 : vector<8x128xf32>
    %470 = arith.addf %447, %469 : vector<8x128xf32>
    %471 = vector.extract_strided_slice %470 {offsets = [0, 0], sizes = [8, 32], strides = [1, 1]} : vector<8x128xf32> to vector<8x32xf32>
    %472 = arith.negf %471 : vector<8x32xf32>
    %473 = math.exp %472 : vector<8x32xf32>
    %cst_173 = arith.constant 1.000000e+00 : f32
    %474 = vector.broadcast %cst_173 : f32 to vector<8x32xf32>
    %475 = arith.addf %474, %473 : vector<8x32xf32>
    %476 = arith.divf %474, %475 : vector<8x32xf32>
    %477 = vector.extract_strided_slice %470 {offsets = [0, 32], sizes = [8, 32], strides = [1, 1]} : vector<8x128xf32> to vector<8x32xf32>
    %478 = arith.negf %477 : vector<8x32xf32>
    %479 = math.exp %478 : vector<8x32xf32>
    %cst_174 = arith.constant 1.000000e+00 : f32
    %480 = vector.broadcast %cst_174 : f32 to vector<8x32xf32>
    %481 = arith.addf %480, %479 : vector<8x32xf32>
    %482 = arith.divf %480, %481 : vector<8x32xf32>
    %483 = vector.extract_strided_slice %470 {offsets = [0, 64], sizes = [8, 32], strides = [1, 1]} : vector<8x128xf32> to vector<8x32xf32>
    %484 = math.tanh %483 : vector<8x32xf32>
    %485 = vector.extract_strided_slice %470 {offsets = [0, 96], sizes = [8, 32], strides = [1, 1]} : vector<8x128xf32> to vector<8x32xf32>
    %486 = arith.negf %485 : vector<8x32xf32>
    %487 = math.exp %486 : vector<8x32xf32>
    %cst_175 = arith.constant 1.000000e+00 : f32
    %488 = vector.broadcast %cst_175 : f32 to vector<8x32xf32>
    %489 = arith.addf %488, %487 : vector<8x32xf32>
    %490 = arith.divf %488, %489 : vector<8x32xf32>
    %491 = arith.mulf %482, %441 : vector<8x32xf32>
    %492 = arith.mulf %476, %484 : vector<8x32xf32>
    %493 = arith.addf %491, %492 : vector<8x32xf32>
    %494 = math.tanh %493 : vector<8x32xf32>
    %cst_176 = arith.constant dense<0.000000e+00> : vector<8xf32>
    %495 = vector.multi_reduction <add>, %494, %cst_176 [1] : vector<8x32xf32> to vector<8xf32>
    %496 = vector.shape_cast %495 : vector<8xf32> to vector<8x1xf32>
    %cst_177 = arith.constant 3.200000e+01 : f32
    %497 = vector.broadcast %cst_177 : f32 to vector<8x1xf32>
    %498 = arith.divf %496, %497 : vector<8x1xf32>
    %499 = vector.broadcast %498 : vector<8x1xf32> to vector<8x32xf32>
    %500 = arith.subf %494, %499 : vector<8x32xf32>
    %501 = arith.mulf %500, %500 : vector<8x32xf32>
    %cst_178 = arith.constant dense<0.000000e+00> : vector<8xf32>
    %502 = vector.multi_reduction <add>, %501, %cst_178 [1] : vector<8x32xf32> to vector<8xf32>
    %503 = vector.shape_cast %502 : vector<8xf32> to vector<8x1xf32>
    %cst_179 = arith.constant 3.200000e+01 : f32
    %504 = vector.broadcast %cst_179 : f32 to vector<8x1xf32>
    %505 = arith.divf %503, %504 : vector<8x1xf32>
    %506 = vector.broadcast %498 : vector<8x1xf32> to vector<8x32xf32>
    %507 = arith.subf %494, %506 : vector<8x32xf32>
    %cst_180 = arith.constant 9.99999974E-6 : f32
    %508 = vector.broadcast %cst_180 : f32 to vector<8x1xf32>
    %509 = arith.addf %505, %508 : vector<8x1xf32>
    %510 = math.rsqrt %509 : vector<8x1xf32>
    %511 = vector.broadcast %510 : vector<8x1xf32> to vector<8x32xf32>
    %512 = arith.mulf %507, %511 : vector<8x32xf32>
    %513 = vector.broadcast %11 : vector<1x32xf32> to vector<8x32xf32>
    %514 = arith.mulf %512, %513 : vector<8x32xf32>
    %515 = vector.broadcast %12 : vector<1x32xf32> to vector<8x32xf32>
    %516 = arith.addf %514, %515 : vector<8x32xf32>
    %517 = arith.mulf %490, %516 : vector<8x32xf32>
    %518 = vector.broadcast %433 : vector<8x1xf32> to vector<8x32xf32>
    %519 = arith.mulf %517, %518 : vector<8x32xf32>
    %520 = vector.broadcast %433 : vector<8x1xf32> to vector<8x32xf32>
    %521 = arith.mulf %493, %520 : vector<8x32xf32>
    %c0_181 = arith.constant 0 : index
    %c0_182 = arith.constant 0 : index
    %c0_183 = arith.constant 0 : index
    %522 = vector.load %arg23[%c0_181, %c0_182, %c0_183] : memref<2x8x32xf32, #tpu.memory_space<vmem>>, vector<1x8x32xf32>
    %523 = vector.shape_cast %522 : vector<1x8x32xf32> to vector<8x32xf32>
    %524 = vector.shape_cast %519 : vector<8x32xf32> to vector<1x8x32xf32>
    tpu.vector_store %arg23[%c0_181, %c0_182, %c0_183], %524 {strides = array<i32>} : memref<2x8x32xf32, #tpu.memory_space<vmem>>, vector<1x8x32xf32>,
    %c0_184 = arith.constant 0 : index
    %c0_185 = arith.constant 0 : index
    %c0_186 = arith.constant 0 : index
    %525 = vector.load %arg24[%c0_184, %c0_185, %c0_186] : memref<2x8x32xf32, #tpu.memory_space<vmem>>, vector<1x8x32xf32>
    %526 = vector.shape_cast %525 : vector<1x8x32xf32> to vector<8x32xf32>
    %527 = vector.shape_cast %521 : vector<8x32xf32> to vector<1x8x32xf32>
    tpu.vector_store %arg24[%c0_184, %c0_185, %c0_186], %527 {strides = array<i32>} : memref<2x8x32xf32, #tpu.memory_space<vmem>>, vector<1x8x32xf32>,
    %c1_187 = arith.constant 1 : index
    %c0_188 = arith.constant 0 : index
    %c0_189 = arith.constant 0 : index
    %528 = vector.load %arg23[%c1_187, %c0_188, %c0_189] : memref<2x8x32xf32, #tpu.memory_space<vmem>>, vector<1x8x32xf32>
    %529 = vector.shape_cast %528 : vector<1x8x32xf32> to vector<8x32xf32>
    %c1_190 = arith.constant 1 : index
    %c0_191 = arith.constant 0 : index
    %c0_192 = arith.constant 0 : index
    %530 = vector.load %arg24[%c1_190, %c0_191, %c0_192] : memref<2x8x32xf32, #tpu.memory_space<vmem>>, vector<1x8x32xf32>
    %531 = vector.shape_cast %530 : vector<1x8x32xf32> to vector<8x32xf32>
    %532 = arith.truncf %519 : vector<8x32xf32> to vector<8x32xbf16>
    %cst_193 = arith.constant dense<0.000000e+00> : vector<8x128xf32>
    %533 = tpu.matmul %532, %13, %cst_193 {dimension_numbers = #tpu.dot_dimension_numbers<[1], [0], [0], [1], [0, 0, 1, 1], [], []>} : vector<8x32xbf16>, vector<32x128xbf16>, vector<8x128xf32> -> vector<8x128xf32>
    %534 = vector.broadcast %15 : vector<1x128xf32> to vector<8x128xf32>
    %535 = arith.addf %533, %534 : vector<8x128xf32>
    %536 = arith.truncf %529 : vector<8x32xf32> to vector<8x32xbf16>
    %cst_194 = arith.constant dense<0.000000e+00> : vector<8x128xf32>
    %537 = tpu.matmul %536, %14, %cst_194 {dimension_numbers = #tpu.dot_dimension_numbers<[1], [0], [0], [1], [0, 0, 1, 1], [], []>} : vector<8x32xbf16>, vector<32x128xbf16>, vector<8x128xf32> -> vector<8x128xf32>
    %538 = vector.broadcast %16 : vector<1x128xf32> to vector<8x128xf32>
    %539 = arith.addf %537, %538 : vector<8x128xf32>
    %540 = tpu.concatenate %535, %539 in 0 : vector<8x128xf32>, vector<8x128xf32> -> vector<16x128xf32>
    %cst_195 = arith.constant dense<0.000000e+00> : vector<16xf32>
    %541 = vector.multi_reduction <add>, %540, %cst_195 [1] : vector<16x128xf32> to vector<16xf32>
    %542 = vector.shape_cast %541 : vector<16xf32> to vector<16x1xf32>
    %cst_196 = arith.constant 1.280000e+02 : f32
    %543 = vector.broadcast %cst_196 : f32 to vector<16x1xf32>
    %544 = arith.divf %542, %543 : vector<16x1xf32>
    %545 = vector.broadcast %544 : vector<16x1xf32> to vector<16x128xf32>
    %546 = arith.subf %540, %545 : vector<16x128xf32>
    %547 = arith.mulf %546, %546 : vector<16x128xf32>
    %cst_197 = arith.constant dense<0.000000e+00> : vector<16xf32>
    %548 = vector.multi_reduction <add>, %547, %cst_197 [1] : vector<16x128xf32> to vector<16xf32>
    %549 = vector.shape_cast %548 : vector<16xf32> to vector<16x1xf32>
    %cst_198 = arith.constant 1.280000e+02 : f32
    %550 = vector.broadcast %cst_198 : f32 to vector<16x1xf32>
    %551 = arith.divf %549, %550 : vector<16x1xf32>
    %552 = vector.broadcast %544 : vector<16x1xf32> to vector<16x128xf32>
    %553 = arith.subf %540, %552 : vector<16x128xf32>
    %cst_199 = arith.constant 9.99999974E-6 : f32
    %554 = vector.broadcast %cst_199 : f32 to vector<16x1xf32>
    %555 = arith.addf %551, %554 : vector<16x1xf32>
    %556 = math.rsqrt %555 : vector<16x1xf32>
    %557 = vector.broadcast %556 : vector<16x1xf32> to vector<16x128xf32>
    %558 = arith.mulf %553, %557 : vector<16x128xf32>
    %559 = vector.extract_strided_slice %558 {offsets = [0, 0], sizes = [8, 128], strides = [1, 1]} : vector<16x128xf32> to vector<8x128xf32>
    %560 = vector.broadcast %17 : vector<1x128xf32> to vector<8x128xf32>
    %561 = arith.mulf %559, %560 : vector<8x128xf32>
    %562 = vector.extract_strided_slice %558 {offsets = [8, 0], sizes = [8, 128], strides = [1, 1]} : vector<16x128xf32> to vector<8x128xf32>
    %563 = vector.broadcast %19 : vector<1x128xf32> to vector<8x128xf32>
    %564 = arith.mulf %562, %563 : vector<8x128xf32>
    %565 = arith.addf %561, %564 : vector<8x128xf32>
    %566 = vector.broadcast %23 : vector<1x128xf32> to vector<8x128xf32>
    %567 = arith.addf %565, %566 : vector<8x128xf32>
    %568 = vector.extract_strided_slice %567 {offsets = [0, 0], sizes = [8, 32], strides = [1, 1]} : vector<8x128xf32> to vector<8x32xf32>
    %569 = arith.negf %568 : vector<8x32xf32>
    %570 = math.exp %569 : vector<8x32xf32>
    %cst_200 = arith.constant 1.000000e+00 : f32
    %571 = vector.broadcast %cst_200 : f32 to vector<8x32xf32>
    %572 = arith.addf %571, %570 : vector<8x32xf32>
    %573 = arith.divf %571, %572 : vector<8x32xf32>
    %574 = vector.extract_strided_slice %567 {offsets = [0, 32], sizes = [8, 32], strides = [1, 1]} : vector<8x128xf32> to vector<8x32xf32>
    %575 = arith.negf %574 : vector<8x32xf32>
    %576 = math.exp %575 : vector<8x32xf32>
    %cst_201 = arith.constant 1.000000e+00 : f32
    %577 = vector.broadcast %cst_201 : f32 to vector<8x32xf32>
    %578 = arith.addf %577, %576 : vector<8x32xf32>
    %579 = arith.divf %577, %578 : vector<8x32xf32>
    %580 = vector.extract_strided_slice %567 {offsets = [0, 64], sizes = [8, 32], strides = [1, 1]} : vector<8x128xf32> to vector<8x32xf32>
    %581 = math.tanh %580 : vector<8x32xf32>
    %582 = vector.extract_strided_slice %567 {offsets = [0, 96], sizes = [8, 32], strides = [1, 1]} : vector<8x128xf32> to vector<8x32xf32>
    %583 = arith.negf %582 : vector<8x32xf32>
    %584 = math.exp %583 : vector<8x32xf32>
    %cst_202 = arith.constant 1.000000e+00 : f32
    %585 = vector.broadcast %cst_202 : f32 to vector<8x32xf32>
    %586 = arith.addf %585, %584 : vector<8x32xf32>
    %587 = arith.divf %585, %586 : vector<8x32xf32>
    %588 = arith.mulf %579, %531 : vector<8x32xf32>
    %589 = arith.mulf %573, %581 : vector<8x32xf32>
    %590 = arith.addf %588, %589 : vector<8x32xf32>
    %591 = math.tanh %590 : vector<8x32xf32>
    %cst_203 = arith.constant dense<0.000000e+00> : vector<8xf32>
    %592 = vector.multi_reduction <add>, %591, %cst_203 [1] : vector<8x32xf32> to vector<8xf32>
    %593 = vector.shape_cast %592 : vector<8xf32> to vector<8x1xf32>
    %cst_204 = arith.constant 3.200000e+01 : f32
    %594 = vector.broadcast %cst_204 : f32 to vector<8x1xf32>
    %595 = arith.divf %593, %594 : vector<8x1xf32>
    %596 = vector.broadcast %595 : vector<8x1xf32> to vector<8x32xf32>
    %597 = arith.subf %591, %596 : vector<8x32xf32>
    %598 = arith.mulf %597, %597 : vector<8x32xf32>
    %cst_205 = arith.constant dense<0.000000e+00> : vector<8xf32>
    %599 = vector.multi_reduction <add>, %598, %cst_205 [1] : vector<8x32xf32> to vector<8xf32>
    %600 = vector.shape_cast %599 : vector<8xf32> to vector<8x1xf32>
    %cst_206 = arith.constant 3.200000e+01 : f32
    %601 = vector.broadcast %cst_206 : f32 to vector<8x1xf32>
    %602 = arith.divf %600, %601 : vector<8x1xf32>
    %603 = vector.broadcast %595 : vector<8x1xf32> to vector<8x32xf32>
    %604 = arith.subf %591, %603 : vector<8x32xf32>
    %cst_207 = arith.constant 9.99999974E-6 : f32
    %605 = vector.broadcast %cst_207 : f32 to vector<8x1xf32>
    %606 = arith.addf %602, %605 : vector<8x1xf32>
    %607 = math.rsqrt %606 : vector<8x1xf32>
    %608 = vector.broadcast %607 : vector<8x1xf32> to vector<8x32xf32>
    %609 = arith.mulf %604, %608 : vector<8x32xf32>
    %610 = vector.broadcast %21 : vector<1x32xf32> to vector<8x32xf32>
    %611 = arith.mulf %609, %610 : vector<8x32xf32>
    %612 = vector.broadcast %22 : vector<1x32xf32> to vector<8x32xf32>
    %613 = arith.addf %611, %612 : vector<8x32xf32>
    %614 = arith.mulf %587, %613 : vector<8x32xf32>
    %615 = vector.broadcast %433 : vector<8x1xf32> to vector<8x32xf32>
    %616 = arith.mulf %614, %615 : vector<8x32xf32>
    %617 = vector.broadcast %433 : vector<8x1xf32> to vector<8x32xf32>
    %618 = arith.mulf %590, %617 : vector<8x32xf32>
    %c1_208 = arith.constant 1 : index
    %c0_209 = arith.constant 0 : index
    %c0_210 = arith.constant 0 : index
    %619 = vector.load %arg23[%c1_208, %c0_209, %c0_210] : memref<2x8x32xf32, #tpu.memory_space<vmem>>, vector<1x8x32xf32>
    %620 = vector.shape_cast %619 : vector<1x8x32xf32> to vector<8x32xf32>
    %621 = vector.shape_cast %616 : vector<8x32xf32> to vector<1x8x32xf32>
    tpu.vector_store %arg23[%c1_208, %c0_209, %c0_210], %621 {strides = array<i32>} : memref<2x8x32xf32, #tpu.memory_space<vmem>>, vector<1x8x32xf32>,
    %c1_211 = arith.constant 1 : index
    %c0_212 = arith.constant 0 : index
    %c0_213 = arith.constant 0 : index
    %622 = vector.load %arg24[%c1_211, %c0_212, %c0_213] : memref<2x8x32xf32, #tpu.memory_space<vmem>>, vector<1x8x32xf32>
    %623 = vector.shape_cast %622 : vector<1x8x32xf32> to vector<8x32xf32>
    %624 = vector.shape_cast %618 : vector<8x32xf32> to vector<1x8x32xf32>
    tpu.vector_store %arg24[%c1_211, %c0_212, %c0_213], %624 {strides = array<i32>} : memref<2x8x32xf32, #tpu.memory_space<vmem>>, vector<1x8x32xf32>,
    %c2_214 = arith.constant 2 : index
    %c0_215 = arith.constant 0 : index
    %c0_216 = arith.constant 0 : index
    %625 = vector.load %arg20[%c2_214, %c0_215, %c0_216] : memref<4x8x32xf32, #tpu.memory_space<vmem>>, vector<1x8x32xf32>
    %626 = vector.shape_cast %625 : vector<1x8x32xf32> to vector<8x32xf32>
    %627 = vector.shape_cast %616 : vector<8x32xf32> to vector<1x8x32xf32>
    tpu.vector_store %arg20[%c2_214, %c0_215, %c0_216], %627 {strides = array<i32>} : memref<4x8x32xf32, #tpu.memory_space<vmem>>, vector<1x8x32xf32>,
    %628 = arith.extui %6 : i1 to i32
    %c0_i32_217 = arith.constant 0 : i32
    %629 = arith.cmpi ne, %628, %c0_i32_217 : i32
    scf.if %629 {
      %c0_279 = arith.constant 0 : index
      %c0_280 = arith.constant 0 : index
      %c0_281 = arith.constant 0 : index
      %832 = vector.load %arg21[%c0_279, %c0_280, %c0_281] : memref<2x8x32xf32, #tpu.memory_space<vmem>>, vector<1x8x32xf32>
      %833 = vector.shape_cast %832 : vector<1x8x32xf32> to vector<8x32xf32>
      %834 = vector.shape_cast %437 : vector<8x1xi1> to vector<8x1xi1>
      %835 = vector.broadcast %834 : vector<8x1xi1> to vector<8x32xi1>
      %836 = arith.select %835, %519, %833 : vector<8x32xi1>, vector<8x32xf32>
      %c0_282 = arith.constant 0 : index
      %c0_283 = arith.constant 0 : index
      %c0_284 = arith.constant 0 : index
      %837 = vector.load %arg21[%c0_282, %c0_283, %c0_284] : memref<2x8x32xf32, #tpu.memory_space<vmem>>, vector<1x8x32xf32>
      %838 = vector.shape_cast %837 : vector<1x8x32xf32> to vector<8x32xf32>
      %839 = vector.shape_cast %836 : vector<8x32xf32> to vector<1x8x32xf32>
      tpu.vector_store %arg21[%c0_282, %c0_283, %c0_284], %839 {strides = array<i32>} : memref<2x8x32xf32, #tpu.memory_space<vmem>>, vector<1x8x32xf32>,
      %c0_285 = arith.constant 0 : index
      %c0_286 = arith.constant 0 : index
      %c0_287 = arith.constant 0 : index
      %840 = vector.load %arg22[%c0_285, %c0_286, %c0_287] : memref<2x8x32xf32, #tpu.memory_space<vmem>>, vector<1x8x32xf32>
      %841 = vector.shape_cast %840 : vector<1x8x32xf32> to vector<8x32xf32>
      %842 = vector.shape_cast %437 : vector<8x1xi1> to vector<8x1xi1>
      %843 = vector.broadcast %842 : vector<8x1xi1> to vector<8x32xi1>
      %844 = arith.select %843, %521, %841 : vector<8x32xi1>, vector<8x32xf32>
      %c0_288 = arith.constant 0 : index
      %c0_289 = arith.constant 0 : index
      %c0_290 = arith.constant 0 : index
      %845 = vector.load %arg22[%c0_288, %c0_289, %c0_290] : memref<2x8x32xf32, #tpu.memory_space<vmem>>, vector<1x8x32xf32>
      %846 = vector.shape_cast %845 : vector<1x8x32xf32> to vector<8x32xf32>
      %847 = vector.shape_cast %844 : vector<8x32xf32> to vector<1x8x32xf32>
      tpu.vector_store %arg22[%c0_288, %c0_289, %c0_290], %847 {strides = array<i32>} : memref<2x8x32xf32, #tpu.memory_space<vmem>>, vector<1x8x32xf32>,
      %c1_291 = arith.constant 1 : index
      %c0_292 = arith.constant 0 : index
      %c0_293 = arith.constant 0 : index
      %848 = vector.load %arg21[%c1_291, %c0_292, %c0_293] : memref<2x8x32xf32, #tpu.memory_space<vmem>>, vector<1x8x32xf32>
      %849 = vector.shape_cast %848 : vector<1x8x32xf32> to vector<8x32xf32>
      %850 = vector.shape_cast %437 : vector<8x1xi1> to vector<8x1xi1>
      %851 = vector.broadcast %850 : vector<8x1xi1> to vector<8x32xi1>
      %852 = arith.select %851, %616, %849 : vector<8x32xi1>, vector<8x32xf32>
      %c1_294 = arith.constant 1 : index
      %c0_295 = arith.constant 0 : index
      %c0_296 = arith.constant 0 : index
      %853 = vector.load %arg21[%c1_294, %c0_295, %c0_296] : memref<2x8x32xf32, #tpu.memory_space<vmem>>, vector<1x8x32xf32>
      %854 = vector.shape_cast %853 : vector<1x8x32xf32> to vector<8x32xf32>
      %855 = vector.shape_cast %852 : vector<8x32xf32> to vector<1x8x32xf32>
      tpu.vector_store %arg21[%c1_294, %c0_295, %c0_296], %855 {strides = array<i32>} : memref<2x8x32xf32, #tpu.memory_space<vmem>>, vector<1x8x32xf32>,
      %c1_297 = arith.constant 1 : index
      %c0_298 = arith.constant 0 : index
      %c0_299 = arith.constant 0 : index
      %856 = vector.load %arg22[%c1_297, %c0_298, %c0_299] : memref<2x8x32xf32, #tpu.memory_space<vmem>>, vector<1x8x32xf32>
      %857 = vector.shape_cast %856 : vector<1x8x32xf32> to vector<8x32xf32>
      %858 = vector.shape_cast %437 : vector<8x1xi1> to vector<8x1xi1>
      %859 = vector.broadcast %858 : vector<8x1xi1> to vector<8x32xi1>
      %860 = arith.select %859, %618, %857 : vector<8x32xi1>, vector<8x32xf32>
      %c1_300 = arith.constant 1 : index
      %c0_301 = arith.constant 0 : index
      %c0_302 = arith.constant 0 : index
      %861 = vector.load %arg22[%c1_300, %c0_301, %c0_302] : memref<2x8x32xf32, #tpu.memory_space<vmem>>, vector<1x8x32xf32>
      %862 = vector.shape_cast %861 : vector<1x8x32xf32> to vector<8x32xf32>
      %863 = vector.shape_cast %860 : vector<8x32xf32> to vector<1x8x32xf32>
      tpu.vector_store %arg22[%c1_300, %c0_301, %c0_302], %863 {strides = array<i32>} : memref<2x8x32xf32, #tpu.memory_space<vmem>>, vector<1x8x32xf32>,
    } else {
    }
    %c4_i32_218 = arith.constant 4 : i32
    %630 = arith.muli %arg0, %c4_i32_218 : i32
    %c3_i32 = arith.constant 3 : i32
    %631 = arith.addi %630, %c3_i32 : i32
    %632 = vector.broadcast %631 : i32 to vector<8x1xi32>
    %633 = arith.cmpi slt, %632, %3 : vector<8x1xi32>
    %634 = arith.extui %633 : vector<8x1xi1> to vector<8x1xi32>
    %635 = arith.sitofp %634 : vector<8x1xi32> to vector<8x1xf32>
    %c1_i32_219 = arith.constant 1 : i32
    %636 = vector.broadcast %c1_i32_219 : i32 to vector<8x1xi32>
    %637 = arith.subi %3, %636 : vector<8x1xi32>
    %638 = vector.broadcast %631 : i32 to vector<8x1xi32>
    %639 = arith.cmpi eq, %638, %637 : vector<8x1xi32>
    %c0_220 = arith.constant 0 : index
    %c0_221 = arith.constant 0 : index
    %c0_222 = arith.constant 0 : index
    %640 = vector.load %arg23[%c0_220, %c0_221, %c0_222] : memref<2x8x32xf32, #tpu.memory_space<vmem>>, vector<1x8x32xf32>
    %641 = vector.shape_cast %640 : vector<1x8x32xf32> to vector<8x32xf32>
    %c0_223 = arith.constant 0 : index
    %c0_224 = arith.constant 0 : index
    %c0_225 = arith.constant 0 : index
    %642 = vector.load %arg24[%c0_223, %c0_224, %c0_225] : memref<2x8x32xf32, #tpu.memory_space<vmem>>, vector<1x8x32xf32>
    %643 = vector.shape_cast %642 : vector<1x8x32xf32> to vector<8x32xf32>
    %644 = arith.truncf %641 : vector<8x32xf32> to vector<8x32xbf16>
    %cst_226 = arith.constant dense<0.000000e+00> : vector<8x128xf32>
    %645 = tpu.matmul %644, %7, %cst_226 {dimension_numbers = #tpu.dot_dimension_numbers<[1], [0], [0], [1], [0, 0, 1, 1], [], []>} : vector<8x32xbf16>, vector<32x128xbf16>, vector<8x128xf32> -> vector<8x128xf32>
    %646 = vector.broadcast %8 : vector<1x128xf32> to vector<8x128xf32>
    %647 = arith.addf %645, %646 : vector<8x128xf32>
    %c3 = arith.constant 3 : index
    %c0_227 = arith.constant 0 : index
    %c0_228 = arith.constant 0 : index
    %648 = vector.load %arg2[%c3, %c0_227, %c0_228] : memref<4x8x128xf32, #tpu.memory_space<vmem>>, vector<1x8x128xf32>
    %649 = vector.shape_cast %648 : vector<1x8x128xf32> to vector<8x128xf32>
    %cst_229 = arith.constant dense<0.000000e+00> : vector<8xf32>
    %650 = vector.multi_reduction <add>, %647, %cst_229 [1] : vector<8x128xf32> to vector<8xf32>
    %651 = vector.shape_cast %650 : vector<8xf32> to vector<8x1xf32>
    %cst_230 = arith.constant 1.280000e+02 : f32
    %652 = vector.broadcast %cst_230 : f32 to vector<8x1xf32>
    %653 = arith.divf %651, %652 : vector<8x1xf32>
    %654 = vector.broadcast %653 : vector<8x1xf32> to vector<8x128xf32>
    %655 = arith.subf %647, %654 : vector<8x128xf32>
    %656 = arith.mulf %655, %655 : vector<8x128xf32>
    %cst_231 = arith.constant dense<0.000000e+00> : vector<8xf32>
    %657 = vector.multi_reduction <add>, %656, %cst_231 [1] : vector<8x128xf32> to vector<8xf32>
    %658 = vector.shape_cast %657 : vector<8xf32> to vector<8x1xf32>
    %cst_232 = arith.constant 1.280000e+02 : f32
    %659 = vector.broadcast %cst_232 : f32 to vector<8x1xf32>
    %660 = arith.divf %658, %659 : vector<8x1xf32>
    %661 = vector.broadcast %653 : vector<8x1xf32> to vector<8x128xf32>
    %662 = arith.subf %647, %661 : vector<8x128xf32>
    %cst_233 = arith.constant 9.99999974E-6 : f32
    %663 = vector.broadcast %cst_233 : f32 to vector<8x1xf32>
    %664 = arith.addf %660, %663 : vector<8x1xf32>
    %665 = math.rsqrt %664 : vector<8x1xf32>
    %666 = vector.broadcast %665 : vector<8x1xf32> to vector<8x128xf32>
    %667 = arith.mulf %662, %666 : vector<8x128xf32>
    %668 = vector.broadcast %9 : vector<1x128xf32> to vector<8x128xf32>
    %669 = arith.mulf %667, %668 : vector<8x128xf32>
    %670 = vector.broadcast %10 : vector<1x128xf32> to vector<8x128xf32>
    %671 = arith.addf %669, %670 : vector<8x128xf32>
    %672 = arith.addf %649, %671 : vector<8x128xf32>
    %673 = vector.extract_strided_slice %672 {offsets = [0, 0], sizes = [8, 32], strides = [1, 1]} : vector<8x128xf32> to vector<8x32xf32>
    %674 = arith.negf %673 : vector<8x32xf32>
    %675 = math.exp %674 : vector<8x32xf32>
    %cst_234 = arith.constant 1.000000e+00 : f32
    %676 = vector.broadcast %cst_234 : f32 to vector<8x32xf32>
    %677 = arith.addf %676, %675 : vector<8x32xf32>
    %678 = arith.divf %676, %677 : vector<8x32xf32>
    %679 = vector.extract_strided_slice %672 {offsets = [0, 32], sizes = [8, 32], strides = [1, 1]} : vector<8x128xf32> to vector<8x32xf32>
    %680 = arith.negf %679 : vector<8x32xf32>
    %681 = math.exp %680 : vector<8x32xf32>
    %cst_235 = arith.constant 1.000000e+00 : f32
    %682 = vector.broadcast %cst_235 : f32 to vector<8x32xf32>
    %683 = arith.addf %682, %681 : vector<8x32xf32>
    %684 = arith.divf %682, %683 : vector<8x32xf32>
    %685 = vector.extract_strided_slice %672 {offsets = [0, 64], sizes = [8, 32], strides = [1, 1]} : vector<8x128xf32> to vector<8x32xf32>
    %686 = math.tanh %685 : vector<8x32xf32>
    %687 = vector.extract_strided_slice %672 {offsets = [0, 96], sizes = [8, 32], strides = [1, 1]} : vector<8x128xf32> to vector<8x32xf32>
    %688 = arith.negf %687 : vector<8x32xf32>
    %689 = math.exp %688 : vector<8x32xf32>
    %cst_236 = arith.constant 1.000000e+00 : f32
    %690 = vector.broadcast %cst_236 : f32 to vector<8x32xf32>
    %691 = arith.addf %690, %689 : vector<8x32xf32>
    %692 = arith.divf %690, %691 : vector<8x32xf32>
    %693 = arith.mulf %684, %643 : vector<8x32xf32>
    %694 = arith.mulf %678, %686 : vector<8x32xf32>
    %695 = arith.addf %693, %694 : vector<8x32xf32>
    %696 = math.tanh %695 : vector<8x32xf32>
    %cst_237 = arith.constant dense<0.000000e+00> : vector<8xf32>
    %697 = vector.multi_reduction <add>, %696, %cst_237 [1] : vector<8x32xf32> to vector<8xf32>
    %698 = vector.shape_cast %697 : vector<8xf32> to vector<8x1xf32>
    %cst_238 = arith.constant 3.200000e+01 : f32
    %699 = vector.broadcast %cst_238 : f32 to vector<8x1xf32>
    %700 = arith.divf %698, %699 : vector<8x1xf32>
    %701 = vector.broadcast %700 : vector<8x1xf32> to vector<8x32xf32>
    %702 = arith.subf %696, %701 : vector<8x32xf32>
    %703 = arith.mulf %702, %702 : vector<8x32xf32>
    %cst_239 = arith.constant dense<0.000000e+00> : vector<8xf32>
    %704 = vector.multi_reduction <add>, %703, %cst_239 [1] : vector<8x32xf32> to vector<8xf32>
    %705 = vector.shape_cast %704 : vector<8xf32> to vector<8x1xf32>
    %cst_240 = arith.constant 3.200000e+01 : f32
    %706 = vector.broadcast %cst_240 : f32 to vector<8x1xf32>
    %707 = arith.divf %705, %706 : vector<8x1xf32>
    %708 = vector.broadcast %700 : vector<8x1xf32> to vector<8x32xf32>
    %709 = arith.subf %696, %708 : vector<8x32xf32>
    %cst_241 = arith.constant 9.99999974E-6 : f32
    %710 = vector.broadcast %cst_241 : f32 to vector<8x1xf32>
    %711 = arith.addf %707, %710 : vector<8x1xf32>
    %712 = math.rsqrt %711 : vector<8x1xf32>
    %713 = vector.broadcast %712 : vector<8x1xf32> to vector<8x32xf32>
    %714 = arith.mulf %709, %713 : vector<8x32xf32>
    %715 = vector.broadcast %11 : vector<1x32xf32> to vector<8x32xf32>
    %716 = arith.mulf %714, %715 : vector<8x32xf32>
    %717 = vector.broadcast %12 : vector<1x32xf32> to vector<8x32xf32>
    %718 = arith.addf %716, %717 : vector<8x32xf32>
    %719 = arith.mulf %692, %718 : vector<8x32xf32>
    %720 = vector.broadcast %635 : vector<8x1xf32> to vector<8x32xf32>
    %721 = arith.mulf %719, %720 : vector<8x32xf32>
    %722 = vector.broadcast %635 : vector<8x1xf32> to vector<8x32xf32>
    %723 = arith.mulf %695, %722 : vector<8x32xf32>
    %c0_242 = arith.constant 0 : index
    %c0_243 = arith.constant 0 : index
    %c0_244 = arith.constant 0 : index
    %724 = vector.load %arg23[%c0_242, %c0_243, %c0_244] : memref<2x8x32xf32, #tpu.memory_space<vmem>>, vector<1x8x32xf32>
    %725 = vector.shape_cast %724 : vector<1x8x32xf32> to vector<8x32xf32>
    %726 = vector.shape_cast %721 : vector<8x32xf32> to vector<1x8x32xf32>
    tpu.vector_store %arg23[%c0_242, %c0_243, %c0_244], %726 {strides = array<i32>} : memref<2x8x32xf32, #tpu.memory_space<vmem>>, vector<1x8x32xf32>,
    %c0_245 = arith.constant 0 : index
    %c0_246 = arith.constant 0 : index
    %c0_247 = arith.constant 0 : index
    %727 = vector.load %arg24[%c0_245, %c0_246, %c0_247] : memref<2x8x32xf32, #tpu.memory_space<vmem>>, vector<1x8x32xf32>
    %728 = vector.shape_cast %727 : vector<1x8x32xf32> to vector<8x32xf32>
    %729 = vector.shape_cast %723 : vector<8x32xf32> to vector<1x8x32xf32>
    tpu.vector_store %arg24[%c0_245, %c0_246, %c0_247], %729 {strides = array<i32>} : memref<2x8x32xf32, #tpu.memory_space<vmem>>, vector<1x8x32xf32>,
    %c1_248 = arith.constant 1 : index
    %c0_249 = arith.constant 0 : index
    %c0_250 = arith.constant 0 : index
    %730 = vector.load %arg23[%c1_248, %c0_249, %c0_250] : memref<2x8x32xf32, #tpu.memory_space<vmem>>, vector<1x8x32xf32>
    %731 = vector.shape_cast %730 : vector<1x8x32xf32> to vector<8x32xf32>
    %c1_251 = arith.constant 1 : index
    %c0_252 = arith.constant 0 : index
    %c0_253 = arith.constant 0 : index
    %732 = vector.load %arg24[%c1_251, %c0_252, %c0_253] : memref<2x8x32xf32, #tpu.memory_space<vmem>>, vector<1x8x32xf32>
    %733 = vector.shape_cast %732 : vector<1x8x32xf32> to vector<8x32xf32>
    %734 = arith.truncf %721 : vector<8x32xf32> to vector<8x32xbf16>
    %cst_254 = arith.constant dense<0.000000e+00> : vector<8x128xf32>
    %735 = tpu.matmul %734, %13, %cst_254 {dimension_numbers = #tpu.dot_dimension_numbers<[1], [0], [0], [1], [0, 0, 1, 1], [], []>} : vector<8x32xbf16>, vector<32x128xbf16>, vector<8x128xf32> -> vector<8x128xf32>
    %736 = vector.broadcast %15 : vector<1x128xf32> to vector<8x128xf32>
    %737 = arith.addf %735, %736 : vector<8x128xf32>
    %738 = arith.truncf %731 : vector<8x32xf32> to vector<8x32xbf16>
    %cst_255 = arith.constant dense<0.000000e+00> : vector<8x128xf32>
    %739 = tpu.matmul %738, %14, %cst_255 {dimension_numbers = #tpu.dot_dimension_numbers<[1], [0], [0], [1], [0, 0, 1, 1], [], []>} : vector<8x32xbf16>, vector<32x128xbf16>, vector<8x128xf32> -> vector<8x128xf32>
    %740 = vector.broadcast %16 : vector<1x128xf32> to vector<8x128xf32>
    %741 = arith.addf %739, %740 : vector<8x128xf32>
    %742 = tpu.concatenate %737, %741 in 0 : vector<8x128xf32>, vector<8x128xf32> -> vector<16x128xf32>
    %cst_256 = arith.constant dense<0.000000e+00> : vector<16xf32>
    %743 = vector.multi_reduction <add>, %742, %cst_256 [1] : vector<16x128xf32> to vector<16xf32>
    %744 = vector.shape_cast %743 : vector<16xf32> to vector<16x1xf32>
    %cst_257 = arith.constant 1.280000e+02 : f32
    %745 = vector.broadcast %cst_257 : f32 to vector<16x1xf32>
    %746 = arith.divf %744, %745 : vector<16x1xf32>
    %747 = vector.broadcast %746 : vector<16x1xf32> to vector<16x128xf32>
    %748 = arith.subf %742, %747 : vector<16x128xf32>
    %749 = arith.mulf %748, %748 : vector<16x128xf32>
    %cst_258 = arith.constant dense<0.000000e+00> : vector<16xf32>
    %750 = vector.multi_reduction <add>, %749, %cst_258 [1] : vector<16x128xf32> to vector<16xf32>
    %751 = vector.shape_cast %750 : vector<16xf32> to vector<16x1xf32>
    %cst_259 = arith.constant 1.280000e+02 : f32
    %752 = vector.broadcast %cst_259 : f32 to vector<16x1xf32>
    %753 = arith.divf %751, %752 : vector<16x1xf32>
    %754 = vector.broadcast %746 : vector<16x1xf32> to vector<16x128xf32>
    %755 = arith.subf %742, %754 : vector<16x128xf32>
    %cst_260 = arith.constant 9.99999974E-6 : f32
    %756 = vector.broadcast %cst_260 : f32 to vector<16x1xf32>
    %757 = arith.addf %753, %756 : vector<16x1xf32>
    %758 = math.rsqrt %757 : vector<16x1xf32>
    %759 = vector.broadcast %758 : vector<16x1xf32> to vector<16x128xf32>
    %760 = arith.mulf %755, %759 : vector<16x128xf32>
    %761 = vector.extract_strided_slice %760 {offsets = [0, 0], sizes = [8, 128], strides = [1, 1]} : vector<16x128xf32> to vector<8x128xf32>
    %762 = vector.broadcast %17 : vector<1x128xf32> to vector<8x128xf32>
    %763 = arith.mulf %761, %762 : vector<8x128xf32>
    %764 = vector.extract_strided_slice %760 {offsets = [8, 0], sizes = [8, 128], strides = [1, 1]} : vector<16x128xf32> to vector<8x128xf32>
    %765 = vector.broadcast %19 : vector<1x128xf32> to vector<8x128xf32>
    %766 = arith.mulf %764, %765 : vector<8x128xf32>
    %767 = arith.addf %763, %766 : vector<8x128xf32>
    %768 = vector.broadcast %23 : vector<1x128xf32> to vector<8x128xf32>
    %769 = arith.addf %767, %768 : vector<8x128xf32>
    %770 = vector.extract_strided_slice %769 {offsets = [0, 0], sizes = [8, 32], strides = [1, 1]} : vector<8x128xf32> to vector<8x32xf32>
    %771 = arith.negf %770 : vector<8x32xf32>
    %772 = math.exp %771 : vector<8x32xf32>
    %cst_261 = arith.constant 1.000000e+00 : f32
    %773 = vector.broadcast %cst_261 : f32 to vector<8x32xf32>
    %774 = arith.addf %773, %772 : vector<8x32xf32>
    %775 = arith.divf %773, %774 : vector<8x32xf32>
    %776 = vector.extract_strided_slice %769 {offsets = [0, 32], sizes = [8, 32], strides = [1, 1]} : vector<8x128xf32> to vector<8x32xf32>
    %777 = arith.negf %776 : vector<8x32xf32>
    %778 = math.exp %777 : vector<8x32xf32>
    %cst_262 = arith.constant 1.000000e+00 : f32
    %779 = vector.broadcast %cst_262 : f32 to vector<8x32xf32>
    %780 = arith.addf %779, %778 : vector<8x32xf32>
    %781 = arith.divf %779, %780 : vector<8x32xf32>
    %782 = vector.extract_strided_slice %769 {offsets = [0, 64], sizes = [8, 32], strides = [1, 1]} : vector<8x128xf32> to vector<8x32xf32>
    %783 = math.tanh %782 : vector<8x32xf32>
    %784 = vector.extract_strided_slice %769 {offsets = [0, 96], sizes = [8, 32], strides = [1, 1]} : vector<8x128xf32> to vector<8x32xf32>
    %785 = arith.negf %784 : vector<8x32xf32>
    %786 = math.exp %785 : vector<8x32xf32>
    %cst_263 = arith.constant 1.000000e+00 : f32
    %787 = vector.broadcast %cst_263 : f32 to vector<8x32xf32>
    %788 = arith.addf %787, %786 : vector<8x32xf32>
    %789 = arith.divf %787, %788 : vector<8x32xf32>
    %790 = arith.mulf %781, %733 : vector<8x32xf32>
    %791 = arith.mulf %775, %783 : vector<8x32xf32>
    %792 = arith.addf %790, %791 : vector<8x32xf32>
    %793 = math.tanh %792 : vector<8x32xf32>
    %cst_264 = arith.constant dense<0.000000e+00> : vector<8xf32>
    %794 = vector.multi_reduction <add>, %793, %cst_264 [1] : vector<8x32xf32> to vector<8xf32>
    %795 = vector.shape_cast %794 : vector<8xf32> to vector<8x1xf32>
    %cst_265 = arith.constant 3.200000e+01 : f32
    %796 = vector.broadcast %cst_265 : f32 to vector<8x1xf32>
    %797 = arith.divf %795, %796 : vector<8x1xf32>
    %798 = vector.broadcast %797 : vector<8x1xf32> to vector<8x32xf32>
    %799 = arith.subf %793, %798 : vector<8x32xf32>
    %800 = arith.mulf %799, %799 : vector<8x32xf32>
    %cst_266 = arith.constant dense<0.000000e+00> : vector<8xf32>
    %801 = vector.multi_reduction <add>, %800, %cst_266 [1] : vector<8x32xf32> to vector<8xf32>
    %802 = vector.shape_cast %801 : vector<8xf32> to vector<8x1xf32>
    %cst_267 = arith.constant 3.200000e+01 : f32
    %803 = vector.broadcast %cst_267 : f32 to vector<8x1xf32>
    %804 = arith.divf %802, %803 : vector<8x1xf32>
    %805 = vector.broadcast %797 : vector<8x1xf32> to vector<8x32xf32>
    %806 = arith.subf %793, %805 : vector<8x32xf32>
    %cst_268 = arith.constant 9.99999974E-6 : f32
    %807 = vector.broadcast %cst_268 : f32 to vector<8x1xf32>
    %808 = arith.addf %804, %807 : vector<8x1xf32>
    %809 = math.rsqrt %808 : vector<8x1xf32>
    %810 = vector.broadcast %809 : vector<8x1xf32> to vector<8x32xf32>
    %811 = arith.mulf %806, %810 : vector<8x32xf32>
    %812 = vector.broadcast %21 : vector<1x32xf32> to vector<8x32xf32>
    %813 = arith.mulf %811, %812 : vector<8x32xf32>
    %814 = vector.broadcast %22 : vector<1x32xf32> to vector<8x32xf32>
    %815 = arith.addf %813, %814 : vector<8x32xf32>
    %816 = arith.mulf %789, %815 : vector<8x32xf32>
    %817 = vector.broadcast %635 : vector<8x1xf32> to vector<8x32xf32>
    %818 = arith.mulf %816, %817 : vector<8x32xf32>
    %819 = vector.broadcast %635 : vector<8x1xf32> to vector<8x32xf32>
    %820 = arith.mulf %792, %819 : vector<8x32xf32>
    %c1_269 = arith.constant 1 : index
    %c0_270 = arith.constant 0 : index
    %c0_271 = arith.constant 0 : index
    %821 = vector.load %arg23[%c1_269, %c0_270, %c0_271] : memref<2x8x32xf32, #tpu.memory_space<vmem>>, vector<1x8x32xf32>
    %822 = vector.shape_cast %821 : vector<1x8x32xf32> to vector<8x32xf32>
    %823 = vector.shape_cast %818 : vector<8x32xf32> to vector<1x8x32xf32>
    tpu.vector_store %arg23[%c1_269, %c0_270, %c0_271], %823 {strides = array<i32>} : memref<2x8x32xf32, #tpu.memory_space<vmem>>, vector<1x8x32xf32>,
    %c1_272 = arith.constant 1 : index
    %c0_273 = arith.constant 0 : index
    %c0_274 = arith.constant 0 : index
    %824 = vector.load %arg24[%c1_272, %c0_273, %c0_274] : memref<2x8x32xf32, #tpu.memory_space<vmem>>, vector<1x8x32xf32>
    %825 = vector.shape_cast %824 : vector<1x8x32xf32> to vector<8x32xf32>
    %826 = vector.shape_cast %820 : vector<8x32xf32> to vector<1x8x32xf32>
    tpu.vector_store %arg24[%c1_272, %c0_273, %c0_274], %826 {strides = array<i32>} : memref<2x8x32xf32, #tpu.memory_space<vmem>>, vector<1x8x32xf32>,
    %c3_275 = arith.constant 3 : index
    %c0_276 = arith.constant 0 : index
    %c0_277 = arith.constant 0 : index
    %827 = vector.load %arg20[%c3_275, %c0_276, %c0_277] : memref<4x8x32xf32, #tpu.memory_space<vmem>>, vector<1x8x32xf32>
    %828 = vector.shape_cast %827 : vector<1x8x32xf32> to vector<8x32xf32>
    %829 = vector.shape_cast %818 : vector<8x32xf32> to vector<1x8x32xf32>
    tpu.vector_store %arg20[%c3_275, %c0_276, %c0_277], %829 {strides = array<i32>} : memref<4x8x32xf32, #tpu.memory_space<vmem>>, vector<1x8x32xf32>,
    %830 = arith.extui %6 : i1 to i32
    %c0_i32_278 = arith.constant 0 : i32
    %831 = arith.cmpi ne, %830, %c0_i32_278 : i32
    scf.if %831 {
      %c0_279 = arith.constant 0 : index
      %c0_280 = arith.constant 0 : index
      %c0_281 = arith.constant 0 : index
      %832 = vector.load %arg21[%c0_279, %c0_280, %c0_281] : memref<2x8x32xf32, #tpu.memory_space<vmem>>, vector<1x8x32xf32>
      %833 = vector.shape_cast %832 : vector<1x8x32xf32> to vector<8x32xf32>
      %834 = vector.shape_cast %639 : vector<8x1xi1> to vector<8x1xi1>
      %835 = vector.broadcast %834 : vector<8x1xi1> to vector<8x32xi1>
      %836 = arith.select %835, %721, %833 : vector<8x32xi1>, vector<8x32xf32>
      %c0_282 = arith.constant 0 : index
      %c0_283 = arith.constant 0 : index
      %c0_284 = arith.constant 0 : index
      %837 = vector.load %arg21[%c0_282, %c0_283, %c0_284] : memref<2x8x32xf32, #tpu.memory_space<vmem>>, vector<1x8x32xf32>
      %838 = vector.shape_cast %837 : vector<1x8x32xf32> to vector<8x32xf32>
      %839 = vector.shape_cast %836 : vector<8x32xf32> to vector<1x8x32xf32>
      tpu.vector_store %arg21[%c0_282, %c0_283, %c0_284], %839 {strides = array<i32>} : memref<2x8x32xf32, #tpu.memory_space<vmem>>, vector<1x8x32xf32>,
      %c0_285 = arith.constant 0 : index
      %c0_286 = arith.constant 0 : index
      %c0_287 = arith.constant 0 : index
      %840 = vector.load %arg22[%c0_285, %c0_286, %c0_287] : memref<2x8x32xf32, #tpu.memory_space<vmem>>, vector<1x8x32xf32>
      %841 = vector.shape_cast %840 : vector<1x8x32xf32> to vector<8x32xf32>
      %842 = vector.shape_cast %639 : vector<8x1xi1> to vector<8x1xi1>
      %843 = vector.broadcast %842 : vector<8x1xi1> to vector<8x32xi1>
      %844 = arith.select %843, %723, %841 : vector<8x32xi1>, vector<8x32xf32>
      %c0_288 = arith.constant 0 : index
      %c0_289 = arith.constant 0 : index
      %c0_290 = arith.constant 0 : index
      %845 = vector.load %arg22[%c0_288, %c0_289, %c0_290] : memref<2x8x32xf32, #tpu.memory_space<vmem>>, vector<1x8x32xf32>
      %846 = vector.shape_cast %845 : vector<1x8x32xf32> to vector<8x32xf32>
      %847 = vector.shape_cast %844 : vector<8x32xf32> to vector<1x8x32xf32>
      tpu.vector_store %arg22[%c0_288, %c0_289, %c0_290], %847 {strides = array<i32>} : memref<2x8x32xf32, #tpu.memory_space<vmem>>, vector<1x8x32xf32>,
      %c1_291 = arith.constant 1 : index
      %c0_292 = arith.constant 0 : index
      %c0_293 = arith.constant 0 : index
      %848 = vector.load %arg21[%c1_291, %c0_292, %c0_293] : memref<2x8x32xf32, #tpu.memory_space<vmem>>, vector<1x8x32xf32>
      %849 = vector.shape_cast %848 : vector<1x8x32xf32> to vector<8x32xf32>
      %850 = vector.shape_cast %639 : vector<8x1xi1> to vector<8x1xi1>
      %851 = vector.broadcast %850 : vector<8x1xi1> to vector<8x32xi1>
      %852 = arith.select %851, %818, %849 : vector<8x32xi1>, vector<8x32xf32>
      %c1_294 = arith.constant 1 : index
      %c0_295 = arith.constant 0 : index
      %c0_296 = arith.constant 0 : index
      %853 = vector.load %arg21[%c1_294, %c0_295, %c0_296] : memref<2x8x32xf32, #tpu.memory_space<vmem>>, vector<1x8x32xf32>
      %854 = vector.shape_cast %853 : vector<1x8x32xf32> to vector<8x32xf32>
      %855 = vector.shape_cast %852 : vector<8x32xf32> to vector<1x8x32xf32>
      tpu.vector_store %arg21[%c1_294, %c0_295, %c0_296], %855 {strides = array<i32>} : memref<2x8x32xf32, #tpu.memory_space<vmem>>, vector<1x8x32xf32>,
      %c1_297 = arith.constant 1 : index
      %c0_298 = arith.constant 0 : index
      %c0_299 = arith.constant 0 : index
      %856 = vector.load %arg22[%c1_297, %c0_298, %c0_299] : memref<2x8x32xf32, #tpu.memory_space<vmem>>, vector<1x8x32xf32>
      %857 = vector.shape_cast %856 : vector<1x8x32xf32> to vector<8x32xf32>
      %858 = vector.shape_cast %639 : vector<8x1xi1> to vector<8x1xi1>
      %859 = vector.broadcast %858 : vector<8x1xi1> to vector<8x32xi1>
      %860 = arith.select %859, %820, %857 : vector<8x32xi1>, vector<8x32xf32>
      %c1_300 = arith.constant 1 : index
      %c0_301 = arith.constant 0 : index
      %c0_302 = arith.constant 0 : index
      %861 = vector.load %arg22[%c1_300, %c0_301, %c0_302] : memref<2x8x32xf32, #tpu.memory_space<vmem>>, vector<1x8x32xf32>
      %862 = vector.shape_cast %861 : vector<1x8x32xf32> to vector<8x32xf32>
      %863 = vector.shape_cast %860 : vector<8x32xf32> to vector<1x8x32xf32>
      tpu.vector_store %arg22[%c1_300, %c0_301, %c0_302], %863 {strides = array<i32>} : memref<2x8x32xf32, #tpu.memory_space<vmem>>, vector<1x8x32xf32>,
    } else {
    }
    return
  }
  func.func @transform_0(%arg0: i32, %arg1: memref<2xi32, #tpu.memory_space<smem>>) -> (i32, i32, i32) {
    %c0_i32 = arith.constant 0 : i32
    %c0_i32_0 = arith.constant 0 : i32
    %c0_i32_1 = arith.constant 0 : i32
    return %arg0, %c0_i32, %c0_i32_0 : i32, i32, i32
  }
  func.func @transform_1(%arg0: i32, %arg1: memref<2xi32, #tpu.memory_space<smem>>) -> (i32, i32) {
    %c0_i32 = arith.constant 0 : i32
    %c0_i32_0 = arith.constant 0 : i32
    %c0_i32_1 = arith.constant 0 : i32
    return %c0_i32, %c0_i32_0 : i32, i32
  }
  func.func @transform_2(%arg0: i32, %arg1: memref<2xi32, #tpu.memory_space<smem>>) -> (i32, i32) {
    %c0_i32 = arith.constant 0 : i32
    %c0_i32_0 = arith.constant 0 : i32
    %c0_i32_1 = arith.constant 0 : i32
    return %c0_i32, %c0_i32_0 : i32, i32
  }
  func.func @transform_3(%arg0: i32, %arg1: memref<2xi32, #tpu.memory_space<smem>>) -> (i32, i32) {
    %c0_i32 = arith.constant 0 : i32
    %c0_i32_0 = arith.constant 0 : i32
    %c0_i32_1 = arith.constant 0 : i32
    return %c0_i32, %c0_i32_0 : i32, i32
  }
  func.func @transform_4(%arg0: i32, %arg1: memref<2xi32, #tpu.memory_space<smem>>) -> (i32, i32) {
    %c0_i32 = arith.constant 0 : i32
    %c0_i32_0 = arith.constant 0 : i32
    %c0_i32_1 = arith.constant 0 : i32
    return %c0_i32, %c0_i32_0 : i32, i32
  }
  func.func @transform_5(%arg0: i32, %arg1: memref<2xi32, #tpu.memory_space<smem>>) -> (i32, i32) {
    %c0_i32 = arith.constant 0 : i32
    %c0_i32_0 = arith.constant 0 : i32
    %c0_i32_1 = arith.constant 0 : i32
    return %c0_i32, %c0_i32_0 : i32, i32
  }
  func.func @transform_6(%arg0: i32, %arg1: memref<2xi32, #tpu.memory_space<smem>>) -> (i32, i32) {
    %c0_i32 = arith.constant 0 : i32
    %c0_i32_0 = arith.constant 0 : i32
    %c0_i32_1 = arith.constant 0 : i32
    return %c0_i32, %c0_i32_0 : i32, i32
  }
  func.func @transform_7(%arg0: i32, %arg1: memref<2xi32, #tpu.memory_space<smem>>) -> (i32, i32) {
    %c0_i32 = arith.constant 0 : i32
    %c0_i32_0 = arith.constant 0 : i32
    %c0_i32_1 = arith.constant 0 : i32
    return %c0_i32, %c0_i32_0 : i32, i32
  }
  func.func @transform_8(%arg0: i32, %arg1: memref<2xi32, #tpu.memory_space<smem>>) -> (i32, i32) {
    %c0_i32 = arith.constant 0 : i32
    %c0_i32_0 = arith.constant 0 : i32
    %c0_i32_1 = arith.constant 0 : i32
    return %c0_i32, %c0_i32_0 : i32, i32
  }
  func.func @transform_9(%arg0: i32, %arg1: memref<2xi32, #tpu.memory_space<smem>>) -> (i32, i32) {
    %c0_i32 = arith.constant 0 : i32
    %c0_i32_0 = arith.constant 0 : i32
    %c0_i32_1 = arith.constant 0 : i32
    return %c0_i32, %c0_i32_0 : i32, i32
  }
  func.func @transform_10(%arg0: i32, %arg1: memref<2xi32, #tpu.memory_space<smem>>) -> (i32, i32) {
    %c0_i32 = arith.constant 0 : i32
    %c0_i32_0 = arith.constant 0 : i32
    %c0_i32_1 = arith.constant 0 : i32
    return %c0_i32, %c0_i32_0 : i32, i32
  }
  func.func @transform_11(%arg0: i32, %arg1: memref<2xi32, #tpu.memory_space<smem>>) -> (i32, i32) {
    %c0_i32 = arith.constant 0 : i32
    %c0_i32_0 = arith.constant 0 : i32
    %c0_i32_1 = arith.constant 0 : i32
    return %c0_i32, %c0_i32_0 : i32, i32
  }
  func.func @transform_12(%arg0: i32, %arg1: memref<2xi32, #tpu.memory_space<smem>>) -> (i32, i32) {
    %c0_i32 = arith.constant 0 : i32
    %c0_i32_0 = arith.constant 0 : i32
    %c0_i32_1 = arith.constant 0 : i32
    return %c0_i32, %c0_i32_0 : i32, i32
  }
  func.func @transform_13(%arg0: i32, %arg1: memref<2xi32, #tpu.memory_space<smem>>) -> (i32, i32) {
    %c0_i32 = arith.constant 0 : i32
    %c0_i32_0 = arith.constant 0 : i32
    %c0_i32_1 = arith.constant 0 : i32
    return %c0_i32, %c0_i32_0 : i32, i32
  }
  func.func @transform_14(%arg0: i32, %arg1: memref<2xi32, #tpu.memory_space<smem>>) -> (i32, i32) {
    %c0_i32 = arith.constant 0 : i32
    %c0_i32_0 = arith.constant 0 : i32
    %c0_i32_1 = arith.constant 0 : i32
    return %c0_i32, %c0_i32_0 : i32, i32
  }
  func.func @transform_15(%arg0: i32, %arg1: memref<2xi32, #tpu.memory_space<smem>>) -> (i32, i32) {
    %c0_i32 = arith.constant 0 : i32
    %c0_i32_0 = arith.constant 0 : i32
    %c0_i32_1 = arith.constant 0 : i32
    return %c0_i32, %c0_i32_0 : i32, i32
  }
  func.func @transform_16(%arg0: i32, %arg1: memref<2xi32, #tpu.memory_space<smem>>) -> (i32, i32) {
    %c0_i32 = arith.constant 0 : i32
    %c0_i32_0 = arith.constant 0 : i32
    %c0_i32_1 = arith.constant 0 : i32
    return %c0_i32, %c0_i32_0 : i32, i32
  }
  func.func @transform_17(%arg0: i32, %arg1: memref<2xi32, #tpu.memory_space<smem>>) -> (i32, i32) {
    %c0_i32 = arith.constant 0 : i32
    %c0_i32_0 = arith.constant 0 : i32
    %c0_i32_1 = arith.constant 0 : i32
    return %c0_i32, %c0_i32_0 : i32, i32
  }
  func.func @transform_18(%arg0: i32, %arg1: memref<2xi32, #tpu.memory_space<smem>>) -> (i32, i32, i32) {
    %c0_i32 = arith.constant 0 : i32
    %c0_i32_0 = arith.constant 0 : i32
    %c0_i32_1 = arith.constant 0 : i32
    return %arg0, %c0_i32, %c0_i32_0 : i32, i32, i32
  }
  func.func @transform_19(%arg0: i32, %arg1: memref<2xi32, #tpu.memory_space<smem>>) -> (i32, i32, i32) {
    %c0_i32 = arith.constant 0 : i32
    %c0_i32_0 = arith.constant 0 : i32
    %c0_i32_1 = arith.constant 0 : i32
    %c0_i32_2 = arith.constant 0 : i32
    return %c0_i32, %c0_i32_0, %c0_i32_1 : i32, i32, i32
  }
  func.func @transform_20(%arg0: i32, %arg1: memref<2xi32, #tpu.memory_space<smem>>) -> (i32, i32, i32) {
    %c0_i32 = arith.constant 0 : i32
    %c0_i32_0 = arith.constant 0 : i32
    %c0_i32_1 = arith.constant 0 : i32
    %c0_i32_2 = arith.constant 0 : i32
    return %c0_i32, %c0_i32_0, %c0_i32_1 : i32, i32, i32
  }
}

module attributes {stable_mosaic.version = 11 : i64} {
  func.func @kernel(%arg0: i32, %arg1: memref<2xi32, #tpu.memory_space<smem>>, %arg2: memref<4x8x128xf32, #tpu.memory_space<vmem>>, %arg3: memref<8x1xi32, #tpu.memory_space<vmem>>, %arg4: memref<32x128xbf16, #tpu.memory_space<vmem>>, %arg5: memref<1x128xf32, #tpu.memory_space<vmem>>, %arg6: memref<1x128xf32, #tpu.memory_space<vmem>>, %arg7: memref<1x128xf32, #tpu.memory_space<vmem>>, %arg8: memref<1x32xf32, #tpu.memory_space<vmem>>, %arg9: memref<1x32xf32, #tpu.memory_space<vmem>>, %arg10: memref<32x128xbf16, #tpu.memory_space<vmem>>, %arg11: memref<32x128xbf16, #tpu.memory_space<vmem>>, %arg12: memref<1x128xf32, #tpu.memory_space<vmem>>, %arg13: memref<1x128xf32, #tpu.memory_space<vmem>>, %arg14: memref<1x128xf32, #tpu.memory_space<vmem>>, %arg15: memref<1x128xf32, #tpu.memory_space<vmem>>, %arg16: memref<1x128xf32, #tpu.memory_space<vmem>>, %arg17: memref<1x128xf32, #tpu.memory_space<vmem>>, %arg18: memref<1x32xf32, #tpu.memory_space<vmem>>, %arg19: memref<1x32xf32, #tpu.memory_space<vmem>>, %arg20: memref<4x8x32xf32, #tpu.memory_space<vmem>>, %arg21: memref<2x8x32xf32, #tpu.memory_space<vmem>>, %arg22: memref<2x8x32xf32, #tpu.memory_space<vmem>>, %arg23: memref<2x8x32xf32, #tpu.memory_space<vmem>>, %arg24: memref<2x8x32xf32, #tpu.memory_space<vmem>>) attributes {dimension_semantics = [#tpu.dimension_semantics<arbitrary>], iteration_bounds = array<i64: 2>, scalar_prefetch = 1 : i64, scratch_operands = 2 : i64, tpu.core_type = #tpu.core_type<tc>, window_params = [{transform_indices = @transform_0, window_bounds = array<i64: 4, 8, 128>}, {pipeline_mode = #tpu.pipeline_mode<synchronous>, transform_indices = @transform_1, window_bounds = array<i64: 8, 1>}, {pipeline_mode = #tpu.pipeline_mode<synchronous>, transform_indices = @transform_2, window_bounds = array<i64: 32, 128>}, {pipeline_mode = #tpu.pipeline_mode<synchronous>, transform_indices = @transform_3, window_bounds = array<i64: 1, 128>}, {pipeline_mode = #tpu.pipeline_mode<synchronous>, transform_indices = @transform_4, window_bounds = array<i64: 1, 128>}, {pipeline_mode = #tpu.pipeline_mode<synchronous>, transform_indices = @transform_5, window_bounds = array<i64: 1, 128>}, {pipeline_mode = #tpu.pipeline_mode<synchronous>, transform_indices = @transform_6, window_bounds = array<i64: 1, 32>}, {pipeline_mode = #tpu.pipeline_mode<synchronous>, transform_indices = @transform_7, window_bounds = array<i64: 1, 32>}, {pipeline_mode = #tpu.pipeline_mode<synchronous>, transform_indices = @transform_8, window_bounds = array<i64: 32, 128>}, {pipeline_mode = #tpu.pipeline_mode<synchronous>, transform_indices = @transform_9, window_bounds = array<i64: 32, 128>}, {pipeline_mode = #tpu.pipeline_mode<synchronous>, transform_indices = @transform_10, window_bounds = array<i64: 1, 128>}, {pipeline_mode = #tpu.pipeline_mode<synchronous>, transform_indices = @transform_11, window_bounds = array<i64: 1, 128>}, {pipeline_mode = #tpu.pipeline_mode<synchronous>, transform_indices = @transform_12, window_bounds = array<i64: 1, 128>}, {pipeline_mode = #tpu.pipeline_mode<synchronous>, transform_indices = @transform_13, window_bounds = array<i64: 1, 128>}, {pipeline_mode = #tpu.pipeline_mode<synchronous>, transform_indices = @transform_14, window_bounds = array<i64: 1, 128>}, {pipeline_mode = #tpu.pipeline_mode<synchronous>, transform_indices = @transform_15, window_bounds = array<i64: 1, 128>}, {pipeline_mode = #tpu.pipeline_mode<synchronous>, transform_indices = @transform_16, window_bounds = array<i64: 1, 32>}, {pipeline_mode = #tpu.pipeline_mode<synchronous>, transform_indices = @transform_17, window_bounds = array<i64: 1, 32>}, {transform_indices = @transform_18, window_bounds = array<i64: 4, 8, 32>}, {pipeline_mode = #tpu.pipeline_mode<synchronous>, transform_indices = @transform_19, window_bounds = array<i64: 2, 8, 32>}, {pipeline_mode = #tpu.pipeline_mode<synchronous>, transform_indices = @transform_20, window_bounds = array<i64: 2, 8, 32>}]} {
    %c0_i32 = arith.constant 0 : i32
    %0 = arith.cmpi eq, %arg0, %c0_i32 : i32
    %1 = arith.extui %0 : i1 to i32
    %c0_i32_0 = arith.constant 0 : i32
    %2 = arith.cmpi ne, %1, %c0_i32_0 : i32
    scf.if %2 {
      %cst_279 = arith.constant 0.000000e+00 : f32
      %832 = vector.broadcast %cst_279 : f32 to vector<2x8x32xf32>
      %c0_280 = arith.constant 0 : index
      %c0_281 = arith.constant 0 : index
      %c0_282 = arith.constant 0 : index
      %833 = vector.load %arg23[%c0_280, %c0_281, %c0_282] : memref<2x8x32xf32, #tpu.memory_space<vmem>>, vector<2x8x32xf32>
      tpu.vector_store %arg23[%c0_280, %c0_281, %c0_282], %832 {strides = array<i32>} : memref<2x8x32xf32, #tpu.memory_space<vmem>>, vector<2x8x32xf32>,
      %cst_283 = arith.constant 0.000000e+00 : f32
      %834 = vector.broadcast %cst_283 : f32 to vector<2x8x32xf32>
      %c0_284 = arith.constant 0 : index
      %c0_285 = arith.constant 0 : index
      %c0_286 = arith.constant 0 : index
      %835 = vector.load %arg24[%c0_284, %c0_285, %c0_286] : memref<2x8x32xf32, #tpu.memory_space<vmem>>, vector<2x8x32xf32>
      tpu.vector_store %arg24[%c0_284, %c0_285, %c0_286], %834 {strides = array<i32>} : memref<2x8x32xf32, #tpu.memory_space<vmem>>, vector<2x8x32xf32>,
      %cst_287 = arith.constant 0.000000e+00 : f32
      %836 = vector.broadcast %cst_287 : f32 to vector<2x8x32xf32>
      %c0_288 = arith.constant 0 : index
      %c0_289 = arith.constant 0 : index
      %c0_290 = arith.constant 0 : index
      %837 = vector.load %arg21[%c0_288, %c0_289, %c0_290] : memref<2x8x32xf32, #tpu.memory_space<vmem>>, vector<2x8x32xf32>
      tpu.vector_store %arg21[%c0_288, %c0_289, %c0_290], %836 {strides = array<i32>} : memref<2x8x32xf32, #tpu.memory_space<vmem>>, vector<2x8x32xf32>,
      %cst_291 = arith.constant 0.000000e+00 : f32
      %838 = vector.broadcast %cst_291 : f32 to vector<2x8x32xf32>
      %c0_292 = arith.constant 0 : index
      %c0_293 = arith.constant 0 : index
      %c0_294 = arith.constant 0 : index
      %839 = vector.load %arg22[%c0_292, %c0_293, %c0_294] : memref<2x8x32xf32, #tpu.memory_space<vmem>>, vector<2x8x32xf32>
      tpu.vector_store %arg22[%c0_292, %c0_293, %c0_294], %838 {strides = array<i32>} : memref<2x8x32xf32, #tpu.memory_space<vmem>>, vector<2x8x32xf32>,
    } else {
    }
    %c0 = arith.constant 0 : index
    %c0_1 = arith.constant 0 : index
    %3 = vector.load %arg3[%c0, %c0_1] : memref<8x1xi32, #tpu.memory_space<vmem>>, vector<8x1xi32>
    %4 = arith.index_cast %arg0 : i32 to index
    %5 = memref.load %arg1[%4] : memref<2xi32, #tpu.memory_space<smem>>
    %c0_i32_2 = arith.constant 0 : i32
    %6 = arith.cmpi sgt, %5, %c0_i32_2 : i32
    %c0_3 = arith.constant 0 : index
    %c0_4 = arith.constant 0 : index
    %7 = vector.load %arg4[%c0_3, %c0_4] : memref<32x128xbf16, #tpu.memory_space<vmem>>, vector<32x128xbf16>
    %c0_5 = arith.constant 0 : index
    %c0_6 = arith.constant 0 : index
    %8 = vector.load %arg5[%c0_5, %c0_6] : memref<1x128xf32, #tpu.memory_space<vmem>>, vector<1x128xf32>
    %c0_7 = arith.constant 0 : index
    %c0_8 = arith.constant 0 : index
    %9 = vector.load %arg6[%c0_7, %c0_8] : memref<1x128xf32, #tpu.memory_space<vmem>>, vector<1x128xf32>
    %c0_9 = arith.constant 0 : index
    %c0_10 = arith.constant 0 : index
    %10 = vector.load %arg7[%c0_9, %c0_10] : memref<1x128xf32, #tpu.memory_space<vmem>>, vector<1x128xf32>
    %c0_11 = arith.constant 0 : index
    %c0_12 = arith.constant 0 : index
    %11 = vector.load %arg8[%c0_11, %c0_12] : memref<1x32xf32, #tpu.memory_space<vmem>>, vector<1x32xf32>
    %c0_13 = arith.constant 0 : index
    %c0_14 = arith.constant 0 : index
    %12 = vector.load %arg9[%c0_13, %c0_14] : memref<1x32xf32, #tpu.memory_space<vmem>>, vector<1x32xf32>
    %c0_15 = arith.constant 0 : index
    %c0_16 = arith.constant 0 : index
    %13 = vector.load %arg10[%c0_15, %c0_16] : memref<32x128xbf16, #tpu.memory_space<vmem>>, vector<32x128xbf16>
    %c0_17 = arith.constant 0 : index
    %c0_18 = arith.constant 0 : index
    %14 = vector.load %arg11[%c0_17, %c0_18] : memref<32x128xbf16, #tpu.memory_space<vmem>>, vector<32x128xbf16>
    %c0_19 = arith.constant 0 : index
    %c0_20 = arith.constant 0 : index
    %15 = vector.load %arg12[%c0_19, %c0_20] : memref<1x128xf32, #tpu.memory_space<vmem>>, vector<1x128xf32>
    %c0_21 = arith.constant 0 : index
    %c0_22 = arith.constant 0 : index
    %16 = vector.load %arg13[%c0_21, %c0_22] : memref<1x128xf32, #tpu.memory_space<vmem>>, vector<1x128xf32>
    %c0_23 = arith.constant 0 : index
    %c0_24 = arith.constant 0 : index
    %17 = vector.load %arg14[%c0_23, %c0_24] : memref<1x128xf32, #tpu.memory_space<vmem>>, vector<1x128xf32>
    %c0_25 = arith.constant 0 : index
    %c0_26 = arith.constant 0 : index
    %18 = vector.load %arg15[%c0_25, %c0_26] : memref<1x128xf32, #tpu.memory_space<vmem>>, vector<1x128xf32>
    %c0_27 = arith.constant 0 : index
    %c0_28 = arith.constant 0 : index
    %19 = vector.load %arg16[%c0_27, %c0_28] : memref<1x128xf32, #tpu.memory_space<vmem>>, vector<1x128xf32>
    %c0_29 = arith.constant 0 : index
    %c0_30 = arith.constant 0 : index
    %20 = vector.load %arg17[%c0_29, %c0_30] : memref<1x128xf32, #tpu.memory_space<vmem>>, vector<1x128xf32>
    %c0_31 = arith.constant 0 : index
    %c0_32 = arith.constant 0 : index
    %21 = vector.load %arg18[%c0_31, %c0_32] : memref<1x32xf32, #tpu.memory_space<vmem>>, vector<1x32xf32>
    %c0_33 = arith.constant 0 : index
    %c0_34 = arith.constant 0 : index
    %22 = vector.load %arg19[%c0_33, %c0_34] : memref<1x32xf32, #tpu.memory_space<vmem>>, vector<1x32xf32>
    %23 = arith.addf %18, %20 : vector<1x128xf32>
    %c4_i32 = arith.constant 4 : i32
    %24 = arith.muli %arg0, %c4_i32 : i32
    %c0_i32_35 = arith.constant 0 : i32
    %25 = arith.addi %24, %c0_i32_35 : i32
    %26 = vector.broadcast %25 : i32 to vector<8x1xi32>
    %27 = arith.cmpi slt, %26, %3 : vector<8x1xi32>
    %28 = arith.extui %27 : vector<8x1xi1> to vector<8x1xi32>
    %29 = arith.sitofp %28 : vector<8x1xi32> to vector<8x1xf32>
    %c1_i32 = arith.constant 1 : i32
    %30 = vector.broadcast %c1_i32 : i32 to vector<8x1xi32>
    %31 = arith.subi %3, %30 : vector<8x1xi32>
    %32 = vector.broadcast %25 : i32 to vector<8x1xi32>
    %33 = arith.cmpi eq, %32, %31 : vector<8x1xi32>
    %c0_36 = arith.constant 0 : index
    %c0_37 = arith.constant 0 : index
    %c0_38 = arith.constant 0 : index
    %34 = vector.load %arg23[%c0_36, %c0_37, %c0_38] : memref<2x8x32xf32, #tpu.memory_space<vmem>>, vector<1x8x32xf32>
    %35 = vector.shape_cast %34 : vector<1x8x32xf32> to vector<8x32xf32>
    %c0_39 = arith.constant 0 : index
    %c0_40 = arith.constant 0 : index
    %c0_41 = arith.constant 0 : index
    %36 = vector.load %arg24[%c0_39, %c0_40, %c0_41] : memref<2x8x32xf32, #tpu.memory_space<vmem>>, vector<1x8x32xf32>
    %37 = vector.shape_cast %36 : vector<1x8x32xf32> to vector<8x32xf32>
    %38 = arith.truncf %35 : vector<8x32xf32> to vector<8x32xbf16>
    %cst = arith.constant dense<0.000000e+00> : vector<8x128xf32>
    %39 = tpu.matmul %38, %7, %cst {dimension_numbers = #tpu.dot_dimension_numbers<[1], [0], [0], [1], [0, 0, 1, 1], [], []>} : vector<8x32xbf16>, vector<32x128xbf16>, vector<8x128xf32> -> vector<8x128xf32>
    %40 = vector.broadcast %8 : vector<1x128xf32> to vector<8x128xf32>
    %41 = arith.addf %39, %40 : vector<8x128xf32>
    %c0_42 = arith.constant 0 : index
    %c0_43 = arith.constant 0 : index
    %c0_44 = arith.constant 0 : index
    %42 = vector.load %arg2[%c0_42, %c0_43, %c0_44] : memref<4x8x128xf32, #tpu.memory_space<vmem>>, vector<1x8x128xf32>
    %43 = vector.shape_cast %42 : vector<1x8x128xf32> to vector<8x128xf32>
    %cst_45 = arith.constant dense<0.000000e+00> : vector<8xf32>
    %44 = vector.multi_reduction <add>, %41, %cst_45 [1] : vector<8x128xf32> to vector<8xf32>
    %45 = vector.shape_cast %44 : vector<8xf32> to vector<8x1xf32>
    %cst_46 = arith.constant 1.280000e+02 : f32
    %46 = vector.broadcast %cst_46 : f32 to vector<8x1xf32>
    %47 = arith.divf %45, %46 : vector<8x1xf32>
    %48 = vector.broadcast %47 : vector<8x1xf32> to vector<8x128xf32>
    %49 = arith.subf %41, %48 : vector<8x128xf32>
    %50 = arith.mulf %49, %49 : vector<8x128xf32>
    %cst_47 = arith.constant dense<0.000000e+00> : vector<8xf32>
    %51 = vector.multi_reduction <add>, %50, %cst_47 [1] : vector<8x128xf32> to vector<8xf32>
    %52 = vector.shape_cast %51 : vector<8xf32> to vector<8x1xf32>
    %cst_48 = arith.constant 1.280000e+02 : f32
    %53 = vector.broadcast %cst_48 : f32 to vector<8x1xf32>
    %54 = arith.divf %52, %53 : vector<8x1xf32>
    %55 = vector.broadcast %47 : vector<8x1xf32> to vector<8x128xf32>
    %56 = arith.subf %41, %55 : vector<8x128xf32>
    %cst_49 = arith.constant 9.99999974E-6 : f32
    %57 = vector.broadcast %cst_49 : f32 to vector<8x1xf32>
    %58 = arith.addf %54, %57 : vector<8x1xf32>
    %59 = math.rsqrt %58 : vector<8x1xf32>
    %60 = vector.broadcast %59 : vector<8x1xf32> to vector<8x128xf32>
    %61 = arith.mulf %56, %60 : vector<8x128xf32>
    %62 = vector.broadcast %9 : vector<1x128xf32> to vector<8x128xf32>
    %63 = arith.mulf %61, %62 : vector<8x128xf32>
    %64 = vector.broadcast %10 : vector<1x128xf32> to vector<8x128xf32>
    %65 = arith.addf %63, %64 : vector<8x128xf32>
    %66 = arith.addf %43, %65 : vector<8x128xf32>
    %67 = vector.extract_strided_slice %66 {offsets = [0, 0], sizes = [8, 32], strides = [1, 1]} : vector<8x128xf32> to vector<8x32xf32>
    %68 = arith.negf %67 : vector<8x32xf32>
    %69 = math.exp %68 : vector<8x32xf32>
    %cst_50 = arith.constant 1.000000e+00 : f32
    %70 = vector.broadcast %cst_50 : f32 to vector<8x32xf32>
    %71 = arith.addf %70, %69 : vector<8x32xf32>
    %72 = arith.divf %70, %71 : vector<8x32xf32>
    %73 = vector.extract_strided_slice %66 {offsets = [0, 32], sizes = [8, 32], strides = [1, 1]} : vector<8x128xf32> to vector<8x32xf32>
    %74 = arith.negf %73 : vector<8x32xf32>
    %75 = math.exp %74 : vector<8x32xf32>
    %cst_51 = arith.constant 1.000000e+00 : f32
    %76 = vector.broadcast %cst_51 : f32 to vector<8x32xf32>
    %77 = arith.addf %76, %75 : vector<8x32xf32>
    %78 = arith.divf %76, %77 : vector<8x32xf32>
    %79 = vector.extract_strided_slice %66 {offsets = [0, 64], sizes = [8, 32], strides = [1, 1]} : vector<8x128xf32> to vector<8x32xf32>
    %80 = math.tanh %79 : vector<8x32xf32>
    %81 = vector.extract_strided_slice %66 {offsets = [0, 96], sizes = [8, 32], strides = [1, 1]} : vector<8x128xf32> to vector<8x32xf32>
    %82 = arith.negf %81 : vector<8x32xf32>
    %83 = math.exp %82 : vector<8x32xf32>
    %cst_52 = arith.constant 1.000000e+00 : f32
    %84 = vector.broadcast %cst_52 : f32 to vector<8x32xf32>
    %85 = arith.addf %84, %83 : vector<8x32xf32>
    %86 = arith.divf %84, %85 : vector<8x32xf32>
    %87 = arith.mulf %78, %37 : vector<8x32xf32>
    %88 = arith.mulf %72, %80 : vector<8x32xf32>
    %89 = arith.addf %87, %88 : vector<8x32xf32>
    %90 = math.tanh %89 : vector<8x32xf32>
    %cst_53 = arith.constant dense<0.000000e+00> : vector<8xf32>
    %91 = vector.multi_reduction <add>, %90, %cst_53 [1] : vector<8x32xf32> to vector<8xf32>
    %92 = vector.shape_cast %91 : vector<8xf32> to vector<8x1xf32>
    %cst_54 = arith.constant 3.200000e+01 : f32
    %93 = vector.broadcast %cst_54 : f32 to vector<8x1xf32>
    %94 = arith.divf %92, %93 : vector<8x1xf32>
    %95 = vector.broadcast %94 : vector<8x1xf32> to vector<8x32xf32>
    %96 = arith.subf %90, %95 : vector<8x32xf32>
    %97 = arith.mulf %96, %96 : vector<8x32xf32>
    %cst_55 = arith.constant dense<0.000000e+00> : vector<8xf32>
    %98 = vector.multi_reduction <add>, %97, %cst_55 [1] : vector<8x32xf32> to vector<8xf32>
    %99 = vector.shape_cast %98 : vector<8xf32> to vector<8x1xf32>
    %cst_56 = arith.constant 3.200000e+01 : f32
    %100 = vector.broadcast %cst_56 : f32 to vector<8x1xf32>
    %101 = arith.divf %99, %100 : vector<8x1xf32>
    %102 = vector.broadcast %94 : vector<8x1xf32> to vector<8x32xf32>
    %103 = arith.subf %90, %102 : vector<8x32xf32>
    %cst_57 = arith.constant 9.99999974E-6 : f32
    %104 = vector.broadcast %cst_57 : f32 to vector<8x1xf32>
    %105 = arith.addf %101, %104 : vector<8x1xf32>
    %106 = math.rsqrt %105 : vector<8x1xf32>
    %107 = vector.broadcast %106 : vector<8x1xf32> to vector<8x32xf32>
    %108 = arith.mulf %103, %107 : vector<8x32xf32>
    %109 = vector.broadcast %11 : vector<1x32xf32> to vector<8x32xf32>
    %110 = arith.mulf %108, %109 : vector<8x32xf32>
    %111 = vector.broadcast %12 : vector<1x32xf32> to vector<8x32xf32>
    %112 = arith.addf %110, %111 : vector<8x32xf32>
    %113 = arith.mulf %86, %112 : vector<8x32xf32>
    %114 = vector.broadcast %29 : vector<8x1xf32> to vector<8x32xf32>
    %115 = arith.mulf %113, %114 : vector<8x32xf32>
    %116 = vector.broadcast %29 : vector<8x1xf32> to vector<8x32xf32>
    %117 = arith.mulf %89, %116 : vector<8x32xf32>
    %c0_58 = arith.constant 0 : index
    %c0_59 = arith.constant 0 : index
    %c0_60 = arith.constant 0 : index
    %118 = vector.load %arg23[%c0_58, %c0_59, %c0_60] : memref<2x8x32xf32, #tpu.memory_space<vmem>>, vector<1x8x32xf32>
    %119 = vector.shape_cast %118 : vector<1x8x32xf32> to vector<8x32xf32>
    %120 = vector.shape_cast %115 : vector<8x32xf32> to vector<1x8x32xf32>
    tpu.vector_store %arg23[%c0_58, %c0_59, %c0_60], %120 {strides = array<i32>} : memref<2x8x32xf32, #tpu.memory_space<vmem>>, vector<1x8x32xf32>,
    %c0_61 = arith.constant 0 : index
    %c0_62 = arith.constant 0 : index
    %c0_63 = arith.constant 0 : index
    %121 = vector.load %arg24[%c0_61, %c0_62, %c0_63] : memref<2x8x32xf32, #tpu.memory_space<vmem>>, vector<1x8x32xf32>
    %122 = vector.shape_cast %121 : vector<1x8x32xf32> to vector<8x32xf32>
    %123 = vector.shape_cast %117 : vector<8x32xf32> to vector<1x8x32xf32>
    tpu.vector_store %arg24[%c0_61, %c0_62, %c0_63], %123 {strides = array<i32>} : memref<2x8x32xf32, #tpu.memory_space<vmem>>, vector<1x8x32xf32>,
    %c1 = arith.constant 1 : index
    %c0_64 = arith.constant 0 : index
    %c0_65 = arith.constant 0 : index
    %124 = vector.load %arg23[%c1, %c0_64, %c0_65] : memref<2x8x32xf32, #tpu.memory_space<vmem>>, vector<1x8x32xf32>
    %125 = vector.shape_cast %124 : vector<1x8x32xf32> to vector<8x32xf32>
    %c1_66 = arith.constant 1 : index
    %c0_67 = arith.constant 0 : index
    %c0_68 = arith.constant 0 : index
    %126 = vector.load %arg24[%c1_66, %c0_67, %c0_68] : memref<2x8x32xf32, #tpu.memory_space<vmem>>, vector<1x8x32xf32>
    %127 = vector.shape_cast %126 : vector<1x8x32xf32> to vector<8x32xf32>
    %128 = arith.truncf %115 : vector<8x32xf32> to vector<8x32xbf16>
    %cst_69 = arith.constant dense<0.000000e+00> : vector<8x128xf32>
    %129 = tpu.matmul %128, %13, %cst_69 {dimension_numbers = #tpu.dot_dimension_numbers<[1], [0], [0], [1], [0, 0, 1, 1], [], []>} : vector<8x32xbf16>, vector<32x128xbf16>, vector<8x128xf32> -> vector<8x128xf32>
    %130 = vector.broadcast %15 : vector<1x128xf32> to vector<8x128xf32>
    %131 = arith.addf %129, %130 : vector<8x128xf32>
    %132 = arith.truncf %125 : vector<8x32xf32> to vector<8x32xbf16>
    %cst_70 = arith.constant dense<0.000000e+00> : vector<8x128xf32>
    %133 = tpu.matmul %132, %14, %cst_70 {dimension_numbers = #tpu.dot_dimension_numbers<[1], [0], [0], [1], [0, 0, 1, 1], [], []>} : vector<8x32xbf16>, vector<32x128xbf16>, vector<8x128xf32> -> vector<8x128xf32>
    %134 = vector.broadcast %16 : vector<1x128xf32> to vector<8x128xf32>
    %135 = arith.addf %133, %134 : vector<8x128xf32>
    %136 = tpu.concatenate %131, %135 in 0 : vector<8x128xf32>, vector<8x128xf32> -> vector<16x128xf32>
    %cst_71 = arith.constant dense<0.000000e+00> : vector<16xf32>
    %137 = vector.multi_reduction <add>, %136, %cst_71 [1] : vector<16x128xf32> to vector<16xf32>
    %138 = vector.shape_cast %137 : vector<16xf32> to vector<16x1xf32>
    %cst_72 = arith.constant 1.280000e+02 : f32
    %139 = vector.broadcast %cst_72 : f32 to vector<16x1xf32>
    %140 = arith.divf %138, %139 : vector<16x1xf32>
    %141 = vector.broadcast %140 : vector<16x1xf32> to vector<16x128xf32>
    %142 = arith.subf %136, %141 : vector<16x128xf32>
    %143 = arith.mulf %142, %142 : vector<16x128xf32>
    %cst_73 = arith.constant dense<0.000000e+00> : vector<16xf32>
    %144 = vector.multi_reduction <add>, %143, %cst_73 [1] : vector<16x128xf32> to vector<16xf32>
    %145 = vector.shape_cast %144 : vector<16xf32> to vector<16x1xf32>
    %cst_74 = arith.constant 1.280000e+02 : f32
    %146 = vector.broadcast %cst_74 : f32 to vector<16x1xf32>
    %147 = arith.divf %145, %146 : vector<16x1xf32>
    %148 = vector.broadcast %140 : vector<16x1xf32> to vector<16x128xf32>
    %149 = arith.subf %136, %148 : vector<16x128xf32>
    %cst_75 = arith.constant 9.99999974E-6 : f32
    %150 = vector.broadcast %cst_75 : f32 to vector<16x1xf32>
    %151 = arith.addf %147, %150 : vector<16x1xf32>
    %152 = math.rsqrt %151 : vector<16x1xf32>
    %153 = vector.broadcast %152 : vector<16x1xf32> to vector<16x128xf32>
    %154 = arith.mulf %149, %153 : vector<16x128xf32>
    %155 = vector.extract_strided_slice %154 {offsets = [0, 0], sizes = [8, 128], strides = [1, 1]} : vector<16x128xf32> to vector<8x128xf32>
    %156 = vector.broadcast %17 : vector<1x128xf32> to vector<8x128xf32>
    %157 = arith.mulf %155, %156 : vector<8x128xf32>
    %158 = vector.extract_strided_slice %154 {offsets = [8, 0], sizes = [8, 128], strides = [1, 1]} : vector<16x128xf32> to vector<8x128xf32>
    %159 = vector.broadcast %19 : vector<1x128xf32> to vector<8x128xf32>
    %160 = arith.mulf %158, %159 : vector<8x128xf32>
    %161 = arith.addf %157, %160 : vector<8x128xf32>
    %162 = vector.broadcast %23 : vector<1x128xf32> to vector<8x128xf32>
    %163 = arith.addf %161, %162 : vector<8x128xf32>
    %164 = vector.extract_strided_slice %163 {offsets = [0, 0], sizes = [8, 32], strides = [1, 1]} : vector<8x128xf32> to vector<8x32xf32>
    %165 = arith.negf %164 : vector<8x32xf32>
    %166 = math.exp %165 : vector<8x32xf32>
    %cst_76 = arith.constant 1.000000e+00 : f32
    %167 = vector.broadcast %cst_76 : f32 to vector<8x32xf32>
    %168 = arith.addf %167, %166 : vector<8x32xf32>
    %169 = arith.divf %167, %168 : vector<8x32xf32>
    %170 = vector.extract_strided_slice %163 {offsets = [0, 32], sizes = [8, 32], strides = [1, 1]} : vector<8x128xf32> to vector<8x32xf32>
    %171 = arith.negf %170 : vector<8x32xf32>
    %172 = math.exp %171 : vector<8x32xf32>
    %cst_77 = arith.constant 1.000000e+00 : f32
    %173 = vector.broadcast %cst_77 : f32 to vector<8x32xf32>
    %174 = arith.addf %173, %172 : vector<8x32xf32>
    %175 = arith.divf %173, %174 : vector<8x32xf32>
    %176 = vector.extract_strided_slice %163 {offsets = [0, 64], sizes = [8, 32], strides = [1, 1]} : vector<8x128xf32> to vector<8x32xf32>
    %177 = math.tanh %176 : vector<8x32xf32>
    %178 = vector.extract_strided_slice %163 {offsets = [0, 96], sizes = [8, 32], strides = [1, 1]} : vector<8x128xf32> to vector<8x32xf32>
    %179 = arith.negf %178 : vector<8x32xf32>
    %180 = math.exp %179 : vector<8x32xf32>
    %cst_78 = arith.constant 1.000000e+00 : f32
    %181 = vector.broadcast %cst_78 : f32 to vector<8x32xf32>
    %182 = arith.addf %181, %180 : vector<8x32xf32>
    %183 = arith.divf %181, %182 : vector<8x32xf32>
    %184 = arith.mulf %175, %127 : vector<8x32xf32>
    %185 = arith.mulf %169, %177 : vector<8x32xf32>
    %186 = arith.addf %184, %185 : vector<8x32xf32>
    %187 = math.tanh %186 : vector<8x32xf32>
    %cst_79 = arith.constant dense<0.000000e+00> : vector<8xf32>
    %188 = vector.multi_reduction <add>, %187, %cst_79 [1] : vector<8x32xf32> to vector<8xf32>
    %189 = vector.shape_cast %188 : vector<8xf32> to vector<8x1xf32>
    %cst_80 = arith.constant 3.200000e+01 : f32
    %190 = vector.broadcast %cst_80 : f32 to vector<8x1xf32>
    %191 = arith.divf %189, %190 : vector<8x1xf32>
    %192 = vector.broadcast %191 : vector<8x1xf32> to vector<8x32xf32>
    %193 = arith.subf %187, %192 : vector<8x32xf32>
    %194 = arith.mulf %193, %193 : vector<8x32xf32>
    %cst_81 = arith.constant dense<0.000000e+00> : vector<8xf32>
    %195 = vector.multi_reduction <add>, %194, %cst_81 [1] : vector<8x32xf32> to vector<8xf32>
    %196 = vector.shape_cast %195 : vector<8xf32> to vector<8x1xf32>
    %cst_82 = arith.constant 3.200000e+01 : f32
    %197 = vector.broadcast %cst_82 : f32 to vector<8x1xf32>
    %198 = arith.divf %196, %197 : vector<8x1xf32>
    %199 = vector.broadcast %191 : vector<8x1xf32> to vector<8x32xf32>
    %200 = arith.subf %187, %199 : vector<8x32xf32>
    %cst_83 = arith.constant 9.99999974E-6 : f32
    %201 = vector.broadcast %cst_83 : f32 to vector<8x1xf32>
    %202 = arith.addf %198, %201 : vector<8x1xf32>
    %203 = math.rsqrt %202 : vector<8x1xf32>
    %204 = vector.broadcast %203 : vector<8x1xf32> to vector<8x32xf32>
    %205 = arith.mulf %200, %204 : vector<8x32xf32>
    %206 = vector.broadcast %21 : vector<1x32xf32> to vector<8x32xf32>
    %207 = arith.mulf %205, %206 : vector<8x32xf32>
    %208 = vector.broadcast %22 : vector<1x32xf32> to vector<8x32xf32>
    %209 = arith.addf %207, %208 : vector<8x32xf32>
    %210 = arith.mulf %183, %209 : vector<8x32xf32>
    %211 = vector.broadcast %29 : vector<8x1xf32> to vector<8x32xf32>
    %212 = arith.mulf %210, %211 : vector<8x32xf32>
    %213 = vector.broadcast %29 : vector<8x1xf32> to vector<8x32xf32>
    %214 = arith.mulf %186, %213 : vector<8x32xf32>
    %c1_84 = arith.constant 1 : index
    %c0_85 = arith.constant 0 : index
    %c0_86 = arith.constant 0 : index
    %215 = vector.load %arg23[%c1_84, %c0_85, %c0_86] : memref<2x8x32xf32, #tpu.memory_space<vmem>>, vector<1x8x32xf32>
    %216 = vector.shape_cast %215 : vector<1x8x32xf32> to vector<8x32xf32>
    %217 = vector.shape_cast %212 : vector<8x32xf32> to vector<1x8x32xf32>
    tpu.vector_store %arg23[%c1_84, %c0_85, %c0_86], %217 {strides = array<i32>} : memref<2x8x32xf32, #tpu.memory_space<vmem>>, vector<1x8x32xf32>,
    %c1_87 = arith.constant 1 : index
    %c0_88 = arith.constant 0 : index
    %c0_89 = arith.constant 0 : index
    %218 = vector.load %arg24[%c1_87, %c0_88, %c0_89] : memref<2x8x32xf32, #tpu.memory_space<vmem>>, vector<1x8x32xf32>
    %219 = vector.shape_cast %218 : vector<1x8x32xf32> to vector<8x32xf32>
    %220 = vector.shape_cast %214 : vector<8x32xf32> to vector<1x8x32xf32>
    tpu.vector_store %arg24[%c1_87, %c0_88, %c0_89], %220 {strides = array<i32>} : memref<2x8x32xf32, #tpu.memory_space<vmem>>, vector<1x8x32xf32>,
    %c0_90 = arith.constant 0 : index
    %c0_91 = arith.constant 0 : index
    %c0_92 = arith.constant 0 : index
    %221 = vector.load %arg20[%c0_90, %c0_91, %c0_92] : memref<4x8x32xf32, #tpu.memory_space<vmem>>, vector<1x8x32xf32>
    %222 = vector.shape_cast %221 : vector<1x8x32xf32> to vector<8x32xf32>
    %223 = vector.shape_cast %212 : vector<8x32xf32> to vector<1x8x32xf32>
    tpu.vector_store %arg20[%c0_90, %c0_91, %c0_92], %223 {strides = array<i32>} : memref<4x8x32xf32, #tpu.memory_space<vmem>>, vector<1x8x32xf32>,
    %224 = arith.extui %6 : i1 to i32
    %c0_i32_93 = arith.constant 0 : i32
    %225 = arith.cmpi ne, %224, %c0_i32_93 : i32
    scf.if %225 {
      %c0_279 = arith.constant 0 : index
      %c0_280 = arith.constant 0 : index
      %c0_281 = arith.constant 0 : index
      %832 = vector.load %arg21[%c0_279, %c0_280, %c0_281] : memref<2x8x32xf32, #tpu.memory_space<vmem>>, vector<1x8x32xf32>
      %833 = vector.shape_cast %832 : vector<1x8x32xf32> to vector<8x32xf32>
      %834 = vector.shape_cast %33 : vector<8x1xi1> to vector<8x1xi1>
      %835 = vector.broadcast %834 : vector<8x1xi1> to vector<8x32xi1>
      %836 = arith.select %835, %115, %833 : vector<8x32xi1>, vector<8x32xf32>
      %c0_282 = arith.constant 0 : index
      %c0_283 = arith.constant 0 : index
      %c0_284 = arith.constant 0 : index
      %837 = vector.load %arg21[%c0_282, %c0_283, %c0_284] : memref<2x8x32xf32, #tpu.memory_space<vmem>>, vector<1x8x32xf32>
      %838 = vector.shape_cast %837 : vector<1x8x32xf32> to vector<8x32xf32>
      %839 = vector.shape_cast %836 : vector<8x32xf32> to vector<1x8x32xf32>
      tpu.vector_store %arg21[%c0_282, %c0_283, %c0_284], %839 {strides = array<i32>} : memref<2x8x32xf32, #tpu.memory_space<vmem>>, vector<1x8x32xf32>,
      %c0_285 = arith.constant 0 : index
      %c0_286 = arith.constant 0 : index
      %c0_287 = arith.constant 0 : index
      %840 = vector.load %arg22[%c0_285, %c0_286, %c0_287] : memref<2x8x32xf32, #tpu.memory_space<vmem>>, vector<1x8x32xf32>
      %841 = vector.shape_cast %840 : vector<1x8x32xf32> to vector<8x32xf32>
      %842 = vector.shape_cast %33 : vector<8x1xi1> to vector<8x1xi1>
      %843 = vector.broadcast %842 : vector<8x1xi1> to vector<8x32xi1>
      %844 = arith.select %843, %117, %841 : vector<8x32xi1>, vector<8x32xf32>
      %c0_288 = arith.constant 0 : index
      %c0_289 = arith.constant 0 : index
      %c0_290 = arith.constant 0 : index
      %845 = vector.load %arg22[%c0_288, %c0_289, %c0_290] : memref<2x8x32xf32, #tpu.memory_space<vmem>>, vector<1x8x32xf32>
      %846 = vector.shape_cast %845 : vector<1x8x32xf32> to vector<8x32xf32>
      %847 = vector.shape_cast %844 : vector<8x32xf32> to vector<1x8x32xf32>
      tpu.vector_store %arg22[%c0_288, %c0_289, %c0_290], %847 {strides = array<i32>} : memref<2x8x32xf32, #tpu.memory_space<vmem>>, vector<1x8x32xf32>,
      %c1_291 = arith.constant 1 : index
      %c0_292 = arith.constant 0 : index
      %c0_293 = arith.constant 0 : index
      %848 = vector.load %arg21[%c1_291, %c0_292, %c0_293] : memref<2x8x32xf32, #tpu.memory_space<vmem>>, vector<1x8x32xf32>
      %849 = vector.shape_cast %848 : vector<1x8x32xf32> to vector<8x32xf32>
      %850 = vector.shape_cast %33 : vector<8x1xi1> to vector<8x1xi1>
      %851 = vector.broadcast %850 : vector<8x1xi1> to vector<8x32xi1>
      %852 = arith.select %851, %212, %849 : vector<8x32xi1>, vector<8x32xf32>
      %c1_294 = arith.constant 1 : index
      %c0_295 = arith.constant 0 : index
      %c0_296 = arith.constant 0 : index
      %853 = vector.load %arg21[%c1_294, %c0_295, %c0_296] : memref<2x8x32xf32, #tpu.memory_space<vmem>>, vector<1x8x32xf32>
      %854 = vector.shape_cast %853 : vector<1x8x32xf32> to vector<8x32xf32>
      %855 = vector.shape_cast %852 : vector<8x32xf32> to vector<1x8x32xf32>
      tpu.vector_store %arg21[%c1_294, %c0_295, %c0_296], %855 {strides = array<i32>} : memref<2x8x32xf32, #tpu.memory_space<vmem>>, vector<1x8x32xf32>,
      %c1_297 = arith.constant 1 : index
      %c0_298 = arith.constant 0 : index
      %c0_299 = arith.constant 0 : index
      %856 = vector.load %arg22[%c1_297, %c0_298, %c0_299] : memref<2x8x32xf32, #tpu.memory_space<vmem>>, vector<1x8x32xf32>
      %857 = vector.shape_cast %856 : vector<1x8x32xf32> to vector<8x32xf32>
      %858 = vector.shape_cast %33 : vector<8x1xi1> to vector<8x1xi1>
      %859 = vector.broadcast %858 : vector<8x1xi1> to vector<8x32xi1>
      %860 = arith.select %859, %214, %857 : vector<8x32xi1>, vector<8x32xf32>
      %c1_300 = arith.constant 1 : index
      %c0_301 = arith.constant 0 : index
      %c0_302 = arith.constant 0 : index
      %861 = vector.load %arg22[%c1_300, %c0_301, %c0_302] : memref<2x8x32xf32, #tpu.memory_space<vmem>>, vector<1x8x32xf32>
      %862 = vector.shape_cast %861 : vector<1x8x32xf32> to vector<8x32xf32>
      %863 = vector.shape_cast %860 : vector<8x32xf32> to vector<1x8x32xf32>
      tpu.vector_store %arg22[%c1_300, %c0_301, %c0_302], %863 {strides = array<i32>} : memref<2x8x32xf32, #tpu.memory_space<vmem>>, vector<1x8x32xf32>,
    } else {
    }
    %c4_i32_94 = arith.constant 4 : i32
    %226 = arith.muli %arg0, %c4_i32_94 : i32
    %c1_i32_95 = arith.constant 1 : i32
    %227 = arith.addi %226, %c1_i32_95 : i32
    %228 = vector.broadcast %227 : i32 to vector<8x1xi32>
    %229 = arith.cmpi slt, %228, %3 : vector<8x1xi32>
    %230 = arith.extui %229 : vector<8x1xi1> to vector<8x1xi32>
    %231 = arith.sitofp %230 : vector<8x1xi32> to vector<8x1xf32>
    %c1_i32_96 = arith.constant 1 : i32
    %232 = vector.broadcast %c1_i32_96 : i32 to vector<8x1xi32>
    %233 = arith.subi %3, %232 : vector<8x1xi32>
    %234 = vector.broadcast %227 : i32 to vector<8x1xi32>
    %235 = arith.cmpi eq, %234, %233 : vector<8x1xi32>
    %c0_97 = arith.constant 0 : index
    %c0_98 = arith.constant 0 : index
    %c0_99 = arith.constant 0 : index
    %236 = vector.load %arg23[%c0_97, %c0_98, %c0_99] : memref<2x8x32xf32, #tpu.memory_space<vmem>>, vector<1x8x32xf32>
    %237 = vector.shape_cast %236 : vector<1x8x32xf32> to vector<8x32xf32>
    %c0_100 = arith.constant 0 : index
    %c0_101 = arith.constant 0 : index
    %c0_102 = arith.constant 0 : index
    %238 = vector.load %arg24[%c0_100, %c0_101, %c0_102] : memref<2x8x32xf32, #tpu.memory_space<vmem>>, vector<1x8x32xf32>
    %239 = vector.shape_cast %238 : vector<1x8x32xf32> to vector<8x32xf32>
    %240 = arith.truncf %237 : vector<8x32xf32> to vector<8x32xbf16>
    %cst_103 = arith.constant dense<0.000000e+00> : vector<8x128xf32>
    %241 = tpu.matmul %240, %7, %cst_103 {dimension_numbers = #tpu.dot_dimension_numbers<[1], [0], [0], [1], [0, 0, 1, 1], [], []>} : vector<8x32xbf16>, vector<32x128xbf16>, vector<8x128xf32> -> vector<8x128xf32>
    %242 = vector.broadcast %8 : vector<1x128xf32> to vector<8x128xf32>
    %243 = arith.addf %241, %242 : vector<8x128xf32>
    %c1_104 = arith.constant 1 : index
    %c0_105 = arith.constant 0 : index
    %c0_106 = arith.constant 0 : index
    %244 = vector.load %arg2[%c1_104, %c0_105, %c0_106] : memref<4x8x128xf32, #tpu.memory_space<vmem>>, vector<1x8x128xf32>
    %245 = vector.shape_cast %244 : vector<1x8x128xf32> to vector<8x128xf32>
    %cst_107 = arith.constant dense<0.000000e+00> : vector<8xf32>
    %246 = vector.multi_reduction <add>, %243, %cst_107 [1] : vector<8x128xf32> to vector<8xf32>
    %247 = vector.shape_cast %246 : vector<8xf32> to vector<8x1xf32>
    %cst_108 = arith.constant 1.280000e+02 : f32
    %248 = vector.broadcast %cst_108 : f32 to vector<8x1xf32>
    %249 = arith.divf %247, %248 : vector<8x1xf32>
    %250 = vector.broadcast %249 : vector<8x1xf32> to vector<8x128xf32>
    %251 = arith.subf %243, %250 : vector<8x128xf32>
    %252 = arith.mulf %251, %251 : vector<8x128xf32>
    %cst_109 = arith.constant dense<0.000000e+00> : vector<8xf32>
    %253 = vector.multi_reduction <add>, %252, %cst_109 [1] : vector<8x128xf32> to vector<8xf32>
    %254 = vector.shape_cast %253 : vector<8xf32> to vector<8x1xf32>
    %cst_110 = arith.constant 1.280000e+02 : f32
    %255 = vector.broadcast %cst_110 : f32 to vector<8x1xf32>
    %256 = arith.divf %254, %255 : vector<8x1xf32>
    %257 = vector.broadcast %249 : vector<8x1xf32> to vector<8x128xf32>
    %258 = arith.subf %243, %257 : vector<8x128xf32>
    %cst_111 = arith.constant 9.99999974E-6 : f32
    %259 = vector.broadcast %cst_111 : f32 to vector<8x1xf32>
    %260 = arith.addf %256, %259 : vector<8x1xf32>
    %261 = math.rsqrt %260 : vector<8x1xf32>
    %262 = vector.broadcast %261 : vector<8x1xf32> to vector<8x128xf32>
    %263 = arith.mulf %258, %262 : vector<8x128xf32>
    %264 = vector.broadcast %9 : vector<1x128xf32> to vector<8x128xf32>
    %265 = arith.mulf %263, %264 : vector<8x128xf32>
    %266 = vector.broadcast %10 : vector<1x128xf32> to vector<8x128xf32>
    %267 = arith.addf %265, %266 : vector<8x128xf32>
    %268 = arith.addf %245, %267 : vector<8x128xf32>
    %269 = vector.extract_strided_slice %268 {offsets = [0, 0], sizes = [8, 32], strides = [1, 1]} : vector<8x128xf32> to vector<8x32xf32>
    %270 = arith.negf %269 : vector<8x32xf32>
    %271 = math.exp %270 : vector<8x32xf32>
    %cst_112 = arith.constant 1.000000e+00 : f32
    %272 = vector.broadcast %cst_112 : f32 to vector<8x32xf32>
    %273 = arith.addf %272, %271 : vector<8x32xf32>
    %274 = arith.divf %272, %273 : vector<8x32xf32>
    %275 = vector.extract_strided_slice %268 {offsets = [0, 32], sizes = [8, 32], strides = [1, 1]} : vector<8x128xf32> to vector<8x32xf32>
    %276 = arith.negf %275 : vector<8x32xf32>
    %277 = math.exp %276 : vector<8x32xf32>
    %cst_113 = arith.constant 1.000000e+00 : f32
    %278 = vector.broadcast %cst_113 : f32 to vector<8x32xf32>
    %279 = arith.addf %278, %277 : vector<8x32xf32>
    %280 = arith.divf %278, %279 : vector<8x32xf32>
    %281 = vector.extract_strided_slice %268 {offsets = [0, 64], sizes = [8, 32], strides = [1, 1]} : vector<8x128xf32> to vector<8x32xf32>
    %282 = math.tanh %281 : vector<8x32xf32>
    %283 = vector.extract_strided_slice %268 {offsets = [0, 96], sizes = [8, 32], strides = [1, 1]} : vector<8x128xf32> to vector<8x32xf32>
    %284 = arith.negf %283 : vector<8x32xf32>
    %285 = math.exp %284 : vector<8x32xf32>
    %cst_114 = arith.constant 1.000000e+00 : f32
    %286 = vector.broadcast %cst_114 : f32 to vector<8x32xf32>
    %287 = arith.addf %286, %285 : vector<8x32xf32>
    %288 = arith.divf %286, %287 : vector<8x32xf32>
    %289 = arith.mulf %280, %239 : vector<8x32xf32>
    %290 = arith.mulf %274, %282 : vector<8x32xf32>
    %291 = arith.addf %289, %290 : vector<8x32xf32>
    %292 = math.tanh %291 : vector<8x32xf32>
    %cst_115 = arith.constant dense<0.000000e+00> : vector<8xf32>
    %293 = vector.multi_reduction <add>, %292, %cst_115 [1] : vector<8x32xf32> to vector<8xf32>
    %294 = vector.shape_cast %293 : vector<8xf32> to vector<8x1xf32>
    %cst_116 = arith.constant 3.200000e+01 : f32
    %295 = vector.broadcast %cst_116 : f32 to vector<8x1xf32>
    %296 = arith.divf %294, %295 : vector<8x1xf32>
    %297 = vector.broadcast %296 : vector<8x1xf32> to vector<8x32xf32>
    %298 = arith.subf %292, %297 : vector<8x32xf32>
    %299 = arith.mulf %298, %298 : vector<8x32xf32>
    %cst_117 = arith.constant dense<0.000000e+00> : vector<8xf32>
    %300 = vector.multi_reduction <add>, %299, %cst_117 [1] : vector<8x32xf32> to vector<8xf32>
    %301 = vector.shape_cast %300 : vector<8xf32> to vector<8x1xf32>
    %cst_118 = arith.constant 3.200000e+01 : f32
    %302 = vector.broadcast %cst_118 : f32 to vector<8x1xf32>
    %303 = arith.divf %301, %302 : vector<8x1xf32>
    %304 = vector.broadcast %296 : vector<8x1xf32> to vector<8x32xf32>
    %305 = arith.subf %292, %304 : vector<8x32xf32>
    %cst_119 = arith.constant 9.99999974E-6 : f32
    %306 = vector.broadcast %cst_119 : f32 to vector<8x1xf32>
    %307 = arith.addf %303, %306 : vector<8x1xf32>
    %308 = math.rsqrt %307 : vector<8x1xf32>
    %309 = vector.broadcast %308 : vector<8x1xf32> to vector<8x32xf32>
    %310 = arith.mulf %305, %309 : vector<8x32xf32>
    %311 = vector.broadcast %11 : vector<1x32xf32> to vector<8x32xf32>
    %312 = arith.mulf %310, %311 : vector<8x32xf32>
    %313 = vector.broadcast %12 : vector<1x32xf32> to vector<8x32xf32>
    %314 = arith.addf %312, %313 : vector<8x32xf32>
    %315 = arith.mulf %288, %314 : vector<8x32xf32>
    %316 = vector.broadcast %231 : vector<8x1xf32> to vector<8x32xf32>
    %317 = arith.mulf %315, %316 : vector<8x32xf32>
    %318 = vector.broadcast %231 : vector<8x1xf32> to vector<8x32xf32>
    %319 = arith.mulf %291, %318 : vector<8x32xf32>
    %c0_120 = arith.constant 0 : index
    %c0_121 = arith.constant 0 : index
    %c0_122 = arith.constant 0 : index
    %320 = vector.load %arg23[%c0_120, %c0_121, %c0_122] : memref<2x8x32xf32, #tpu.memory_space<vmem>>, vector<1x8x32xf32>
    %321 = vector.shape_cast %320 : vector<1x8x32xf32> to vector<8x32xf32>
    %322 = vector.shape_cast %317 : vector<8x32xf32> to vector<1x8x32xf32>
    tpu.vector_store %arg23[%c0_120, %c0_121, %c0_122], %322 {strides = array<i32>} : memref<2x8x32xf32, #tpu.memory_space<vmem>>, vector<1x8x32xf32>,
    %c0_123 = arith.constant 0 : index
    %c0_124 = arith.constant 0 : index
    %c0_125 = arith.constant 0 : index
    %323 = vector.load %arg24[%c0_123, %c0_124, %c0_125] : memref<2x8x32xf32, #tpu.memory_space<vmem>>, vector<1x8x32xf32>
    %324 = vector.shape_cast %323 : vector<1x8x32xf32> to vector<8x32xf32>
    %325 = vector.shape_cast %319 : vector<8x32xf32> to vector<1x8x32xf32>
    tpu.vector_store %arg24[%c0_123, %c0_124, %c0_125], %325 {strides = array<i32>} : memref<2x8x32xf32, #tpu.memory_space<vmem>>, vector<1x8x32xf32>,
    %c1_126 = arith.constant 1 : index
    %c0_127 = arith.constant 0 : index
    %c0_128 = arith.constant 0 : index
    %326 = vector.load %arg23[%c1_126, %c0_127, %c0_128] : memref<2x8x32xf32, #tpu.memory_space<vmem>>, vector<1x8x32xf32>
    %327 = vector.shape_cast %326 : vector<1x8x32xf32> to vector<8x32xf32>
    %c1_129 = arith.constant 1 : index
    %c0_130 = arith.constant 0 : index
    %c0_131 = arith.constant 0 : index
    %328 = vector.load %arg24[%c1_129, %c0_130, %c0_131] : memref<2x8x32xf32, #tpu.memory_space<vmem>>, vector<1x8x32xf32>
    %329 = vector.shape_cast %328 : vector<1x8x32xf32> to vector<8x32xf32>
    %330 = arith.truncf %317 : vector<8x32xf32> to vector<8x32xbf16>
    %cst_132 = arith.constant dense<0.000000e+00> : vector<8x128xf32>
    %331 = tpu.matmul %330, %13, %cst_132 {dimension_numbers = #tpu.dot_dimension_numbers<[1], [0], [0], [1], [0, 0, 1, 1], [], []>} : vector<8x32xbf16>, vector<32x128xbf16>, vector<8x128xf32> -> vector<8x128xf32>
    %332 = vector.broadcast %15 : vector<1x128xf32> to vector<8x128xf32>
    %333 = arith.addf %331, %332 : vector<8x128xf32>
    %334 = arith.truncf %327 : vector<8x32xf32> to vector<8x32xbf16>
    %cst_133 = arith.constant dense<0.000000e+00> : vector<8x128xf32>
    %335 = tpu.matmul %334, %14, %cst_133 {dimension_numbers = #tpu.dot_dimension_numbers<[1], [0], [0], [1], [0, 0, 1, 1], [], []>} : vector<8x32xbf16>, vector<32x128xbf16>, vector<8x128xf32> -> vector<8x128xf32>
    %336 = vector.broadcast %16 : vector<1x128xf32> to vector<8x128xf32>
    %337 = arith.addf %335, %336 : vector<8x128xf32>
    %338 = tpu.concatenate %333, %337 in 0 : vector<8x128xf32>, vector<8x128xf32> -> vector<16x128xf32>
    %cst_134 = arith.constant dense<0.000000e+00> : vector<16xf32>
    %339 = vector.multi_reduction <add>, %338, %cst_134 [1] : vector<16x128xf32> to vector<16xf32>
    %340 = vector.shape_cast %339 : vector<16xf32> to vector<16x1xf32>
    %cst_135 = arith.constant 1.280000e+02 : f32
    %341 = vector.broadcast %cst_135 : f32 to vector<16x1xf32>
    %342 = arith.divf %340, %341 : vector<16x1xf32>
    %343 = vector.broadcast %342 : vector<16x1xf32> to vector<16x128xf32>
    %344 = arith.subf %338, %343 : vector<16x128xf32>
    %345 = arith.mulf %344, %344 : vector<16x128xf32>
    %cst_136 = arith.constant dense<0.000000e+00> : vector<16xf32>
    %346 = vector.multi_reduction <add>, %345, %cst_136 [1] : vector<16x128xf32> to vector<16xf32>
    %347 = vector.shape_cast %346 : vector<16xf32> to vector<16x1xf32>
    %cst_137 = arith.constant 1.280000e+02 : f32
    %348 = vector.broadcast %cst_137 : f32 to vector<16x1xf32>
    %349 = arith.divf %347, %348 : vector<16x1xf32>
    %350 = vector.broadcast %342 : vector<16x1xf32> to vector<16x128xf32>
    %351 = arith.subf %338, %350 : vector<16x128xf32>
    %cst_138 = arith.constant 9.99999974E-6 : f32
    %352 = vector.broadcast %cst_138 : f32 to vector<16x1xf32>
    %353 = arith.addf %349, %352 : vector<16x1xf32>
    %354 = math.rsqrt %353 : vector<16x1xf32>
    %355 = vector.broadcast %354 : vector<16x1xf32> to vector<16x128xf32>
    %356 = arith.mulf %351, %355 : vector<16x128xf32>
    %357 = vector.extract_strided_slice %356 {offsets = [0, 0], sizes = [8, 128], strides = [1, 1]} : vector<16x128xf32> to vector<8x128xf32>
    %358 = vector.broadcast %17 : vector<1x128xf32> to vector<8x128xf32>
    %359 = arith.mulf %357, %358 : vector<8x128xf32>
    %360 = vector.extract_strided_slice %356 {offsets = [8, 0], sizes = [8, 128], strides = [1, 1]} : vector<16x128xf32> to vector<8x128xf32>
    %361 = vector.broadcast %19 : vector<1x128xf32> to vector<8x128xf32>
    %362 = arith.mulf %360, %361 : vector<8x128xf32>
    %363 = arith.addf %359, %362 : vector<8x128xf32>
    %364 = vector.broadcast %23 : vector<1x128xf32> to vector<8x128xf32>
    %365 = arith.addf %363, %364 : vector<8x128xf32>
    %366 = vector.extract_strided_slice %365 {offsets = [0, 0], sizes = [8, 32], strides = [1, 1]} : vector<8x128xf32> to vector<8x32xf32>
    %367 = arith.negf %366 : vector<8x32xf32>
    %368 = math.exp %367 : vector<8x32xf32>
    %cst_139 = arith.constant 1.000000e+00 : f32
    %369 = vector.broadcast %cst_139 : f32 to vector<8x32xf32>
    %370 = arith.addf %369, %368 : vector<8x32xf32>
    %371 = arith.divf %369, %370 : vector<8x32xf32>
    %372 = vector.extract_strided_slice %365 {offsets = [0, 32], sizes = [8, 32], strides = [1, 1]} : vector<8x128xf32> to vector<8x32xf32>
    %373 = arith.negf %372 : vector<8x32xf32>
    %374 = math.exp %373 : vector<8x32xf32>
    %cst_140 = arith.constant 1.000000e+00 : f32
    %375 = vector.broadcast %cst_140 : f32 to vector<8x32xf32>
    %376 = arith.addf %375, %374 : vector<8x32xf32>
    %377 = arith.divf %375, %376 : vector<8x32xf32>
    %378 = vector.extract_strided_slice %365 {offsets = [0, 64], sizes = [8, 32], strides = [1, 1]} : vector<8x128xf32> to vector<8x32xf32>
    %379 = math.tanh %378 : vector<8x32xf32>
    %380 = vector.extract_strided_slice %365 {offsets = [0, 96], sizes = [8, 32], strides = [1, 1]} : vector<8x128xf32> to vector<8x32xf32>
    %381 = arith.negf %380 : vector<8x32xf32>
    %382 = math.exp %381 : vector<8x32xf32>
    %cst_141 = arith.constant 1.000000e+00 : f32
    %383 = vector.broadcast %cst_141 : f32 to vector<8x32xf32>
    %384 = arith.addf %383, %382 : vector<8x32xf32>
    %385 = arith.divf %383, %384 : vector<8x32xf32>
    %386 = arith.mulf %377, %329 : vector<8x32xf32>
    %387 = arith.mulf %371, %379 : vector<8x32xf32>
    %388 = arith.addf %386, %387 : vector<8x32xf32>
    %389 = math.tanh %388 : vector<8x32xf32>
    %cst_142 = arith.constant dense<0.000000e+00> : vector<8xf32>
    %390 = vector.multi_reduction <add>, %389, %cst_142 [1] : vector<8x32xf32> to vector<8xf32>
    %391 = vector.shape_cast %390 : vector<8xf32> to vector<8x1xf32>
    %cst_143 = arith.constant 3.200000e+01 : f32
    %392 = vector.broadcast %cst_143 : f32 to vector<8x1xf32>
    %393 = arith.divf %391, %392 : vector<8x1xf32>
    %394 = vector.broadcast %393 : vector<8x1xf32> to vector<8x32xf32>
    %395 = arith.subf %389, %394 : vector<8x32xf32>
    %396 = arith.mulf %395, %395 : vector<8x32xf32>
    %cst_144 = arith.constant dense<0.000000e+00> : vector<8xf32>
    %397 = vector.multi_reduction <add>, %396, %cst_144 [1] : vector<8x32xf32> to vector<8xf32>
    %398 = vector.shape_cast %397 : vector<8xf32> to vector<8x1xf32>
    %cst_145 = arith.constant 3.200000e+01 : f32
    %399 = vector.broadcast %cst_145 : f32 to vector<8x1xf32>
    %400 = arith.divf %398, %399 : vector<8x1xf32>
    %401 = vector.broadcast %393 : vector<8x1xf32> to vector<8x32xf32>
    %402 = arith.subf %389, %401 : vector<8x32xf32>
    %cst_146 = arith.constant 9.99999974E-6 : f32
    %403 = vector.broadcast %cst_146 : f32 to vector<8x1xf32>
    %404 = arith.addf %400, %403 : vector<8x1xf32>
    %405 = math.rsqrt %404 : vector<8x1xf32>
    %406 = vector.broadcast %405 : vector<8x1xf32> to vector<8x32xf32>
    %407 = arith.mulf %402, %406 : vector<8x32xf32>
    %408 = vector.broadcast %21 : vector<1x32xf32> to vector<8x32xf32>
    %409 = arith.mulf %407, %408 : vector<8x32xf32>
    %410 = vector.broadcast %22 : vector<1x32xf32> to vector<8x32xf32>
    %411 = arith.addf %409, %410 : vector<8x32xf32>
    %412 = arith.mulf %385, %411 : vector<8x32xf32>
    %413 = vector.broadcast %231 : vector<8x1xf32> to vector<8x32xf32>
    %414 = arith.mulf %412, %413 : vector<8x32xf32>
    %415 = vector.broadcast %231 : vector<8x1xf32> to vector<8x32xf32>
    %416 = arith.mulf %388, %415 : vector<8x32xf32>
    %c1_147 = arith.constant 1 : index
    %c0_148 = arith.constant 0 : index
    %c0_149 = arith.constant 0 : index
    %417 = vector.load %arg23[%c1_147, %c0_148, %c0_149] : memref<2x8x32xf32, #tpu.memory_space<vmem>>, vector<1x8x32xf32>
    %418 = vector.shape_cast %417 : vector<1x8x32xf32> to vector<8x32xf32>
    %419 = vector.shape_cast %414 : vector<8x32xf32> to vector<1x8x32xf32>
    tpu.vector_store %arg23[%c1_147, %c0_148, %c0_149], %419 {strides = array<i32>} : memref<2x8x32xf32, #tpu.memory_space<vmem>>, vector<1x8x32xf32>,
    %c1_150 = arith.constant 1 : index
    %c0_151 = arith.constant 0 : index
    %c0_152 = arith.constant 0 : index
    %420 = vector.load %arg24[%c1_150, %c0_151, %c0_152] : memref<2x8x32xf32, #tpu.memory_space<vmem>>, vector<1x8x32xf32>
    %421 = vector.shape_cast %420 : vector<1x8x32xf32> to vector<8x32xf32>
    %422 = vector.shape_cast %416 : vector<8x32xf32> to vector<1x8x32xf32>
    tpu.vector_store %arg24[%c1_150, %c0_151, %c0_152], %422 {strides = array<i32>} : memref<2x8x32xf32, #tpu.memory_space<vmem>>, vector<1x8x32xf32>,
    %c1_153 = arith.constant 1 : index
    %c0_154 = arith.constant 0 : index
    %c0_155 = arith.constant 0 : index
    %423 = vector.load %arg20[%c1_153, %c0_154, %c0_155] : memref<4x8x32xf32, #tpu.memory_space<vmem>>, vector<1x8x32xf32>
    %424 = vector.shape_cast %423 : vector<1x8x32xf32> to vector<8x32xf32>
    %425 = vector.shape_cast %414 : vector<8x32xf32> to vector<1x8x32xf32>
    tpu.vector_store %arg20[%c1_153, %c0_154, %c0_155], %425 {strides = array<i32>} : memref<4x8x32xf32, #tpu.memory_space<vmem>>, vector<1x8x32xf32>,
    %426 = arith.extui %6 : i1 to i32
    %c0_i32_156 = arith.constant 0 : i32
    %427 = arith.cmpi ne, %426, %c0_i32_156 : i32
    scf.if %427 {
      %c0_279 = arith.constant 0 : index
      %c0_280 = arith.constant 0 : index
      %c0_281 = arith.constant 0 : index
      %832 = vector.load %arg21[%c0_279, %c0_280, %c0_281] : memref<2x8x32xf32, #tpu.memory_space<vmem>>, vector<1x8x32xf32>
      %833 = vector.shape_cast %832 : vector<1x8x32xf32> to vector<8x32xf32>
      %834 = vector.shape_cast %235 : vector<8x1xi1> to vector<8x1xi1>
      %835 = vector.broadcast %834 : vector<8x1xi1> to vector<8x32xi1>
      %836 = arith.select %835, %317, %833 : vector<8x32xi1>, vector<8x32xf32>
      %c0_282 = arith.constant 0 : index
      %c0_283 = arith.constant 0 : index
      %c0_284 = arith.constant 0 : index
      %837 = vector.load %arg21[%c0_282, %c0_283, %c0_284] : memref<2x8x32xf32, #tpu.memory_space<vmem>>, vector<1x8x32xf32>
      %838 = vector.shape_cast %837 : vector<1x8x32xf32> to vector<8x32xf32>
      %839 = vector.shape_cast %836 : vector<8x32xf32> to vector<1x8x32xf32>
      tpu.vector_store %arg21[%c0_282, %c0_283, %c0_284], %839 {strides = array<i32>} : memref<2x8x32xf32, #tpu.memory_space<vmem>>, vector<1x8x32xf32>,
      %c0_285 = arith.constant 0 : index
      %c0_286 = arith.constant 0 : index
      %c0_287 = arith.constant 0 : index
      %840 = vector.load %arg22[%c0_285, %c0_286, %c0_287] : memref<2x8x32xf32, #tpu.memory_space<vmem>>, vector<1x8x32xf32>
      %841 = vector.shape_cast %840 : vector<1x8x32xf32> to vector<8x32xf32>
      %842 = vector.shape_cast %235 : vector<8x1xi1> to vector<8x1xi1>
      %843 = vector.broadcast %842 : vector<8x1xi1> to vector<8x32xi1>
      %844 = arith.select %843, %319, %841 : vector<8x32xi1>, vector<8x32xf32>
      %c0_288 = arith.constant 0 : index
      %c0_289 = arith.constant 0 : index
      %c0_290 = arith.constant 0 : index
      %845 = vector.load %arg22[%c0_288, %c0_289, %c0_290] : memref<2x8x32xf32, #tpu.memory_space<vmem>>, vector<1x8x32xf32>
      %846 = vector.shape_cast %845 : vector<1x8x32xf32> to vector<8x32xf32>
      %847 = vector.shape_cast %844 : vector<8x32xf32> to vector<1x8x32xf32>
      tpu.vector_store %arg22[%c0_288, %c0_289, %c0_290], %847 {strides = array<i32>} : memref<2x8x32xf32, #tpu.memory_space<vmem>>, vector<1x8x32xf32>,
      %c1_291 = arith.constant 1 : index
      %c0_292 = arith.constant 0 : index
      %c0_293 = arith.constant 0 : index
      %848 = vector.load %arg21[%c1_291, %c0_292, %c0_293] : memref<2x8x32xf32, #tpu.memory_space<vmem>>, vector<1x8x32xf32>
      %849 = vector.shape_cast %848 : vector<1x8x32xf32> to vector<8x32xf32>
      %850 = vector.shape_cast %235 : vector<8x1xi1> to vector<8x1xi1>
      %851 = vector.broadcast %850 : vector<8x1xi1> to vector<8x32xi1>
      %852 = arith.select %851, %414, %849 : vector<8x32xi1>, vector<8x32xf32>
      %c1_294 = arith.constant 1 : index
      %c0_295 = arith.constant 0 : index
      %c0_296 = arith.constant 0 : index
      %853 = vector.load %arg21[%c1_294, %c0_295, %c0_296] : memref<2x8x32xf32, #tpu.memory_space<vmem>>, vector<1x8x32xf32>
      %854 = vector.shape_cast %853 : vector<1x8x32xf32> to vector<8x32xf32>
      %855 = vector.shape_cast %852 : vector<8x32xf32> to vector<1x8x32xf32>
      tpu.vector_store %arg21[%c1_294, %c0_295, %c0_296], %855 {strides = array<i32>} : memref<2x8x32xf32, #tpu.memory_space<vmem>>, vector<1x8x32xf32>,
      %c1_297 = arith.constant 1 : index
      %c0_298 = arith.constant 0 : index
      %c0_299 = arith.constant 0 : index
      %856 = vector.load %arg22[%c1_297, %c0_298, %c0_299] : memref<2x8x32xf32, #tpu.memory_space<vmem>>, vector<1x8x32xf32>
      %857 = vector.shape_cast %856 : vector<1x8x32xf32> to vector<8x32xf32>
      %858 = vector.shape_cast %235 : vector<8x1xi1> to vector<8x1xi1>
      %859 = vector.broadcast %858 : vector<8x1xi1> to vector<8x32xi1>
      %860 = arith.select %859, %416, %857 : vector<8x32xi1>, vector<8x32xf32>
      %c1_300 = arith.constant 1 : index
      %c0_301 = arith.constant 0 : index
      %c0_302 = arith.constant 0 : index
      %861 = vector.load %arg22[%c1_300, %c0_301, %c0_302] : memref<2x8x32xf32, #tpu.memory_space<vmem>>, vector<1x8x32xf32>
      %862 = vector.shape_cast %861 : vector<1x8x32xf32> to vector<8x32xf32>
      %863 = vector.shape_cast %860 : vector<8x32xf32> to vector<1x8x32xf32>
      tpu.vector_store %arg22[%c1_300, %c0_301, %c0_302], %863 {strides = array<i32>} : memref<2x8x32xf32, #tpu.memory_space<vmem>>, vector<1x8x32xf32>,
    } else {
    }
    %c4_i32_157 = arith.constant 4 : i32
    %428 = arith.muli %arg0, %c4_i32_157 : i32
    %c2_i32 = arith.constant 2 : i32
    %429 = arith.addi %428, %c2_i32 : i32
    %430 = vector.broadcast %429 : i32 to vector<8x1xi32>
    %431 = arith.cmpi slt, %430, %3 : vector<8x1xi32>
    %432 = arith.extui %431 : vector<8x1xi1> to vector<8x1xi32>
    %433 = arith.sitofp %432 : vector<8x1xi32> to vector<8x1xf32>
    %c1_i32_158 = arith.constant 1 : i32
    %434 = vector.broadcast %c1_i32_158 : i32 to vector<8x1xi32>
    %435 = arith.subi %3, %434 : vector<8x1xi32>
    %436 = vector.broadcast %429 : i32 to vector<8x1xi32>
    %437 = arith.cmpi eq, %436, %435 : vector<8x1xi32>
    %c0_159 = arith.constant 0 : index
    %c0_160 = arith.constant 0 : index
    %c0_161 = arith.constant 0 : index
    %438 = vector.load %arg23[%c0_159, %c0_160, %c0_161] : memref<2x8x32xf32, #tpu.memory_space<vmem>>, vector<1x8x32xf32>
    %439 = vector.shape_cast %438 : vector<1x8x32xf32> to vector<8x32xf32>
    %c0_162 = arith.constant 0 : index
    %c0_163 = arith.constant 0 : index
    %c0_164 = arith.constant 0 : index
    %440 = vector.load %arg24[%c0_162, %c0_163, %c0_164] : memref<2x8x32xf32, #tpu.memory_space<vmem>>, vector<1x8x32xf32>
    %441 = vector.shape_cast %440 : vector<1x8x32xf32> to vector<8x32xf32>
    %442 = arith.truncf %439 : vector<8x32xf32> to vector<8x32xbf16>
    %cst_165 = arith.constant dense<0.000000e+00> : vector<8x128xf32>
    %443 = tpu.matmul %442, %7, %cst_165 {dimension_numbers = #tpu.dot_dimension_numbers<[1], [0], [0], [1], [0, 0, 1, 1], [], []>} : vector<8x32xbf16>, vector<32x128xbf16>, vector<8x128xf32> -> vector<8x128xf32>
    %444 = vector.broadcast %8 : vector<1x128xf32> to vector<8x128xf32>
    %445 = arith.addf %443, %444 : vector<8x128xf32>
    %c2 = arith.constant 2 : index
    %c0_166 = arith.constant 0 : index
    %c0_167 = arith.constant 0 : index
    %446 = vector.load %arg2[%c2, %c0_166, %c0_167] : memref<4x8x128xf32, #tpu.memory_space<vmem>>, vector<1x8x128xf32>
    %447 = vector.shape_cast %446 : vector<1x8x128xf32> to vector<8x128xf32>
    %cst_168 = arith.constant dense<0.000000e+00> : vector<8xf32>
    %448 = vector.multi_reduction <add>, %445, %cst_168 [1] : vector<8x128xf32> to vector<8xf32>
    %449 = vector.shape_cast %448 : vector<8xf32> to vector<8x1xf32>
    %cst_169 = arith.constant 1.280000e+02 : f32
    %450 = vector.broadcast %cst_169 : f32 to vector<8x1xf32>
    %451 = arith.divf %449, %450 : vector<8x1xf32>
    %452 = vector.broadcast %451 : vector<8x1xf32> to vector<8x128xf32>
    %453 = arith.subf %445, %452 : vector<8x128xf32>
    %454 = arith.mulf %453, %453 : vector<8x128xf32>
    %cst_170 = arith.constant dense<0.000000e+00> : vector<8xf32>
    %455 = vector.multi_reduction <add>, %454, %cst_170 [1] : vector<8x128xf32> to vector<8xf32>
    %456 = vector.shape_cast %455 : vector<8xf32> to vector<8x1xf32>
    %cst_171 = arith.constant 1.280000e+02 : f32
    %457 = vector.broadcast %cst_171 : f32 to vector<8x1xf32>
    %458 = arith.divf %456, %457 : vector<8x1xf32>
    %459 = vector.broadcast %451 : vector<8x1xf32> to vector<8x128xf32>
    %460 = arith.subf %445, %459 : vector<8x128xf32>
    %cst_172 = arith.constant 9.99999974E-6 : f32
    %461 = vector.broadcast %cst_172 : f32 to vector<8x1xf32>
    %462 = arith.addf %458, %461 : vector<8x1xf32>
    %463 = math.rsqrt %462 : vector<8x1xf32>
    %464 = vector.broadcast %463 : vector<8x1xf32> to vector<8x128xf32>
    %465 = arith.mulf %460, %464 : vector<8x128xf32>
    %466 = vector.broadcast %9 : vector<1x128xf32> to vector<8x128xf32>
    %467 = arith.mulf %465, %466 : vector<8x128xf32>
    %468 = vector.broadcast %10 : vector<1x128xf32> to vector<8x128xf32>
    %469 = arith.addf %467, %468 : vector<8x128xf32>
    %470 = arith.addf %447, %469 : vector<8x128xf32>
    %471 = vector.extract_strided_slice %470 {offsets = [0, 0], sizes = [8, 32], strides = [1, 1]} : vector<8x128xf32> to vector<8x32xf32>
    %472 = arith.negf %471 : vector<8x32xf32>
    %473 = math.exp %472 : vector<8x32xf32>
    %cst_173 = arith.constant 1.000000e+00 : f32
    %474 = vector.broadcast %cst_173 : f32 to vector<8x32xf32>
    %475 = arith.addf %474, %473 : vector<8x32xf32>
    %476 = arith.divf %474, %475 : vector<8x32xf32>
    %477 = vector.extract_strided_slice %470 {offsets = [0, 32], sizes = [8, 32], strides = [1, 1]} : vector<8x128xf32> to vector<8x32xf32>
    %478 = arith.negf %477 : vector<8x32xf32>
    %479 = math.exp %478 : vector<8x32xf32>
    %cst_174 = arith.constant 1.000000e+00 : f32
    %480 = vector.broadcast %cst_174 : f32 to vector<8x32xf32>
    %481 = arith.addf %480, %479 : vector<8x32xf32>
    %482 = arith.divf %480, %481 : vector<8x32xf32>
    %483 = vector.extract_strided_slice %470 {offsets = [0, 64], sizes = [8, 32], strides = [1, 1]} : vector<8x128xf32> to vector<8x32xf32>
    %484 = math.tanh %483 : vector<8x32xf32>
    %485 = vector.extract_strided_slice %470 {offsets = [0, 96], sizes = [8, 32], strides = [1, 1]} : vector<8x128xf32> to vector<8x32xf32>
    %486 = arith.negf %485 : vector<8x32xf32>
    %487 = math.exp %486 : vector<8x32xf32>
    %cst_175 = arith.constant 1.000000e+00 : f32
    %488 = vector.broadcast %cst_175 : f32 to vector<8x32xf32>
    %489 = arith.addf %488, %487 : vector<8x32xf32>
    %490 = arith.divf %488, %489 : vector<8x32xf32>
    %491 = arith.mulf %482, %441 : vector<8x32xf32>
    %492 = arith.mulf %476, %484 : vector<8x32xf32>
    %493 = arith.addf %491, %492 : vector<8x32xf32>
    %494 = math.tanh %493 : vector<8x32xf32>
    %cst_176 = arith.constant dense<0.000000e+00> : vector<8xf32>
    %495 = vector.multi_reduction <add>, %494, %cst_176 [1] : vector<8x32xf32> to vector<8xf32>
    %496 = vector.shape_cast %495 : vector<8xf32> to vector<8x1xf32>
    %cst_177 = arith.constant 3.200000e+01 : f32
    %497 = vector.broadcast %cst_177 : f32 to vector<8x1xf32>
    %498 = arith.divf %496, %497 : vector<8x1xf32>
    %499 = vector.broadcast %498 : vector<8x1xf32> to vector<8x32xf32>
    %500 = arith.subf %494, %499 : vector<8x32xf32>
    %501 = arith.mulf %500, %500 : vector<8x32xf32>
    %cst_178 = arith.constant dense<0.000000e+00> : vector<8xf32>
    %502 = vector.multi_reduction <add>, %501, %cst_178 [1] : vector<8x32xf32> to vector<8xf32>
    %503 = vector.shape_cast %502 : vector<8xf32> to vector<8x1xf32>
    %cst_179 = arith.constant 3.200000e+01 : f32
    %504 = vector.broadcast %cst_179 : f32 to vector<8x1xf32>
    %505 = arith.divf %503, %504 : vector<8x1xf32>
    %506 = vector.broadcast %498 : vector<8x1xf32> to vector<8x32xf32>
    %507 = arith.subf %494, %506 : vector<8x32xf32>
    %cst_180 = arith.constant 9.99999974E-6 : f32
    %508 = vector.broadcast %cst_180 : f32 to vector<8x1xf32>
    %509 = arith.addf %505, %508 : vector<8x1xf32>
    %510 = math.rsqrt %509 : vector<8x1xf32>
    %511 = vector.broadcast %510 : vector<8x1xf32> to vector<8x32xf32>
    %512 = arith.mulf %507, %511 : vector<8x32xf32>
    %513 = vector.broadcast %11 : vector<1x32xf32> to vector<8x32xf32>
    %514 = arith.mulf %512, %513 : vector<8x32xf32>
    %515 = vector.broadcast %12 : vector<1x32xf32> to vector<8x32xf32>
    %516 = arith.addf %514, %515 : vector<8x32xf32>
    %517 = arith.mulf %490, %516 : vector<8x32xf32>
    %518 = vector.broadcast %433 : vector<8x1xf32> to vector<8x32xf32>
    %519 = arith.mulf %517, %518 : vector<8x32xf32>
    %520 = vector.broadcast %433 : vector<8x1xf32> to vector<8x32xf32>
    %521 = arith.mulf %493, %520 : vector<8x32xf32>
    %c0_181 = arith.constant 0 : index
    %c0_182 = arith.constant 0 : index
    %c0_183 = arith.constant 0 : index
    %522 = vector.load %arg23[%c0_181, %c0_182, %c0_183] : memref<2x8x32xf32, #tpu.memory_space<vmem>>, vector<1x8x32xf32>
    %523 = vector.shape_cast %522 : vector<1x8x32xf32> to vector<8x32xf32>
    %524 = vector.shape_cast %519 : vector<8x32xf32> to vector<1x8x32xf32>
    tpu.vector_store %arg23[%c0_181, %c0_182, %c0_183], %524 {strides = array<i32>} : memref<2x8x32xf32, #tpu.memory_space<vmem>>, vector<1x8x32xf32>,
    %c0_184 = arith.constant 0 : index
    %c0_185 = arith.constant 0 : index
    %c0_186 = arith.constant 0 : index
    %525 = vector.load %arg24[%c0_184, %c0_185, %c0_186] : memref<2x8x32xf32, #tpu.memory_space<vmem>>, vector<1x8x32xf32>
    %526 = vector.shape_cast %525 : vector<1x8x32xf32> to vector<8x32xf32>
    %527 = vector.shape_cast %521 : vector<8x32xf32> to vector<1x8x32xf32>
    tpu.vector_store %arg24[%c0_184, %c0_185, %c0_186], %527 {strides = array<i32>} : memref<2x8x32xf32, #tpu.memory_space<vmem>>, vector<1x8x32xf32>,
    %c1_187 = arith.constant 1 : index
    %c0_188 = arith.constant 0 : index
    %c0_189 = arith.constant 0 : index
    %528 = vector.load %arg23[%c1_187, %c0_188, %c0_189] : memref<2x8x32xf32, #tpu.memory_space<vmem>>, vector<1x8x32xf32>
    %529 = vector.shape_cast %528 : vector<1x8x32xf32> to vector<8x32xf32>
    %c1_190 = arith.constant 1 : index
    %c0_191 = arith.constant 0 : index
    %c0_192 = arith.constant 0 : index
    %530 = vector.load %arg24[%c1_190, %c0_191, %c0_192] : memref<2x8x32xf32, #tpu.memory_space<vmem>>, vector<1x8x32xf32>
    %531 = vector.shape_cast %530 : vector<1x8x32xf32> to vector<8x32xf32>
    %532 = arith.truncf %519 : vector<8x32xf32> to vector<8x32xbf16>
    %cst_193 = arith.constant dense<0.000000e+00> : vector<8x128xf32>
    %533 = tpu.matmul %532, %13, %cst_193 {dimension_numbers = #tpu.dot_dimension_numbers<[1], [0], [0], [1], [0, 0, 1, 1], [], []>} : vector<8x32xbf16>, vector<32x128xbf16>, vector<8x128xf32> -> vector<8x128xf32>
    %534 = vector.broadcast %15 : vector<1x128xf32> to vector<8x128xf32>
    %535 = arith.addf %533, %534 : vector<8x128xf32>
    %536 = arith.truncf %529 : vector<8x32xf32> to vector<8x32xbf16>
    %cst_194 = arith.constant dense<0.000000e+00> : vector<8x128xf32>
    %537 = tpu.matmul %536, %14, %cst_194 {dimension_numbers = #tpu.dot_dimension_numbers<[1], [0], [0], [1], [0, 0, 1, 1], [], []>} : vector<8x32xbf16>, vector<32x128xbf16>, vector<8x128xf32> -> vector<8x128xf32>
    %538 = vector.broadcast %16 : vector<1x128xf32> to vector<8x128xf32>
    %539 = arith.addf %537, %538 : vector<8x128xf32>
    %540 = tpu.concatenate %535, %539 in 0 : vector<8x128xf32>, vector<8x128xf32> -> vector<16x128xf32>
    %cst_195 = arith.constant dense<0.000000e+00> : vector<16xf32>
    %541 = vector.multi_reduction <add>, %540, %cst_195 [1] : vector<16x128xf32> to vector<16xf32>
    %542 = vector.shape_cast %541 : vector<16xf32> to vector<16x1xf32>
    %cst_196 = arith.constant 1.280000e+02 : f32
    %543 = vector.broadcast %cst_196 : f32 to vector<16x1xf32>
    %544 = arith.divf %542, %543 : vector<16x1xf32>
    %545 = vector.broadcast %544 : vector<16x1xf32> to vector<16x128xf32>
    %546 = arith.subf %540, %545 : vector<16x128xf32>
    %547 = arith.mulf %546, %546 : vector<16x128xf32>
    %cst_197 = arith.constant dense<0.000000e+00> : vector<16xf32>
    %548 = vector.multi_reduction <add>, %547, %cst_197 [1] : vector<16x128xf32> to vector<16xf32>
    %549 = vector.shape_cast %548 : vector<16xf32> to vector<16x1xf32>
    %cst_198 = arith.constant 1.280000e+02 : f32
    %550 = vector.broadcast %cst_198 : f32 to vector<16x1xf32>
    %551 = arith.divf %549, %550 : vector<16x1xf32>
    %552 = vector.broadcast %544 : vector<16x1xf32> to vector<16x128xf32>
    %553 = arith.subf %540, %552 : vector<16x128xf32>
    %cst_199 = arith.constant 9.99999974E-6 : f32
    %554 = vector.broadcast %cst_199 : f32 to vector<16x1xf32>
    %555 = arith.addf %551, %554 : vector<16x1xf32>
    %556 = math.rsqrt %555 : vector<16x1xf32>
    %557 = vector.broadcast %556 : vector<16x1xf32> to vector<16x128xf32>
    %558 = arith.mulf %553, %557 : vector<16x128xf32>
    %559 = vector.extract_strided_slice %558 {offsets = [0, 0], sizes = [8, 128], strides = [1, 1]} : vector<16x128xf32> to vector<8x128xf32>
    %560 = vector.broadcast %17 : vector<1x128xf32> to vector<8x128xf32>
    %561 = arith.mulf %559, %560 : vector<8x128xf32>
    %562 = vector.extract_strided_slice %558 {offsets = [8, 0], sizes = [8, 128], strides = [1, 1]} : vector<16x128xf32> to vector<8x128xf32>
    %563 = vector.broadcast %19 : vector<1x128xf32> to vector<8x128xf32>
    %564 = arith.mulf %562, %563 : vector<8x128xf32>
    %565 = arith.addf %561, %564 : vector<8x128xf32>
    %566 = vector.broadcast %23 : vector<1x128xf32> to vector<8x128xf32>
    %567 = arith.addf %565, %566 : vector<8x128xf32>
    %568 = vector.extract_strided_slice %567 {offsets = [0, 0], sizes = [8, 32], strides = [1, 1]} : vector<8x128xf32> to vector<8x32xf32>
    %569 = arith.negf %568 : vector<8x32xf32>
    %570 = math.exp %569 : vector<8x32xf32>
    %cst_200 = arith.constant 1.000000e+00 : f32
    %571 = vector.broadcast %cst_200 : f32 to vector<8x32xf32>
    %572 = arith.addf %571, %570 : vector<8x32xf32>
    %573 = arith.divf %571, %572 : vector<8x32xf32>
    %574 = vector.extract_strided_slice %567 {offsets = [0, 32], sizes = [8, 32], strides = [1, 1]} : vector<8x128xf32> to vector<8x32xf32>
    %575 = arith.negf %574 : vector<8x32xf32>
    %576 = math.exp %575 : vector<8x32xf32>
    %cst_201 = arith.constant 1.000000e+00 : f32
    %577 = vector.broadcast %cst_201 : f32 to vector<8x32xf32>
    %578 = arith.addf %577, %576 : vector<8x32xf32>
    %579 = arith.divf %577, %578 : vector<8x32xf32>
    %580 = vector.extract_strided_slice %567 {offsets = [0, 64], sizes = [8, 32], strides = [1, 1]} : vector<8x128xf32> to vector<8x32xf32>
    %581 = math.tanh %580 : vector<8x32xf32>
    %582 = vector.extract_strided_slice %567 {offsets = [0, 96], sizes = [8, 32], strides = [1, 1]} : vector<8x128xf32> to vector<8x32xf32>
    %583 = arith.negf %582 : vector<8x32xf32>
    %584 = math.exp %583 : vector<8x32xf32>
    %cst_202 = arith.constant 1.000000e+00 : f32
    %585 = vector.broadcast %cst_202 : f32 to vector<8x32xf32>
    %586 = arith.addf %585, %584 : vector<8x32xf32>
    %587 = arith.divf %585, %586 : vector<8x32xf32>
    %588 = arith.mulf %579, %531 : vector<8x32xf32>
    %589 = arith.mulf %573, %581 : vector<8x32xf32>
    %590 = arith.addf %588, %589 : vector<8x32xf32>
    %591 = math.tanh %590 : vector<8x32xf32>
    %cst_203 = arith.constant dense<0.000000e+00> : vector<8xf32>
    %592 = vector.multi_reduction <add>, %591, %cst_203 [1] : vector<8x32xf32> to vector<8xf32>
    %593 = vector.shape_cast %592 : vector<8xf32> to vector<8x1xf32>
    %cst_204 = arith.constant 3.200000e+01 : f32
    %594 = vector.broadcast %cst_204 : f32 to vector<8x1xf32>
    %595 = arith.divf %593, %594 : vector<8x1xf32>
    %596 = vector.broadcast %595 : vector<8x1xf32> to vector<8x32xf32>
    %597 = arith.subf %591, %596 : vector<8x32xf32>
    %598 = arith.mulf %597, %597 : vector<8x32xf32>
    %cst_205 = arith.constant dense<0.000000e+00> : vector<8xf32>
    %599 = vector.multi_reduction <add>, %598, %cst_205 [1] : vector<8x32xf32> to vector<8xf32>
    %600 = vector.shape_cast %599 : vector<8xf32> to vector<8x1xf32>
    %cst_206 = arith.constant 3.200000e+01 : f32
    %601 = vector.broadcast %cst_206 : f32 to vector<8x1xf32>
    %602 = arith.divf %600, %601 : vector<8x1xf32>
    %603 = vector.broadcast %595 : vector<8x1xf32> to vector<8x32xf32>
    %604 = arith.subf %591, %603 : vector<8x32xf32>
    %cst_207 = arith.constant 9.99999974E-6 : f32
    %605 = vector.broadcast %cst_207 : f32 to vector<8x1xf32>
    %606 = arith.addf %602, %605 : vector<8x1xf32>
    %607 = math.rsqrt %606 : vector<8x1xf32>
    %608 = vector.broadcast %607 : vector<8x1xf32> to vector<8x32xf32>
    %609 = arith.mulf %604, %608 : vector<8x32xf32>
    %610 = vector.broadcast %21 : vector<1x32xf32> to vector<8x32xf32>
    %611 = arith.mulf %609, %610 : vector<8x32xf32>
    %612 = vector.broadcast %22 : vector<1x32xf32> to vector<8x32xf32>
    %613 = arith.addf %611, %612 : vector<8x32xf32>
    %614 = arith.mulf %587, %613 : vector<8x32xf32>
    %615 = vector.broadcast %433 : vector<8x1xf32> to vector<8x32xf32>
    %616 = arith.mulf %614, %615 : vector<8x32xf32>
    %617 = vector.broadcast %433 : vector<8x1xf32> to vector<8x32xf32>
    %618 = arith.mulf %590, %617 : vector<8x32xf32>
    %c1_208 = arith.constant 1 : index
    %c0_209 = arith.constant 0 : index
    %c0_210 = arith.constant 0 : index
    %619 = vector.load %arg23[%c1_208, %c0_209, %c0_210] : memref<2x8x32xf32, #tpu.memory_space<vmem>>, vector<1x8x32xf32>
    %620 = vector.shape_cast %619 : vector<1x8x32xf32> to vector<8x32xf32>
    %621 = vector.shape_cast %616 : vector<8x32xf32> to vector<1x8x32xf32>
    tpu.vector_store %arg23[%c1_208, %c0_209, %c0_210], %621 {strides = array<i32>} : memref<2x8x32xf32, #tpu.memory_space<vmem>>, vector<1x8x32xf32>,
    %c1_211 = arith.constant 1 : index
    %c0_212 = arith.constant 0 : index
    %c0_213 = arith.constant 0 : index
    %622 = vector.load %arg24[%c1_211, %c0_212, %c0_213] : memref<2x8x32xf32, #tpu.memory_space<vmem>>, vector<1x8x32xf32>
    %623 = vector.shape_cast %622 : vector<1x8x32xf32> to vector<8x32xf32>
    %624 = vector.shape_cast %618 : vector<8x32xf32> to vector<1x8x32xf32>
    tpu.vector_store %arg24[%c1_211, %c0_212, %c0_213], %624 {strides = array<i32>} : memref<2x8x32xf32, #tpu.memory_space<vmem>>, vector<1x8x32xf32>,
    %c2_214 = arith.constant 2 : index
    %c0_215 = arith.constant 0 : index
    %c0_216 = arith.constant 0 : index
    %625 = vector.load %arg20[%c2_214, %c0_215, %c0_216] : memref<4x8x32xf32, #tpu.memory_space<vmem>>, vector<1x8x32xf32>
    %626 = vector.shape_cast %625 : vector<1x8x32xf32> to vector<8x32xf32>
    %627 = vector.shape_cast %616 : vector<8x32xf32> to vector<1x8x32xf32>
    tpu.vector_store %arg20[%c2_214, %c0_215, %c0_216], %627 {strides = array<i32>} : memref<4x8x32xf32, #tpu.memory_space<vmem>>, vector<1x8x32xf32>,
    %628 = arith.extui %6 : i1 to i32
    %c0_i32_217 = arith.constant 0 : i32
    %629 = arith.cmpi ne, %628, %c0_i32_217 : i32
    scf.if %629 {
      %c0_279 = arith.constant 0 : index
      %c0_280 = arith.constant 0 : index
      %c0_281 = arith.constant 0 : index
      %832 = vector.load %arg21[%c0_279, %c0_280, %c0_281] : memref<2x8x32xf32, #tpu.memory_space<vmem>>, vector<1x8x32xf32>
      %833 = vector.shape_cast %832 : vector<1x8x32xf32> to vector<8x32xf32>
      %834 = vector.shape_cast %437 : vector<8x1xi1> to vector<8x1xi1>
      %835 = vector.broadcast %834 : vector<8x1xi1> to vector<8x32xi1>
      %836 = arith.select %835, %519, %833 : vector<8x32xi1>, vector<8x32xf32>
      %c0_282 = arith.constant 0 : index
      %c0_283 = arith.constant 0 : index
      %c0_284 = arith.constant 0 : index
      %837 = vector.load %arg21[%c0_282, %c0_283, %c0_284] : memref<2x8x32xf32, #tpu.memory_space<vmem>>, vector<1x8x32xf32>
      %838 = vector.shape_cast %837 : vector<1x8x32xf32> to vector<8x32xf32>
      %839 = vector.shape_cast %836 : vector<8x32xf32> to vector<1x8x32xf32>
      tpu.vector_store %arg21[%c0_282, %c0_283, %c0_284], %839 {strides = array<i32>} : memref<2x8x32xf32, #tpu.memory_space<vmem>>, vector<1x8x32xf32>,
      %c0_285 = arith.constant 0 : index
      %c0_286 = arith.constant 0 : index
      %c0_287 = arith.constant 0 : index
      %840 = vector.load %arg22[%c0_285, %c0_286, %c0_287] : memref<2x8x32xf32, #tpu.memory_space<vmem>>, vector<1x8x32xf32>
      %841 = vector.shape_cast %840 : vector<1x8x32xf32> to vector<8x32xf32>
      %842 = vector.shape_cast %437 : vector<8x1xi1> to vector<8x1xi1>
      %843 = vector.broadcast %842 : vector<8x1xi1> to vector<8x32xi1>
      %844 = arith.select %843, %521, %841 : vector<8x32xi1>, vector<8x32xf32>
      %c0_288 = arith.constant 0 : index
      %c0_289 = arith.constant 0 : index
      %c0_290 = arith.constant 0 : index
      %845 = vector.load %arg22[%c0_288, %c0_289, %c0_290] : memref<2x8x32xf32, #tpu.memory_space<vmem>>, vector<1x8x32xf32>
      %846 = vector.shape_cast %845 : vector<1x8x32xf32> to vector<8x32xf32>
      %847 = vector.shape_cast %844 : vector<8x32xf32> to vector<1x8x32xf32>
      tpu.vector_store %arg22[%c0_288, %c0_289, %c0_290], %847 {strides = array<i32>} : memref<2x8x32xf32, #tpu.memory_space<vmem>>, vector<1x8x32xf32>,
      %c1_291 = arith.constant 1 : index
      %c0_292 = arith.constant 0 : index
      %c0_293 = arith.constant 0 : index
      %848 = vector.load %arg21[%c1_291, %c0_292, %c0_293] : memref<2x8x32xf32, #tpu.memory_space<vmem>>, vector<1x8x32xf32>
      %849 = vector.shape_cast %848 : vector<1x8x32xf32> to vector<8x32xf32>
      %850 = vector.shape_cast %437 : vector<8x1xi1> to vector<8x1xi1>
      %851 = vector.broadcast %850 : vector<8x1xi1> to vector<8x32xi1>
      %852 = arith.select %851, %616, %849 : vector<8x32xi1>, vector<8x32xf32>
      %c1_294 = arith.constant 1 : index
      %c0_295 = arith.constant 0 : index
      %c0_296 = arith.constant 0 : index
      %853 = vector.load %arg21[%c1_294, %c0_295, %c0_296] : memref<2x8x32xf32, #tpu.memory_space<vmem>>, vector<1x8x32xf32>
      %854 = vector.shape_cast %853 : vector<1x8x32xf32> to vector<8x32xf32>
      %855 = vector.shape_cast %852 : vector<8x32xf32> to vector<1x8x32xf32>
      tpu.vector_store %arg21[%c1_294, %c0_295, %c0_296], %855 {strides = array<i32>} : memref<2x8x32xf32, #tpu.memory_space<vmem>>, vector<1x8x32xf32>,
      %c1_297 = arith.constant 1 : index
      %c0_298 = arith.constant 0 : index
      %c0_299 = arith.constant 0 : index
      %856 = vector.load %arg22[%c1_297, %c0_298, %c0_299] : memref<2x8x32xf32, #tpu.memory_space<vmem>>, vector<1x8x32xf32>
      %857 = vector.shape_cast %856 : vector<1x8x32xf32> to vector<8x32xf32>
      %858 = vector.shape_cast %437 : vector<8x1xi1> to vector<8x1xi1>
      %859 = vector.broadcast %858 : vector<8x1xi1> to vector<8x32xi1>
      %860 = arith.select %859, %618, %857 : vector<8x32xi1>, vector<8x32xf32>
      %c1_300 = arith.constant 1 : index
      %c0_301 = arith.constant 0 : index
      %c0_302 = arith.constant 0 : index
      %861 = vector.load %arg22[%c1_300, %c0_301, %c0_302] : memref<2x8x32xf32, #tpu.memory_space<vmem>>, vector<1x8x32xf32>
      %862 = vector.shape_cast %861 : vector<1x8x32xf32> to vector<8x32xf32>
      %863 = vector.shape_cast %860 : vector<8x32xf32> to vector<1x8x32xf32>
      tpu.vector_store %arg22[%c1_300, %c0_301, %c0_302], %863 {strides = array<i32>} : memref<2x8x32xf32, #tpu.memory_space<vmem>>, vector<1x8x32xf32>,
    } else {
    }
    %c4_i32_218 = arith.constant 4 : i32
    %630 = arith.muli %arg0, %c4_i32_218 : i32
    %c3_i32 = arith.constant 3 : i32
    %631 = arith.addi %630, %c3_i32 : i32
    %632 = vector.broadcast %631 : i32 to vector<8x1xi32>
    %633 = arith.cmpi slt, %632, %3 : vector<8x1xi32>
    %634 = arith.extui %633 : vector<8x1xi1> to vector<8x1xi32>
    %635 = arith.sitofp %634 : vector<8x1xi32> to vector<8x1xf32>
    %c1_i32_219 = arith.constant 1 : i32
    %636 = vector.broadcast %c1_i32_219 : i32 to vector<8x1xi32>
    %637 = arith.subi %3, %636 : vector<8x1xi32>
    %638 = vector.broadcast %631 : i32 to vector<8x1xi32>
    %639 = arith.cmpi eq, %638, %637 : vector<8x1xi32>
    %c0_220 = arith.constant 0 : index
    %c0_221 = arith.constant 0 : index
    %c0_222 = arith.constant 0 : index
    %640 = vector.load %arg23[%c0_220, %c0_221, %c0_222] : memref<2x8x32xf32, #tpu.memory_space<vmem>>, vector<1x8x32xf32>
    %641 = vector.shape_cast %640 : vector<1x8x32xf32> to vector<8x32xf32>
    %c0_223 = arith.constant 0 : index
    %c0_224 = arith.constant 0 : index
    %c0_225 = arith.constant 0 : index
    %642 = vector.load %arg24[%c0_223, %c0_224, %c0_225] : memref<2x8x32xf32, #tpu.memory_space<vmem>>, vector<1x8x32xf32>
    %643 = vector.shape_cast %642 : vector<1x8x32xf32> to vector<8x32xf32>
    %644 = arith.truncf %641 : vector<8x32xf32> to vector<8x32xbf16>
    %cst_226 = arith.constant dense<0.000000e+00> : vector<8x128xf32>
    %645 = tpu.matmul %644, %7, %cst_226 {dimension_numbers = #tpu.dot_dimension_numbers<[1], [0], [0], [1], [0, 0, 1, 1], [], []>} : vector<8x32xbf16>, vector<32x128xbf16>, vector<8x128xf32> -> vector<8x128xf32>
    %646 = vector.broadcast %8 : vector<1x128xf32> to vector<8x128xf32>
    %647 = arith.addf %645, %646 : vector<8x128xf32>
    %c3 = arith.constant 3 : index
    %c0_227 = arith.constant 0 : index
    %c0_228 = arith.constant 0 : index
    %648 = vector.load %arg2[%c3, %c0_227, %c0_228] : memref<4x8x128xf32, #tpu.memory_space<vmem>>, vector<1x8x128xf32>
    %649 = vector.shape_cast %648 : vector<1x8x128xf32> to vector<8x128xf32>
    %cst_229 = arith.constant dense<0.000000e+00> : vector<8xf32>
    %650 = vector.multi_reduction <add>, %647, %cst_229 [1] : vector<8x128xf32> to vector<8xf32>
    %651 = vector.shape_cast %650 : vector<8xf32> to vector<8x1xf32>
    %cst_230 = arith.constant 1.280000e+02 : f32
    %652 = vector.broadcast %cst_230 : f32 to vector<8x1xf32>
    %653 = arith.divf %651, %652 : vector<8x1xf32>
    %654 = vector.broadcast %653 : vector<8x1xf32> to vector<8x128xf32>
    %655 = arith.subf %647, %654 : vector<8x128xf32>
    %656 = arith.mulf %655, %655 : vector<8x128xf32>
    %cst_231 = arith.constant dense<0.000000e+00> : vector<8xf32>
    %657 = vector.multi_reduction <add>, %656, %cst_231 [1] : vector<8x128xf32> to vector<8xf32>
    %658 = vector.shape_cast %657 : vector<8xf32> to vector<8x1xf32>
    %cst_232 = arith.constant 1.280000e+02 : f32
    %659 = vector.broadcast %cst_232 : f32 to vector<8x1xf32>
    %660 = arith.divf %658, %659 : vector<8x1xf32>
    %661 = vector.broadcast %653 : vector<8x1xf32> to vector<8x128xf32>
    %662 = arith.subf %647, %661 : vector<8x128xf32>
    %cst_233 = arith.constant 9.99999974E-6 : f32
    %663 = vector.broadcast %cst_233 : f32 to vector<8x1xf32>
    %664 = arith.addf %660, %663 : vector<8x1xf32>
    %665 = math.rsqrt %664 : vector<8x1xf32>
    %666 = vector.broadcast %665 : vector<8x1xf32> to vector<8x128xf32>
    %667 = arith.mulf %662, %666 : vector<8x128xf32>
    %668 = vector.broadcast %9 : vector<1x128xf32> to vector<8x128xf32>
    %669 = arith.mulf %667, %668 : vector<8x128xf32>
    %670 = vector.broadcast %10 : vector<1x128xf32> to vector<8x128xf32>
    %671 = arith.addf %669, %670 : vector<8x128xf32>
    %672 = arith.addf %649, %671 : vector<8x128xf32>
    %673 = vector.extract_strided_slice %672 {offsets = [0, 0], sizes = [8, 32], strides = [1, 1]} : vector<8x128xf32> to vector<8x32xf32>
    %674 = arith.negf %673 : vector<8x32xf32>
    %675 = math.exp %674 : vector<8x32xf32>
    %cst_234 = arith.constant 1.000000e+00 : f32
    %676 = vector.broadcast %cst_234 : f32 to vector<8x32xf32>
    %677 = arith.addf %676, %675 : vector<8x32xf32>
    %678 = arith.divf %676, %677 : vector<8x32xf32>
    %679 = vector.extract_strided_slice %672 {offsets = [0, 32], sizes = [8, 32], strides = [1, 1]} : vector<8x128xf32> to vector<8x32xf32>
    %680 = arith.negf %679 : vector<8x32xf32>
    %681 = math.exp %680 : vector<8x32xf32>
    %cst_235 = arith.constant 1.000000e+00 : f32
    %682 = vector.broadcast %cst_235 : f32 to vector<8x32xf32>
    %683 = arith.addf %682, %681 : vector<8x32xf32>
    %684 = arith.divf %682, %683 : vector<8x32xf32>
    %685 = vector.extract_strided_slice %672 {offsets = [0, 64], sizes = [8, 32], strides = [1, 1]} : vector<8x128xf32> to vector<8x32xf32>
    %686 = math.tanh %685 : vector<8x32xf32>
    %687 = vector.extract_strided_slice %672 {offsets = [0, 96], sizes = [8, 32], strides = [1, 1]} : vector<8x128xf32> to vector<8x32xf32>
    %688 = arith.negf %687 : vector<8x32xf32>
    %689 = math.exp %688 : vector<8x32xf32>
    %cst_236 = arith.constant 1.000000e+00 : f32
    %690 = vector.broadcast %cst_236 : f32 to vector<8x32xf32>
    %691 = arith.addf %690, %689 : vector<8x32xf32>
    %692 = arith.divf %690, %691 : vector<8x32xf32>
    %693 = arith.mulf %684, %643 : vector<8x32xf32>
    %694 = arith.mulf %678, %686 : vector<8x32xf32>
    %695 = arith.addf %693, %694 : vector<8x32xf32>
    %696 = math.tanh %695 : vector<8x32xf32>
    %cst_237 = arith.constant dense<0.000000e+00> : vector<8xf32>
    %697 = vector.multi_reduction <add>, %696, %cst_237 [1] : vector<8x32xf32> to vector<8xf32>
    %698 = vector.shape_cast %697 : vector<8xf32> to vector<8x1xf32>
    %cst_238 = arith.constant 3.200000e+01 : f32
    %699 = vector.broadcast %cst_238 : f32 to vector<8x1xf32>
    %700 = arith.divf %698, %699 : vector<8x1xf32>
    %701 = vector.broadcast %700 : vector<8x1xf32> to vector<8x32xf32>
    %702 = arith.subf %696, %701 : vector<8x32xf32>
    %703 = arith.mulf %702, %702 : vector<8x32xf32>
    %cst_239 = arith.constant dense<0.000000e+00> : vector<8xf32>
    %704 = vector.multi_reduction <add>, %703, %cst_239 [1] : vector<8x32xf32> to vector<8xf32>
    %705 = vector.shape_cast %704 : vector<8xf32> to vector<8x1xf32>
    %cst_240 = arith.constant 3.200000e+01 : f32
    %706 = vector.broadcast %cst_240 : f32 to vector<8x1xf32>
    %707 = arith.divf %705, %706 : vector<8x1xf32>
    %708 = vector.broadcast %700 : vector<8x1xf32> to vector<8x32xf32>
    %709 = arith.subf %696, %708 : vector<8x32xf32>
    %cst_241 = arith.constant 9.99999974E-6 : f32
    %710 = vector.broadcast %cst_241 : f32 to vector<8x1xf32>
    %711 = arith.addf %707, %710 : vector<8x1xf32>
    %712 = math.rsqrt %711 : vector<8x1xf32>
    %713 = vector.broadcast %712 : vector<8x1xf32> to vector<8x32xf32>
    %714 = arith.mulf %709, %713 : vector<8x32xf32>
    %715 = vector.broadcast %11 : vector<1x32xf32> to vector<8x32xf32>
    %716 = arith.mulf %714, %715 : vector<8x32xf32>
    %717 = vector.broadcast %12 : vector<1x32xf32> to vector<8x32xf32>
    %718 = arith.addf %716, %717 : vector<8x32xf32>
    %719 = arith.mulf %692, %718 : vector<8x32xf32>
    %720 = vector.broadcast %635 : vector<8x1xf32> to vector<8x32xf32>
    %721 = arith.mulf %719, %720 : vector<8x32xf32>
    %722 = vector.broadcast %635 : vector<8x1xf32> to vector<8x32xf32>
    %723 = arith.mulf %695, %722 : vector<8x32xf32>
    %c0_242 = arith.constant 0 : index
    %c0_243 = arith.constant 0 : index
    %c0_244 = arith.constant 0 : index
    %724 = vector.load %arg23[%c0_242, %c0_243, %c0_244] : memref<2x8x32xf32, #tpu.memory_space<vmem>>, vector<1x8x32xf32>
    %725 = vector.shape_cast %724 : vector<1x8x32xf32> to vector<8x32xf32>
    %726 = vector.shape_cast %721 : vector<8x32xf32> to vector<1x8x32xf32>
    tpu.vector_store %arg23[%c0_242, %c0_243, %c0_244], %726 {strides = array<i32>} : memref<2x8x32xf32, #tpu.memory_space<vmem>>, vector<1x8x32xf32>,
    %c0_245 = arith.constant 0 : index
    %c0_246 = arith.constant 0 : index
    %c0_247 = arith.constant 0 : index
    %727 = vector.load %arg24[%c0_245, %c0_246, %c0_247] : memref<2x8x32xf32, #tpu.memory_space<vmem>>, vector<1x8x32xf32>
    %728 = vector.shape_cast %727 : vector<1x8x32xf32> to vector<8x32xf32>
    %729 = vector.shape_cast %723 : vector<8x32xf32> to vector<1x8x32xf32>
    tpu.vector_store %arg24[%c0_245, %c0_246, %c0_247], %729 {strides = array<i32>} : memref<2x8x32xf32, #tpu.memory_space<vmem>>, vector<1x8x32xf32>,
    %c1_248 = arith.constant 1 : index
    %c0_249 = arith.constant 0 : index
    %c0_250 = arith.constant 0 : index
    %730 = vector.load %arg23[%c1_248, %c0_249, %c0_250] : memref<2x8x32xf32, #tpu.memory_space<vmem>>, vector<1x8x32xf32>
    %731 = vector.shape_cast %730 : vector<1x8x32xf32> to vector<8x32xf32>
    %c1_251 = arith.constant 1 : index
    %c0_252 = arith.constant 0 : index
    %c0_253 = arith.constant 0 : index
    %732 = vector.load %arg24[%c1_251, %c0_252, %c0_253] : memref<2x8x32xf32, #tpu.memory_space<vmem>>, vector<1x8x32xf32>
    %733 = vector.shape_cast %732 : vector<1x8x32xf32> to vector<8x32xf32>
    %734 = arith.truncf %721 : vector<8x32xf32> to vector<8x32xbf16>
    %cst_254 = arith.constant dense<0.000000e+00> : vector<8x128xf32>
    %735 = tpu.matmul %734, %13, %cst_254 {dimension_numbers = #tpu.dot_dimension_numbers<[1], [0], [0], [1], [0, 0, 1, 1], [], []>} : vector<8x32xbf16>, vector<32x128xbf16>, vector<8x128xf32> -> vector<8x128xf32>
    %736 = vector.broadcast %15 : vector<1x128xf32> to vector<8x128xf32>
    %737 = arith.addf %735, %736 : vector<8x128xf32>
    %738 = arith.truncf %731 : vector<8x32xf32> to vector<8x32xbf16>
    %cst_255 = arith.constant dense<0.000000e+00> : vector<8x128xf32>
    %739 = tpu.matmul %738, %14, %cst_255 {dimension_numbers = #tpu.dot_dimension_numbers<[1], [0], [0], [1], [0, 0, 1, 1], [], []>} : vector<8x32xbf16>, vector<32x128xbf16>, vector<8x128xf32> -> vector<8x128xf32>
    %740 = vector.broadcast %16 : vector<1x128xf32> to vector<8x128xf32>
    %741 = arith.addf %739, %740 : vector<8x128xf32>
    %742 = tpu.concatenate %737, %741 in 0 : vector<8x128xf32>, vector<8x128xf32> -> vector<16x128xf32>
    %cst_256 = arith.constant dense<0.000000e+00> : vector<16xf32>
    %743 = vector.multi_reduction <add>, %742, %cst_256 [1] : vector<16x128xf32> to vector<16xf32>
    %744 = vector.shape_cast %743 : vector<16xf32> to vector<16x1xf32>
    %cst_257 = arith.constant 1.280000e+02 : f32
    %745 = vector.broadcast %cst_257 : f32 to vector<16x1xf32>
    %746 = arith.divf %744, %745 : vector<16x1xf32>
    %747 = vector.broadcast %746 : vector<16x1xf32> to vector<16x128xf32>
    %748 = arith.subf %742, %747 : vector<16x128xf32>
    %749 = arith.mulf %748, %748 : vector<16x128xf32>
    %cst_258 = arith.constant dense<0.000000e+00> : vector<16xf32>
    %750 = vector.multi_reduction <add>, %749, %cst_258 [1] : vector<16x128xf32> to vector<16xf32>
    %751 = vector.shape_cast %750 : vector<16xf32> to vector<16x1xf32>
    %cst_259 = arith.constant 1.280000e+02 : f32
    %752 = vector.broadcast %cst_259 : f32 to vector<16x1xf32>
    %753 = arith.divf %751, %752 : vector<16x1xf32>
    %754 = vector.broadcast %746 : vector<16x1xf32> to vector<16x128xf32>
    %755 = arith.subf %742, %754 : vector<16x128xf32>
    %cst_260 = arith.constant 9.99999974E-6 : f32
    %756 = vector.broadcast %cst_260 : f32 to vector<16x1xf32>
    %757 = arith.addf %753, %756 : vector<16x1xf32>
    %758 = math.rsqrt %757 : vector<16x1xf32>
    %759 = vector.broadcast %758 : vector<16x1xf32> to vector<16x128xf32>
    %760 = arith.mulf %755, %759 : vector<16x128xf32>
    %761 = vector.extract_strided_slice %760 {offsets = [0, 0], sizes = [8, 128], strides = [1, 1]} : vector<16x128xf32> to vector<8x128xf32>
    %762 = vector.broadcast %17 : vector<1x128xf32> to vector<8x128xf32>
    %763 = arith.mulf %761, %762 : vector<8x128xf32>
    %764 = vector.extract_strided_slice %760 {offsets = [8, 0], sizes = [8, 128], strides = [1, 1]} : vector<16x128xf32> to vector<8x128xf32>
    %765 = vector.broadcast %19 : vector<1x128xf32> to vector<8x128xf32>
    %766 = arith.mulf %764, %765 : vector<8x128xf32>
    %767 = arith.addf %763, %766 : vector<8x128xf32>
    %768 = vector.broadcast %23 : vector<1x128xf32> to vector<8x128xf32>
    %769 = arith.addf %767, %768 : vector<8x128xf32>
    %770 = vector.extract_strided_slice %769 {offsets = [0, 0], sizes = [8, 32], strides = [1, 1]} : vector<8x128xf32> to vector<8x32xf32>
    %771 = arith.negf %770 : vector<8x32xf32>
    %772 = math.exp %771 : vector<8x32xf32>
    %cst_261 = arith.constant 1.000000e+00 : f32
    %773 = vector.broadcast %cst_261 : f32 to vector<8x32xf32>
    %774 = arith.addf %773, %772 : vector<8x32xf32>
    %775 = arith.divf %773, %774 : vector<8x32xf32>
    %776 = vector.extract_strided_slice %769 {offsets = [0, 32], sizes = [8, 32], strides = [1, 1]} : vector<8x128xf32> to vector<8x32xf32>
    %777 = arith.negf %776 : vector<8x32xf32>
    %778 = math.exp %777 : vector<8x32xf32>
    %cst_262 = arith.constant 1.000000e+00 : f32
    %779 = vector.broadcast %cst_262 : f32 to vector<8x32xf32>
    %780 = arith.addf %779, %778 : vector<8x32xf32>
    %781 = arith.divf %779, %780 : vector<8x32xf32>
    %782 = vector.extract_strided_slice %769 {offsets = [0, 64], sizes = [8, 32], strides = [1, 1]} : vector<8x128xf32> to vector<8x32xf32>
    %783 = math.tanh %782 : vector<8x32xf32>
    %784 = vector.extract_strided_slice %769 {offsets = [0, 96], sizes = [8, 32], strides = [1, 1]} : vector<8x128xf32> to vector<8x32xf32>
    %785 = arith.negf %784 : vector<8x32xf32>
    %786 = math.exp %785 : vector<8x32xf32>
    %cst_263 = arith.constant 1.000000e+00 : f32
    %787 = vector.broadcast %cst_263 : f32 to vector<8x32xf32>
    %788 = arith.addf %787, %786 : vector<8x32xf32>
    %789 = arith.divf %787, %788 : vector<8x32xf32>
    %790 = arith.mulf %781, %733 : vector<8x32xf32>
    %791 = arith.mulf %775, %783 : vector<8x32xf32>
    %792 = arith.addf %790, %791 : vector<8x32xf32>
    %793 = math.tanh %792 : vector<8x32xf32>
    %cst_264 = arith.constant dense<0.000000e+00> : vector<8xf32>
    %794 = vector.multi_reduction <add>, %793, %cst_264 [1] : vector<8x32xf32> to vector<8xf32>
    %795 = vector.shape_cast %794 : vector<8xf32> to vector<8x1xf32>
    %cst_265 = arith.constant 3.200000e+01 : f32
    %796 = vector.broadcast %cst_265 : f32 to vector<8x1xf32>
    %797 = arith.divf %795, %796 : vector<8x1xf32>
    %798 = vector.broadcast %797 : vector<8x1xf32> to vector<8x32xf32>
    %799 = arith.subf %793, %798 : vector<8x32xf32>
    %800 = arith.mulf %799, %799 : vector<8x32xf32>
    %cst_266 = arith.constant dense<0.000000e+00> : vector<8xf32>
    %801 = vector.multi_reduction <add>, %800, %cst_266 [1] : vector<8x32xf32> to vector<8xf32>
    %802 = vector.shape_cast %801 : vector<8xf32> to vector<8x1xf32>
    %cst_267 = arith.constant 3.200000e+01 : f32
    %803 = vector.broadcast %cst_267 : f32 to vector<8x1xf32>
    %804 = arith.divf %802, %803 : vector<8x1xf32>
    %805 = vector.broadcast %797 : vector<8x1xf32> to vector<8x32xf32>
    %806 = arith.subf %793, %805 : vector<8x32xf32>
    %cst_268 = arith.constant 9.99999974E-6 : f32
    %807 = vector.broadcast %cst_268 : f32 to vector<8x1xf32>
    %808 = arith.addf %804, %807 : vector<8x1xf32>
    %809 = math.rsqrt %808 : vector<8x1xf32>
    %810 = vector.broadcast %809 : vector<8x1xf32> to vector<8x32xf32>
    %811 = arith.mulf %806, %810 : vector<8x32xf32>
    %812 = vector.broadcast %21 : vector<1x32xf32> to vector<8x32xf32>
    %813 = arith.mulf %811, %812 : vector<8x32xf32>
    %814 = vector.broadcast %22 : vector<1x32xf32> to vector<8x32xf32>
    %815 = arith.addf %813, %814 : vector<8x32xf32>
    %816 = arith.mulf %789, %815 : vector<8x32xf32>
    %817 = vector.broadcast %635 : vector<8x1xf32> to vector<8x32xf32>
    %818 = arith.mulf %816, %817 : vector<8x32xf32>
    %819 = vector.broadcast %635 : vector<8x1xf32> to vector<8x32xf32>
    %820 = arith.mulf %792, %819 : vector<8x32xf32>
    %c1_269 = arith.constant 1 : index
    %c0_270 = arith.constant 0 : index
    %c0_271 = arith.constant 0 : index
    %821 = vector.load %arg23[%c1_269, %c0_270, %c0_271] : memref<2x8x32xf32, #tpu.memory_space<vmem>>, vector<1x8x32xf32>
    %822 = vector.shape_cast %821 : vector<1x8x32xf32> to vector<8x32xf32>
    %823 = vector.shape_cast %818 : vector<8x32xf32> to vector<1x8x32xf32>
    tpu.vector_store %arg23[%c1_269, %c0_270, %c0_271], %823 {strides = array<i32>} : memref<2x8x32xf32, #tpu.memory_space<vmem>>, vector<1x8x32xf32>,
    %c1_272 = arith.constant 1 : index
    %c0_273 = arith.constant 0 : index
    %c0_274 = arith.constant 0 : index
    %824 = vector.load %arg24[%c1_272, %c0_273, %c0_274] : memref<2x8x32xf32, #tpu.memory_space<vmem>>, vector<1x8x32xf32>
    %825 = vector.shape_cast %824 : vector<1x8x32xf32> to vector<8x32xf32>
    %826 = vector.shape_cast %820 : vector<8x32xf32> to vector<1x8x32xf32>
    tpu.vector_store %arg24[%c1_272, %c0_273, %c0_274], %826 {strides = array<i32>} : memref<2x8x32xf32, #tpu.memory_space<vmem>>, vector<1x8x32xf32>,
    %c3_275 = arith.constant 3 : index
    %c0_276 = arith.constant 0 : index
    %c0_277 = arith.constant 0 : index
    %827 = vector.load %arg20[%c3_275, %c0_276, %c0_277] : memref<4x8x32xf32, #tpu.memory_space<vmem>>, vector<1x8x32xf32>
    %828 = vector.shape_cast %827 : vector<1x8x32xf32> to vector<8x32xf32>
    %829 = vector.shape_cast %818 : vector<8x32xf32> to vector<1x8x32xf32>
    tpu.vector_store %arg20[%c3_275, %c0_276, %c0_277], %829 {strides = array<i32>} : memref<4x8x32xf32, #tpu.memory_space<vmem>>, vector<1x8x32xf32>,
    %830 = arith.extui %6 : i1 to i32
    %c0_i32_278 = arith.constant 0 : i32
    %831 = arith.cmpi ne, %830, %c0_i32_278 : i32
    scf.if %831 {
      %c0_279 = arith.constant 0 : index
      %c0_280 = arith.constant 0 : index
      %c0_281 = arith.constant 0 : index
      %832 = vector.load %arg21[%c0_279, %c0_280, %c0_281] : memref<2x8x32xf32, #tpu.memory_space<vmem>>, vector<1x8x32xf32>
      %833 = vector.shape_cast %832 : vector<1x8x32xf32> to vector<8x32xf32>
      %834 = vector.shape_cast %639 : vector<8x1xi1> to vector<8x1xi1>
      %835 = vector.broadcast %834 : vector<8x1xi1> to vector<8x32xi1>
      %836 = arith.select %835, %721, %833 : vector<8x32xi1>, vector<8x32xf32>
      %c0_282 = arith.constant 0 : index
      %c0_283 = arith.constant 0 : index
      %c0_284 = arith.constant 0 : index
      %837 = vector.load %arg21[%c0_282, %c0_283, %c0_284] : memref<2x8x32xf32, #tpu.memory_space<vmem>>, vector<1x8x32xf32>
      %838 = vector.shape_cast %837 : vector<1x8x32xf32> to vector<8x32xf32>
      %839 = vector.shape_cast %836 : vector<8x32xf32> to vector<1x8x32xf32>
      tpu.vector_store %arg21[%c0_282, %c0_283, %c0_284], %839 {strides = array<i32>} : memref<2x8x32xf32, #tpu.memory_space<vmem>>, vector<1x8x32xf32>,
      %c0_285 = arith.constant 0 : index
      %c0_286 = arith.constant 0 : index
      %c0_287 = arith.constant 0 : index
      %840 = vector.load %arg22[%c0_285, %c0_286, %c0_287] : memref<2x8x32xf32, #tpu.memory_space<vmem>>, vector<1x8x32xf32>
      %841 = vector.shape_cast %840 : vector<1x8x32xf32> to vector<8x32xf32>
      %842 = vector.shape_cast %639 : vector<8x1xi1> to vector<8x1xi1>
      %843 = vector.broadcast %842 : vector<8x1xi1> to vector<8x32xi1>
      %844 = arith.select %843, %723, %841 : vector<8x32xi1>, vector<8x32xf32>
      %c0_288 = arith.constant 0 : index
      %c0_289 = arith.constant 0 : index
      %c0_290 = arith.constant 0 : index
      %845 = vector.load %arg22[%c0_288, %c0_289, %c0_290] : memref<2x8x32xf32, #tpu.memory_space<vmem>>, vector<1x8x32xf32>
      %846 = vector.shape_cast %845 : vector<1x8x32xf32> to vector<8x32xf32>
      %847 = vector.shape_cast %844 : vector<8x32xf32> to vector<1x8x32xf32>
      tpu.vector_store %arg22[%c0_288, %c0_289, %c0_290], %847 {strides = array<i32>} : memref<2x8x32xf32, #tpu.memory_space<vmem>>, vector<1x8x32xf32>,
      %c1_291 = arith.constant 1 : index
      %c0_292 = arith.constant 0 : index
      %c0_293 = arith.constant 0 : index
      %848 = vector.load %arg21[%c1_291, %c0_292, %c0_293] : memref<2x8x32xf32, #tpu.memory_space<vmem>>, vector<1x8x32xf32>
      %849 = vector.shape_cast %848 : vector<1x8x32xf32> to vector<8x32xf32>
      %850 = vector.shape_cast %639 : vector<8x1xi1> to vector<8x1xi1>
      %851 = vector.broadcast %850 : vector<8x1xi1> to vector<8x32xi1>
      %852 = arith.select %851, %818, %849 : vector<8x32xi1>, vector<8x32xf32>
      %c1_294 = arith.constant 1 : index
      %c0_295 = arith.constant 0 : index
      %c0_296 = arith.constant 0 : index
      %853 = vector.load %arg21[%c1_294, %c0_295, %c0_296] : memref<2x8x32xf32, #tpu.memory_space<vmem>>, vector<1x8x32xf32>
      %854 = vector.shape_cast %853 : vector<1x8x32xf32> to vector<8x32xf32>
      %855 = vector.shape_cast %852 : vector<8x32xf32> to vector<1x8x32xf32>
      tpu.vector_store %arg21[%c1_294, %c0_295, %c0_296], %855 {strides = array<i32>} : memref<2x8x32xf32, #tpu.memory_space<vmem>>, vector<1x8x32xf32>,
      %c1_297 = arith.constant 1 : index
      %c0_298 = arith.constant 0 : index
      %c0_299 = arith.constant 0 : index
      %856 = vector.load %arg22[%c1_297, %c0_298, %c0_299] : memref<2x8x32xf32, #tpu.memory_space<vmem>>, vector<1x8x32xf32>
      %857 = vector.shape_cast %856 : vector<1x8x32xf32> to vector<8x32xf32>
      %858 = vector.shape_cast %639 : vector<8x1xi1> to vector<8x1xi1>
      %859 = vector.broadcast %858 : vector<8x1xi1> to vector<8x32xi1>
      %860 = arith.select %859, %820, %857 : vector<8x32xi1>, vector<8x32xf32>
      %c1_300 = arith.constant 1 : index
      %c0_301 = arith.constant 0 : index
      %c0_302 = arith.constant 0 : index
      %861 = vector.load %arg22[%c1_300, %c0_301, %c0_302] : memref<2x8x32xf32, #tpu.memory_space<vmem>>, vector<1x8x32xf32>
      %862 = vector.shape_cast %861 : vector<1x8x32xf32> to vector<8x32xf32>
      %863 = vector.shape_cast %860 : vector<8x32xf32> to vector<1x8x32xf32>
      tpu.vector_store %arg22[%c1_300, %c0_301, %c0_302], %863 {strides = array<i32>} : memref<2x8x32xf32, #tpu.memory_space<vmem>>, vector<1x8x32xf32>,
    } else {
    }
    return
  }
  func.func @transform_0(%arg0: i32, %arg1: memref<2xi32, #tpu.memory_space<smem>>) -> (i32, i32, i32) {
    %c0_i32 = arith.constant 0 : i32
    %c0_i32_0 = arith.constant 0 : i32
    %c0_i32_1 = arith.constant 0 : i32
    return %arg0, %c0_i32, %c0_i32_0 : i32, i32, i32
  }
  func.func @transform_1(%arg0: i32, %arg1: memref<2xi32, #tpu.memory_space<smem>>) -> (i32, i32) {
    %c0_i32 = arith.constant 0 : i32
    %c0_i32_0 = arith.constant 0 : i32
    %c0_i32_1 = arith.constant 0 : i32
    return %c0_i32, %c0_i32_0 : i32, i32
  }
  func.func @transform_2(%arg0: i32, %arg1: memref<2xi32, #tpu.memory_space<smem>>) -> (i32, i32) {
    %c0_i32 = arith.constant 0 : i32
    %c0_i32_0 = arith.constant 0 : i32
    %c0_i32_1 = arith.constant 0 : i32
    return %c0_i32, %c0_i32_0 : i32, i32
  }
  func.func @transform_3(%arg0: i32, %arg1: memref<2xi32, #tpu.memory_space<smem>>) -> (i32, i32) {
    %c0_i32 = arith.constant 0 : i32
    %c0_i32_0 = arith.constant 0 : i32
    %c0_i32_1 = arith.constant 0 : i32
    return %c0_i32, %c0_i32_0 : i32, i32
  }
  func.func @transform_4(%arg0: i32, %arg1: memref<2xi32, #tpu.memory_space<smem>>) -> (i32, i32) {
    %c0_i32 = arith.constant 0 : i32
    %c0_i32_0 = arith.constant 0 : i32
    %c0_i32_1 = arith.constant 0 : i32
    return %c0_i32, %c0_i32_0 : i32, i32
  }
  func.func @transform_5(%arg0: i32, %arg1: memref<2xi32, #tpu.memory_space<smem>>) -> (i32, i32) {
    %c0_i32 = arith.constant 0 : i32
    %c0_i32_0 = arith.constant 0 : i32
    %c0_i32_1 = arith.constant 0 : i32
    return %c0_i32, %c0_i32_0 : i32, i32
  }
  func.func @transform_6(%arg0: i32, %arg1: memref<2xi32, #tpu.memory_space<smem>>) -> (i32, i32) {
    %c0_i32 = arith.constant 0 : i32
    %c0_i32_0 = arith.constant 0 : i32
    %c0_i32_1 = arith.constant 0 : i32
    return %c0_i32, %c0_i32_0 : i32, i32
  }
  func.func @transform_7(%arg0: i32, %arg1: memref<2xi32, #tpu.memory_space<smem>>) -> (i32, i32) {
    %c0_i32 = arith.constant 0 : i32
    %c0_i32_0 = arith.constant 0 : i32
    %c0_i32_1 = arith.constant 0 : i32
    return %c0_i32, %c0_i32_0 : i32, i32
  }
  func.func @transform_8(%arg0: i32, %arg1: memref<2xi32, #tpu.memory_space<smem>>) -> (i32, i32) {
    %c0_i32 = arith.constant 0 : i32
    %c0_i32_0 = arith.constant 0 : i32
    %c0_i32_1 = arith.constant 0 : i32
    return %c0_i32, %c0_i32_0 : i32, i32
  }
  func.func @transform_9(%arg0: i32, %arg1: memref<2xi32, #tpu.memory_space<smem>>) -> (i32, i32) {
    %c0_i32 = arith.constant 0 : i32
    %c0_i32_0 = arith.constant 0 : i32
    %c0_i32_1 = arith.constant 0 : i32
    return %c0_i32, %c0_i32_0 : i32, i32
  }
  func.func @transform_10(%arg0: i32, %arg1: memref<2xi32, #tpu.memory_space<smem>>) -> (i32, i32) {
    %c0_i32 = arith.constant 0 : i32
    %c0_i32_0 = arith.constant 0 : i32
    %c0_i32_1 = arith.constant 0 : i32
    return %c0_i32, %c0_i32_0 : i32, i32
  }
  func.func @transform_11(%arg0: i32, %arg1: memref<2xi32, #tpu.memory_space<smem>>) -> (i32, i32) {
    %c0_i32 = arith.constant 0 : i32
    %c0_i32_0 = arith.constant 0 : i32
    %c0_i32_1 = arith.constant 0 : i32
    return %c0_i32, %c0_i32_0 : i32, i32
  }
  func.func @transform_12(%arg0: i32, %arg1: memref<2xi32, #tpu.memory_space<smem>>) -> (i32, i32) {
    %c0_i32 = arith.constant 0 : i32
    %c0_i32_0 = arith.constant 0 : i32
    %c0_i32_1 = arith.constant 0 : i32
    return %c0_i32, %c0_i32_0 : i32, i32
  }
  func.func @transform_13(%arg0: i32, %arg1: memref<2xi32, #tpu.memory_space<smem>>) -> (i32, i32) {
    %c0_i32 = arith.constant 0 : i32
    %c0_i32_0 = arith.constant 0 : i32
    %c0_i32_1 = arith.constant 0 : i32
    return %c0_i32, %c0_i32_0 : i32, i32
  }
  func.func @transform_14(%arg0: i32, %arg1: memref<2xi32, #tpu.memory_space<smem>>) -> (i32, i32) {
    %c0_i32 = arith.constant 0 : i32
    %c0_i32_0 = arith.constant 0 : i32
    %c0_i32_1 = arith.constant 0 : i32
    return %c0_i32, %c0_i32_0 : i32, i32
  }
  func.func @transform_15(%arg0: i32, %arg1: memref<2xi32, #tpu.memory_space<smem>>) -> (i32, i32) {
    %c0_i32 = arith.constant 0 : i32
    %c0_i32_0 = arith.constant 0 : i32
    %c0_i32_1 = arith.constant 0 : i32
    return %c0_i32, %c0_i32_0 : i32, i32
  }
  func.func @transform_16(%arg0: i32, %arg1: memref<2xi32, #tpu.memory_space<smem>>) -> (i32, i32) {
    %c0_i32 = arith.constant 0 : i32
    %c0_i32_0 = arith.constant 0 : i32
    %c0_i32_1 = arith.constant 0 : i32
    return %c0_i32, %c0_i32_0 : i32, i32
  }
  func.func @transform_17(%arg0: i32, %arg1: memref<2xi32, #tpu.memory_space<smem>>) -> (i32, i32) {
    %c0_i32 = arith.constant 0 : i32
    %c0_i32_0 = arith.constant 0 : i32
    %c0_i32_1 = arith.constant 0 : i32
    return %c0_i32, %c0_i32_0 : i32, i32
  }
  func.func @transform_18(%arg0: i32, %arg1: memref<2xi32, #tpu.memory_space<smem>>) -> (i32, i32, i32) {
    %c0_i32 = arith.constant 0 : i32
    %c0_i32_0 = arith.constant 0 : i32
    %c0_i32_1 = arith.constant 0 : i32
    return %arg0, %c0_i32, %c0_i32_0 : i32, i32, i32
  }
  func.func @transform_19(%arg0: i32, %arg1: memref<2xi32, #tpu.memory_space<smem>>) -> (i32, i32, i32) {
    %c0_i32 = arith.constant 0 : i32
    %c0_i32_0 = arith.constant 0 : i32
    %c0_i32_1 = arith.constant 0 : i32
    %c0_i32_2 = arith.constant 0 : i32
    return %c0_i32, %c0_i32_0, %c0_i32_1 : i32, i32, i32
  }
  func.func @transform_20(%arg0: i32, %arg1: memref<2xi32, #tpu.memory_space<smem>>) -> (i32, i32, i32) {
    %c0_i32 = arith.constant 0 : i32
    %c0_i32_0 = arith.constant 0 : i32
    %c0_i32_1 = arith.constant 0 : i32
    %c0_i32_2 = arith.constant 0 : i32
    return %c0_i32, %c0_i32_0, %c0_i32_1 : i32, i32, i32
  }
}

</mosaic_0001>

<bundles_post_ra>
// kernel: tpu_custom_call.1
= control target key start
LH: loop header
LB: loop body
LE: loop exit
PB: predicated region body
PF: predicated region fallthrough
CT: control target
= control target key end

     0   :  { %s3083_s27 = smov [#allocation5]   ;;  %s3905_s0 = inlined_call_operand.vmem [shape: s32[2], index: 0, kind: input, shape index: {}]   ;;  %s3906_s1 = inlined_call_operand.hbm [shape: f32[8,8,128], index: 1, kind: input, shape index: {}]   ;;  %s3907_s2 = inlined_call_operand.vmem [shape: s32[8,1], index: 2, kind: input, shape index: {}]   ;;  %s3908_s3 = inlined_call_operand.hbm [shape: bf16[32,128], index: 3, kind: input, shape index: {}]   ;;  %s3909_s4 = inlined_call_operand.vmem [shape: f32[1,128], index: 4, kind: input, shape index: {}]   ;;  %s3910_s5 = inlined_call_operand.vmem [shape: f32[1,128], index: 5, kind: input, shape index: {}]   ;;  %s3911_s6 = inlined_call_operand.vmem [shape: f32[1,128], index: 6, kind: input, shape index: {}]   ;;  %s3912_s7 = inlined_call_operand.vmem [shape: f32[1,32], index: 7, kind: input, shape index: {}]   ;;  %s3913_s8 = inlined_call_operand.vmem [shape: f32[1,32], index: 8, kind: input, shape index: {}]   ;;  %s3914_s9 = inlined_call_operand.hbm [shape: bf16[32,128], index: 9, kind: input, shape index: {}]   ;;  %s3915_s10 = inlined_call_operand.hbm [shape: bf16[32,128], index: 10, kind: input, shape index: {}]   ;;  %s3916_s11 = inlined_call_operand.vmem [shape: f32[1,128], index: 11, kind: input, shape index: {}]   ;;  %s3917_s12 = inlined_call_operand.vmem [shape: f32[1,128], index: 12, kind: input, shape index: {}]   ;;  %s3918_s13 = inlined_call_operand.vmem [shape: f32[1,128], index: 13, kind: input, shape index: {}]   ;;  %s3919_s14 = inlined_call_operand.vmem [shape: f32[1,128], index: 14, kind: input, shape index: {}]   ;;  %s3920_s15 = inlined_call_operand.vmem [shape: f32[1,128], index: 15, kind: input, shape index: {}]   ;;  %s3921_s16 = inlined_call_operand.vmem [shape: f32[1,128], index: 16, kind: input, shape index: {}]   ;;  %s3922_s17 = inlined_call_operand.vmem [shape: f32[1,32], index: 17, kind: input, shape index: {}]   ;;  %s3923_s18 = inlined_call_operand.vmem [shape: f32[1,32], index: 18, kind: input, shape index: {}]   ;;  %s3924_s19 = inlined_call_operand.hbm [shape: f32[8,8,32], index: 19, kind: output, shape index: {0}]   ;;  %s3925_s20 = inlined_call_operand.hbm [shape: f32[2,8,32], index: 20, kind: output, shape index: {1}]   ;;  %s3926_s21 = inlined_call_operand.hbm [shape: f32[2,8,32], index: 21, kind: output, shape index: {2}]  }
   0x1   :  { %3948 = sst [smem:[#allocation29_spill]] %s3905_s0 }
   0x2   :  { %3949 = sst [smem:[#allocation30_spill]] %s3906_s1 }
   0x3   :  { %3950 = sst [smem:[#allocation31_spill]] %s3907_s2 }
   0x4   :  { %3951 = sst [smem:[#allocation32_spill]] %s3908_s3 }
   0x5   :  { %3952 = sst [smem:[#allocation33_spill]] %s3909_s4 }
   0x6   :  { %3953 = sst [smem:[#allocation34_spill]] %s3910_s5 }
   0x7   :  { %3954 = sst [smem:[#allocation35_spill]] %s3911_s6 }
   0x8   :  { %3955 = sst [smem:[#allocation36_spill]] %s3912_s7 }
   0x9   :  { %3956 = sst [smem:[#allocation37_spill]] %s3914_s9 }
   0xa   :  { %3957 = sst [smem:[#allocation38_spill]] %s3915_s10 }
   0xb   :  { %3958 = sst [smem:[#allocation39_spill]] %s3920_s15 }
   0xc   :  { %3959 = sst [smem:[#allocation40_spill]] %s3924_s19 }
   0xd   :  { %3960 = sst [smem:[#allocation41_spill]] %s3926_s21 }
   0xe   :  { %s3961_s26 = sld [smem:[#allocation29_spill]] }
  0x14   :  { %s28_s15 = sshll.u32 %s3961_s26, 4  ;;  %s29_s15 = int_to_ptr.vmem [resolvable:$true] %s28_s15 }
  0x15   :  { %31 = dma.vmem_to_smem %s29_s15, 16, %s3083_s27, [#allocation4] }
  0x16   :  { %3045 = dma.done.wait [#allocation4], 16 }
  0x17   :  { %3046 = vsyncadd [#allocation4], 4294967280 }
  0x18   :  { %34 = sfence }
  0x19   :  { %35 = vsyncpa [#allocation7], 0 }
  0x1a   :  { %37 = vsyncpa [#allocation7 + $0x1], 0 }
  0x1b   :  { %38 = vsyncpa [#allocation10], 0 }
  0x1c   :  { %39 = vsyncpa [#allocation13], 0 }
  0x1d   :  { %40 = vsyncpa [#allocation8], 0 }
  0x1e   :  { %42 = vsyncpa [#allocation8 + $0x1], 0 }
  0x1f   :  { %43 = vsyncpa [#allocation16], 0  ;;  %s3228_s3 = smov 0   ;;  %s3230_s28 = smov 0  }
  0x20   :  { %s3232_s29 = smov 0   ;;  %s3234_s0 = smov 0  }
  0x21 LB: > { %3962 = sst [smem:[#allocation24_spill]] %s3069_s3  ;;  %s3249_s15 = sadd.s32 4294967295, %s3081_s0   ;;  %s3081_s0 = sphi %s3234_s0, %s4004_s0   ;;  %s3077_s29 = sphi %s3232_s29, %s4006_s29   ;;  %s3073_s28 = sphi %s3230_s28, %s4008_s28   ;;  %s3069_s3 = sphi %s3228_s3, %s4007_s3  }
  0x22   : > { %3963 = sst [smem:[#allocation25_spill]] %s3077_s29  ;;  %s2471_s4 = sadd.s32 4294967294, %s3081_s0  }
  0x23   : > { %p69_p0 = scmp.ne.s32.totalorder %s3073_s28, %s3069_s3  ;;  %p70_p1 = scmp.eq.s32.totalorder %s3249_s15, 0 }
  0x24   : > { %p3934_p2 = scmp.eq.s32.totalorder %s3249_s15, 1  ;;  %p456_p3 = scmp.eq.s32.totalorder %s2471_s4, 1 }
  0x25   : > { %p3258_p4 = por %p70_p1, %p69_p0  ;;  %p2472_p5 = scmp.ge.s32.totalorder %s3081_s0, 1 }
  0x26   : > { %p3263_p6 = por %p456_p3, %p69_p0  ;;  %p505_p7 = scmp.lt.s32.totalorder %s3081_s0, 3 }
  0x27   : > { %s3967_s1 = sld [smem:[#allocation32_spill]]  ;;  %s3084_s25 = smov [#allocation9]  }
  0x28   : > { %s3965_s5 = scalar_select %p3263_p6, 1, 0 }
  0x29   : > { %p3272_p9 = pnand %p2472_p5, %p505_p7  ;;  %s521_s26 = sshll.u32 %s3084_s25, 4  ;;  %s522_s26 = int_to_ptr.vmem [resolvable:$true] %s521_s26 }
  0x2a   : > { %3966 = sst [smem:[#allocation26_spill]] %s3965_s5  ;;  %s3086_s25 = smov 4  }
  0x2b   : > { %p2588_p10 = pneg %p3272_p9  ;;  %s3970_s9 = sld [smem:[#allocation37_spill]] }
  0x2c   : > { %s3087_s5 = smov [#allocation11]   ;;  %s3971_s10 = sld [smem:[#allocation38_spill]] }
  0x2d   : > { %s519_s24 = sshll.u32 %s3967_s1, 4  ;;  %p3280_p11 = pnand %p2588_p10, %p70_p1  ;;  %s520_s24 = int_to_ptr.hbm [resolvable:$true] %s519_s24 }
  0x2e   : > { %s3085_s1 = smov 64   ;;  %s550_s3 = sshll.u32 %s3087_s5, 4  ;;  %s551_s3 = int_to_ptr.vmem [resolvable:$true] %s550_s3 }
  0x2f   : > { %2591 = dma.hbm_to_vmem [thread:$0]  (!%p3280_p11), %s520_s24, 256, %s522_s26, [#allocation10], %s3085_s1, %s3085_s1, %s3086_s25  }
  0x30   : > { %s3088_s22 = smov [#allocation12]   ;;  %s3296_s24 = sadd.s32 1, %s3081_s0  }
  0x31   : > { %s548_s23 = sshll.u32 %s3970_s9, 4  ;;  %s564_s9 = sshll.u32 %s3088_s22, 4  ;;  %s549_s23 = int_to_ptr.hbm [resolvable:$true] %s548_s23  ;;  %s565_s9 = int_to_ptr.vmem [resolvable:$true] %s564_s9 }
  0x32   : > { %s562_s4 = sshll.u32 %s3971_s10, 4  ;;  %3972 = sst [smem:[#allocation27_spill]] %s3296_s24  ;;  %s563_s4 = int_to_ptr.hbm [resolvable:$true] %s562_s4 }
  0x33   : > { %2594 = dma.hbm_to_vmem [thread:$0]  (!%p3280_p11), %s549_s23, 256, %s551_s3, [#allocation10], %s3085_s1, %s3085_s1, %s3086_s25  }
  0x34   : > { %2597 = dma.hbm_to_vmem [thread:$0]  (!%p3280_p11), %s563_s4, 256, %s565_s9, [#allocation13], %s3085_s1, %s3085_s1, %s3086_s25  }
  0x35   : > { %s53_s5 = ssub.s32 %s3081_s0, %s3296_s24  ;;  %s56_s26 = sadd.s32 1, %s3077_s29 }
  0x36   : > { %p54_p13 = scmp.eq.s32.totalorder %s53_s5, 0  ;;  %p63_p0 = scmp.ne.s32.totalorder %s3077_s29, %s3073_s28 }
  0x37   : > { %p64_p3 = scmp.eq.s32.totalorder %s3081_s0, 0  ;;  %p2609_p5 = scmp.lt.s32.totalorder %s3081_s0, 2 }
  0x38   : > { %s3308_s19 = scalar_select %p54_p13, %s3077_s29, %s56_s26  }
  0x39   : > { %p65_p7 = por %p64_p3, %p63_p0  ;;  %p3312_p10 = por %p3934_p2, %p63_p0 }
  0x3a   : > { %3973 = sst [smem:[#allocation28_spill]] %s3308_s19  ;;  %s602_s3 = sand.u32 1, %s3077_s29  }
  0x3b   : > { %s2556_s23 = sshll.u32 %s3081_s0, 5  ;;  %s2477_s27 = sshll.u32 %s602_s3, 5 }
  0x3c   : > { %s3975_s1 = sld [smem:[#allocation30_spill]]  ;;  %s606_s5 = scalar_lea.vmem [#allocation6], %s2477_s27 }
  0x3d   : > { %s614_s10 = sshll.u32 %s606_s5, 4  ;;  %p3323_p11 = pnand %p2609_p5, %p65_p7  ;;  %s615_s10 = int_to_ptr.vmem [resolvable:$true] %s614_s10 }
  0x3e   : > { %s603_s19 = scalar_lea.sflag [#allocation7], %s602_s3 }
  0x3f   : > { %p2919_p0 = pneg %p3323_p11 }
  0x42   : > { %s611_s25 = scalar_lea.hbm %s3975_s1, %s2556_s23  ;;  %s2922_s22 = scalar_lea.hbm %s3975_s1, 64 }
  0x43   : > { %s612_s4 = sshll.u32 %s611_s25, 4  ;;  %s613_s4 = int_to_ptr.hbm [resolvable:$true] %s612_s4 }
  0x44   : > { %s2915_s24 = sshra.s32 %s613_s4, 4  ;;  %s2916_s24 = int_to_ptr.hbm [resolvable:$true] %s2915_s24 }
  0x45   : > { %s2917_s29 = scalar_lea.hbm %s2916_s24, 32  ;;  %p2923_p5 = scmp.lt.s32.totalorder %s2916_s24, %s3975_s1 }
  0x46   : > { %p2918_p13 = scmp.ne.s32.totalorder %s2916_s24, %s2917_s29  ;;  %p2924_p7 = scmp.lt.s32.totalorder %s2922_s22, %s2917_s29 }
  0x48   : > { %p2920_p3 = pnand %p2919_p0, %p2918_p13  ;;  %p2925_p2 = por %p2924_p7, %p2923_p5 }
  0x4a   : > { %p2921_p12 = pneg %p2920_p3 }
  0x4c   : > { %p2926_p8 = pnand %p2925_p2, %p2921_p12 }
  0x4e   : > { %2929 = shalt.err (!%p2926_p8)
}
  0x4f   : > { %s3089_s3 = smov 128   ;;  %s3090_s5 = smov 8  }
  0x50   : > { %2601 = dma.hbm_to_vmem [thread:$0]  (!%p3323_p11), %s613_s4, 512, %s615_s10, %s603_s19, %s3089_s3, %s3089_s3, %s3090_s5  }
  0x51   : > { %626 = sbr.rel (%p3272_p9) target bundleno = 11858 (0x2e52), region = 92  ;;  %s3340_s23 = sand.u32 (!%p3272_p9), 1, %s3073_s28  }
  0x52   : > { %s2481_s27 = sshll.u32 (!%p3272_p9), %s3340_s23, 5  ;;  %s629_s24 = scalar_lea.sflag (!%p3272_p9), [#allocation7], %s3340_s23 }
  0x53   : > { %s3344_s29 = scalar_lea.vmem (!%p3272_p9), [#allocation6], %s2481_s27 }
  0x56   : > { %3048 = dma.done.wait (%p3258_p4), %s629_s24, 512  }
  0x57   : > { %3050 = vsyncadd (%p3258_p4), %s629_s24, 4294966784 }
  0x58   : > { %3052 = dma.done.wait (%p70_p1), [#allocation10], 512  }
  0x59   : > { %3054 = vsyncadd (%p70_p1), [#allocation10], 4294966784 }
  0x5a   : > { %3056 = dma.done.wait (%p70_p1), [#allocation13], 256  }
  0x5b   : > { %3058 = vsyncadd (%p70_p1), [#allocation13], 4294967040  ;;  %s3358_s10 = scalar_lea.vmem [#allocation14], %s2481_s27  ;;  %p3977_p2 = scmp.ne.s32.totalorder %s3249_s15, 0 }
  0x5d   : > { %711 = sbr.rel (%p3977_p2) target bundleno = 107 (0x6b), region = 112 }
  0x62   : > { %vm712_vm0 = vcmask 261120   ;;  %v3091_v0 = vmov 0.0  }
  0x63   : > { %713 = vst.msk [vmem:[#allocation2] sm:$0xff] %vm712_vm0, %v3091_v0 }
  0x64   : > { %714 = vst.msk [vmem:[#allocation2 + $0x8] sm:$0xff] %vm712_vm0, %v3091_v0 }
  0x65   : > { %715 = vst.msk [vmem:[#allocation3] sm:$0xff] %vm712_vm0, %v3091_v0 }
  0x66   : > { %716 = vst.msk [vmem:[#allocation3 + $0x8] sm:$0xff] %vm712_vm0, %v3091_v0 }
  0x67   : > { %717 = vst.msk [vmem:[#allocation15] sm:$0xff] %vm712_vm0, %v3091_v0 }
  0x68   : > { %718 = vst.msk [vmem:[#allocation15 + $0x8] sm:$0xff] %vm712_vm0, %v3091_v0 }
  0x69   : > { %719 = vst.msk [vmem:[#allocation17] sm:$0xff] %vm712_vm0, %v3091_v0 }
  0x6a   : > { %720 = vst.msk [vmem:[#allocation17 + $0x8] sm:$0xff] %vm712_vm0, %v3091_v0 }
  0x6b PF: > { %s3363_s30 = sld [smem:[#allocation5 + %s3249_s15]]  ;;  %v3365_v1 = vld [vmem:[#allocation9 + $0x8] sm:$0xff]  ;;  %v3367_v2 = vld [vmem:[#allocation9] sm:$0xff]  ;;  %vm775_vm1 = vcmask 261120   ;;  %v3092_v9 = vmov 128.0   ;;  %s3093_s5 = smov 64  }
  0x6c   : > { %v757_v3 = vld [vmem:[#allocation2] sm:$0xff]  ;;  %785 = vmatpush.bf16.msra.mxu0 %v3365_v1  ;;  %s3978_s4 = sld [smem:[#allocation33_spill]]  ;;  %2695 = vrcp.f32 %v3092_v9  ;;  %v758_v38 = vld [vmem:[#allocation3] sm:$0xff]  ;;  %s3940_s27 = smov 32   ;;  %v3096_v61 = vmov 32.0  }
  0x6d   : > { %v759_v4 = vpack.c.bf16 %v757_v3, %v757_v3  ;;  %s3979_s9 = sld [smem:[#allocation34_spill]]  ;;  %v792_v34 = vld [vmem:[%s3344_s29] sm:$0xff]  ;;  %s3935_s24 = smov 96  }
  0x6e   : > { %s3980_s6 = sld [smem:[#allocation35_spill]]  ;;  %s3421_s22 = sshll.u32 %s3249_s15, 2 }
  0x6f   : > { %s3981_s7 = sld [smem:[#allocation36_spill]] }
  0x70   : > { %786 = vmatpush.bf16.msra.mxu0 %v3367_v2  ;;  %s3982_s3 = sld [smem:[#allocation31_spill]] }
  0x71   : > { %p2519_p1 = scmp.le.s32.totalorder %s3363_s30, 0 }
  0x72   : > { %v3375_v5 = vld [vmem:[%s3978_s4] ss:$0 sm:$0xff]  ;;  %v2696_v10 = vpop.eup %2695  ;;  %s3099_s19 = smov (!%p2519_p1), 32   ;;  %s3101_s4 = smov (!%p2519_p1), 96  }
  0x73   : > { %2498 = vmatmul.msk.bf16.vlgmr.msra.gmra.mxu0 %vm775_vm1, %v759_v4  ;;  %v796_v11 = vmul.f32 128.0, %v2696_v10  ;;  %vm800_vm2 = vweird.f32 %v2696_v10  ;;  %v3385_v29 = vld [vmem:[%s3979_s9] ss:$0 sm:$0xff] }
  0x74   : > { %v3390_v32 = vld [vmem:[%s3980_s6] ss:$0 sm:$0xff] }
  0x75   : > { %v797_v12 = vsub.f32 1.0, %v796_v11  ;;  %v2687_v11 = vld [vmem:[%s3981_s7] ss:$0 sm:$0xff] }
  0x77   : > { %v798_v13 = vmul.f32 %v2696_v10, %v797_v12  ;;  %v2688_v12 = vld [vmem:[%s3913_s8] ss:$0 sm:$0xff] }
  0x79   : > { %v799_v14 = vadd.f32 %v2696_v10, %v798_v13 }
  0x7b   : > { %v3378_v15 = vsel %vm800_vm2, %v2696_v10, %v799_v14 }
  0xf0   : > { %v788_v6 = vpop.f32.mrf.mxu0 }
  0xf1   : > { %v789_v7 = vadd.f32 %v3375_v5, %v788_v6 }
  0xf3   : > { %793 = vadd.xlane.f32.xlu0 %v789_v7 }
  0xf8   : > { %v790_v8 = vpop.f32.mrf.mxu0 }
 0x166   : > { %v794_v16 = vpop.xlane.xlu0 %793 }
 0x167   : > { %v802_v17 = vmul.f32 %v3378_v15, %v794_v16  ;;  %v3426_v16 = vld [vmem:[%s3982_s3] sm:$0xff] }
 0x169   : > { %v803_v18 = vsub.f32 %v789_v7, %v802_v17  ;;  %v3097_v17 = vmov 0  }
 0x16a   : > { %2682 = vset.pattern.permute.xlu1 %v3097_v17  ;;  %2683 = vset.pattern.permute.xlu0 %v3097_v17 }
 0x16b   : > { %v804_v19 = vmul.f32 %v803_v18, %v803_v18 }
 0x16d   : > { %805 = vadd.xlane.f32.xlu0 %v804_v19  ;;  %v751_v19 = vstv %s3421_s22 }
 0x16e   : > { %vm752_vm15 = vcmp.lt.s32.totalorder %v751_v19, %v3426_v16 }
 0x1e0   : > { %v806_v20 = vpop.xlane.xlu0 %805 }
 0x1e1   : > { %v807_v21 = vmul.f32 %v806_v20, %v3378_v15 }
 0x1e3   : > { %v808_v22 = vadd.f32 1e-05, %v807_v21 }
 0x1e5   : > { %2697 = vrsqrt.f32 %v808_v22  ;;  %vm815_vm4 = vweird.f32 %v808_v22 }
 0x1eb   : > { %v2698_v23 = vpop.eup %2697 }
 0x1ec   : > { %v810_v24 = vmul.f32 %v2698_v23, %v808_v22  ;;  %vm816_vm3 = vweird.f32 %v2698_v23 }
 0x1ed   : > { %vm817_vm5 = vmor %vm815_vm4, %vm816_vm3 }
 0x1ee   : > { %v811_v25 = vmul.f32 %v2698_v23, %v810_v24 }
 0x1f0   : > { %v812_v26 = vmul.f32 0.5, %v811_v25 }
 0x1f2   : > { %v813_v27 = vsub.f32 1.5, %v812_v26 }
 0x1f4   : > { %v814_v28 = vmul.f32 %v2698_v23, %v813_v27 }
 0x1f6   : > { %v818_v30 = vsel %vm817_vm5, %v2698_v23, %v814_v28 }
 0x1f7   : > { %v819_v31 = vmul.f32 %v818_v30, %v803_v18  ;;  %v3430_v18 = vadd.s32 4294967295, %v3426_v16 }
 0x1f9   : > { %v823_v33 = vmul.f32 %v3385_v29, %v819_v31  ;;  %vm3435_vm11 = vcmp.eq.s32.totalorder %v751_v19, %v3430_v18 }
 0x1fb   : > { %v827_v35 = vadd.f32 %v3390_v32, %v823_v33 }
 0x1fd   : > { %v828_v36 = vadd.f32 %v827_v35, %v792_v34 }
 0x1ff   : > { %2699 = vtanh.f32 %v828_v36  ;;  %v2499_v39 = vmul.f32 -1.442695, %v828_v36 }
 0x201   : > { %2701 = vpow2.f32 %v2499_v39 }
 0x205   : > { %v2700_v37 = vpop.eup %2699 }
 0x206   : > { %855 = vrot.lane.b32.xlu1 %v2700_v37, %s3093_s5 }
 0x207   : > { %v2702_v40 = vpop.eup %2701 }
 0x208   : > { %v832_v41 = vadd.f32 1.0, %v2702_v40  ;;  %v3449_v40 = vld [vmem:[#allocation12 + $0x8] sm:$0xff] }
 0x209   : > { %1000 = vmatpush.bf16.msra.mxu2 %v3449_v40 }
 0x20a   : > { %2703 = vrcp.f32 %v832_v41  ;;  %v844_v47 = vand.u32 2147483648, %v832_v41  ;;  %vm838_vm7 = vweird.f32 %v832_v41  ;;  %v842_v48 = vand.u32 2147483647, %v832_v41 }
 0x20c   : > { %v845_v50 = vor.u32 1.1754944e-38, %v844_v47  ;;  %vm843_vm9 = vcmp.eq.f32.partialorder %v842_v48, 8.507059e+37 }
 0x20e   : > { %850 = vrot.lane.b32.xlu1 %v758_v38, %s3940_s27  ;;  %v3098_v38 = vmov 0.0  }
 0x20f   : > { %v2488_v39 = vsel %vm752_vm15, 1.0, %v3098_v38 }
 0x210   : > { %v2704_v42 = vpop.eup %2703 }
 0x211   : > { %v834_v43 = vmul.f32 %v2704_v42, %v832_v41  ;;  %vm839_vm6 = vweird.f32 %v2704_v42  ;;  %v3452_v41 = vld [vmem:[#allocation12] sm:$0xff] }
 0x212   : > { %vm840_vm8 = vmor %vm838_vm7, %vm839_vm6  ;;  %1001 = vmatpush.bf16.msra.mxu2 %v3452_v41 }
 0x213   : > { %v835_v44 = vsub.f32 1.0, %v834_v43 }
 0x215   : > { %v836_v45 = vmul.f32 %v2704_v42, %v835_v44  ;;  %v3456_v44 = vld [vmem:[#allocation11 + $0x8] sm:$0xff] }
 0x216   : > { %968 = vmatpush.bf16.msra.mxu1 %v3456_v44 }
 0x217   : > { %v837_v46 = vadd.f32 %v2704_v42, %v836_v45  ;;  %v3459_v45 = vld [vmem:[#allocation11] sm:$0xff] }
 0x219   : > { %v841_v49 = vsel %vm840_vm8, %v2704_v42, %v837_v46  ;;  %v937_v42 = vld [vmem:[#allocation2 + $0x8] sm:$0xff] }
 0x21a   : > { %v3397_v52 = vsel %vm843_vm9, %v845_v50, %v841_v49  ;;  %v975_v43 = vpack.c.bf16 %v937_v42, %v937_v42  ;;  %969 = vmatpush.bf16.msra.mxu1 %v3459_v45 }
 0x21c   : > { %2517 = vmatmul.msk.bf16.vlgmr.msra.gmra.mxu2 %vm775_vm1, %v975_v43  ;;  %v3498_v43 = vld [vmem:[%s3918_s13] ss:$0 sm:$0xff] }
 0x278   : > { %v856_v51 = vpop.permute.xlu1 %855 }
 0x279   : > { %v858_v53 = vmul.f32 %v856_v51, %v3397_v52  ;;  %v3474_v51 = vld [vmem:[%s3917_s12] ss:$0 sm:$0xff] }
 0x27b   : > { %860 = vrot.lane.b32.xlu2 %v858_v53, %s3940_s27 }
 0x280   : > { %v851_v54 = vpop.permute.xlu1 %850 }
 0x281   : > { %v853_v55 = vmul.f32 %v851_v54, %v3397_v52 }
 0x29f   : > { %v1003_v53 = vpop.f32.mrf.mxu2 }
 0x2a0   : > { %v1004_v54 = vadd.f32 %v3474_v51, %v1003_v53 }
 0x2d5   : > { %v861_v56 = vpop.permute.xlu2 %860 }
 0x2d6   : > { %v3402_v57 = vadd.f32 %v861_v56, %v853_v55  ;;  %v3481_v56 = vld [vmem:[%s3916_s11] ss:$0 sm:$0xff] }
 0x2d8   : > { %2705 = vtanh.f32 %v3402_v57 }
 0x2d9   : > { %2707 = vrcp.f32 %v3096_v61  ;;  %v939_v61 = vld [vmem:[#allocation3 + $0x8] sm:$0xff] }
 0x2de   : > { %v2706_v58 = vpop.eup %2705 }
 0x2df   : > { %866 = vrot.lane.b32.xlu2 %v2706_v58, %s3935_s24  ;;  %v2708_v62 = vpop.eup %2707 }
 0x2e0   : > { %v873_v63 = vmul.f32 32.0, %v2708_v62  ;;  %vm877_vm10 = vweird.f32 %v2708_v62 }
 0x2e2   : > { %v874_v0 = vsub.f32 1.0, %v873_v63 }
 0x2e4   : > { %v875_v3 = vmul.f32 %v2708_v62, %v874_v0 }
 0x2e6   : > { %v876_v4 = vadd.f32 %v2708_v62, %v875_v3 }
 0x2e8   : > { %v3407_v6 = vsel %vm877_vm10, %v2708_v62, %v876_v4 }
 0x339   : > { %v867_v59 = vpop.permute.xlu2 %866 }
 0x33a   : > { %v869_v60 = vsel %vm775_vm1, %v867_v59, 0.0 }
 0x33b   : > { %870 = vadd.xlane.f32.xlu0 %v869_v60 }
 0x34f   : > { %904 = vrot.lane.b32.xlu0 %v2687_v11, %s3940_s27 }
 0x3ae   : > { %v871_v7 = vpop.xlane.xlu0 %870 }
 0x3af   : > { %v879_v8 = vmul.f32 %v3407_v6, %v871_v7 }
 0x3b1   : > { %v880_v9 = vsub.f32 %v2706_v58, %v879_v8 }
 0x3b3   : > { %v881_v10 = vmul.f32 %v880_v9, %v880_v9 }
 0x3b5   : > { %883 = vrot.lane.b32.xlu1 %v881_v10, %s3935_s24  ;;  %s3987_s24 = smov 96  }
 0x3bd   : > { %910 = vrot.lane.b32.xlu1 %v2688_v12, %s3940_s27 }
 0x3c1   : > { %v3440_v33 = vpop.permute.xlu0 %904 }
 0x427   : > { %v884_v13 = vpop.permute.xlu1 %883 }
 0x428   : > { %v886_v14 = vsel %vm775_vm1, %v884_v13, 0.0 }
 0x429   : > { %887 = vadd.xlane.f32.xlu2 %v886_v14 }
 0x42f   : > { %v3442_v35 = vpop.permute.xlu1 %910 }
 0x49c   : > { %v888_v20 = vpop.xlane.xlu2 %887 }
 0x49d   : > { %v889_v22 = vmul.f32 %v888_v20, %v3407_v6 }
 0x49f   : > { %v890_v23 = vadd.f32 1e-05, %v889_v22 }
 0x4a1   : > { %2709 = vrsqrt.f32 %v890_v23  ;;  %vm897_vm13 = vweird.f32 %v890_v23 }
 0x4a7   : > { %v2710_v24 = vpop.eup %2709 }
 0x4a8   : > { %v892_v25 = vmul.f32 %v2710_v24, %v890_v23  ;;  %vm898_vm12 = vweird.f32 %v2710_v24 }
 0x4a9   : > { %vm899_vm14 = vmor %vm897_vm13, %vm898_vm12 }
 0x4aa   : > { %v893_v26 = vmul.f32 %v2710_v24, %v892_v25 }
 0x4ac   : > { %v894_v27 = vmul.f32 0.5, %v893_v26 }
 0x4ae   : > { %v895_v28 = vsub.f32 1.5, %v894_v27 }
 0x4b0   : > { %v896_v30 = vmul.f32 %v2710_v24, %v895_v28 }
 0x4b2   : > { %v900_v31 = vsel %vm899_vm14, %v2710_v24, %v896_v30 }
 0x4b3   : > { %v901_v34 = vmul.f32 %v900_v31, %v880_v9 }
 0x4b5   : > { %v907_v36 = vmul.f32 %v3440_v33, %v901_v34 }
 0x4b7   : > { %v913_v37 = vadd.f32 %v3442_v35, %v907_v36  ;;  %v744_v36 = vld [vmem:[%s3919_s14] sm:$0x1] }
 0x4b9   : > { %915 = vrot.lane.b32.xlu1 %v913_v37, %s3093_s5  ;;  %v746_v37 = vld [vmem:[%s3921_s16] sm:$0x1] }
 0x4c1   : > { %921 = vperm.xlu1 %2682, %v2488_v39  }
 0x52b   : > { %v916_v46 = vpop.permute.xlu1 %915 }
 0x52c   : > { %v918_v47 = vmul.f32 %v916_v46, %v3397_v52  ;;  %v1005_v52 = vpop.f32.mrf.mxu2 }
 0x533   : > { %v3463_v48 = vpop.permute.xlu1 %921 }
 0x534   : > { %v3466_v49 = vmul.f32 %v3463_v48, %v918_v47  ;;  %v749_v47 = vadd.f32 %v746_v37, %v744_v36 }
 0x536   : > { %v940_v50 = vpack.c.bf16 %v3466_v49, %v3466_v49 }
 0x538   : > { %945 = vrot.lane.b32.xlu0 %v940_v50, %s3940_s27 }
 0x562   : > { %1009 = vadd.xlane.f32.xlu0 %v1004_v54 }
 0x5aa   : > { %v946_v55 = vpop.permute.xlu0 %945 }
 0x5ab   : > { %2508 = vmatmul.msk.bf16.vlgmr.msra.gmra.mxu1 %vm775_vm1, %v946_v55  ;;  %v3506_v55 = vperm.slane %v749_v47, 0 }
 0x5d5   : > { %v1010_v0 = vpop.xlane.xlu0 %1009 }
 0x5d6   : > { %v1012_v4 = vmul.f32 %v1010_v0, %v3378_v15 }
 0x5d8   : > { %v1014_v8 = vsub.f32 %v1004_v54, %v1012_v4 }
 0x5da   : > { %v1016_v9 = vmul.f32 %v1014_v8, %v1014_v8 }
 0x628   : > { %v971_v58 = vpop.f32.mrf.mxu1 }
 0x629   : > { %v972_v59 = vadd.f32 %v3481_v56, %v971_v58 }
 0x62b   : > { %1007 = vadd.xlane.f32.xlu1 %v972_v59 }
 0x630   : > { %v973_v60 = vpop.f32.mrf.mxu1 }
 0x644   : > { %1081 = vrot.lane.b32.xlu1 %v939_v61, %s3940_s27  ;;  %s3985_s27 = sld [smem:[#allocation39_spill]] }
 0x64a   : > { %v3503_v50 = vld [vmem:[%s3985_s27] ss:$0 sm:$0xff]  ;;  %s3986_s27 = smov 32  }
 0x69e   : > { %v1008_v62 = vpop.xlane.xlu1 %1007 }
 0x69f   : > { %v1011_v63 = vmul.f32 %v1008_v62, %v3378_v15 }
 0x6a1   : > { %v1013_v3 = vsub.f32 %v972_v59, %v1011_v63 }
 0x6a3   : > { %v1015_v7 = vmul.f32 %v1013_v3, %v1013_v3 }
 0x6a5   : > { %1017 = vadd.xlane.f32.xlu2 %v1015_v7 }
 0x6ad   : > { %1019 = vadd.xlane.f32.xlu2 %v1016_v9 }
 0x718   : > { %v1018_v10 = vpop.xlane.xlu2 %1017 }
 0x719   : > { %v1021_v11 = vmul.f32 %v1018_v10, %v3378_v15 }
 0x71b   : > { %v1023_v12 = vadd.f32 1e-05, %v1021_v11 }
 0x71d   : > { %2711 = vrsqrt.f32 %v1023_v12  ;;  %vm1031_vm2 = vweird.f32 %v1023_v12 }
 0x720   : > { %v1020_v13 = vpop.xlane.xlu2 %1019 }
 0x721   : > { %v1022_v14 = vmul.f32 %v1020_v13, %v3378_v15 }
 0x723   : > { %v2712_v19 = vpop.eup %2711  ;;  %v1024_v20 = vadd.f32 1e-05, %v1022_v14 }
 0x724   : > { %v1026_v22 = vmul.f32 %v2712_v19, %v1023_v12  ;;  %vm1032_vm0 = vweird.f32 %v2712_v19 }
 0x725   : > { %2713 = vrsqrt.f32 %v1024_v20  ;;  %vm1033_vm3 = vmor %vm1031_vm2, %vm1032_vm0  ;;  %vm1041_vm5 = vweird.f32 %v1024_v20 }
 0x726   : > { %v1027_v23 = vmul.f32 %v2712_v19, %v1026_v22  ;;  %v1082_v22 = vpop.permute.xlu1 %1081 }
 0x728   : > { %v1028_v24 = vmul.f32 0.5, %v1027_v23 }
 0x72a   : > { %v1029_v25 = vsub.f32 1.5, %v1028_v24 }
 0x72b   : > { %v2714_v26 = vpop.eup %2713 }
 0x72c   : > { %v1036_v27 = vmul.f32 %v2714_v26, %v1024_v20  ;;  %v1030_v28 = vmul.f32 %v2712_v19, %v1029_v25  ;;  %vm1042_vm4 = vweird.f32 %v2714_v26 }
 0x72d   : > { %vm1043_vm6 = vmor %vm1041_vm5, %vm1042_vm4 }
 0x72e   : > { %v1037_v30 = vmul.f32 %v2714_v26, %v1036_v27  ;;  %v1034_v34 = vsel %vm1033_vm3, %v2712_v19, %v1030_v28 }
 0x72f   : > { %v1045_v46 = vmul.f32 %v1034_v34, %v1013_v3 }
 0x730   : > { %v1038_v31 = vmul.f32 0.5, %v1037_v30  ;;  %v3516_v30 = vmul.f32 %v3463_v48, %v3402_v57  ;;  %v2694_v57 = vld [vmem:[%s3923_s18] ss:$0 sm:$0xff] }
 0x731   : > { %v1050_v52 = vmul.f32 %v3498_v43, %v1045_v46 }
 0x732   : > { %v1039_v39 = vsub.f32 1.5, %v1038_v31 }
 0x734   : > { %v1040_v42 = vmul.f32 %v2714_v26, %v1039_v39 }
 0x736   : > { %v1044_v53 = vsel %vm1043_vm6, %v2714_v26, %v1040_v42  ;;  %v2693_v42 = vld [vmem:[%s3922_s17] ss:$0 sm:$0xff] }
 0x737   : > { %v1046_v54 = vmul.f32 %v1044_v53, %v1014_v8 }
 0x739   : > { %v1054_v58 = vmul.f32 %v3503_v50, %v1046_v54 }
 0x73b   : > { %v1055_v59 = vadd.f32 %v1054_v58, %v1050_v52 }
 0x73d   : > { %v1059_v60 = vadd.f32 %v3506_v55, %v1055_v59 }
 0x73f   : > { %2715 = vtanh.f32 %v1059_v60  ;;  %v2518_v62 = vmul.f32 -1.442695, %v1059_v60 }
 0x741   : > { %2717 = vpow2.f32 %v2518_v62 }
 0x745   : > { %v2716_v61 = vpop.eup %2715 }
 0x746   : > { %1086 = vrot.lane.b32.xlu2 %v2716_v61, %s3093_s5 }
 0x747   : > { %v2718_v63 = vpop.eup %2717 }
 0x748   : > { %v1063_v0 = vadd.f32 1.0, %v2718_v63 }
 0x74a   : > { %2719 = vrcp.f32 %v1063_v0  ;;  %v1075_v10 = vand.u32 2147483648, %v1063_v0  ;;  %vm1069_vm8 = vweird.f32 %v1063_v0  ;;  %v1073_v11 = vand.u32 2147483647, %v1063_v0 }
 0x74c   : > { %v1076_v13 = vor.u32 1.1754944e-38, %v1075_v10  ;;  %vm1074_vm10 = vcmp.eq.f32.partialorder %v1073_v11, 8.507059e+37 }
 0x750   : > { %v2720_v3 = vpop.eup %2719 }
 0x751   : > { %v1065_v4 = vmul.f32 %v2720_v3, %v1063_v0  ;;  %vm1070_vm7 = vweird.f32 %v2720_v3 }
 0x752   : > { %vm1071_vm9 = vmor %vm1069_vm8, %vm1070_vm7 }
 0x753   : > { %v1066_v7 = vsub.f32 1.0, %v1065_v4 }
 0x755   : > { %v1067_v8 = vmul.f32 %v2720_v3, %v1066_v7 }
 0x757   : > { %v1068_v9 = vadd.f32 %v2720_v3, %v1067_v8 }
 0x759   : > { %v1072_v12 = vsel %vm1071_vm9, %v2720_v3, %v1068_v9 }
 0x75a   : > { %v1077_v14 = vsel %vm1074_vm10, %v1076_v13, %v1072_v12 }
 0x75b   : > { %v1084_v23 = vmul.f32 %v1082_v22, %v1077_v14 }
 0x7a0   : > { %v1087_v19 = vpop.permute.xlu2 %1086 }
 0x7a1   : > { %v1089_v20 = vmul.f32 %v1087_v19, %v1077_v14 }
 0x7a3   : > { %1091 = vrot.lane.b32.xlu0 %v1089_v20, %s3986_s27 }
 0x815   : > { %v1092_v24 = vpop.permute.xlu0 %1091 }
 0x816   : > { %v1094_v25 = vadd.f32 %v1092_v24, %v1084_v23 }
 0x818   : > { %2721 = vtanh.f32 %v1094_v25  ;;  %v3533_v53 = vmul.f32 %v1094_v25, %v3463_v48 }
 0x81e   : > { %v2722_v26 = vpop.eup %2721 }
 0x81f   : > { %1097 = vrot.lane.b32.xlu2 %v2722_v26, %s3987_s24 }
 0x879   : > { %v1098_v27 = vpop.permute.xlu2 %1097 }
 0x87a   : > { %v1100_v28 = vsel %vm775_vm1, %v1098_v27, 0.0 }
 0x87b   : > { %1101 = vadd.xlane.f32.xlu2 %v1100_v28 }
 0x893   : > { %932 = vrot.lane.b32.xlu2 %v3516_v30, %s3987_s24 }
 0x8ee   : > { %v1102_v31 = vpop.xlane.xlu2 %1101 }
 0x8ef   : > { %v1103_v34 = vmul.f32 %v1102_v31, %v3407_v6 }
 0x8f1   : > { %v1104_v36 = vsub.f32 %v2722_v26, %v1103_v34 }
 0x8f3   : > { %v1105_v37 = vmul.f32 %v1104_v36, %v1104_v36 }
 0x8f5   : > { %1107 = vrot.lane.b32.xlu0 %v1105_v37, %s3987_s24 }
 0x8f6   : > { %v933_v39 = vpop.permute.xlu2 %932 }
 0x8f7   : > { %935 = vst.msk [vmem:[#allocation3] sm:$0xff] %vm775_vm1, %v933_v39 }
 0x8fd   : > { %1128 = vrot.lane.b32.xlu0 %v2693_v42, %s3986_s27 }
 0x905   : > { %1134 = vrot.lane.b32.xlu0 %v2694_v57, %s3986_s27 }
 0x967   : > { %v1108_v46 = vpop.permute.xlu0 %1107 }
 0x968   : > { %v1110_v47 = vsel %vm775_vm1, %v1108_v46, 0.0 }
 0x969   : > { %1111 = vadd.xlane.f32.xlu1 %v1110_v47 }
 0x96f   : > { %v3538_v62 = vpop.permute.xlu0 %1128 }
 0x977   : > { %v3540_v9 = vpop.permute.xlu0 %1134 }
 0x982   : > { %1151 = vrot.lane.b32.xlu1 %v3533_v53, %s3987_s24 }
 0x9dc   : > { %v1112_v54 = vpop.xlane.xlu1 %1111 }
 0x9dd   : > { %v1113_v52 = vmul.f32 %v1112_v54, %v3407_v6 }
 0x9df   : > { %v1114_v58 = vadd.f32 1e-05, %v1113_v52 }
 0x9e1   : > { %2723 = vrsqrt.f32 %v1114_v58  ;;  %vm1121_vm13 = vweird.f32 %v1114_v58 }
 0x9e7   : > { %v2724_v59 = vpop.eup %2723 }
 0x9e8   : > { %v1116_v60 = vmul.f32 %v2724_v59, %v1114_v58  ;;  %vm1122_vm12 = vweird.f32 %v2724_v59 }
 0x9e9   : > { %vm1123_vm14 = vmor %vm1121_vm13, %vm1122_vm12 }
 0x9ea   : > { %v1117_v61 = vmul.f32 %v2724_v59, %v1116_v60 }
 0x9ec   : > { %v1118_v63 = vmul.f32 0.5, %v1117_v61 }
 0x9ee   : > { %v1119_v0 = vsub.f32 1.5, %v1118_v63 }
 0x9f0   : > { %v1120_v3 = vmul.f32 %v2724_v59, %v1119_v0 }
 0x9f2   : > { %v1124_v4 = vsel %vm1123_vm14, %v2724_v59, %v1120_v3 }
 0x9f3   : > { %v1125_v7 = vmul.f32 %v1124_v4, %v1104_v36 }
 0x9f4   : > { %v1152_v8 = vpop.permute.xlu1 %1151 }
 0x9f5   : > { %v1131_v10 = vmul.f32 %v3538_v62, %v1125_v7  ;;  %1154 = vst.msk [vmem:[#allocation3 + $0x8] sm:$0xff] %vm775_vm1, %v1152_v8 }
 0x9f7   : > { %v1137_v11 = vadd.f32 %v3540_v9, %v1131_v10 }
 0x9f9   : > { %1139 = vrot.lane.b32.xlu0 %v1137_v11, %s3093_s5 }
 0xa01   : > { %927 = vrot.lane.b32.xlu0 %v3466_v49, %s3986_s27 }
 0xa6b   : > { %v1140_v12 = vpop.permute.xlu0 %1139 }
 0xa6c   : > { %v1142_v13 = vmul.f32 %v1140_v12, %v1077_v14 }
 0xa6e   : > { %v1143_v19 = vmul.f32 %v1142_v13, %v3463_v48 }
 0xa70   : > { %1146 = vrot.lane.b32.xlu0 %v1143_v19, %s3986_s27 }
 0xa73   : > { %v928_v20 = vpop.permute.xlu0 %927 }
 0xa74   : > { %930 = vst.msk [vmem:[#allocation2] sm:$0xff] %vm775_vm1, %v928_v20 }
 0xae0   : > { %1158 = sbr.rel (%p2519_p1) target bundleno = 3030 (0xbd6), region = 116 }
 0xae2   : > { %v1147_v22 = vpop.permute.xlu0 %1146 }
 0xae3   : > { %1149 = vst.msk [vmem:[#allocation2 + $0x8] sm:$0xff] %vm775_vm1, %v1147_v22 }
 0xae4   : > { %1155 = vst.msk [vmem:[%s3358_s10] sm:$0xff] %vm775_vm1, %v1147_v22 }
 0xae5   : > { %v1175_v23 = vld [vmem:[#allocation17] sm:$0xff]  ;;  %v3100_v14 = vmov 0   ;;  %v1199_v24 = vld [vmem:[#allocation17 + $0x8] sm:$0xff]  ;;  %v1187_v25 = vld [vmem:[#allocation15 + $0x8] sm:$0xff] }
 0xae6   : > { %1177 = vrot.lane.b32.xlu1 %v1175_v23, %s3099_s19  ;;  %2725 = vset.pattern.permute.xlu0 %v3100_v14  ;;  %v1160_v48 = vsel %vm3435_vm11, 1, %v3100_v14  ;;  %v1159_v26 = vld [vmem:[#allocation15] sm:$0xff] }
 0xae7   : > { %1162 = vperm.xlu0 %2725, %v1160_v48   ;;  %1201 = vrot.lane.b32.xlu2 %v1199_v24, %s3099_s19 }
 0xaee   : > { %1189 = vrot.lane.b32.xlu1 %v1187_v25, %s3101_s4 }
 0xaef   : > { %1166 = vrot.lane.b32.xlu0 %v1159_v26, %s3101_s4 }
 0xb41   : > { %v1202_v39 = vpop.permute.xlu2 %1201 }
 0xb58   : > { %v1178_v27 = vpop.permute.xlu1 %1177 }
 0xb59   : > { %v1163_v28 = vpop.permute.xlu0 %1162 }
 0xb5a   : > { %vm1164_vm15 = vcmp.eq.s32.totalorder %v1163_v28, 1 }
 0xb5b   : > { %v1180_v31 = vsel %vm1164_vm15, %v3516_v30, %v1178_v27  ;;  %v1204_v42 = vsel %vm1164_vm15, %v3533_v53, %v1202_v39 }
 0xb5c   : > { %1182 = vrot.lane.b32.xlu0 %v1180_v31, %s3101_s4 }
 0xb60   : > { %v1190_v34 = vpop.permute.xlu1 %1189 }
 0xb61   : > { %v1192_v36 = vsel %vm1164_vm15, %v1143_v19, %v1190_v34  ;;  %v1167_v37 = vpop.permute.xlu0 %1166 }
 0xb62   : > { %v1169_v21 = vsel %vm1164_vm15, %v3466_v49, %v1167_v37  ;;  %1194 = vrot.lane.b32.xlu1 %v1192_v36, %s3099_s19 }
 0xb63   : > { %1171 = vrot.lane.b32.xlu2 %v1169_v21, %s3099_s19 }
 0xb6b   : > { %1206 = vrot.lane.b32.xlu2 %v1204_v42, %s3101_s4 }
 0xbbd   : > { %v1172_v57 = vpop.permute.xlu2 %1171 }
 0xbbe   : > { %1174 = vst.msk [vmem:[#allocation15] sm:$0xff] %vm775_vm1, %v1172_v57 }
 0xbc5   : > { %v1207_v46 = vpop.permute.xlu2 %1206 }
 0xbc6   : > { %1209 = vst.msk [vmem:[#allocation17 + $0x8] sm:$0xff] %vm775_vm1, %v1207_v46 }
 0xbce   : > { %v1183_v47 = vpop.permute.xlu0 %1182 }
 0xbcf   : > { %1185 = vst.msk [vmem:[#allocation17] sm:$0xff] %vm775_vm1, %v1183_v47 }
 0xbd4   : > { %v1195_v30 = vpop.permute.xlu1 %1194 }
 0xbd5   : > { %1197 = vst.msk [vmem:[#allocation15 + $0x8] sm:$0xff] %vm775_vm1, %v1195_v30 }
 0xbd6 PF: > { %1228 = vmatpush.bf16.msra.mxu3 %v3365_v1  ;;  %v1216_v49 = vld [vmem:[#allocation2] sm:$0xff]  ;;  %2726 = vset.pattern.permute.xlu1 %v3097_v17  ;;  %v2522_v23 = vld [vmem:[%s3344_s29 + $0x8] sm:$0xff]  ;;  %v1217_v25 = vld [vmem:[#allocation3] sm:$0xff]  ;;  %s3988_s26 = smov 32   ;;  %s3989_s27 = smov 96  }
 0xbd7   : > { %1382 = vmatpush.bf16.msrb.mxu1 %v3449_v40  ;;  %1365 = vmatpush.bf16.msrb.mxu0 %v3456_v44  ;;  %v1218_v53 = vpack.c.bf16 %v1216_v49, %v1216_v49  ;;  %s1210_s24 = sadd.s32 1, %s3421_s22  ;;  %s3102_s9 = smov (!%p2519_p1), 32  }
 0xbd8   : > { %2727 = vset.pattern.permute.xlu0 %v3097_v17  ;;  %s3104_s25 = smov (!%p2519_p1), 96  }
 0xbda   : > { %1229 = vmatpush.bf16.msra.mxu3 %v3367_v2 }
 0xbdb   : > { %1383 = vmatpush.bf16.msrb.mxu1 %v3452_v41  ;;  %1366 = vmatpush.bf16.msrb.mxu0 %v3459_v45 }
 0xbdd   : > { %2521 = vmatmul.msk.bf16.vlgmr.msra.gmra.mxu3 %vm775_vm1, %v1218_v53 }
 0xc60   : > { %v1231_v54 = vpop.f32.mrf.mxu3 }
 0xc61   : > { %v1232_v52 = vadd.f32 %v3375_v5, %v1231_v54 }
 0xc63   : > { %1237 = vadd.xlane.f32.xlu0 %v1232_v52 }
 0xc68   : > { %v1233_v58 = vpop.f32.mrf.mxu3 }
 0xcd6   : > { %v1238_v59 = vpop.xlane.xlu0 %1237 }
 0xcd7   : > { %v1239_v60 = vmul.f32 %v1238_v59, %v3378_v15 }
 0xcd9   : > { %v1240_v61 = vsub.f32 %v1232_v52, %v1239_v60 }
 0xcdb   : > { %v1241_v63 = vmul.f32 %v1240_v61, %v1240_v61 }
 0xcdd   : > { %1242 = vadd.xlane.f32.xlu0 %v1241_v63  ;;  %v3590_v63 = vstv %s1210_s24 }
 0xcde   : > { %vm1215_vm7 = vcmp.eq.s32.totalorder %v3590_v63, %v3430_v18  ;;  %vm1212_vm8 = vcmp.lt.s32.totalorder %v3590_v63, %v3426_v16 }
 0xd50   : > { %v1243_v0 = vpop.xlane.xlu0 %1242 }
 0xd51   : > { %v1244_v3 = vmul.f32 %v1243_v0, %v3378_v15 }
 0xd53   : > { %v1245_v4 = vadd.f32 1e-05, %v1244_v3 }
 0xd55   : > { %2728 = vrsqrt.f32 %v1245_v4  ;;  %vm1252_vm0 = vweird.f32 %v1245_v4 }
 0xd5b   : > { %v2729_v7 = vpop.eup %2728 }
 0xd5c   : > { %v1247_v8 = vmul.f32 %v2729_v7, %v1245_v4  ;;  %vm1253_vm11 = vweird.f32 %v2729_v7 }
 0xd5d   : > { %vm1254_vm2 = vmor %vm1252_vm0, %vm1253_vm11 }
 0xd5e   : > { %v1248_v10 = vmul.f32 %v2729_v7, %v1247_v8  ;;  %v2520_v8 = vsel %vm1212_vm8, 1.0, %v3098_v38 }
 0xd60   : > { %v1249_v11 = vmul.f32 0.5, %v1248_v10 }
 0xd62   : > { %v1250_v12 = vsub.f32 1.5, %v1249_v11 }
 0xd64   : > { %v1251_v13 = vmul.f32 %v2729_v7, %v1250_v12 }
 0xd66   : > { %v1255_v19 = vsel %vm1254_vm2, %v2729_v7, %v1251_v13 }
 0xd67   : > { %v1256_v20 = vmul.f32 %v1255_v19, %v1240_v61 }
 0xd69   : > { %v1257_v22 = vmul.f32 %v3385_v29, %v1256_v20 }
 0xd6b   : > { %v1258_v14 = vadd.f32 %v3390_v32, %v1257_v22 }
 0xd6d   : > { %v1259_v48 = vadd.f32 %v2522_v23, %v1258_v14 }
 0xd6f   : > { %2730 = vtanh.f32 %v1259_v48  ;;  %v2523_v26 = vmul.f32 -1.442695, %v1259_v48 }
 0xd71   : > { %2732 = vpow2.f32 %v2523_v26 }
 0xd75   : > { %v2731_v24 = vpop.eup %2730 }
 0xd76   : > { %1286 = vrot.lane.b32.xlu1 %v2731_v24, %s3093_s5 }
 0xd77   : > { %v2733_v27 = vpop.eup %2732 }
 0xd78   : > { %v1263_v28 = vadd.f32 1.0, %v2733_v27 }
 0xd7a   : > { %2734 = vrcp.f32 %v1263_v28  ;;  %v1275_v39 = vand.u32 2147483648, %v1263_v28  ;;  %vm1269_vm4 = vweird.f32 %v1263_v28  ;;  %v1273_v42 = vand.u32 2147483647, %v1263_v28 }
 0xd7c   : > { %v1276_v46 = vor.u32 1.1754944e-38, %v1275_v39  ;;  %vm1274_vm6 = vcmp.eq.f32.partialorder %v1273_v42, 8.507059e+37 }
 0xd7e   : > { %1281 = vrot.lane.b32.xlu1 %v1217_v25, %s3988_s26 }
 0xd80   : > { %v2735_v31 = vpop.eup %2734 }
 0xd81   : > { %v1265_v34 = vmul.f32 %v2735_v31, %v1263_v28  ;;  %vm1270_vm3 = vweird.f32 %v2735_v31 }
 0xd82   : > { %vm1271_vm5 = vmor %vm1269_vm4, %vm1270_vm3 }
 0xd83   : > { %v1266_v36 = vsub.f32 1.0, %v1265_v34 }
 0xd85   : > { %v1267_v37 = vmul.f32 %v2735_v31, %v1266_v36 }
 0xd87   : > { %v1268_v21 = vadd.f32 %v2735_v31, %v1267_v37 }
 0xd89   : > { %v1272_v57 = vsel %vm1271_vm5, %v2735_v31, %v1268_v21  ;;  %v1350_v31 = vld [vmem:[#allocation2 + $0x8] sm:$0xff] }
 0xd8a   : > { %v1277_v30 = vsel %vm1274_vm6, %v1276_v46, %v1272_v57  ;;  %v1372_v34 = vpack.c.bf16 %v1350_v31, %v1350_v31 }
 0xd8c   : > { %2525 = vmatmul.msk.bf16.vlgmr.msrb.gmra.mxu1 %vm775_vm1, %v1372_v34 }
 0xde8   : > { %v1287_v47 = vpop.permute.xlu1 %1286 }
 0xde9   : > { %v1289_v49 = vmul.f32 %v1287_v47, %v1277_v30 }
 0xdeb   : > { %1291 = vrot.lane.b32.xlu2 %v1289_v49, %s3988_s26 }
 0xdf0   : > { %v1282_v53 = vpop.permute.xlu1 %1281 }
 0xdf1   : > { %v1284_v54 = vmul.f32 %v1282_v53, %v1277_v30 }
 0xe09   : > { %v1385_v57 = vpop.f32.mrf.mxu1 }
 0xe0a   : > { %v1386_v46 = vadd.f32 %v3474_v51, %v1385_v57 }
 0xe11   : > { %v1387_v47 = vpop.f32.mrf.mxu1 }
 0xe45   : > { %v1292_v52 = vpop.permute.xlu2 %1291 }
 0xe46   : > { %v3584_v58 = vadd.f32 %v1292_v52, %v1284_v54  ;;  %v1351_v52 = vld [vmem:[#allocation3 + $0x8] sm:$0xff] }
 0xe48   : > { %2736 = vtanh.f32 %v3584_v58 }
 0xe4e   : > { %v2737_v59 = vpop.eup %2736 }
 0xe4f   : > { %1297 = vrot.lane.b32.xlu2 %v2737_v59, %s3989_s27 }
 0xea9   : > { %v1298_v60 = vpop.permute.xlu2 %1297 }
 0xeaa   : > { %v1300_v61 = vsel %vm775_vm1, %v1298_v60, 0.0 }
 0xeab   : > { %1301 = vadd.xlane.f32.xlu0 %v1300_v61 }
 0xf1e   : > { %v1302_v0 = vpop.xlane.xlu0 %1301 }
 0xf1f   : > { %v1303_v3 = vmul.f32 %v1302_v0, %v3407_v6 }
 0xf21   : > { %v1304_v4 = vsub.f32 %v2737_v59, %v1303_v3 }
 0xf23   : > { %v1305_v7 = vmul.f32 %v1304_v4, %v1304_v4 }
 0xf25   : > { %1307 = vrot.lane.b32.xlu1 %v1305_v7, %s3989_s27 }
 0xf2d   : > { %1335 = vperm.xlu1 %2726, %v2520_v8  }
 0xf97   : > { %v1308_v10 = vpop.permute.xlu1 %1307 }
 0xf98   : > { %v1310_v11 = vsel %vm775_vm1, %v1308_v10, 0.0 }
 0xf99   : > { %1311 = vadd.xlane.f32.xlu2 %v1310_v11 }
 0xf9f   : > { %v3605_v21 = vpop.permute.xlu1 %1335 }
0x100c   : > { %v1312_v12 = vpop.xlane.xlu2 %1311 }
0x100d   : > { %v1313_v13 = vmul.f32 %v1312_v12, %v3407_v6 }
0x100f   : > { %v1314_v19 = vadd.f32 1e-05, %v1313_v13 }
0x1011   : > { %2738 = vrsqrt.f32 %v1314_v19  ;;  %vm1321_vm10 = vweird.f32 %v1314_v19 }
0x1017   : > { %v2739_v20 = vpop.eup %2738 }
0x1018   : > { %v1316_v22 = vmul.f32 %v2739_v20, %v1314_v19  ;;  %vm1322_vm9 = vweird.f32 %v2739_v20 }
0x1019   : > { %vm1323_vm12 = vmor %vm1321_vm10, %vm1322_vm9 }
0x101a   : > { %v1317_v23 = vmul.f32 %v2739_v20, %v1316_v22 }
0x101c   : > { %v1318_v14 = vmul.f32 0.5, %v1317_v23 }
0x101e   : > { %v1319_v48 = vsub.f32 1.5, %v1318_v14 }
0x1020   : > { %v1320_v24 = vmul.f32 %v2739_v20, %v1319_v48 }
0x1022   : > { %v1324_v25 = vsel %vm1323_vm12, %v2739_v20, %v1320_v24 }
0x1023   : > { %v1325_v26 = vmul.f32 %v1324_v25, %v1304_v4 }
0x1025   : > { %v1326_v27 = vmul.f32 %v1325_v26, %v3440_v33 }
0x1027   : > { %v1327_v28 = vadd.f32 %v1326_v27, %v3442_v35 }
0x1029   : > { %1329 = vrot.lane.b32.xlu0 %v1327_v28, %s3093_s5 }
0x1053   : > { %1391 = vadd.xlane.f32.xlu0 %v1386_v46 }
0x109b   : > { %v1330_v36 = vpop.permute.xlu0 %1329 }
0x109c   : > { %v1332_v37 = vmul.f32 %v1330_v36, %v1277_v30 }
0x109e   : > { %v3608_v39 = vmul.f32 %v3605_v21, %v1332_v37 }
0x10a0   : > { %v1352_v42 = vpack.c.bf16 %v3608_v39, %v3608_v39 }
0x10a2   : > { %1354 = vrot.lane.b32.xlu1 %v1352_v42, %s3988_s26 }
0x10c6   : > { %v1392_v61 = vpop.xlane.xlu0 %1391 }
0x10c7   : > { %v1394_v3 = vmul.f32 %v1392_v61, %v3378_v15 }
0x10c9   : > { %v1396_v7 = vsub.f32 %v1386_v46, %v1394_v3 }
0x10cb   : > { %v1398_v8 = vmul.f32 %v1396_v7, %v1396_v7 }
0x1114   : > { %v1355_v49 = vpop.permute.xlu1 %1354 }
0x1115   : > { %2524 = vmatmul.msk.bf16.vlgmr.msrb.gmra.mxu0 %vm775_vm1, %v1355_v49 }
0x1192   : > { %v1368_v53 = vpop.f32.mrf.mxu0 }
0x1193   : > { %v1369_v30 = vadd.f32 %v3481_v56, %v1368_v53 }
0x1195   : > { %1389 = vadd.xlane.f32.xlu1 %v1369_v30 }
0x119a   : > { %v1370_v54 = vpop.f32.mrf.mxu0 }
0x11ae   : > { %1454 = vrot.lane.b32.xlu1 %v1351_v52, %s3988_s26 }
0x1208   : > { %v1390_v59 = vpop.xlane.xlu1 %1389 }
0x1209   : > { %v1393_v60 = vmul.f32 %v1390_v59, %v3378_v15 }
0x120b   : > { %v1395_v0 = vsub.f32 %v1369_v30, %v1393_v60 }
0x120d   : > { %v1397_v4 = vmul.f32 %v1395_v0, %v1395_v0 }
0x120f   : > { %1399 = vadd.xlane.f32.xlu2 %v1397_v4 }
0x1217   : > { %1401 = vadd.xlane.f32.xlu2 %v1398_v8 }
0x1282   : > { %v1400_v10 = vpop.xlane.xlu2 %1399 }
0x1283   : > { %v1403_v11 = vmul.f32 %v1400_v10, %v3378_v15 }
0x1285   : > { %v1405_v12 = vadd.f32 1e-05, %v1403_v11 }
0x1287   : > { %2740 = vrsqrt.f32 %v1405_v12  ;;  %vm1413_vm14 = vweird.f32 %v1405_v12 }
0x128a   : > { %v1402_v13 = vpop.xlane.xlu2 %1401 }
0x128b   : > { %v1404_v19 = vmul.f32 %v1402_v13, %v3378_v15 }
0x128d   : > { %v2741_v20 = vpop.eup %2740  ;;  %v1406_v22 = vadd.f32 1e-05, %v1404_v19 }
0x128e   : > { %v1408_v23 = vmul.f32 %v2741_v20, %v1405_v12  ;;  %vm1414_vm13 = vweird.f32 %v2741_v20 }
0x128f   : > { %2742 = vrsqrt.f32 %v1406_v22  ;;  %vm1415_vm15 = vmor %vm1413_vm14, %vm1414_vm13  ;;  %vm1423_vm0 = vweird.f32 %v1406_v22 }
0x1290   : > { %v1409_v14 = vmul.f32 %v2741_v20, %v1408_v23 }
0x1292   : > { %v1410_v48 = vmul.f32 0.5, %v1409_v14 }
0x1294   : > { %v1411_v24 = vsub.f32 1.5, %v1410_v48 }
0x1295   : > { %v2743_v25 = vpop.eup %2742 }
0x1296   : > { %v1418_v26 = vmul.f32 %v2743_v25, %v1406_v22  ;;  %v1412_v27 = vmul.f32 %v2741_v20, %v1411_v24  ;;  %vm1424_vm11 = vweird.f32 %v2743_v25  ;;  %v1455_v22 = vpop.permute.xlu1 %1454 }
0x1297   : > { %vm1425_vm2 = vmor %vm1423_vm0, %vm1424_vm11 }
0x1298   : > { %v1419_v28 = vmul.f32 %v2743_v25, %v1418_v26  ;;  %v1416_v34 = vsel %vm1415_vm15, %v2741_v20, %v1412_v27 }
0x1299   : > { %v1427_v42 = vmul.f32 %v1416_v34, %v1395_v0 }
0x129a   : > { %v1420_v31 = vmul.f32 0.5, %v1419_v28 }
0x129b   : > { %v1429_v47 = vmul.f32 %v3498_v43, %v1427_v42 }
0x129c   : > { %v1421_v36 = vsub.f32 1.5, %v1420_v31 }
0x129e   : > { %v1422_v37 = vmul.f32 %v2743_v25, %v1421_v36 }
0x12a0   : > { %v1426_v57 = vsel %vm1425_vm2, %v2743_v25, %v1422_v37 }
0x12a1   : > { %v1428_v46 = vmul.f32 %v1426_v57, %v1396_v7 }
0x12a3   : > { %v1430_v49 = vmul.f32 %v3503_v50, %v1428_v46 }
0x12a5   : > { %v1431_v53 = vadd.f32 %v1430_v49, %v1429_v47 }
0x12a7   : > { %v1432_v30 = vadd.f32 %v1431_v53, %v3506_v55 }
0x12a9   : > { %2744 = vtanh.f32 %v1432_v30  ;;  %v2526_v52 = vmul.f32 -1.442695, %v1432_v30 }
0x12ab   : > { %2746 = vpow2.f32 %v2526_v52 }
0x12af   : > { %v2745_v54 = vpop.eup %2744 }
0x12b0   : > { %1459 = vrot.lane.b32.xlu2 %v2745_v54, %s3093_s5 }
0x12b1   : > { %v2747_v59 = vpop.eup %2746 }
0x12b2   : > { %v1436_v60 = vadd.f32 1.0, %v2747_v59 }
0x12b4   : > { %2748 = vrcp.f32 %v1436_v60  ;;  %v1448_v8 = vand.u32 2147483648, %v1436_v60  ;;  %vm1442_vm4 = vweird.f32 %v1436_v60  ;;  %v1446_v10 = vand.u32 2147483647, %v1436_v60 }
0x12b6   : > { %v1449_v12 = vor.u32 1.1754944e-38, %v1448_v8  ;;  %vm1447_vm6 = vcmp.eq.f32.partialorder %v1446_v10, 8.507059e+37 }
0x12ba   : > { %v2749_v61 = vpop.eup %2748 }
0x12bb   : > { %v1438_v0 = vmul.f32 %v2749_v61, %v1436_v60  ;;  %vm1443_vm3 = vweird.f32 %v2749_v61 }
0x12bc   : > { %vm1444_vm5 = vmor %vm1442_vm4, %vm1443_vm3 }
0x12bd   : > { %v1439_v3 = vsub.f32 1.0, %v1438_v0 }
0x12bf   : > { %v1440_v4 = vmul.f32 %v2749_v61, %v1439_v3  ;;  %v1339_v3 = vmul.f32 %v3605_v21, %v3584_v58 }
0x12c1   : > { %v1441_v7 = vadd.f32 %v2749_v61, %v1440_v4 }
0x12c3   : > { %v1445_v11 = vsel %vm1444_vm5, %v2749_v61, %v1441_v7 }
0x12c4   : > { %v1450_v13 = vsel %vm1447_vm6, %v1449_v12, %v1445_v11 }
0x12c5   : > { %v1457_v23 = vmul.f32 %v1455_v22, %v1450_v13 }
0x130a   : > { %v1460_v19 = vpop.permute.xlu2 %1459 }
0x130b   : > { %v1462_v20 = vmul.f32 %v1460_v19, %v1450_v13 }
0x130d   : > { %1464 = vrot.lane.b32.xlu0 %v1462_v20, %s3988_s26 }
0x137f   : > { %v1465_v14 = vpop.permute.xlu0 %1464 }
0x1380   : > { %v1467_v48 = vadd.f32 %v1465_v14, %v1457_v23 }
0x1382   : > { %2750 = vtanh.f32 %v1467_v48  ;;  %v1507_v11 = vmul.f32 %v1467_v48, %v3605_v21 }
0x1388   : > { %v2751_v24 = vpop.eup %2750 }
0x1389   : > { %1470 = vrot.lane.b32.xlu2 %v2751_v24, %s3989_s27 }
0x13e3   : > { %v1471_v25 = vpop.permute.xlu2 %1470 }
0x13e4   : > { %v1473_v26 = vsel %vm775_vm1, %v1471_v25, 0.0 }
0x13e5   : > { %1474 = vadd.xlane.f32.xlu2 %v1473_v26 }
0x1458   : > { %v1475_v27 = vpop.xlane.xlu2 %1474 }
0x1459   : > { %v1476_v28 = vmul.f32 %v1475_v27, %v3407_v6 }
0x145b   : > { %v1477_v31 = vsub.f32 %v2751_v24, %v1476_v28 }
0x145d   : > { %v1478_v34 = vmul.f32 %v1477_v31, %v1477_v31 }
0x145f   : > { %1480 = vrot.lane.b32.xlu0 %v1478_v34, %s3989_s27 }
0x14d1   : > { %v1481_v36 = vpop.permute.xlu0 %1480 }
0x14d2   : > { %v1483_v37 = vsel %vm775_vm1, %v1481_v36, 0.0 }
0x14d3   : > { %1484 = vadd.xlane.f32.xlu1 %v1483_v37 }
0x1546   : > { %v1485_v42 = vpop.xlane.xlu1 %1484 }
0x1547   : > { %v1486_v57 = vmul.f32 %v1485_v42, %v3407_v6 }
0x1549   : > { %v1487_v46 = vadd.f32 1e-05, %v1486_v57 }
0x154b   : > { %2752 = vrsqrt.f32 %v1487_v46  ;;  %vm1494_vm9 = vweird.f32 %v1487_v46 }
0x1551   : > { %v2753_v47 = vpop.eup %2752 }
0x1552   : > { %v1489_v49 = vmul.f32 %v2753_v47, %v1487_v46  ;;  %vm1495_vm8 = vweird.f32 %v2753_v47 }
0x1553   : > { %vm1496_vm10 = vmor %vm1494_vm9, %vm1495_vm8 }
0x1554   : > { %v1490_v53 = vmul.f32 %v2753_v47, %v1489_v49 }
0x1556   : > { %v1491_v30 = vmul.f32 0.5, %v1490_v53 }
0x1558   : > { %v1492_v54 = vsub.f32 1.5, %v1491_v30 }
0x155a   : > { %v1493_v52 = vmul.f32 %v2753_v47, %v1492_v54 }
0x155c   : > { %v1497_v59 = vsel %vm1496_vm10, %v2753_v47, %v1493_v52 }
0x155d   : > { %v1498_v60 = vmul.f32 %v1497_v59, %v1477_v31 }
0x155f   : > { %v1499_v61 = vmul.f32 %v1498_v60, %v3538_v62 }
0x1561   : > { %v1500_v0 = vadd.f32 %v1499_v61, %v3540_v9 }
0x1563   : > { %1502 = vrot.lane.b32.xlu0 %v1500_v0, %s3093_s5 }
0x156b   : > { %1341 = vrot.lane.b32.xlu0 %v3608_v39, %s3988_s26 }
0x1573   : > { %1346 = vrot.lane.b32.xlu0 %v1339_v3, %s3989_s27 }
0x15d5   : > { %v1503_v4 = vpop.permute.xlu0 %1502 }
0x15d6   : > { %v1505_v7 = vmul.f32 %v1503_v4, %v1450_v13 }
0x15d8   : > { %v1506_v8 = vmul.f32 %v1505_v7, %v3605_v21 }
0x15da   : > { %1509 = vrot.lane.b32.xlu0 %v1506_v8, %s3988_s26 }
0x15dd   : > { %v1342_v10 = vpop.permute.xlu0 %1341 }
0x15de   : > { %1344 = vst.msk [vmem:[#allocation2] sm:$0xff] %vm775_vm1, %v1342_v10 }
0x15e2   : > { %1514 = vrot.lane.b32.xlu0 %v1507_v11, %s3989_s27 }
0x15e5   : > { %v1347_v12 = vpop.permute.xlu0 %1346 }
0x15e6   : > { %1349 = vst.msk [vmem:[#allocation3] sm:$0xff] %vm775_vm1, %v1347_v12 }
0x164c   : > { %v1510_v19 = vpop.permute.xlu0 %1509 }
0x164d   : > { %1512 = vst.msk [vmem:[#allocation2 + $0x8] sm:$0xff] %vm775_vm1, %v1510_v19 }
0x164e   : > { %2527 = vst.msk [vmem:[%s3358_s10 + $0x8] sm:$0xff] %vm775_vm1, %v1510_v19 }
0x1651   : > { %1522 = sbr.rel (%p2519_p1) target bundleno = 5959 (0x1747), region = 120 }
0x1654   : > { %v1515_v58 = vpop.permute.xlu0 %1514 }
0x1655   : > { %1517 = vst.msk [vmem:[#allocation3 + $0x8] sm:$0xff] %vm775_vm1, %v1515_v58 }
0x1656   : > { %v1539_v13 = vld [vmem:[#allocation17] sm:$0xff]  ;;  %v3103_v21 = vmov 0   ;;  %v1563_v22 = vld [vmem:[#allocation17 + $0x8] sm:$0xff]  ;;  %v1551_v23 = vld [vmem:[#allocation15 + $0x8] sm:$0xff] }
0x1657   : > { %1541 = vrot.lane.b32.xlu1 %v1539_v13, %s3102_s9  ;;  %2754 = vset.pattern.permute.xlu0 %v3103_v21  ;;  %v1524_v20 = vsel %vm1215_vm7, 1, %v3103_v21  ;;  %v1523_v14 = vld [vmem:[#allocation15] sm:$0xff] }
0x1658   : > { %1526 = vperm.xlu0 %2754, %v1524_v20   ;;  %1565 = vrot.lane.b32.xlu2 %v1563_v22, %s3102_s9 }
0x165f   : > { %1553 = vrot.lane.b32.xlu1 %v1551_v23, %s3104_s25 }
0x1660   : > { %1530 = vrot.lane.b32.xlu0 %v1523_v14, %s3104_s25 }
0x16b2   : > { %v1566_v63 = vpop.permute.xlu2 %1565 }
0x16c9   : > { %v1542_v48 = vpop.permute.xlu1 %1541 }
0x16ca   : > { %v1527_v24 = vpop.permute.xlu0 %1526 }
0x16cb   : > { %vm1528_vm12 = vcmp.eq.s32.totalorder %v1527_v24, 1 }
0x16cc   : > { %v1544_v25 = vsel %vm1528_vm12, %v1339_v3, %v1542_v48  ;;  %v1568_v34 = vsel %vm1528_vm12, %v1507_v11, %v1566_v63 }
0x16cd   : > { %1546 = vrot.lane.b32.xlu0 %v1544_v25, %s3104_s25 }
0x16d1   : > { %v1554_v26 = vpop.permute.xlu1 %1553 }
0x16d2   : > { %v1556_v27 = vsel %vm1528_vm12, %v1506_v8, %v1554_v26  ;;  %v1531_v28 = vpop.permute.xlu0 %1530 }
0x16d3   : > { %v1533_v31 = vsel %vm1528_vm12, %v3608_v39, %v1531_v28  ;;  %1558 = vrot.lane.b32.xlu1 %v1556_v27, %s3102_s9 }
0x16d4   : > { %1535 = vrot.lane.b32.xlu2 %v1533_v31, %s3102_s9 }
0x16dc   : > { %1570 = vrot.lane.b32.xlu2 %v1568_v34, %s3104_s25 }
0x172e   : > { %v1536_v36 = vpop.permute.xlu2 %1535 }
0x172f   : > { %1538 = vst.msk [vmem:[#allocation15] sm:$0xff] %vm775_vm1, %v1536_v36 }
0x1736   : > { %v1571_v37 = vpop.permute.xlu2 %1570 }
0x1737   : > { %1573 = vst.msk [vmem:[#allocation17 + $0x8] sm:$0xff] %vm775_vm1, %v1571_v37 }
0x173f   : > { %v1547_v42 = vpop.permute.xlu0 %1546 }
0x1740   : > { %1549 = vst.msk [vmem:[#allocation17] sm:$0xff] %vm775_vm1, %v1547_v42 }
0x1745   : > { %v1559_v57 = vpop.permute.xlu1 %1558 }
0x1746   : > { %1561 = vst.msk [vmem:[#allocation15 + $0x8] sm:$0xff] %vm775_vm1, %v1559_v57 }
0x1747 PF: > { %1592 = vmatpush.bf16.msrb.mxu2 %v3365_v1  ;;  %v1580_v39 = vld [vmem:[#allocation2] sm:$0xff]  ;;  %2755 = vset.pattern.permute.xlu1 %v3097_v17  ;;  %v2531_v13 = vld [vmem:[%s3344_s29 + $0x10] sm:$0xff]  ;;  %s3990_s3 = smov 32   ;;  %s3991_s2 = smov 96  }
0x1748   : > { %1746 = vmatpush.bf16.msra.mxu0 %v3449_v40  ;;  %1729 = vmatpush.bf16.msrb.mxu3 %v3456_v44  ;;  %v1582_v46 = vpack.c.bf16 %v1580_v39, %v1580_v39  ;;  %v1581_v23 = vld [vmem:[#allocation3] sm:$0xff]  ;;  %s1574_s19 = sadd.s32 2, %s3421_s22  ;;  %s3105_s4 = smov (!%p2519_p1), 32  }
0x1749   : > { %2756 = vset.pattern.permute.xlu0 %v3097_v17  ;;  %s3107_s26 = smov (!%p2519_p1), 96  }
0x174b   : > { %1593 = vmatpush.bf16.msrb.mxu2 %v3367_v2 }
0x174c   : > { %1747 = vmatpush.bf16.msra.mxu0 %v3452_v41  ;;  %1730 = vmatpush.bf16.msrb.mxu3 %v3459_v45 }
0x174e   : > { %2530 = vmatmul.msk.bf16.vlgmr.msrb.gmra.mxu2 %vm775_vm1, %v1582_v46 }
0x17d1   : > { %v1595_v47 = vpop.f32.mrf.mxu2 }
0x17d2   : > { %v1596_v49 = vadd.f32 %v3375_v5, %v1595_v47 }
0x17d4   : > { %1601 = vadd.xlane.f32.xlu0 %v1596_v49 }
0x17d9   : > { %v1597_v53 = vpop.f32.mrf.mxu2 }
0x1847   : > { %v1602_v30 = vpop.xlane.xlu0 %1601 }
0x1848   : > { %v1603_v54 = vmul.f32 %v1602_v30, %v3378_v15 }
0x184a   : > { %v1604_v52 = vsub.f32 %v1596_v49, %v1603_v54 }
0x184c   : > { %v1605_v59 = vmul.f32 %v1604_v52, %v1604_v52 }
0x184e   : > { %1606 = vadd.xlane.f32.xlu0 %v1605_v59  ;;  %v3684_v59 = vstv %s1574_s19 }
0x184f   : > { %vm1579_vm3 = vcmp.eq.s32.totalorder %v3684_v59, %v3430_v18  ;;  %vm1576_vm4 = vcmp.lt.s32.totalorder %v3684_v59, %v3426_v16 }
0x18c1   : > { %v1607_v60 = vpop.xlane.xlu0 %1606 }
0x18c2   : > { %v1608_v61 = vmul.f32 %v1607_v60, %v3378_v15 }
0x18c4   : > { %v1609_v0 = vadd.f32 1e-05, %v1608_v61 }
0x18c6   : > { %2757 = vrsqrt.f32 %v1609_v0  ;;  %vm1616_vm13 = vweird.f32 %v1609_v0 }
0x18cc   : > { %v2758_v3 = vpop.eup %2757 }
0x18cd   : > { %v1611_v4 = vmul.f32 %v2758_v3, %v1609_v0  ;;  %vm1617_vm7 = vweird.f32 %v2758_v3 }
0x18ce   : > { %vm1618_vm14 = vmor %vm1616_vm13, %vm1617_vm7 }
0x18cf   : > { %v1612_v7 = vmul.f32 %v2758_v3, %v1611_v4  ;;  %v2529_v4 = vsel %vm1576_vm4, 1.0, %v3098_v38 }
0x18d1   : > { %v1613_v8 = vmul.f32 0.5, %v1612_v7 }
0x18d3   : > { %v1614_v10 = vsub.f32 1.5, %v1613_v8 }
0x18d5   : > { %v1615_v11 = vmul.f32 %v2758_v3, %v1614_v10 }
0x18d7   : > { %v1619_v12 = vsel %vm1618_vm14, %v2758_v3, %v1615_v11 }
0x18d8   : > { %v1620_v19 = vmul.f32 %v1619_v12, %v1604_v52 }
0x18da   : > { %v1621_v58 = vmul.f32 %v3385_v29, %v1620_v19 }
0x18dc   : > { %v1622_v21 = vadd.f32 %v3390_v32, %v1621_v58 }
0x18de   : > { %v1623_v20 = vadd.f32 %v2531_v13, %v1622_v21 }
0x18e0   : > { %2759 = vtanh.f32 %v1623_v20  ;;  %v2532_v14 = vmul.f32 -1.442695, %v1623_v20 }
0x18e2   : > { %2761 = vpow2.f32 %v2532_v14 }
0x18e6   : > { %v2760_v22 = vpop.eup %2759 }
0x18e7   : > { %1650 = vrot.lane.b32.xlu1 %v2760_v22, %s3093_s5 }
0x18e8   : > { %v2762_v48 = vpop.eup %2761 }
0x18e9   : > { %v1627_v24 = vadd.f32 1.0, %v2762_v48 }
0x18eb   : > { %2763 = vrcp.f32 %v1627_v24  ;;  %v1639_v63 = vand.u32 2147483648, %v1627_v24  ;;  %vm1633_vm11 = vweird.f32 %v1627_v24  ;;  %v1637_v34 = vand.u32 2147483647, %v1627_v24 }
0x18ed   : > { %v1640_v37 = vor.u32 1.1754944e-38, %v1639_v63  ;;  %vm1638_vm2 = vcmp.eq.f32.partialorder %v1637_v34, 8.507059e+37 }
0x18ef   : > { %1645 = vrot.lane.b32.xlu1 %v1581_v23, %s3990_s3 }
0x18f1   : > { %v2764_v25 = vpop.eup %2763 }
0x18f2   : > { %v1629_v26 = vmul.f32 %v2764_v25, %v1627_v24  ;;  %vm1634_vm15 = vweird.f32 %v2764_v25 }
0x18f3   : > { %vm1635_vm0 = vmor %vm1633_vm11, %vm1634_vm15 }
0x18f4   : > { %v1630_v27 = vsub.f32 1.0, %v1629_v26 }
0x18f6   : > { %v1631_v28 = vmul.f32 %v2764_v25, %v1630_v27 }
0x18f8   : > { %v1632_v31 = vadd.f32 %v2764_v25, %v1631_v28 }
0x18fa   : > { %v1636_v36 = vsel %vm1635_vm0, %v2764_v25, %v1632_v31  ;;  %v1714_v25 = vld [vmem:[#allocation2 + $0x8] sm:$0xff] }
0x18fb   : > { %v1641_v57 = vsel %vm1638_vm2, %v1640_v37, %v1636_v36  ;;  %v1736_v26 = vpack.c.bf16 %v1714_v25, %v1714_v25 }
0x18fd   : > { %2534 = vmatmul.msk.bf16.vlgmr.msra.gmra.mxu0 %vm775_vm1, %v1736_v26 }
0x1959   : > { %v1651_v42 = vpop.permute.xlu1 %1650 }
0x195a   : > { %v1653_v39 = vmul.f32 %v1651_v42, %v1641_v57 }
0x195c   : > { %1655 = vrot.lane.b32.xlu2 %v1653_v39, %s3990_s3 }
0x1961   : > { %v1646_v46 = vpop.permute.xlu1 %1645 }
0x1962   : > { %v1648_v47 = vmul.f32 %v1646_v46, %v1641_v57 }
0x197a   : > { %v1749_v36 = vpop.f32.mrf.mxu0 }
0x197b   : > { %v1750_v37 = vadd.f32 %v3474_v51, %v1749_v36 }
0x1982   : > { %v1751_v42 = vpop.f32.mrf.mxu0 }
0x19b6   : > { %v1656_v49 = vpop.permute.xlu2 %1655 }
0x19b7   : > { %v3678_v53 = vadd.f32 %v1656_v49, %v1648_v47  ;;  %v1715_v49 = vld [vmem:[#allocation3 + $0x8] sm:$0xff] }
0x19b9   : > { %2765 = vtanh.f32 %v3678_v53 }
0x19bf   : > { %v2766_v30 = vpop.eup %2765 }
0x19c0   : > { %1661 = vrot.lane.b32.xlu2 %v2766_v30, %s3991_s2 }
0x1a1a   : > { %v1662_v54 = vpop.permute.xlu2 %1661 }
0x1a1b   : > { %v1664_v52 = vsel %vm775_vm1, %v1662_v54, 0.0 }
0x1a1c   : > { %1665 = vadd.xlane.f32.xlu0 %v1664_v52 }
0x1a8f   : > { %v1666_v60 = vpop.xlane.xlu0 %1665 }
0x1a90   : > { %v1667_v61 = vmul.f32 %v1666_v60, %v3407_v6 }
0x1a92   : > { %v1668_v0 = vsub.f32 %v2766_v30, %v1667_v61 }
0x1a94   : > { %v1669_v3 = vmul.f32 %v1668_v0, %v1668_v0 }
0x1a96   : > { %1671 = vrot.lane.b32.xlu1 %v1669_v3, %s3991_s2 }
0x1a9e   : > { %1699 = vperm.xlu1 %2755, %v2529_v4  }
0x1b08   : > { %v1672_v7 = vpop.permute.xlu1 %1671 }
0x1b09   : > { %v1674_v8 = vsel %vm775_vm1, %v1672_v7, 0.0 }
0x1b0a   : > { %1675 = vadd.xlane.f32.xlu2 %v1674_v8 }
0x1b10   : > { %v3699_v31 = vpop.permute.xlu1 %1699 }
0x1b7d   : > { %v1676_v10 = vpop.xlane.xlu2 %1675 }
0x1b7e   : > { %v1677_v11 = vmul.f32 %v1676_v10, %v3407_v6 }
0x1b80   : > { %v1678_v12 = vadd.f32 1e-05, %v1677_v11 }
0x1b82   : > { %2767 = vrsqrt.f32 %v1678_v12  ;;  %vm1685_vm6 = vweird.f32 %v1678_v12 }
0x1b88   : > { %v2768_v19 = vpop.eup %2767 }
0x1b89   : > { %v1680_v58 = vmul.f32 %v2768_v19, %v1678_v12  ;;  %vm1686_vm5 = vweird.f32 %v2768_v19 }
0x1b8a   : > { %vm1687_vm8 = vmor %vm1685_vm6, %vm1686_vm5 }
0x1b8b   : > { %v1681_v13 = vmul.f32 %v2768_v19, %v1680_v58 }
0x1b8d   : > { %v1682_v21 = vmul.f32 0.5, %v1681_v13 }
0x1b8f   : > { %v1683_v20 = vsub.f32 1.5, %v1682_v21 }
0x1b91   : > { %v1684_v22 = vmul.f32 %v2768_v19, %v1683_v20 }
0x1b93   : > { %v1688_v23 = vsel %vm1687_vm8, %v2768_v19, %v1684_v22 }
0x1b94   : > { %v1689_v14 = vmul.f32 %v1688_v23, %v1668_v0 }
0x1b96   : > { %v1690_v48 = vmul.f32 %v1689_v14, %v3440_v33 }
0x1b98   : > { %v1691_v24 = vadd.f32 %v1690_v48, %v3442_v35 }
0x1b9a   : > { %1693 = vrot.lane.b32.xlu0 %v1691_v24, %s3093_s5 }
0x1bc4   : > { %1755 = vadd.xlane.f32.xlu0 %v1750_v37 }
0x1c0c   : > { %v1694_v27 = vpop.permute.xlu0 %1693 }
0x1c0d   : > { %v1696_v28 = vmul.f32 %v1694_v27, %v1641_v57 }
0x1c0f   : > { %v3702_v63 = vmul.f32 %v3699_v31, %v1696_v28 }
0x1c11   : > { %v1716_v34 = vpack.c.bf16 %v3702_v63, %v3702_v63 }
0x1c13   : > { %1718 = vrot.lane.b32.xlu1 %v1716_v34, %s3990_s3 }
0x1c37   : > { %v1756_v52 = vpop.xlane.xlu0 %1755 }
0x1c38   : > { %v1758_v61 = vmul.f32 %v1756_v52, %v3378_v15 }
0x1c3a   : > { %v1760_v3 = vsub.f32 %v1750_v37, %v1758_v61 }
0x1c3c   : > { %v1762_v4 = vmul.f32 %v1760_v3, %v1760_v3 }
0x1c85   : > { %v1719_v39 = vpop.permute.xlu1 %1718 }
0x1c86   : > { %2533 = vmatmul.msk.bf16.vlgmr.msrb.gmra.mxu3 %vm775_vm1, %v1719_v39 }
0x1d09   : > { %v1732_v46 = vpop.f32.mrf.mxu3 }
0x1d0a   : > { %v1733_v57 = vadd.f32 %v3481_v56, %v1732_v46 }
0x1d0c   : > { %1753 = vadd.xlane.f32.xlu1 %v1733_v57 }
0x1d11   : > { %v1734_v47 = vpop.f32.mrf.mxu3 }
0x1d25   : > { %1818 = vrot.lane.b32.xlu1 %v1715_v49, %s3990_s3 }
0x1d7f   : > { %v1754_v30 = vpop.xlane.xlu1 %1753 }
0x1d80   : > { %v1757_v54 = vmul.f32 %v1754_v30, %v3378_v15 }
0x1d82   : > { %v1759_v60 = vsub.f32 %v1733_v57, %v1757_v54 }
0x1d84   : > { %v1761_v0 = vmul.f32 %v1759_v60, %v1759_v60 }
0x1d86   : > { %1763 = vadd.xlane.f32.xlu2 %v1761_v0 }
0x1d8e   : > { %1765 = vadd.xlane.f32.xlu2 %v1762_v4 }
0x1df9   : > { %v1764_v7 = vpop.xlane.xlu2 %1763 }
0x1dfa   : > { %v1767_v8 = vmul.f32 %v1764_v7, %v3378_v15 }
0x1dfc   : > { %v1769_v10 = vadd.f32 1e-05, %v1767_v8 }
0x1dfe   : > { %2769 = vrsqrt.f32 %v1769_v10  ;;  %vm1777_vm10 = vweird.f32 %v1769_v10 }
0x1e01   : > { %v1766_v11 = vpop.xlane.xlu2 %1765 }
0x1e02   : > { %v1768_v12 = vmul.f32 %v1766_v11, %v3378_v15 }
0x1e04   : > { %v2770_v19 = vpop.eup %2769  ;;  %v1770_v58 = vadd.f32 1e-05, %v1768_v12 }
0x1e05   : > { %v1772_v13 = vmul.f32 %v2770_v19, %v1769_v10  ;;  %vm1778_vm9 = vweird.f32 %v2770_v19 }
0x1e06   : > { %2771 = vrsqrt.f32 %v1770_v58  ;;  %vm1779_vm12 = vmor %vm1777_vm10, %vm1778_vm9  ;;  %vm1787_vm13 = vweird.f32 %v1770_v58 }
0x1e07   : > { %v1773_v21 = vmul.f32 %v2770_v19, %v1772_v13 }
0x1e09   : > { %v1774_v20 = vmul.f32 0.5, %v1773_v21 }
0x1e0b   : > { %v1775_v22 = vsub.f32 1.5, %v1774_v20 }
0x1e0c   : > { %v2772_v23 = vpop.eup %2771 }
0x1e0d   : > { %v1782_v14 = vmul.f32 %v2772_v23, %v1770_v58  ;;  %v1776_v48 = vmul.f32 %v2770_v19, %v1775_v22  ;;  %vm1788_vm7 = vweird.f32 %v2772_v23  ;;  %v1819_v58 = vpop.permute.xlu1 %1818 }
0x1e0e   : > { %vm1789_vm14 = vmor %vm1787_vm13, %vm1788_vm7 }
0x1e0f   : > { %v1783_v24 = vmul.f32 %v2772_v23, %v1782_v14  ;;  %v1780_v26 = vsel %vm1779_vm12, %v2770_v19, %v1776_v48 }
0x1e10   : > { %v1791_v34 = vmul.f32 %v1780_v26, %v1759_v60 }
0x1e11   : > { %v1784_v25 = vmul.f32 0.5, %v1783_v24 }
0x1e12   : > { %v1793_v42 = vmul.f32 %v3498_v43, %v1791_v34 }
0x1e13   : > { %v1785_v27 = vsub.f32 1.5, %v1784_v25 }
0x1e15   : > { %v1786_v28 = vmul.f32 %v2772_v23, %v1785_v27 }
0x1e17   : > { %v1790_v36 = vsel %vm1789_vm14, %v2772_v23, %v1786_v28 }
0x1e18   : > { %v1792_v37 = vmul.f32 %v1790_v36, %v1760_v3 }
0x1e1a   : > { %v1794_v39 = vmul.f32 %v3503_v50, %v1792_v37 }
0x1e1c   : > { %v1795_v46 = vadd.f32 %v1794_v39, %v1793_v42 }
0x1e1e   : > { %v1796_v57 = vadd.f32 %v1795_v46, %v3506_v55 }
0x1e20   : > { %2773 = vtanh.f32 %v1796_v57  ;;  %v2535_v49 = vmul.f32 -1.442695, %v1796_v57 }
0x1e22   : > { %2775 = vpow2.f32 %v2535_v49 }
0x1e26   : > { %v2774_v47 = vpop.eup %2773 }
0x1e27   : > { %1823 = vrot.lane.b32.xlu2 %v2774_v47, %s3093_s5 }
0x1e28   : > { %v2776_v30 = vpop.eup %2775 }
0x1e29   : > { %v1800_v54 = vadd.f32 1.0, %v2776_v30 }
0x1e2b   : > { %2777 = vrcp.f32 %v1800_v54  ;;  %v1812_v4 = vand.u32 2147483648, %v1800_v54  ;;  %vm1806_vm11 = vweird.f32 %v1800_v54  ;;  %v1810_v7 = vand.u32 2147483647, %v1800_v54 }
0x1e2d   : > { %v1813_v10 = vor.u32 1.1754944e-38, %v1812_v4  ;;  %vm1811_vm2 = vcmp.eq.f32.partialorder %v1810_v7, 8.507059e+37 }
0x1e31   : > { %v2778_v52 = vpop.eup %2777 }
0x1e32   : > { %v1802_v60 = vmul.f32 %v2778_v52, %v1800_v54  ;;  %vm1807_vm15 = vweird.f32 %v2778_v52 }
0x1e33   : > { %vm1808_vm0 = vmor %vm1806_vm11, %vm1807_vm15 }
0x1e34   : > { %v1803_v61 = vsub.f32 1.0, %v1802_v60 }
0x1e36   : > { %v1804_v0 = vmul.f32 %v2778_v52, %v1803_v61  ;;  %v1703_v61 = vmul.f32 %v3699_v31, %v3678_v53 }
0x1e38   : > { %v1805_v3 = vadd.f32 %v2778_v52, %v1804_v0 }
0x1e3a   : > { %v1809_v8 = vsel %vm1808_vm0, %v2778_v52, %v1805_v3 }
0x1e3b   : > { %v1814_v11 = vsel %vm1811_vm2, %v1813_v10, %v1809_v8 }
0x1e3c   : > { %v1821_v13 = vmul.f32 %v1819_v58, %v1814_v11 }
0x1e81   : > { %v1824_v12 = vpop.permute.xlu2 %1823 }
0x1e82   : > { %v1826_v19 = vmul.f32 %v1824_v12, %v1814_v11 }
0x1e84   : > { %1828 = vrot.lane.b32.xlu0 %v1826_v19, %s3990_s3 }
0x1ef6   : > { %v1829_v21 = vpop.permute.xlu0 %1828 }
0x1ef7   : > { %v1831_v20 = vadd.f32 %v1829_v21, %v1821_v13 }
0x1ef9   : > { %2779 = vtanh.f32 %v1831_v20  ;;  %v1871_v8 = vmul.f32 %v1831_v20, %v3699_v31 }
0x1eff   : > { %v2780_v22 = vpop.eup %2779 }
0x1f00   : > { %1834 = vrot.lane.b32.xlu2 %v2780_v22, %s3991_s2 }
0x1f5a   : > { %v1835_v23 = vpop.permute.xlu2 %1834 }
0x1f5b   : > { %v1837_v14 = vsel %vm775_vm1, %v1835_v23, 0.0 }
0x1f5c   : > { %1838 = vadd.xlane.f32.xlu2 %v1837_v14 }
0x1fcf   : > { %v1839_v48 = vpop.xlane.xlu2 %1838 }
0x1fd0   : > { %v1840_v24 = vmul.f32 %v1839_v48, %v3407_v6 }
0x1fd2   : > { %v1841_v25 = vsub.f32 %v2780_v22, %v1840_v24 }
0x1fd4   : > { %v1842_v26 = vmul.f32 %v1841_v25, %v1841_v25 }
0x1fd6   : > { %1844 = vrot.lane.b32.xlu0 %v1842_v26, %s3991_s2 }
0x2048   : > { %v1845_v27 = vpop.permute.xlu0 %1844 }
0x2049   : > { %v1847_v28 = vsel %vm775_vm1, %v1845_v27, 0.0 }
0x204a   : > { %1848 = vadd.xlane.f32.xlu1 %v1847_v28 }
0x20bd   : > { %v1849_v34 = vpop.xlane.xlu1 %1848 }
0x20be   : > { %v1850_v36 = vmul.f32 %v1849_v34, %v3407_v6 }
0x20c0   : > { %v1851_v37 = vadd.f32 1e-05, %v1850_v36 }
0x20c2   : > { %2781 = vrsqrt.f32 %v1851_v37  ;;  %vm1858_vm5 = vweird.f32 %v1851_v37 }
0x20c8   : > { %v2782_v42 = vpop.eup %2781 }
0x20c9   : > { %v1853_v39 = vmul.f32 %v2782_v42, %v1851_v37  ;;  %vm1859_vm4 = vweird.f32 %v2782_v42 }
0x20ca   : > { %vm1860_vm6 = vmor %vm1858_vm5, %vm1859_vm4 }
0x20cb   : > { %v1854_v46 = vmul.f32 %v2782_v42, %v1853_v39 }
0x20cd   : > { %v1855_v57 = vmul.f32 0.5, %v1854_v46 }
0x20cf   : > { %v1856_v47 = vsub.f32 1.5, %v1855_v57 }
0x20d1   : > { %v1857_v49 = vmul.f32 %v2782_v42, %v1856_v47 }
0x20d3   : > { %v1861_v30 = vsel %vm1860_vm6, %v2782_v42, %v1857_v49 }
0x20d4   : > { %v1862_v54 = vmul.f32 %v1861_v30, %v1841_v25 }
0x20d6   : > { %v1863_v52 = vmul.f32 %v1862_v54, %v3538_v62 }
0x20d8   : > { %v1864_v60 = vadd.f32 %v1863_v52, %v3540_v9 }
0x20da   : > { %1866 = vrot.lane.b32.xlu0 %v1864_v60, %s3093_s5 }
0x20e2   : > { %1705 = vrot.lane.b32.xlu0 %v3702_v63, %s3990_s3 }
0x20ea   : > { %1710 = vrot.lane.b32.xlu0 %v1703_v61, %s3991_s2 }
0x214c   : > { %v1867_v0 = vpop.permute.xlu0 %1866 }
0x214d   : > { %v1869_v3 = vmul.f32 %v1867_v0, %v1814_v11 }
0x214f   : > { %v1870_v4 = vmul.f32 %v1869_v3, %v3699_v31 }
0x2151   : > { %1873 = vrot.lane.b32.xlu0 %v1870_v4, %s3990_s3 }
0x2154   : > { %v1706_v7 = vpop.permute.xlu0 %1705 }
0x2155   : > { %1708 = vst.msk [vmem:[#allocation2] sm:$0xff] %vm775_vm1, %v1706_v7 }
0x2159   : > { %1878 = vrot.lane.b32.xlu0 %v1871_v8, %s3991_s2 }
0x215c   : > { %v1711_v10 = vpop.permute.xlu0 %1710 }
0x215d   : > { %1713 = vst.msk [vmem:[#allocation3] sm:$0xff] %vm775_vm1, %v1711_v10 }
0x21c3   : > { %v1874_v12 = vpop.permute.xlu0 %1873 }
0x21c4   : > { %1876 = vst.msk [vmem:[#allocation2 + $0x8] sm:$0xff] %vm775_vm1, %v1874_v12 }
0x21c5   : > { %2536 = vst.msk [vmem:[%s3358_s10 + $0x10] sm:$0xff] %vm775_vm1, %v1874_v12 }
0x21c8   : > { %1886 = sbr.rel (%p2519_p1) target bundleno = 8894 (0x22be), region = 124 }
0x21cb   : > { %v1879_v53 = vpop.permute.xlu0 %1878 }
0x21cc   : > { %1881 = vst.msk [vmem:[#allocation3 + $0x8] sm:$0xff] %vm775_vm1, %v1879_v53 }
0x21cd   : > { %v1903_v11 = vld [vmem:[#allocation17] sm:$0xff]  ;;  %v3106_v31 = vmov 0   ;;  %v1927_v58 = vld [vmem:[#allocation17 + $0x8] sm:$0xff]  ;;  %v1915_v13 = vld [vmem:[#allocation15 + $0x8] sm:$0xff] }
0x21ce   : > { %1905 = vrot.lane.b32.xlu1 %v1903_v11, %s3105_s4  ;;  %2783 = vset.pattern.permute.xlu0 %v3106_v31  ;;  %v1888_v19 = vsel %vm1579_vm3, 1, %v3106_v31  ;;  %v1887_v21 = vld [vmem:[#allocation15] sm:$0xff] }
0x21cf   : > { %1890 = vperm.xlu0 %2783, %v1888_v19   ;;  %1929 = vrot.lane.b32.xlu2 %v1927_v58, %s3105_s4 }
0x21d6   : > { %1917 = vrot.lane.b32.xlu1 %v1915_v13, %s3107_s26 }
0x21d7   : > { %1894 = vrot.lane.b32.xlu0 %v1887_v21, %s3107_s26 }
0x2229   : > { %v1930_v59 = vpop.permute.xlu2 %1929 }
0x2240   : > { %v1906_v20 = vpop.permute.xlu1 %1905 }
0x2241   : > { %v1891_v22 = vpop.permute.xlu0 %1890 }
0x2242   : > { %vm1892_vm8 = vcmp.eq.s32.totalorder %v1891_v22, 1 }
0x2243   : > { %v1908_v23 = vsel %vm1892_vm8, %v1703_v61, %v1906_v20  ;;  %v1932_v26 = vsel %vm1892_vm8, %v1871_v8, %v1930_v59 }
0x2244   : > { %1910 = vrot.lane.b32.xlu0 %v1908_v23, %s3107_s26 }
0x2248   : > { %v1918_v14 = vpop.permute.xlu1 %1917 }
0x2249   : > { %v1920_v48 = vsel %vm1892_vm8, %v1870_v4, %v1918_v14  ;;  %v1895_v24 = vpop.permute.xlu0 %1894 }
0x224a   : > { %v1897_v25 = vsel %vm1892_vm8, %v3702_v63, %v1895_v24  ;;  %1922 = vrot.lane.b32.xlu1 %v1920_v48, %s3105_s4 }
0x224b   : > { %1899 = vrot.lane.b32.xlu2 %v1897_v25, %s3105_s4 }
0x2253   : > { %1934 = vrot.lane.b32.xlu2 %v1932_v26, %s3107_s26 }
0x22a5   : > { %v1900_v27 = vpop.permute.xlu2 %1899 }
0x22a6   : > { %1902 = vst.msk [vmem:[#allocation15] sm:$0xff] %vm775_vm1, %v1900_v27 }
0x22ad   : > { %v1935_v28 = vpop.permute.xlu2 %1934 }
0x22ae   : > { %1937 = vst.msk [vmem:[#allocation17 + $0x8] sm:$0xff] %vm775_vm1, %v1935_v28 }
0x22b6   : > { %v1911_v34 = vpop.permute.xlu0 %1910 }
0x22b7   : > { %1913 = vst.msk [vmem:[#allocation17] sm:$0xff] %vm775_vm1, %v1911_v34 }
0x22bc   : > { %v1923_v36 = vpop.permute.xlu1 %1922 }
0x22bd   : > { %1925 = vst.msk [vmem:[#allocation15 + $0x8] sm:$0xff] %vm775_vm1, %v1923_v36 }
0x22be PF: > { %1956 = vmatpush.bf16.msra.mxu1 %v3365_v1  ;;  %v1944_v63 = vld [vmem:[#allocation2] sm:$0xff]  ;;  %2784 = vset.pattern.permute.xlu1 %v3097_v17  ;;  %v2540_v0 = vld [vmem:[%s3344_s29 + $0x18] sm:$0xff]  ;;  %v1945_v8 = vld [vmem:[#allocation3] sm:$0xff]  ;;  %s3992_s27 = smov 32   ;;  %s3993_s29 = smov 96  }
0x22bf   : > { %2110 = vmatpush.bf16.msra.mxu3 %v3449_v40  ;;  %2093 = vmatpush.bf16.msra.mxu2 %v3456_v44  ;;  %v1946_v37 = vpack.c.bf16 %v1944_v63, %v1944_v63  ;;  %s1938_s24 = sadd.s32 3, %s3421_s22  ;;  %s3110_s22 = smov (!%p2519_p1), 96  }
0x22c0   : > { %2785 = vset.pattern.permute.xlu0 %v3097_v17  ;;  %v3778_v34 = vstv %s1938_s24 }
0x22c1   : > { %vm1943_vm15 = vcmp.eq.s32.totalorder %v3778_v34, %v3430_v18  ;;  %vm1940_vm11 = vcmp.lt.s32.totalorder %v3778_v34, %v3426_v16 }
0x22c2   : > { %1957 = vmatpush.bf16.msra.mxu1 %v3367_v2 }
0x22c3   : > { %2111 = vmatpush.bf16.msra.mxu3 %v3452_v41  ;;  %2094 = vmatpush.bf16.msra.mxu2 %v3459_v45 }
0x22c5   : > { %2539 = vmatmul.msk.bf16.vlgmr.msra.gmra.mxu1 %vm775_vm1, %v1946_v37 }
0x2342   : > { %v1959_v42 = vpop.f32.mrf.mxu1 }
0x2343   : > { %v1960_v1 = vadd.f32 %v3375_v5, %v1959_v42 }
0x2345   : > { %1965 = vadd.xlane.f32.xlu0 %v1960_v1 }
0x234a   : > { %v1961_v39 = vpop.f32.mrf.mxu1 }
0x23b8   : > { %v1966_v46 = vpop.xlane.xlu0 %1965 }
0x23b9   : > { %v1967_v40 = vmul.f32 %v1966_v46, %v3378_v15 }
0x23bb   : > { %v1968_v44 = vsub.f32 %v1960_v1, %v1967_v40  ;;  %v2538_v1 = vsel %vm1940_vm11, 1.0, %v3098_v38 }
0x23bd   : > { %v1969_v57 = vmul.f32 %v1968_v44, %v1968_v44 }
0x23bf   : > { %1970 = vadd.xlane.f32.xlu0 %v1969_v57 }
0x2432   : > { %v1971_v17 = vpop.xlane.xlu0 %1970 }
0x2433   : > { %v1972_v2 = vmul.f32 %v1971_v17, %v3378_v15 }
0x2435   : > { %v1973_v41 = vadd.f32 1e-05, %v1972_v2 }
0x2437   : > { %2786 = vrsqrt.f32 %v1973_v41  ;;  %vm1980_vm9 = vweird.f32 %v1973_v41 }
0x243d   : > { %v2787_v45 = vpop.eup %2786 }
0x243e   : > { %v1975_v47 = vmul.f32 %v2787_v45, %v1973_v41  ;;  %vm1981_vm3 = vweird.f32 %v2787_v45 }
0x243f   : > { %vm1982_vm10 = vmor %vm1980_vm9, %vm1981_vm3 }
0x2440   : > { %v1976_v49 = vmul.f32 %v2787_v45, %v1975_v47 }
0x2442   : > { %v1977_v30 = vmul.f32 0.5, %v1976_v49 }
0x2444   : > { %v1978_v54 = vsub.f32 1.5, %v1977_v30 }
0x2446   : > { %v1979_v5 = vmul.f32 %v2787_v45, %v1978_v54 }
0x2448   : > { %v1983_v52 = vsel %vm1982_vm10, %v2787_v45, %v1979_v5  ;;  %v2078_v5 = vld [vmem:[#allocation2 + $0x8] sm:$0xff] }
0x2449   : > { %v1984_v60 = vmul.f32 %v1983_v52, %v1968_v44  ;;  %v2100_v52 = vpack.c.bf16 %v2078_v5, %v2078_v5 }
0x244b   : > { %v1985_v61 = vmul.f32 %v3385_v29, %v1984_v60  ;;  %2543 = vmatmul.msk.bf16.vlgmr.msra.gmra.mxu3 %vm775_vm1, %v2100_v52 }
0x244d   : > { %v1986_v3 = vadd.f32 %v3390_v32, %v1985_v61 }
0x244f   : > { %v1987_v4 = vadd.f32 %v2540_v0, %v1986_v3 }
0x2451   : > { %2788 = vtanh.f32 %v1987_v4  ;;  %v2541_v10 = vmul.f32 -1.442695, %v1987_v4 }
0x2453   : > { %2790 = vpow2.f32 %v2541_v10 }
0x2457   : > { %v2789_v7 = vpop.eup %2788 }
0x2458   : > { %2014 = vrot.lane.b32.xlu1 %v2789_v7, %s3093_s5 }
0x2459   : > { %v2791_v12 = vpop.eup %2790 }
0x245a   : > { %v1991_v53 = vadd.f32 1.0, %v2791_v12 }
0x245c   : > { %2792 = vrcp.f32 %v1991_v53  ;;  %v2003_v32 = vand.u32 2147483648, %v1991_v53  ;;  %vm1997_vm7 = vweird.f32 %v1991_v53  ;;  %v2001_v13 = vand.u32 2147483647, %v1991_v53 }
0x245e   : > { %v2004_v20 = vor.u32 1.1754944e-38, %v2003_v32  ;;  %vm2002_vm14 = vcmp.eq.f32.partialorder %v2001_v13, 8.507059e+37 }
0x2460   : > { %2009 = vrot.lane.b32.xlu1 %v1945_v8, %s3992_s27 }
0x2462   : > { %v2793_v11 = vpop.eup %2792 }
0x2463   : > { %v1993_v31 = vmul.f32 %v2793_v11, %v1991_v53  ;;  %vm1998_vm12 = vweird.f32 %v2793_v11 }
0x2464   : > { %vm1999_vm13 = vmor %vm1997_vm7, %vm1998_vm12 }
0x2465   : > { %v1994_v19 = vsub.f32 1.0, %v1993_v31 }
0x2467   : > { %v1995_v29 = vmul.f32 %v2793_v11, %v1994_v19 }
0x2469   : > { %v1996_v58 = vadd.f32 %v2793_v11, %v1995_v29 }
0x246b   : > { %v2000_v21 = vsel %vm1999_vm13, %v2793_v11, %v1996_v58  ;;  %v2079_v11 = vld [vmem:[#allocation3 + $0x8] sm:$0xff] }
0x246c   : > { %v2005_v23 = vsel %vm2002_vm14, %v2004_v20, %v2000_v21 }
0x24ca   : > { %v2015_v22 = vpop.permute.xlu1 %2014 }
0x24cb   : > { %v2017_v14 = vmul.f32 %v2015_v22, %v2005_v23 }
0x24cd   : > { %2019 = vrot.lane.b32.xlu2 %v2017_v14, %s3992_s27 }
0x24d2   : > { %v2010_v48 = vpop.permute.xlu1 %2009 }
0x24d3   : > { %v2012_v24 = vmul.f32 %v2010_v48, %v2005_v23 }
0x2527   : > { %v2020_v25 = vpop.permute.xlu2 %2019 }
0x2528   : > { %v3772_v59 = vadd.f32 %v2020_v25, %v2012_v24 }
0x252a   : > { %2794 = vtanh.f32 %v3772_v59 }
0x2530   : > { %v2795_v26 = vpop.eup %2794 }
0x2531   : > { %2025 = vrot.lane.b32.xlu2 %v2795_v26, %s3993_s29 }
0x258b   : > { %v2026_v27 = vpop.permute.xlu2 %2025 }
0x258c   : > { %v2028_v28 = vsel %vm775_vm1, %v2026_v27, 0.0 }
0x258d   : > { %2029 = vadd.xlane.f32.xlu0 %v2028_v28 }
0x2600   : > { %v2030_v36 = vpop.xlane.xlu0 %2029 }
0x2601   : > { %v2031_v63 = vmul.f32 %v2030_v36, %v3407_v6 }
0x2603   : > { %v2032_v37 = vsub.f32 %v2795_v26, %v2031_v63 }
0x2605   : > { %v2033_v42 = vmul.f32 %v2032_v37, %v2032_v37 }
0x2607   : > { %2035 = vrot.lane.b32.xlu1 %v2033_v42, %s3993_s29 }
0x260f   : > { %2063 = vperm.xlu1 %2784, %v2538_v1  }
0x2679   : > { %v2036_v39 = vpop.permute.xlu1 %2035 }
0x267a   : > { %v2038_v46 = vsel %vm775_vm1, %v2036_v39, 0.0 }
0x267b   : > { %2039 = vadd.xlane.f32.xlu2 %v2038_v46 }
0x2681   : > { %v3793_v0 = vpop.permute.xlu1 %2063 }
0x26ee   : > { %v2040_v40 = vpop.xlane.xlu2 %2039 }
0x26ef   : > { %v2041_v44 = vmul.f32 %v2040_v40, %v3407_v6 }
0x26f1   : > { %v2042_v57 = vadd.f32 1e-05, %v2041_v44 }
0x26f3   : > { %2796 = vrsqrt.f32 %v2042_v57  ;;  %vm2049_vm2 = vweird.f32 %v2042_v57 }
0x26f9   : > { %v2797_v17 = vpop.eup %2796 }
0x26fa   : > { %v2044_v2 = vmul.f32 %v2797_v17, %v2042_v57  ;;  %vm2050_vm0 = vweird.f32 %v2797_v17 }
0x26fb   : > { %vm2051_vm4 = vmor %vm2049_vm2, %vm2050_vm0 }
0x26fc   : > { %v2045_v41 = vmul.f32 %v2797_v17, %v2044_v2 }
0x26fe   : > { %v2046_v45 = vmul.f32 0.5, %v2045_v41 }
0x2700   : > { %v2047_v47 = vsub.f32 1.5, %v2046_v45 }
0x2702   : > { %v2048_v16 = vmul.f32 %v2797_v17, %v2047_v47 }
0x2704   : > { %v2052_v38 = vsel %vm2051_vm4, %v2797_v17, %v2048_v16 }
0x2705   : > { %v2053_v49 = vmul.f32 %v2052_v38, %v2032_v37 }
0x2707   : > { %v2054_v30 = vmul.f32 %v2053_v49, %v3440_v33  ;;  %v2113_v33 = vpop.f32.mrf.mxu3 }
0x2709   : > { %v2055_v54 = vadd.f32 %v2054_v30, %v3442_v35  ;;  %v2114_v35 = vadd.f32 %v3474_v51, %v2113_v33 }
0x270b   : > { %2057 = vrot.lane.b32.xlu0 %v2055_v54, %s3093_s5 }
0x270f   : > { %v2115_v7 = vpop.f32.mrf.mxu3 }
0x2735   : > { %2119 = vadd.xlane.f32.xlu0 %v2114_v35 }
0x277d   : > { %v2058_v60 = vpop.permute.xlu0 %2057 }
0x277e   : > { %v2060_v61 = vmul.f32 %v2058_v60, %v2005_v23 }
0x2780   : > { %v3796_v3 = vmul.f32 %v3793_v0, %v2060_v61 }
0x2782   : > { %v2080_v4 = vpack.c.bf16 %v3796_v3, %v3796_v3 }
0x2784   : > { %2082 = vrot.lane.b32.xlu1 %v2080_v4, %s3992_s27 }
0x27a8   : > { %v2120_v29 = vpop.xlane.xlu0 %2119 }
0x27a9   : > { %v2122_v51 = vmul.f32 %v2120_v29, %v3378_v15 }
0x27ab   : > { %v2124_v13 = vsub.f32 %v2114_v35, %v2122_v51 }
0x27ad   : > { %v2126_v21 = vmul.f32 %v2124_v13, %v2124_v13 }
0x27f6   : > { %v2083_v8 = vpop.permute.xlu1 %2082 }
0x27f7   : > { %2542 = vmatmul.msk.bf16.vlgmr.msra.gmra.mxu2 %vm775_vm1, %v2083_v8 }
0x287a   : > { %v2096_v10 = vpop.f32.mrf.mxu2 }
0x287b   : > { %v2097_v12 = vadd.f32 %v3481_v56, %v2096_v10 }
0x287d   : > { %2117 = vadd.xlane.f32.xlu1 %v2097_v12 }
0x2882   : > { %v2098_v53 = vpop.f32.mrf.mxu2 }
0x2896   : > { %2182 = vrot.lane.b32.xlu1 %v2079_v11, %s3992_s27 }
0x28f0   : > { %v2118_v31 = vpop.xlane.xlu1 %2117 }
0x28f1   : > { %v2121_v19 = vmul.f32 %v2118_v31, %v3378_v15 }
0x28f3   : > { %v2123_v58 = vsub.f32 %v2097_v12, %v2121_v19 }
0x28f5   : > { %v2125_v32 = vmul.f32 %v2123_v58, %v2123_v58 }
0x28f7   : > { %2127 = vadd.xlane.f32.xlu2 %v2125_v32 }
0x28ff   : > { %2129 = vadd.xlane.f32.xlu2 %v2126_v21 }
0x2908   : > { %v2183_v7 = vpop.permute.xlu1 %2182 }
0x296a   : > { %v2128_v20 = vpop.xlane.xlu2 %2127 }
0x296b   : > { %v2131_v56 = vmul.f32 %v2128_v20, %v3378_v15 }
0x296d   : > { %v2133_v22 = vadd.f32 1e-05, %v2131_v56 }
0x296f   : > { %2798 = vrsqrt.f32 %v2133_v22  ;;  %vm2141_vm6 = vweird.f32 %v2133_v22 }
0x2972   : > { %v2130_v23 = vpop.xlane.xlu2 %2129 }
0x2973   : > { %v2132_v14 = vmul.f32 %v2130_v23, %v3378_v15 }
0x2975   : > { %v2799_v48 = vpop.eup %2798  ;;  %v2134_v24 = vadd.f32 1e-05, %v2132_v14 }
0x2976   : > { %v2136_v25 = vmul.f32 %v2799_v48, %v2133_v22  ;;  %vm2142_vm5 = vweird.f32 %v2799_v48 }
0x2977   : > { %2800 = vrsqrt.f32 %v2134_v24  ;;  %vm2143_vm8 = vmor %vm2141_vm6, %vm2142_vm5  ;;  %vm2151_vm9 = vweird.f32 %v2134_v24 }
0x2978   : > { %v2137_v26 = vmul.f32 %v2799_v48, %v2136_v25 }
0x297a   : > { %v2138_v27 = vmul.f32 0.5, %v2137_v26 }
0x297c   : > { %v2139_v28 = vsub.f32 1.5, %v2138_v27 }
0x297d   : > { %v2801_v36 = vpop.eup %2800 }
0x297e   : > { %v2146_v63 = vmul.f32 %v2801_v36, %v2134_v24  ;;  %v2140_v37 = vmul.f32 %v2799_v48, %v2139_v28  ;;  %vm2152_vm3 = vweird.f32 %v2801_v36 }
0x297f   : > { %vm2153_vm10 = vmor %vm2151_vm9, %vm2152_vm3 }
0x2980   : > { %v2147_v42 = vmul.f32 %v2801_v36, %v2146_v63  ;;  %v2144_v39 = vsel %vm2143_vm8, %v2799_v48, %v2140_v37 }
0x2981   : > { %v2155_v15 = vmul.f32 %v2144_v39, %v2123_v58 }
0x2982   : > { %v2148_v1 = vmul.f32 0.5, %v2147_v42 }
0x2983   : > { %v2157_v17 = vmul.f32 %v3498_v43, %v2155_v15 }
0x2984   : > { %v2149_v46 = vsub.f32 1.5, %v2148_v1 }
0x2986   : > { %v2150_v40 = vmul.f32 %v2801_v36, %v2149_v46 }
0x2988   : > { %v2154_v44 = vsel %vm2153_vm10, %v2801_v36, %v2150_v40 }
0x2989   : > { %v2156_v57 = vmul.f32 %v2154_v44, %v2124_v13 }
0x298b   : > { %v2158_v2 = vmul.f32 %v3503_v50, %v2156_v57 }
0x298d   : > { %v2159_v41 = vadd.f32 %v2158_v2, %v2157_v17 }
0x298f   : > { %v2160_v45 = vadd.f32 %v2159_v41, %v3506_v55 }
0x2991   : > { %2802 = vtanh.f32 %v2160_v45  ;;  %v2544_v16 = vmul.f32 -1.442695, %v2160_v45 }
0x2993   : > { %2804 = vpow2.f32 %v2544_v16 }
0x2997   : > { %v2803_v47 = vpop.eup %2802 }
0x2998   : > { %2187 = vrot.lane.b32.xlu2 %v2803_v47, %s3093_s5 }
0x2999   : > { %v2805_v38 = vpop.eup %2804 }
0x299a   : > { %v2164_v49 = vadd.f32 1.0, %v2805_v38 }
0x299c   : > { %2806 = vrcp.f32 %v2164_v49  ;;  %v2176_v43 = vand.u32 2147483648, %v2164_v49  ;;  %vm2170_vm7 = vweird.f32 %v2164_v49  ;;  %v2174_v50 = vand.u32 2147483647, %v2164_v49 }
0x299e   : > { %v2177_v61 = vor.u32 1.1754944e-38, %v2176_v43  ;;  %vm2175_vm14 = vcmp.eq.f32.partialorder %v2174_v50, 8.507059e+37 }
0x29a2   : > { %v2807_v30 = vpop.eup %2806 }
0x29a3   : > { %v2166_v54 = vmul.f32 %v2807_v30, %v2164_v49  ;;  %vm2171_vm12 = vweird.f32 %v2807_v30 }
0x29a4   : > { %vm2172_vm13 = vmor %vm2170_vm7, %vm2171_vm12 }
0x29a5   : > { %v2167_v5 = vsub.f32 1.0, %v2166_v54 }
0x29a7   : > { %v2168_v52 = vmul.f32 %v2807_v30, %v2167_v5 }
0x29a9   : > { %v2169_v60 = vadd.f32 %v2807_v30, %v2168_v52 }
0x29ab   : > { %v2173_v55 = vsel %vm2172_vm13, %v2807_v30, %v2169_v60 }
0x29ac   : > { %v2178_v4 = vsel %vm2175_vm14, %v2177_v61, %v2173_v55 }
0x29ad   : > { %v2185_v8 = vmul.f32 %v2183_v7, %v2178_v4 }
0x29f2   : > { %v2188_v33 = vpop.permute.xlu2 %2187 }
0x29f3   : > { %v2190_v35 = vmul.f32 %v2188_v33, %v2178_v4 }
0x29f5   : > { %2192 = vrot.lane.b32.xlu0 %v2190_v35, %s3992_s27 }
0x2a67   : > { %v2193_v10 = vpop.permute.xlu0 %2192 }
0x2a68   : > { %v2195_v12 = vadd.f32 %v2193_v10, %v2185_v8 }
0x2a6a   : > { %2808 = vtanh.f32 %v2195_v12 }
0x2a70   : > { %v2809_v53 = vpop.eup %2808 }
0x2a71   : > { %2198 = vrot.lane.b32.xlu2 %v2809_v53, %s3993_s29 }
0x2acb   : > { %v2199_v11 = vpop.permute.xlu2 %2198 }
0x2acc   : > { %v2201_v31 = vsel %vm775_vm1, %v2199_v11, 0.0 }
0x2acd   : > { %2202 = vadd.xlane.f32.xlu2 %v2201_v31 }
0x2b40   : > { %v2203_v19 = vpop.xlane.xlu2 %2202 }
0x2b41   : > { %v2204_v29 = vmul.f32 %v2203_v19, %v3407_v6 }
0x2b43   : > { %v2205_v58 = vsub.f32 %v2809_v53, %v2204_v29 }
0x2b45   : > { %v2206_v51 = vmul.f32 %v2205_v58, %v2205_v58 }
0x2b47   : > { %2208 = vrot.lane.b32.xlu0 %v2206_v51, %s3993_s29 }
0x2bb9   : > { %v2209_v32 = vpop.permute.xlu0 %2208 }
0x2bba   : > { %v2211_v13 = vsel %vm775_vm1, %v2209_v32, 0.0 }
0x2bbb   : > { %2212 = vadd.xlane.f32.xlu1 %v2211_v13 }
0x2c2e   : > { %v2213_v21 = vpop.xlane.xlu1 %2212 }
0x2c2f   : > { %v2214_v20 = vmul.f32 %v2213_v21, %v3407_v6  ;;  %v2067_v6 = vmul.f32 %v3793_v0, %v3772_v59 }
0x2c31   : > { %v2215_v56 = vadd.f32 1e-05, %v2214_v20 }
0x2c33   : > { %2810 = vrsqrt.f32 %v2215_v56  ;;  %vm2222_vm0 = vweird.f32 %v2215_v56 }
0x2c39   : > { %v2811_v22 = vpop.eup %2810 }
0x2c3a   : > { %v2217_v23 = vmul.f32 %v2811_v22, %v2215_v56  ;;  %vm2223_vm11 = vweird.f32 %v2811_v22 }
0x2c3b   : > { %vm2224_vm2 = vmor %vm2222_vm0, %vm2223_vm11 }
0x2c3c   : > { %v2218_v14 = vmul.f32 %v2811_v22, %v2217_v23 }
0x2c3e   : > { %v2219_v48 = vmul.f32 0.5, %v2218_v14 }
0x2c40   : > { %v2220_v24 = vsub.f32 1.5, %v2219_v48 }
0x2c42   : > { %v2221_v25 = vmul.f32 %v2811_v22, %v2220_v24 }
0x2c44   : > { %v2225_v26 = vsel %vm2224_vm2, %v2811_v22, %v2221_v25 }
0x2c45   : > { %v2226_v27 = vmul.f32 %v2225_v26, %v2205_v58 }
0x2c47   : > { %v2227_v28 = vmul.f32 %v2226_v27, %v3538_v62 }
0x2c49   : > { %v2228_v36 = vadd.f32 %v2227_v28, %v3540_v9  ;;  %v2235_v9 = vmul.f32 %v2195_v12, %v3793_v0 }
0x2c4b   : > { %2230 = vrot.lane.b32.xlu0 %v2228_v36, %s3093_s5  ;;  %s3108_s5 = smov (!%p2519_p1), 32  }
0x2c53   : > { %2069 = vrot.lane.b32.xlu0 %v3796_v3, %s3992_s27 }
0x2c5b   : > { %2074 = vrot.lane.b32.xlu0 %v2067_v6, %s3993_s29 }
0x2cbd   : > { %v2231_v63 = vpop.permute.xlu0 %2230 }
0x2cbe   : > { %v2233_v37 = vmul.f32 %v2231_v63, %v2178_v4 }
0x2cc0   : > { %v2234_v42 = vmul.f32 %v2233_v37, %v3793_v0 }
0x2cc2   : > { %2237 = vrot.lane.b32.xlu0 %v2234_v42, %s3992_s27 }
0x2cc5   : > { %v2070_v62 = vpop.permute.xlu0 %2069 }
0x2cc6   : > { %2072 = vst.msk [vmem:[#allocation2] sm:$0xff] %vm775_vm1, %v2070_v62 }
0x2cca   : > { %2242 = vrot.lane.b32.xlu0 %v2235_v9, %s3993_s29 }
0x2ccd   : > { %v2075_v1 = vpop.permute.xlu0 %2074 }
0x2cce   : > { %2077 = vst.msk [vmem:[#allocation3] sm:$0xff] %vm775_vm1, %v2075_v1 }
0x2d34   : > { %v2238_v39 = vpop.permute.xlu0 %2237 }
0x2d35   : > { %2240 = vst.msk [vmem:[#allocation2 + $0x8] sm:$0xff] %vm775_vm1, %v2238_v39 }
0x2d36   : > { %2545 = vst.msk [vmem:[%s3358_s10 + $0x18] sm:$0xff] %vm775_vm1, %v2238_v39 }
0x2d39   : > { %2250 = sbr.rel (%p2519_p1) target bundleno = 11823 (0x2e2f), region = 128 }
0x2d3c   : > { %v2243_v59 = vpop.permute.xlu0 %2242 }
0x2d3d   : > { %2245 = vst.msk [vmem:[#allocation3 + $0x8] sm:$0xff] %vm775_vm1, %v2243_v59 }
0x2d3e   : > { %v2267_v46 = vld [vmem:[#allocation17] sm:$0xff]  ;;  %v3109_v0 = vmov 0   ;;  %v2291_v15 = vld [vmem:[#allocation17 + $0x8] sm:$0xff]  ;;  %v2279_v44 = vld [vmem:[#allocation15 + $0x8] sm:$0xff] }
0x2d3f   : > { %2269 = vrot.lane.b32.xlu1 %v2267_v46, %s3108_s5  ;;  %2812 = vset.pattern.permute.xlu0 %v3109_v0  ;;  %v2252_v40 = vsel %vm1943_vm15, 1, %v3109_v0  ;;  %v2251_v57 = vld [vmem:[#allocation15] sm:$0xff] }
0x2d40   : > { %2254 = vperm.xlu0 %2812, %v2252_v40   ;;  %2293 = vrot.lane.b32.xlu2 %v2291_v15, %s3108_s5 }
0x2d47   : > { %2281 = vrot.lane.b32.xlu1 %v2279_v44, %s3110_s22 }
0x2d48   : > { %2258 = vrot.lane.b32.xlu0 %v2251_v57, %s3110_s22 }
0x2d9a   : > { %v2294_v18 = vpop.permute.xlu2 %2293 }
0x2db1   : > { %v2270_v17 = vpop.permute.xlu1 %2269 }
0x2db2   : > { %v2255_v2 = vpop.permute.xlu0 %2254 }
0x2db3   : > { %vm2256_vm4 = vcmp.eq.s32.totalorder %v2255_v2, 1 }
0x2db4   : > { %v2272_v41 = vsel %vm2256_vm4, %v2067_v6, %v2270_v17  ;;  %v2296_v34 = vsel %vm2256_vm4, %v2235_v9, %v2294_v18 }
0x2db5   : > { %2274 = vrot.lane.b32.xlu0 %v2272_v41, %s3110_s22 }
0x2db9   : > { %v2282_v45 = vpop.permute.xlu1 %2281 }
0x2dba   : > { %v2284_v47 = vsel %vm2256_vm4, %v2234_v42, %v2282_v45  ;;  %v2259_v16 = vpop.permute.xlu0 %2258 }
0x2dbb   : > { %v2261_v38 = vsel %vm2256_vm4, %v3796_v3, %v2259_v16  ;;  %2286 = vrot.lane.b32.xlu1 %v2284_v47, %s3108_s5 }
0x2dbc   : > { %2263 = vrot.lane.b32.xlu2 %v2261_v38, %s3108_s5 }
0x2dc4   : > { %2298 = vrot.lane.b32.xlu2 %v2296_v34, %s3110_s22 }
0x2e16   : > { %v2264_v49 = vpop.permute.xlu2 %2263 }
0x2e17   : > { %2266 = vst.msk [vmem:[#allocation15] sm:$0xff] %vm775_vm1, %v2264_v49 }
0x2e1e   : > { %v2299_v30 = vpop.permute.xlu2 %2298 }
0x2e1f   : > { %2301 = vst.msk [vmem:[#allocation17 + $0x8] sm:$0xff] %vm775_vm1, %v2299_v30 }
0x2e27   : > { %v2275_v54 = vpop.permute.xlu0 %2274 }
0x2e28   : > { %2277 = vst.msk [vmem:[#allocation17] sm:$0xff] %vm775_vm1, %v2275_v54 }
0x2e2d   : > { %v2287_v5 = vpop.permute.xlu1 %2286 }
0x2e2e   : > { %2289 = vst.msk [vmem:[#allocation15 + $0x8] sm:$0xff] %vm775_vm1, %v2287_v5 }
0x2e2f PF: > { %s3111_s30 = smov [#allocation15]   ;;  %s2331_s2 = sshll.u32 %s3925_s20, 4  ;;  %s2332_s2 = int_to_ptr.hbm [resolvable:$true] %s2331_s2 }
0x2e30   : > { %s2329_s9 = sshll.u32 %s3111_s30, 4  ;;  %s3946_s19 = smov 128   ;;  %s2330_s9 = int_to_ptr.vmem [resolvable:$true] %s2329_s9 }
0x2e31   : > { %s3113_s4 = smov 8   ;;  %p3994_p4 = scmp.eq.s32.totalorder %s3249_s15, 1 }
0x2e32   : > { %s2563_s26 = sshll.u32 %s3249_s15, 5  ;;  %s3995_s24 = sld [smem:[#allocation40_spill]] }
0x2e33   : > { %2580 = dma.vmem_to_hbm [thread:$0]  (%p3994_p4), %s2330_s9, 256, %s2332_s2, [#allocation16], %s3946_s19, %s3946_s19, %s3113_s4  }
0x2e34   : > { %s2315_s22 = sshll.u32 %s3358_s10, 4  ;;  %s2303_s25 = scalar_lea.sflag [#allocation8], %s3340_s23  ;;  %s2316_s22 = int_to_ptr.vmem [resolvable:$true] %s2315_s22 }
0x2e38   : > { %s2314_s5 = scalar_lea.hbm %s3995_s24, %s2563_s26  ;;  %s2993_s9 = scalar_lea.hbm %s3995_s24, 64 }
0x2e39   : > { %s2317_s30 = sshll.u32 %s2314_s5, 4  ;;  %s2318_s30 = int_to_ptr.hbm [resolvable:$true] %s2317_s30 }
0x2e3a   : > { %s2987_s3 = sshra.s32 %s2318_s30, 4  ;;  %s2988_s3 = int_to_ptr.hbm [resolvable:$true] %s2987_s3 }
0x2e3b   : > { %s2989_s1 = scalar_lea.hbm %s2988_s3, 32  ;;  %p2994_p11 = scmp.lt.s32.totalorder %s2988_s3, %s3995_s24 }
0x2e3c   : > { %p2990_p8 = scmp.ne.s32.totalorder %s2988_s3, %s2989_s1  ;;  %p2995_p13 = scmp.lt.s32.totalorder %s2993_s9, %s2989_s1 }
0x2e3e   : > { %p2991_p9 = pnand %p2990_p8, %p3312_p10  ;;  %p2996_p0 = por %p2995_p13, %p2994_p11 }
0x2e40   : > { %p2992_p12 = pneg %p2991_p9 }
0x2e42   : > { %p2997_p3 = pnand %p2996_p0, %p2992_p12 }
0x2e44   : > { %3000 = shalt.err (!%p2997_p3)
}
0x2e45   : > { %s3996_s23 = smov 128   ;;  %s3114_s10 = smov [#allocation17]  }
0x2e46   : > { %2578 = dma.vmem_to_hbm [thread:$0]  (%p3312_p10), %s2316_s22, 512, %s2318_s30, %s2303_s25, %s3996_s23, %s3996_s23, %s3113_s4  }
0x2e47   : > { %s2343_s26 = sshll.u32 %s3114_s10, 4  ;;  %s3997_s27 = sld [smem:[#allocation41_spill]]  ;;  %s2344_s26 = int_to_ptr.vmem [resolvable:$true] %s2343_s26 }
0x2e48   : > { %p3998_p5 = pmov %p3994_p4  ;;  %p3999_p7 = pmov %p3994_p4 }
0x2e4d   : > { %s2345_s29 = sshll.u32 %s3997_s27, 4  ;;  %s2346_s29 = int_to_ptr.hbm [resolvable:$true] %s2345_s29 }
0x2e4e   : > { %2582 = dma.vmem_to_hbm [thread:$0]  (%p3998_p5), %s2344_s26, 256, %s2346_s29, [#allocation16], %s3996_s23, %s3996_s23, %s3113_s4  }
0x2e4f   : > { %3060 = dma.done.wait (%p3999_p7), [#allocation16], 512   ;;  %p4000_p2 = pmov %p3994_p4 }
0x2e51   : > { %3062 = vsyncadd (%p4000_p2), [#allocation16], 4294966784 }
0x2e52 PF: > { %s4001_s21 = sld [smem:[#allocation24_spill]]  ;;  %p4003_p10 = scmp.ge.s32.totalorder %s3081_s0, 2 }
0x2e54   : > { %p2603_p1 = pnand %p4003_p10, %p3263_p6 }
0x2e56   : > { %p2604_p4 = pneg %p2603_p1 }
0x2e58   : > { %s2370_s19 = sand.u32 1, %s4001_s21  }
0x2e59   : > { %s2371_s5 = scalar_lea.sflag [#allocation8], %s2370_s19 }
0x2e5a   : > { %3064 = dma.done.wait (%p2604_p4), %s2371_s5, 512  }
0x2e5b   : > { %3066 = vsyncadd (%p2604_p4), %s2371_s5, 4294966784  ;;  %s4004_s0 = sld [smem:[#allocation27_spill]]  ;;  %s4007_s3 = smov %s3073_s28 }
0x2e5c   : > { %s4005_s4 = sld [smem:[#allocation25_spill]] }
0x2e5d   : > { %s4006_s29 = sld [smem:[#allocation28_spill]] }
0x2e61   : > { %p46_p8 = scmp.ge.s32.totalorder %s4004_s0, 4  }
0x2e62   : > { %s4008_s28 = smov %s4005_s4 }
0x2e63   :  { %48 = sbr.rel (!%p46_p8) target bundleno = 33 (0x21), region = 201 }
0x2e68   :  { %2377 = vsyncpa [#allocation7], 1 }
0x2e69   :  { %2379 = vsyncpa [#allocation7 + $0x1], 1 }
0x2e6a   :  { %2380 = vsyncpa [#allocation10], 1 }
0x2e6b   :  { %2381 = vsyncpa [#allocation13], 1 }
0x2e6c   :  { %2382 = vsyncpa [#allocation8], 1 }
0x2e6d   :  { %2384 = vsyncpa [#allocation8 + $0x1], 1 }
0x2e6e   :  { %2385 = vsyncpa [#allocation16], 1 }

// kernel: tpu_custom_call.1
= control target key start
LH: loop header
LB: loop body
LE: loop exit
PB: predicated region body
PF: predicated region fallthrough
CT: control target
= control target key end

     0   :  { %s3083_s27 = smov [#allocation5]   ;;  %s3905_s0 = inlined_call_operand.vmem [shape: s32[2], index: 0, kind: input, shape index: {}]   ;;  %s3906_s1 = inlined_call_operand.hbm [shape: f32[8,8,128], index: 1, kind: input, shape index: {}]   ;;  %s3907_s2 = inlined_call_operand.vmem [shape: s32[8,1], index: 2, kind: input, shape index: {}]   ;;  %s3908_s3 = inlined_call_operand.hbm [shape: bf16[32,128], index: 3, kind: input, shape index: {}]   ;;  %s3909_s4 = inlined_call_operand.vmem [shape: f32[1,128], index: 4, kind: input, shape index: {}]   ;;  %s3910_s5 = inlined_call_operand.vmem [shape: f32[1,128], index: 5, kind: input, shape index: {}]   ;;  %s3911_s6 = inlined_call_operand.vmem [shape: f32[1,128], index: 6, kind: input, shape index: {}]   ;;  %s3912_s7 = inlined_call_operand.vmem [shape: f32[1,32], index: 7, kind: input, shape index: {}]   ;;  %s3913_s8 = inlined_call_operand.vmem [shape: f32[1,32], index: 8, kind: input, shape index: {}]   ;;  %s3914_s9 = inlined_call_operand.hbm [shape: bf16[32,128], index: 9, kind: input, shape index: {}]   ;;  %s3915_s10 = inlined_call_operand.hbm [shape: bf16[32,128], index: 10, kind: input, shape index: {}]   ;;  %s3916_s11 = inlined_call_operand.vmem [shape: f32[1,128], index: 11, kind: input, shape index: {}]   ;;  %s3917_s12 = inlined_call_operand.vmem [shape: f32[1,128], index: 12, kind: input, shape index: {}]   ;;  %s3918_s13 = inlined_call_operand.vmem [shape: f32[1,128], index: 13, kind: input, shape index: {}]   ;;  %s3919_s14 = inlined_call_operand.vmem [shape: f32[1,128], index: 14, kind: input, shape index: {}]   ;;  %s3920_s15 = inlined_call_operand.vmem [shape: f32[1,128], index: 15, kind: input, shape index: {}]   ;;  %s3921_s16 = inlined_call_operand.vmem [shape: f32[1,128], index: 16, kind: input, shape index: {}]   ;;  %s3922_s17 = inlined_call_operand.vmem [shape: f32[1,32], index: 17, kind: input, shape index: {}]   ;;  %s3923_s18 = inlined_call_operand.vmem [shape: f32[1,32], index: 18, kind: input, shape index: {}]   ;;  %s3924_s19 = inlined_call_operand.hbm [shape: f32[8,8,32], index: 19, kind: output, shape index: {0}]   ;;  %s3925_s20 = inlined_call_operand.hbm [shape: f32[2,8,32], index: 20, kind: output, shape index: {1}]   ;;  %s3926_s21 = inlined_call_operand.hbm [shape: f32[2,8,32], index: 21, kind: output, shape index: {2}]  }
   0x1   :  { %3948 = sst [smem:[#allocation29_spill]] %s3905_s0 }
   0x2   :  { %3949 = sst [smem:[#allocation30_spill]] %s3906_s1 }
   0x3   :  { %3950 = sst [smem:[#allocation31_spill]] %s3907_s2 }
   0x4   :  { %3951 = sst [smem:[#allocation32_spill]] %s3908_s3 }
   0x5   :  { %3952 = sst [smem:[#allocation33_spill]] %s3909_s4 }
   0x6   :  { %3953 = sst [smem:[#allocation34_spill]] %s3910_s5 }
   0x7   :  { %3954 = sst [smem:[#allocation35_spill]] %s3911_s6 }
   0x8   :  { %3955 = sst [smem:[#allocation36_spill]] %s3912_s7 }
   0x9   :  { %3956 = sst [smem:[#allocation37_spill]] %s3914_s9 }
   0xa   :  { %3957 = sst [smem:[#allocation38_spill]] %s3915_s10 }
   0xb   :  { %3958 = sst [smem:[#allocation39_spill]] %s3920_s15 }
   0xc   :  { %3959 = sst [smem:[#allocation40_spill]] %s3924_s19 }
   0xd   :  { %3960 = sst [smem:[#allocation41_spill]] %s3926_s21 }
   0xe   :  { %s3961_s26 = sld [smem:[#allocation29_spill]] }
  0x14   :  { %s28_s15 = sshll.u32 %s3961_s26, 4  ;;  %s29_s15 = int_to_ptr.vmem [resolvable:$true] %s28_s15 }
  0x15   :  { %31 = dma.vmem_to_smem %s29_s15, 16, %s3083_s27, [#allocation4] }
  0x16   :  { %3045 = dma.done.wait [#allocation4], 16 }
  0x17   :  { %3046 = vsyncadd [#allocation4], 4294967280 }
  0x18   :  { %34 = sfence }
  0x19   :  { %35 = vsyncpa [#allocation7], 0 }
  0x1a   :  { %37 = vsyncpa [#allocation7 + $0x1], 0 }
  0x1b   :  { %38 = vsyncpa [#allocation10], 0 }
  0x1c   :  { %39 = vsyncpa [#allocation13], 0 }
  0x1d   :  { %40 = vsyncpa [#allocation8], 0 }
  0x1e   :  { %42 = vsyncpa [#allocation8 + $0x1], 0 }
  0x1f   :  { %43 = vsyncpa [#allocation16], 0  ;;  %s3228_s3 = smov 0   ;;  %s3230_s28 = smov 0  }
  0x20   :  { %s3232_s29 = smov 0   ;;  %s3234_s0 = smov 0  }
  0x21 LB: > { %3962 = sst [smem:[#allocation24_spill]] %s3069_s3  ;;  %s3249_s15 = sadd.s32 4294967295, %s3081_s0   ;;  %s3081_s0 = sphi %s3234_s0, %s4004_s0   ;;  %s3077_s29 = sphi %s3232_s29, %s4006_s29   ;;  %s3073_s28 = sphi %s3230_s28, %s4008_s28   ;;  %s3069_s3 = sphi %s3228_s3, %s4007_s3  }
  0x22   : > { %3963 = sst [smem:[#allocation25_spill]] %s3077_s29  ;;  %s2471_s4 = sadd.s32 4294967294, %s3081_s0  }
  0x23   : > { %p69_p0 = scmp.ne.s32.totalorder %s3073_s28, %s3069_s3  ;;  %p70_p1 = scmp.eq.s32.totalorder %s3249_s15, 0 }
  0x24   : > { %p3934_p2 = scmp.eq.s32.totalorder %s3249_s15, 1  ;;  %p456_p3 = scmp.eq.s32.totalorder %s2471_s4, 1 }
  0x25   : > { %p3258_p4 = por %p70_p1, %p69_p0  ;;  %p2472_p5 = scmp.ge.s32.totalorder %s3081_s0, 1 }
  0x26   : > { %p3263_p6 = por %p456_p3, %p69_p0  ;;  %p505_p7 = scmp.lt.s32.totalorder %s3081_s0, 3 }
  0x27   : > { %s3967_s1 = sld [smem:[#allocation32_spill]]  ;;  %s3084_s25 = smov [#allocation9]  }
  0x28   : > { %s3965_s5 = scalar_select %p3263_p6, 1, 0 }
  0x29   : > { %p3272_p9 = pnand %p2472_p5, %p505_p7  ;;  %s521_s26 = sshll.u32 %s3084_s25, 4  ;;  %s522_s26 = int_to_ptr.vmem [resolvable:$true] %s521_s26 }
  0x2a   : > { %3966 = sst [smem:[#allocation26_spill]] %s3965_s5  ;;  %s3086_s25 = smov 4  }
  0x2b   : > { %p2588_p10 = pneg %p3272_p9  ;;  %s3970_s9 = sld [smem:[#allocation37_spill]] }
  0x2c   : > { %s3087_s5 = smov [#allocation11]   ;;  %s3971_s10 = sld [smem:[#allocation38_spill]] }
  0x2d   : > { %s519_s24 = sshll.u32 %s3967_s1, 4  ;;  %p3280_p11 = pnand %p2588_p10, %p70_p1  ;;  %s520_s24 = int_to_ptr.hbm [resolvable:$true] %s519_s24 }
  0x2e   : > { %s3085_s1 = smov 64   ;;  %s550_s3 = sshll.u32 %s3087_s5, 4  ;;  %s551_s3 = int_to_ptr.vmem [resolvable:$true] %s550_s3 }
  0x2f   : > { %2591 = dma.hbm_to_vmem [thread:$0]  (!%p3280_p11), %s520_s24, 256, %s522_s26, [#allocation10], %s3085_s1, %s3085_s1, %s3086_s25  }
  0x30   : > { %s3088_s22 = smov [#allocation12]   ;;  %s3296_s24 = sadd.s32 1, %s3081_s0  }
  0x31   : > { %s548_s23 = sshll.u32 %s3970_s9, 4  ;;  %s564_s9 = sshll.u32 %s3088_s22, 4  ;;  %s549_s23 = int_to_ptr.hbm [resolvable:$true] %s548_s23  ;;  %s565_s9 = int_to_ptr.vmem [resolvable:$true] %s564_s9 }
  0x32   : > { %s562_s4 = sshll.u32 %s3971_s10, 4  ;;  %3972 = sst [smem:[#allocation27_spill]] %s3296_s24  ;;  %s563_s4 = int_to_ptr.hbm [resolvable:$true] %s562_s4 }
  0x33   : > { %2594 = dma.hbm_to_vmem [thread:$0]  (!%p3280_p11), %s549_s23, 256, %s551_s3, [#allocation10], %s3085_s1, %s3085_s1, %s3086_s25  }
  0x34   : > { %2597 = dma.hbm_to_vmem [thread:$0]  (!%p3280_p11), %s563_s4, 256, %s565_s9, [#allocation13], %s3085_s1, %s3085_s1, %s3086_s25  }
  0x35   : > { %s53_s5 = ssub.s32 %s3081_s0, %s3296_s24  ;;  %s56_s26 = sadd.s32 1, %s3077_s29 }
  0x36   : > { %p54_p13 = scmp.eq.s32.totalorder %s53_s5, 0  ;;  %p63_p0 = scmp.ne.s32.totalorder %s3077_s29, %s3073_s28 }
  0x37   : > { %p64_p3 = scmp.eq.s32.totalorder %s3081_s0, 0  ;;  %p2609_p5 = scmp.lt.s32.totalorder %s3081_s0, 2 }
  0x38   : > { %s3308_s19 = scalar_select %p54_p13, %s3077_s29, %s56_s26  }
  0x39   : > { %p65_p7 = por %p64_p3, %p63_p0  ;;  %p3312_p10 = por %p3934_p2, %p63_p0 }
  0x3a   : > { %3973 = sst [smem:[#allocation28_spill]] %s3308_s19  ;;  %s602_s3 = sand.u32 1, %s3077_s29  }
  0x3b   : > { %s2556_s23 = sshll.u32 %s3081_s0, 5  ;;  %s2477_s27 = sshll.u32 %s602_s3, 5 }
  0x3c   : > { %s3975_s1 = sld [smem:[#allocation30_spill]]  ;;  %s606_s5 = scalar_lea.vmem [#allocation6], %s2477_s27 }
  0x3d   : > { %s614_s10 = sshll.u32 %s606_s5, 4  ;;  %p3323_p11 = pnand %p2609_p5, %p65_p7  ;;  %s615_s10 = int_to_ptr.vmem [resolvable:$true] %s614_s10 }
  0x3e   : > { %s603_s19 = scalar_lea.sflag [#allocation7], %s602_s3 }
  0x3f   : > { %p2919_p0 = pneg %p3323_p11 }
  0x42   : > { %s611_s25 = scalar_lea.hbm %s3975_s1, %s2556_s23  ;;  %s2922_s22 = scalar_lea.hbm %s3975_s1, 64 }
  0x43   : > { %s612_s4 = sshll.u32 %s611_s25, 4  ;;  %s613_s4 = int_to_ptr.hbm [resolvable:$true] %s612_s4 }
  0x44   : > { %s2915_s24 = sshra.s32 %s613_s4, 4  ;;  %s2916_s24 = int_to_ptr.hbm [resolvable:$true] %s2915_s24 }
  0x45   : > { %s2917_s29 = scalar_lea.hbm %s2916_s24, 32  ;;  %p2923_p5 = scmp.lt.s32.totalorder %s2916_s24, %s3975_s1 }
  0x46   : > { %p2918_p13 = scmp.ne.s32.totalorder %s2916_s24, %s2917_s29  ;;  %p2924_p7 = scmp.lt.s32.totalorder %s2922_s22, %s2917_s29 }
  0x48   : > { %p2920_p3 = pnand %p2919_p0, %p2918_p13  ;;  %p2925_p2 = por %p2924_p7, %p2923_p5 }
  0x4a   : > { %p2921_p12 = pneg %p2920_p3 }
  0x4c   : > { %p2926_p8 = pnand %p2925_p2, %p2921_p12 }
  0x4e   : > { %2929 = shalt.err (!%p2926_p8)
}
  0x4f   : > { %s3089_s3 = smov 128   ;;  %s3090_s5 = smov 8  }
  0x50   : > { %2601 = dma.hbm_to_vmem [thread:$0]  (!%p3323_p11), %s613_s4, 512, %s615_s10, %s603_s19, %s3089_s3, %s3089_s3, %s3090_s5  }
  0x51   : > { %626 = sbr.rel (%p3272_p9) target bundleno = 11858 (0x2e52), region = 92  ;;  %s3340_s23 = sand.u32 (!%p3272_p9), 1, %s3073_s28  }
  0x52   : > { %s2481_s27 = sshll.u32 (!%p3272_p9), %s3340_s23, 5  ;;  %s629_s24 = scalar_lea.sflag (!%p3272_p9), [#allocation7], %s3340_s23 }
  0x53   : > { %s3344_s29 = scalar_lea.vmem (!%p3272_p9), [#allocation6], %s2481_s27 }
  0x56   : > { %3048 = dma.done.wait (%p3258_p4), %s629_s24, 512  }
  0x57   : > { %3050 = vsyncadd (%p3258_p4), %s629_s24, 4294966784 }
  0x58   : > { %3052 = dma.done.wait (%p70_p1), [#allocation10], 512  }
  0x59   : > { %3054 = vsyncadd (%p70_p1), [#allocation10], 4294966784 }
  0x5a   : > { %3056 = dma.done.wait (%p70_p1), [#allocation13], 256  }
  0x5b   : > { %3058 = vsyncadd (%p70_p1), [#allocation13], 4294967040  ;;  %s3358_s10 = scalar_lea.vmem [#allocation14], %s2481_s27  ;;  %p3977_p2 = scmp.ne.s32.totalorder %s3249_s15, 0 }
  0x5d   : > { %711 = sbr.rel (%p3977_p2) target bundleno = 107 (0x6b), region = 112 }
  0x62   : > { %vm712_vm0 = vcmask 261120   ;;  %v3091_v0 = vmov 0.0  }
  0x63   : > { %713 = vst.msk [vmem:[#allocation2] sm:$0xff] %vm712_vm0, %v3091_v0 }
  0x64   : > { %714 = vst.msk [vmem:[#allocation2 + $0x8] sm:$0xff] %vm712_vm0, %v3091_v0 }
  0x65   : > { %715 = vst.msk [vmem:[#allocation3] sm:$0xff] %vm712_vm0, %v3091_v0 }
  0x66   : > { %716 = vst.msk [vmem:[#allocation3 + $0x8] sm:$0xff] %vm712_vm0, %v3091_v0 }
  0x67   : > { %717 = vst.msk [vmem:[#allocation15] sm:$0xff] %vm712_vm0, %v3091_v0 }
  0x68   : > { %718 = vst.msk [vmem:[#allocation15 + $0x8] sm:$0xff] %vm712_vm0, %v3091_v0 }
  0x69   : > { %719 = vst.msk [vmem:[#allocation17] sm:$0xff] %vm712_vm0, %v3091_v0 }
  0x6a   : > { %720 = vst.msk [vmem:[#allocation17 + $0x8] sm:$0xff] %vm712_vm0, %v3091_v0 }
  0x6b PF: > { %s3363_s30 = sld [smem:[#allocation5 + %s3249_s15]]  ;;  %v3365_v1 = vld [vmem:[#allocation9 + $0x8] sm:$0xff]  ;;  %v3367_v2 = vld [vmem:[#allocation9] sm:$0xff]  ;;  %vm775_vm1 = vcmask 261120   ;;  %v3092_v9 = vmov 128.0   ;;  %s3093_s5 = smov 64  }
  0x6c   : > { %v757_v3 = vld [vmem:[#allocation2] sm:$0xff]  ;;  %785 = vmatpush.bf16.msra.mxu0 %v3365_v1  ;;  %s3978_s4 = sld [smem:[#allocation33_spill]]  ;;  %2695 = vrcp.f32 %v3092_v9  ;;  %v758_v38 = vld [vmem:[#allocation3] sm:$0xff]  ;;  %s3940_s27 = smov 32   ;;  %v3096_v61 = vmov 32.0  }
  0x6d   : > { %v759_v4 = vpack.c.bf16 %v757_v3, %v757_v3  ;;  %s3979_s9 = sld [smem:[#allocation34_spill]]  ;;  %v792_v34 = vld [vmem:[%s3344_s29] sm:$0xff]  ;;  %s3935_s24 = smov 96  }
  0x6e   : > { %s3980_s6 = sld [smem:[#allocation35_spill]]  ;;  %s3421_s22 = sshll.u32 %s3249_s15, 2 }
  0x6f   : > { %s3981_s7 = sld [smem:[#allocation36_spill]] }
  0x70   : > { %786 = vmatpush.bf16.msra.mxu0 %v3367_v2  ;;  %s3982_s3 = sld [smem:[#allocation31_spill]] }
  0x71   : > { %p2519_p1 = scmp.le.s32.totalorder %s3363_s30, 0 }
  0x72   : > { %v3375_v5 = vld [vmem:[%s3978_s4] ss:$0 sm:$0xff]  ;;  %v2696_v10 = vpop.eup %2695  ;;  %s3099_s19 = smov (!%p2519_p1), 32   ;;  %s3101_s4 = smov (!%p2519_p1), 96  }
  0x73   : > { %2498 = vmatmul.msk.bf16.vlgmr.msra.gmra.mxu0 %vm775_vm1, %v759_v4  ;;  %v796_v11 = vmul.f32 128.0, %v2696_v10  ;;  %vm800_vm2 = vweird.f32 %v2696_v10  ;;  %v3385_v29 = vld [vmem:[%s3979_s9] ss:$0 sm:$0xff] }
  0x74   : > { %v3390_v32 = vld [vmem:[%s3980_s6] ss:$0 sm:$0xff] }
  0x75   : > { %v797_v12 = vsub.f32 1.0, %v796_v11  ;;  %v2687_v11 = vld [vmem:[%s3981_s7] ss:$0 sm:$0xff] }
  0x77   : > { %v798_v13 = vmul.f32 %v2696_v10, %v797_v12  ;;  %v2688_v12 = vld [vmem:[%s3913_s8] ss:$0 sm:$0xff] }
  0x79   : > { %v799_v14 = vadd.f32 %v2696_v10, %v798_v13 }
  0x7b   : > { %v3378_v15 = vsel %vm800_vm2, %v2696_v10, %v799_v14 }
  0xf0   : > { %v788_v6 = vpop.f32.mrf.mxu0 }
  0xf1   : > { %v789_v7 = vadd.f32 %v3375_v5, %v788_v6 }
  0xf3   : > { %793 = vadd.xlane.f32.xlu0 %v789_v7 }
  0xf8   : > { %v790_v8 = vpop.f32.mrf.mxu0 }
 0x166   : > { %v794_v16 = vpop.xlane.xlu0 %793 }
 0x167   : > { %v802_v17 = vmul.f32 %v3378_v15, %v794_v16  ;;  %v3426_v16 = vld [vmem:[%s3982_s3] sm:$0xff] }
 0x169   : > { %v803_v18 = vsub.f32 %v789_v7, %v802_v17  ;;  %v3097_v17 = vmov 0  }
 0x16a   : > { %2682 = vset.pattern.permute.xlu1 %v3097_v17  ;;  %2683 = vset.pattern.permute.xlu0 %v3097_v17 }
 0x16b   : > { %v804_v19 = vmul.f32 %v803_v18, %v803_v18 }
 0x16d   : > { %805 = vadd.xlane.f32.xlu0 %v804_v19  ;;  %v751_v19 = vstv %s3421_s22 }
 0x16e   : > { %vm752_vm15 = vcmp.lt.s32.totalorder %v751_v19, %v3426_v16 }
 0x1e0   : > { %v806_v20 = vpop.xlane.xlu0 %805 }
 0x1e1   : > { %v807_v21 = vmul.f32 %v806_v20, %v3378_v15 }
 0x1e3   : > { %v808_v22 = vadd.f32 1e-05, %v807_v21 }
 0x1e5   : > { %2697 = vrsqrt.f32 %v808_v22  ;;  %vm815_vm4 = vweird.f32 %v808_v22 }
 0x1eb   : > { %v2698_v23 = vpop.eup %2697 }
 0x1ec   : > { %v810_v24 = vmul.f32 %v2698_v23, %v808_v22  ;;  %vm816_vm3 = vweird.f32 %v2698_v23 }
 0x1ed   : > { %vm817_vm5 = vmor %vm815_vm4, %vm816_vm3 }
 0x1ee   : > { %v811_v25 = vmul.f32 %v2698_v23, %v810_v24 }
 0x1f0   : > { %v812_v26 = vmul.f32 0.5, %v811_v25 }
 0x1f2   : > { %v813_v27 = vsub.f32 1.5, %v812_v26 }
 0x1f4   : > { %v814_v28 = vmul.f32 %v2698_v23, %v813_v27 }
 0x1f6   : > { %v818_v30 = vsel %vm817_vm5, %v2698_v23, %v814_v28 }
 0x1f7   : > { %v819_v31 = vmul.f32 %v818_v30, %v803_v18  ;;  %v3430_v18 = vadd.s32 4294967295, %v3426_v16 }
 0x1f9   : > { %v823_v33 = vmul.f32 %v3385_v29, %v819_v31  ;;  %vm3435_vm11 = vcmp.eq.s32.totalorder %v751_v19, %v3430_v18 }
 0x1fb   : > { %v827_v35 = vadd.f32 %v3390_v32, %v823_v33 }
 0x1fd   : > { %v828_v36 = vadd.f32 %v827_v35, %v792_v34 }
 0x1ff   : > { %2699 = vtanh.f32 %v828_v36  ;;  %v2499_v39 = vmul.f32 -1.442695, %v828_v36 }
 0x201   : > { %2701 = vpow2.f32 %v2499_v39 }
 0x205   : > { %v2700_v37 = vpop.eup %2699 }
 0x206   : > { %855 = vrot.lane.b32.xlu1 %v2700_v37, %s3093_s5 }
 0x207   : > { %v2702_v40 = vpop.eup %2701 }
 0x208   : > { %v832_v41 = vadd.f32 1.0, %v2702_v40  ;;  %v3449_v40 = vld [vmem:[#allocation12 + $0x8] sm:$0xff] }
 0x209   : > { %1000 = vmatpush.bf16.msra.mxu2 %v3449_v40 }
 0x20a   : > { %2703 = vrcp.f32 %v832_v41  ;;  %v844_v47 = vand.u32 2147483648, %v832_v41  ;;  %vm838_vm7 = vweird.f32 %v832_v41  ;;  %v842_v48 = vand.u32 2147483647, %v832_v41 }
 0x20c   : > { %v845_v50 = vor.u32 1.1754944e-38, %v844_v47  ;;  %vm843_vm9 = vcmp.eq.f32.partialorder %v842_v48, 8.507059e+37 }
 0x20e   : > { %850 = vrot.lane.b32.xlu1 %v758_v38, %s3940_s27  ;;  %v3098_v38 = vmov 0.0  }
 0x20f   : > { %v2488_v39 = vsel %vm752_vm15, 1.0, %v3098_v38 }
 0x210   : > { %v2704_v42 = vpop.eup %2703 }
 0x211   : > { %v834_v43 = vmul.f32 %v2704_v42, %v832_v41  ;;  %vm839_vm6 = vweird.f32 %v2704_v42  ;;  %v3452_v41 = vld [vmem:[#allocation12] sm:$0xff] }
 0x212   : > { %vm840_vm8 = vmor %vm838_vm7, %vm839_vm6  ;;  %1001 = vmatpush.bf16.msra.mxu2 %v3452_v41 }
 0x213   : > { %v835_v44 = vsub.f32 1.0, %v834_v43 }
 0x215   : > { %v836_v45 = vmul.f32 %v2704_v42, %v835_v44  ;;  %v3456_v44 = vld [vmem:[#allocation11 + $0x8] sm:$0xff] }
 0x216   : > { %968 = vmatpush.bf16.msra.mxu1 %v3456_v44 }
 0x217   : > { %v837_v46 = vadd.f32 %v2704_v42, %v836_v45  ;;  %v3459_v45 = vld [vmem:[#allocation11] sm:$0xff] }
 0x219   : > { %v841_v49 = vsel %vm840_vm8, %v2704_v42, %v837_v46  ;;  %v937_v42 = vld [vmem:[#allocation2 + $0x8] sm:$0xff] }
 0x21a   : > { %v3397_v52 = vsel %vm843_vm9, %v845_v50, %v841_v49  ;;  %v975_v43 = vpack.c.bf16 %v937_v42, %v937_v42  ;;  %969 = vmatpush.bf16.msra.mxu1 %v3459_v45 }
 0x21c   : > { %2517 = vmatmul.msk.bf16.vlgmr.msra.gmra.mxu2 %vm775_vm1, %v975_v43  ;;  %v3498_v43 = vld [vmem:[%s3918_s13] ss:$0 sm:$0xff] }
 0x278   : > { %v856_v51 = vpop.permute.xlu1 %855 }
 0x279   : > { %v858_v53 = vmul.f32 %v856_v51, %v3397_v52  ;;  %v3474_v51 = vld [vmem:[%s3917_s12] ss:$0 sm:$0xff] }
 0x27b   : > { %860 = vrot.lane.b32.xlu2 %v858_v53, %s3940_s27 }
 0x280   : > { %v851_v54 = vpop.permute.xlu1 %850 }
 0x281   : > { %v853_v55 = vmul.f32 %v851_v54, %v3397_v52 }
 0x29f   : > { %v1003_v53 = vpop.f32.mrf.mxu2 }
 0x2a0   : > { %v1004_v54 = vadd.f32 %v3474_v51, %v1003_v53 }
 0x2d5   : > { %v861_v56 = vpop.permute.xlu2 %860 }
 0x2d6   : > { %v3402_v57 = vadd.f32 %v861_v56, %v853_v55  ;;  %v3481_v56 = vld [vmem:[%s3916_s11] ss:$0 sm:$0xff] }
 0x2d8   : > { %2705 = vtanh.f32 %v3402_v57 }
 0x2d9   : > { %2707 = vrcp.f32 %v3096_v61  ;;  %v939_v61 = vld [vmem:[#allocation3 + $0x8] sm:$0xff] }
 0x2de   : > { %v2706_v58 = vpop.eup %2705 }
 0x2df   : > { %866 = vrot.lane.b32.xlu2 %v2706_v58, %s3935_s24  ;;  %v2708_v62 = vpop.eup %2707 }
 0x2e0   : > { %v873_v63 = vmul.f32 32.0, %v2708_v62  ;;  %vm877_vm10 = vweird.f32 %v2708_v62 }
 0x2e2   : > { %v874_v0 = vsub.f32 1.0, %v873_v63 }
 0x2e4   : > { %v875_v3 = vmul.f32 %v2708_v62, %v874_v0 }
 0x2e6   : > { %v876_v4 = vadd.f32 %v2708_v62, %v875_v3 }
 0x2e8   : > { %v3407_v6 = vsel %vm877_vm10, %v2708_v62, %v876_v4 }
 0x339   : > { %v867_v59 = vpop.permute.xlu2 %866 }
 0x33a   : > { %v869_v60 = vsel %vm775_vm1, %v867_v59, 0.0 }
 0x33b   : > { %870 = vadd.xlane.f32.xlu0 %v869_v60 }
 0x34f   : > { %904 = vrot.lane.b32.xlu0 %v2687_v11, %s3940_s27 }
 0x3ae   : > { %v871_v7 = vpop.xlane.xlu0 %870 }
 0x3af   : > { %v879_v8 = vmul.f32 %v3407_v6, %v871_v7 }
 0x3b1   : > { %v880_v9 = vsub.f32 %v2706_v58, %v879_v8 }
 0x3b3   : > { %v881_v10 = vmul.f32 %v880_v9, %v880_v9 }
 0x3b5   : > { %883 = vrot.lane.b32.xlu1 %v881_v10, %s3935_s24  ;;  %s3987_s24 = smov 96  }
 0x3bd   : > { %910 = vrot.lane.b32.xlu1 %v2688_v12, %s3940_s27 }
 0x3c1   : > { %v3440_v33 = vpop.permute.xlu0 %904 }
 0x427   : > { %v884_v13 = vpop.permute.xlu1 %883 }
 0x428   : > { %v886_v14 = vsel %vm775_vm1, %v884_v13, 0.0 }
 0x429   : > { %887 = vadd.xlane.f32.xlu2 %v886_v14 }
 0x42f   : > { %v3442_v35 = vpop.permute.xlu1 %910 }
 0x49c   : > { %v888_v20 = vpop.xlane.xlu2 %887 }
 0x49d   : > { %v889_v22 = vmul.f32 %v888_v20, %v3407_v6 }
 0x49f   : > { %v890_v23 = vadd.f32 1e-05, %v889_v22 }
 0x4a1   : > { %2709 = vrsqrt.f32 %v890_v23  ;;  %vm897_vm13 = vweird.f32 %v890_v23 }
 0x4a7   : > { %v2710_v24 = vpop.eup %2709 }
 0x4a8   : > { %v892_v25 = vmul.f32 %v2710_v24, %v890_v23  ;;  %vm898_vm12 = vweird.f32 %v2710_v24 }
 0x4a9   : > { %vm899_vm14 = vmor %vm897_vm13, %vm898_vm12 }
 0x4aa   : > { %v893_v26 = vmul.f32 %v2710_v24, %v892_v25 }
 0x4ac   : > { %v894_v27 = vmul.f32 0.5, %v893_v26 }
 0x4ae   : > { %v895_v28 = vsub.f32 1.5, %v894_v27 }
 0x4b0   : > { %v896_v30 = vmul.f32 %v2710_v24, %v895_v28 }
 0x4b2   : > { %v900_v31 = vsel %vm899_vm14, %v2710_v24, %v896_v30 }
 0x4b3   : > { %v901_v34 = vmul.f32 %v900_v31, %v880_v9 }
 0x4b5   : > { %v907_v36 = vmul.f32 %v3440_v33, %v901_v34 }
 0x4b7   : > { %v913_v37 = vadd.f32 %v3442_v35, %v907_v36  ;;  %v744_v36 = vld [vmem:[%s3919_s14] sm:$0x1] }
 0x4b9   : > { %915 = vrot.lane.b32.xlu1 %v913_v37, %s3093_s5  ;;  %v746_v37 = vld [vmem:[%s3921_s16] sm:$0x1] }
 0x4c1   : > { %921 = vperm.xlu1 %2682, %v2488_v39  }
 0x52b   : > { %v916_v46 = vpop.permute.xlu1 %915 }
 0x52c   : > { %v918_v47 = vmul.f32 %v916_v46, %v3397_v52  ;;  %v1005_v52 = vpop.f32.mrf.mxu2 }
 0x533   : > { %v3463_v48 = vpop.permute.xlu1 %921 }
 0x534   : > { %v3466_v49 = vmul.f32 %v3463_v48, %v918_v47  ;;  %v749_v47 = vadd.f32 %v746_v37, %v744_v36 }
 0x536   : > { %v940_v50 = vpack.c.bf16 %v3466_v49, %v3466_v49 }
 0x538   : > { %945 = vrot.lane.b32.xlu0 %v940_v50, %s3940_s27 }
 0x562   : > { %1009 = vadd.xlane.f32.xlu0 %v1004_v54 }
 0x5aa   : > { %v946_v55 = vpop.permute.xlu0 %945 }
 0x5ab   : > { %2508 = vmatmul.msk.bf16.vlgmr.msra.gmra.mxu1 %vm775_vm1, %v946_v55  ;;  %v3506_v55 = vperm.slane %v749_v47, 0 }
 0x5d5   : > { %v1010_v0 = vpop.xlane.xlu0 %1009 }
 0x5d6   : > { %v1012_v4 = vmul.f32 %v1010_v0, %v3378_v15 }
 0x5d8   : > { %v1014_v8 = vsub.f32 %v1004_v54, %v1012_v4 }
 0x5da   : > { %v1016_v9 = vmul.f32 %v1014_v8, %v1014_v8 }
 0x628   : > { %v971_v58 = vpop.f32.mrf.mxu1 }
 0x629   : > { %v972_v59 = vadd.f32 %v3481_v56, %v971_v58 }
 0x62b   : > { %1007 = vadd.xlane.f32.xlu1 %v972_v59 }
 0x630   : > { %v973_v60 = vpop.f32.mrf.mxu1 }
 0x644   : > { %1081 = vrot.lane.b32.xlu1 %v939_v61, %s3940_s27  ;;  %s3985_s27 = sld [smem:[#allocation39_spill]] }
 0x64a   : > { %v3503_v50 = vld [vmem:[%s3985_s27] ss:$0 sm:$0xff]  ;;  %s3986_s27 = smov 32  }
 0x69e   : > { %v1008_v62 = vpop.xlane.xlu1 %1007 }
 0x69f   : > { %v1011_v63 = vmul.f32 %v1008_v62, %v3378_v15 }
 0x6a1   : > { %v1013_v3 = vsub.f32 %v972_v59, %v1011_v63 }
 0x6a3   : > { %v1015_v7 = vmul.f32 %v1013_v3, %v1013_v3 }
 0x6a5   : > { %1017 = vadd.xlane.f32.xlu2 %v1015_v7 }
 0x6ad   : > { %1019 = vadd.xlane.f32.xlu2 %v1016_v9 }
 0x718   : > { %v1018_v10 = vpop.xlane.xlu2 %1017 }
 0x719   : > { %v1021_v11 = vmul.f32 %v1018_v10, %v3378_v15 }
 0x71b   : > { %v1023_v12 = vadd.f32 1e-05, %v1021_v11 }
 0x71d   : > { %2711 = vrsqrt.f32 %v1023_v12  ;;  %vm1031_vm2 = vweird.f32 %v1023_v12 }
 0x720   : > { %v1020_v13 = vpop.xlane.xlu2 %1019 }
 0x721   : > { %v1022_v14 = vmul.f32 %v1020_v13, %v3378_v15 }
 0x723   : > { %v2712_v19 = vpop.eup %2711  ;;  %v1024_v20 = vadd.f32 1e-05, %v1022_v14 }
 0x724   : > { %v1026_v22 = vmul.f32 %v2712_v19, %v1023_v12  ;;  %vm1032_vm0 = vweird.f32 %v2712_v19 }
 0x725   : > { %2713 = vrsqrt.f32 %v1024_v20  ;;  %vm1033_vm3 = vmor %vm1031_vm2, %vm1032_vm0  ;;  %vm1041_vm5 = vweird.f32 %v1024_v20 }
 0x726   : > { %v1027_v23 = vmul.f32 %v2712_v19, %v1026_v22  ;;  %v1082_v22 = vpop.permute.xlu1 %1081 }
 0x728   : > { %v1028_v24 = vmul.f32 0.5, %v1027_v23 }
 0x72a   : > { %v1029_v25 = vsub.f32 1.5, %v1028_v24 }
 0x72b   : > { %v2714_v26 = vpop.eup %2713 }
 0x72c   : > { %v1036_v27 = vmul.f32 %v2714_v26, %v1024_v20  ;;  %v1030_v28 = vmul.f32 %v2712_v19, %v1029_v25  ;;  %vm1042_vm4 = vweird.f32 %v2714_v26 }
 0x72d   : > { %vm1043_vm6 = vmor %vm1041_vm5, %vm1042_vm4 }
 0x72e   : > { %v1037_v30 = vmul.f32 %v2714_v26, %v1036_v27  ;;  %v1034_v34 = vsel %vm1033_vm3, %v2712_v19, %v1030_v28 }
 0x72f   : > { %v1045_v46 = vmul.f32 %v1034_v34, %v1013_v3 }
 0x730   : > { %v1038_v31 = vmul.f32 0.5, %v1037_v30  ;;  %v3516_v30 = vmul.f32 %v3463_v48, %v3402_v57  ;;  %v2694_v57 = vld [vmem:[%s3923_s18] ss:$0 sm:$0xff] }
 0x731   : > { %v1050_v52 = vmul.f32 %v3498_v43, %v1045_v46 }
 0x732   : > { %v1039_v39 = vsub.f32 1.5, %v1038_v31 }
 0x734   : > { %v1040_v42 = vmul.f32 %v2714_v26, %v1039_v39 }
 0x736   : > { %v1044_v53 = vsel %vm1043_vm6, %v2714_v26, %v1040_v42  ;;  %v2693_v42 = vld [vmem:[%s3922_s17] ss:$0 sm:$0xff] }
 0x737   : > { %v1046_v54 = vmul.f32 %v1044_v53, %v1014_v8 }
 0x739   : > { %v1054_v58 = vmul.f32 %v3503_v50, %v1046_v54 }
 0x73b   : > { %v1055_v59 = vadd.f32 %v1054_v58, %v1050_v52 }
 0x73d   : > { %v1059_v60 = vadd.f32 %v3506_v55, %v1055_v59 }
 0x73f   : > { %2715 = vtanh.f32 %v1059_v60  ;;  %v2518_v62 = vmul.f32 -1.442695, %v1059_v60 }
 0x741   : > { %2717 = vpow2.f32 %v2518_v62 }
 0x745   : > { %v2716_v61 = vpop.eup %2715 }
 0x746   : > { %1086 = vrot.lane.b32.xlu2 %v2716_v61, %s3093_s5 }
 0x747   : > { %v2718_v63 = vpop.eup %2717 }
 0x748   : > { %v1063_v0 = vadd.f32 1.0, %v2718_v63 }
 0x74a   : > { %2719 = vrcp.f32 %v1063_v0  ;;  %v1075_v10 = vand.u32 2147483648, %v1063_v0  ;;  %vm1069_vm8 = vweird.f32 %v1063_v0  ;;  %v1073_v11 = vand.u32 2147483647, %v1063_v0 }
 0x74c   : > { %v1076_v13 = vor.u32 1.1754944e-38, %v1075_v10  ;;  %vm1074_vm10 = vcmp.eq.f32.partialorder %v1073_v11, 8.507059e+37 }
 0x750   : > { %v2720_v3 = vpop.eup %2719 }
 0x751   : > { %v1065_v4 = vmul.f32 %v2720_v3, %v1063_v0  ;;  %vm1070_vm7 = vweird.f32 %v2720_v3 }
 0x752   : > { %vm1071_vm9 = vmor %vm1069_vm8, %vm1070_vm7 }
 0x753   : > { %v1066_v7 = vsub.f32 1.0, %v1065_v4 }
 0x755   : > { %v1067_v8 = vmul.f32 %v2720_v3, %v1066_v7 }
 0x757   : > { %v1068_v9 = vadd.f32 %v2720_v3, %v1067_v8 }
 0x759   : > { %v1072_v12 = vsel %vm1071_vm9, %v2720_v3, %v1068_v9 }
 0x75a   : > { %v1077_v14 = vsel %vm1074_vm10, %v1076_v13, %v1072_v12 }
 0x75b   : > { %v1084_v23 = vmul.f32 %v1082_v22, %v1077_v14 }
 0x7a0   : > { %v1087_v19 = vpop.permute.xlu2 %1086 }
 0x7a1   : > { %v1089_v20 = vmul.f32 %v1087_v19, %v1077_v14 }
 0x7a3   : > { %1091 = vrot.lane.b32.xlu0 %v1089_v20, %s3986_s27 }
 0x815   : > { %v1092_v24 = vpop.permute.xlu0 %1091 }
 0x816   : > { %v1094_v25 = vadd.f32 %v1092_v24, %v1084_v23 }
 0x818   : > { %2721 = vtanh.f32 %v1094_v25  ;;  %v3533_v53 = vmul.f32 %v1094_v25, %v3463_v48 }
 0x81e   : > { %v2722_v26 = vpop.eup %2721 }
 0x81f   : > { %1097 = vrot.lane.b32.xlu2 %v2722_v26, %s3987_s24 }
 0x879   : > { %v1098_v27 = vpop.permute.xlu2 %1097 }
 0x87a   : > { %v1100_v28 = vsel %vm775_vm1, %v1098_v27, 0.0 }
 0x87b   : > { %1101 = vadd.xlane.f32.xlu2 %v1100_v28 }
 0x893   : > { %932 = vrot.lane.b32.xlu2 %v3516_v30, %s3987_s24 }
 0x8ee   : > { %v1102_v31 = vpop.xlane.xlu2 %1101 }
 0x8ef   : > { %v1103_v34 = vmul.f32 %v1102_v31, %v3407_v6 }
 0x8f1   : > { %v1104_v36 = vsub.f32 %v2722_v26, %v1103_v34 }
 0x8f3   : > { %v1105_v37 = vmul.f32 %v1104_v36, %v1104_v36 }
 0x8f5   : > { %1107 = vrot.lane.b32.xlu0 %v1105_v37, %s3987_s24 }
 0x8f6   : > { %v933_v39 = vpop.permute.xlu2 %932 }
 0x8f7   : > { %935 = vst.msk [vmem:[#allocation3] sm:$0xff] %vm775_vm1, %v933_v39 }
 0x8fd   : > { %1128 = vrot.lane.b32.xlu0 %v2693_v42, %s3986_s27 }
 0x905   : > { %1134 = vrot.lane.b32.xlu0 %v2694_v57, %s3986_s27 }
 0x967   : > { %v1108_v46 = vpop.permute.xlu0 %1107 }
 0x968   : > { %v1110_v47 = vsel %vm775_vm1, %v1108_v46, 0.0 }
 0x969   : > { %1111 = vadd.xlane.f32.xlu1 %v1110_v47 }
 0x96f   : > { %v3538_v62 = vpop.permute.xlu0 %1128 }
 0x977   : > { %v3540_v9 = vpop.permute.xlu0 %1134 }
 0x982   : > { %1151 = vrot.lane.b32.xlu1 %v3533_v53, %s3987_s24 }
 0x9dc   : > { %v1112_v54 = vpop.xlane.xlu1 %1111 }
 0x9dd   : > { %v1113_v52 = vmul.f32 %v1112_v54, %v3407_v6 }
 0x9df   : > { %v1114_v58 = vadd.f32 1e-05, %v1113_v52 }
 0x9e1   : > { %2723 = vrsqrt.f32 %v1114_v58  ;;  %vm1121_vm13 = vweird.f32 %v1114_v58 }
 0x9e7   : > { %v2724_v59 = vpop.eup %2723 }
 0x9e8   : > { %v1116_v60 = vmul.f32 %v2724_v59, %v1114_v58  ;;  %vm1122_vm12 = vweird.f32 %v2724_v59 }
 0x9e9   : > { %vm1123_vm14 = vmor %vm1121_vm13, %vm1122_vm12 }
 0x9ea   : > { %v1117_v61 = vmul.f32 %v2724_v59, %v1116_v60 }
 0x9ec   : > { %v1118_v63 = vmul.f32 0.5, %v1117_v61 }
 0x9ee   : > { %v1119_v0 = vsub.f32 1.5, %v1118_v63 }
 0x9f0   : > { %v1120_v3 = vmul.f32 %v2724_v59, %v1119_v0 }
 0x9f2   : > { %v1124_v4 = vsel %vm1123_vm14, %v2724_v59, %v1120_v3 }
 0x9f3   : > { %v1125_v7 = vmul.f32 %v1124_v4, %v1104_v36 }
 0x9f4   : > { %v1152_v8 = vpop.permute.xlu1 %1151 }
 0x9f5   : > { %v1131_v10 = vmul.f32 %v3538_v62, %v1125_v7  ;;  %1154 = vst.msk [vmem:[#allocation3 + $0x8] sm:$0xff] %vm775_vm1, %v1152_v8 }
 0x9f7   : > { %v1137_v11 = vadd.f32 %v3540_v9, %v1131_v10 }
 0x9f9   : > { %1139 = vrot.lane.b32.xlu0 %v1137_v11, %s3093_s5 }
 0xa01   : > { %927 = vrot.lane.b32.xlu0 %v3466_v49, %s3986_s27 }
 0xa6b   : > { %v1140_v12 = vpop.permute.xlu0 %1139 }
 0xa6c   : > { %v1142_v13 = vmul.f32 %v1140_v12, %v1077_v14 }
 0xa6e   : > { %v1143_v19 = vmul.f32 %v1142_v13, %v3463_v48 }
 0xa70   : > { %1146 = vrot.lane.b32.xlu0 %v1143_v19, %s3986_s27 }
 0xa73   : > { %v928_v20 = vpop.permute.xlu0 %927 }
 0xa74   : > { %930 = vst.msk [vmem:[#allocation2] sm:$0xff] %vm775_vm1, %v928_v20 }
 0xae0   : > { %1158 = sbr.rel (%p2519_p1) target bundleno = 3030 (0xbd6), region = 116 }
 0xae2   : > { %v1147_v22 = vpop.permute.xlu0 %1146 }
 0xae3   : > { %1149 = vst.msk [vmem:[#allocation2 + $0x8] sm:$0xff] %vm775_vm1, %v1147_v22 }
 0xae4   : > { %1155 = vst.msk [vmem:[%s3358_s10] sm:$0xff] %vm775_vm1, %v1147_v22 }
 0xae5   : > { %v1175_v23 = vld [vmem:[#allocation17] sm:$0xff]  ;;  %v3100_v14 = vmov 0   ;;  %v1199_v24 = vld [vmem:[#allocation17 + $0x8] sm:$0xff]  ;;  %v1187_v25 = vld [vmem:[#allocation15 + $0x8] sm:$0xff] }
 0xae6   : > { %1177 = vrot.lane.b32.xlu1 %v1175_v23, %s3099_s19  ;;  %2725 = vset.pattern.permute.xlu0 %v3100_v14  ;;  %v1160_v48 = vsel %vm3435_vm11, 1, %v3100_v14  ;;  %v1159_v26 = vld [vmem:[#allocation15] sm:$0xff] }
 0xae7   : > { %1162 = vperm.xlu0 %2725, %v1160_v48   ;;  %1201 = vrot.lane.b32.xlu2 %v1199_v24, %s3099_s19 }
 0xaee   : > { %1189 = vrot.lane.b32.xlu1 %v1187_v25, %s3101_s4 }
 0xaef   : > { %1166 = vrot.lane.b32.xlu0 %v1159_v26, %s3101_s4 }
 0xb41   : > { %v1202_v39 = vpop.permute.xlu2 %1201 }
 0xb58   : > { %v1178_v27 = vpop.permute.xlu1 %1177 }
 0xb59   : > { %v1163_v28 = vpop.permute.xlu0 %1162 }
 0xb5a   : > { %vm1164_vm15 = vcmp.eq.s32.totalorder %v1163_v28, 1 }
 0xb5b   : > { %v1180_v31 = vsel %vm1164_vm15, %v3516_v30, %v1178_v27  ;;  %v1204_v42 = vsel %vm1164_vm15, %v3533_v53, %v1202_v39 }
 0xb5c   : > { %1182 = vrot.lane.b32.xlu0 %v1180_v31, %s3101_s4 }
 0xb60   : > { %v1190_v34 = vpop.permute.xlu1 %1189 }
 0xb61   : > { %v1192_v36 = vsel %vm1164_vm15, %v1143_v19, %v1190_v34  ;;  %v1167_v37 = vpop.permute.xlu0 %1166 }
 0xb62   : > { %v1169_v21 = vsel %vm1164_vm15, %v3466_v49, %v1167_v37  ;;  %1194 = vrot.lane.b32.xlu1 %v1192_v36, %s3099_s19 }
 0xb63   : > { %1171 = vrot.lane.b32.xlu2 %v1169_v21, %s3099_s19 }
 0xb6b   : > { %1206 = vrot.lane.b32.xlu2 %v1204_v42, %s3101_s4 }
 0xbbd   : > { %v1172_v57 = vpop.permute.xlu2 %1171 }
 0xbbe   : > { %1174 = vst.msk [vmem:[#allocation15] sm:$0xff] %vm775_vm1, %v1172_v57 }
 0xbc5   : > { %v1207_v46 = vpop.permute.xlu2 %1206 }
 0xbc6   : > { %1209 = vst.msk [vmem:[#allocation17 + $0x8] sm:$0xff] %vm775_vm1, %v1207_v46 }
 0xbce   : > { %v1183_v47 = vpop.permute.xlu0 %1182 }
 0xbcf   : > { %1185 = vst.msk [vmem:[#allocation17] sm:$0xff] %vm775_vm1, %v1183_v47 }
 0xbd4   : > { %v1195_v30 = vpop.permute.xlu1 %1194 }
 0xbd5   : > { %1197 = vst.msk [vmem:[#allocation15 + $0x8] sm:$0xff] %vm775_vm1, %v1195_v30 }
 0xbd6 PF: > { %1228 = vmatpush.bf16.msra.mxu3 %v3365_v1  ;;  %v1216_v49 = vld [vmem:[#allocation2] sm:$0xff]  ;;  %2726 = vset.pattern.permute.xlu1 %v3097_v17  ;;  %v2522_v23 = vld [vmem:[%s3344_s29 + $0x8] sm:$0xff]  ;;  %v1217_v25 = vld [vmem:[#allocation3] sm:$0xff]  ;;  %s3988_s26 = smov 32   ;;  %s3989_s27 = smov 96  }
 0xbd7   : > { %1382 = vmatpush.bf16.msrb.mxu1 %v3449_v40  ;;  %1365 = vmatpush.bf16.msrb.mxu0 %v3456_v44  ;;  %v1218_v53 = vpack.c.bf16 %v1216_v49, %v1216_v49  ;;  %s1210_s24 = sadd.s32 1, %s3421_s22  ;;  %s3102_s9 = smov (!%p2519_p1), 32  }
 0xbd8   : > { %2727 = vset.pattern.permute.xlu0 %v3097_v17  ;;  %s3104_s25 = smov (!%p2519_p1), 96  }
 0xbda   : > { %1229 = vmatpush.bf16.msra.mxu3 %v3367_v2 }
 0xbdb   : > { %1383 = vmatpush.bf16.msrb.mxu1 %v3452_v41  ;;  %1366 = vmatpush.bf16.msrb.mxu0 %v3459_v45 }
 0xbdd   : > { %2521 = vmatmul.msk.bf16.vlgmr.msra.gmra.mxu3 %vm775_vm1, %v1218_v53 }
 0xc60   : > { %v1231_v54 = vpop.f32.mrf.mxu3 }
 0xc61   : > { %v1232_v52 = vadd.f32 %v3375_v5, %v1231_v54 }
 0xc63   : > { %1237 = vadd.xlane.f32.xlu0 %v1232_v52 }
 0xc68   : > { %v1233_v58 = vpop.f32.mrf.mxu3 }
 0xcd6   : > { %v1238_v59 = vpop.xlane.xlu0 %1237 }
 0xcd7   : > { %v1239_v60 = vmul.f32 %v1238_v59, %v3378_v15 }
 0xcd9   : > { %v1240_v61 = vsub.f32 %v1232_v52, %v1239_v60 }
 0xcdb   : > { %v1241_v63 = vmul.f32 %v1240_v61, %v1240_v61 }
 0xcdd   : > { %1242 = vadd.xlane.f32.xlu0 %v1241_v63  ;;  %v3590_v63 = vstv %s1210_s24 }
 0xcde   : > { %vm1215_vm7 = vcmp.eq.s32.totalorder %v3590_v63, %v3430_v18  ;;  %vm1212_vm8 = vcmp.lt.s32.totalorder %v3590_v63, %v3426_v16 }
 0xd50   : > { %v1243_v0 = vpop.xlane.xlu0 %1242 }
 0xd51   : > { %v1244_v3 = vmul.f32 %v1243_v0, %v3378_v15 }
 0xd53   : > { %v1245_v4 = vadd.f32 1e-05, %v1244_v3 }
 0xd55   : > { %2728 = vrsqrt.f32 %v1245_v4  ;;  %vm1252_vm0 = vweird.f32 %v1245_v4 }
 0xd5b   : > { %v2729_v7 = vpop.eup %2728 }
 0xd5c   : > { %v1247_v8 = vmul.f32 %v2729_v7, %v1245_v4  ;;  %vm1253_vm11 = vweird.f32 %v2729_v7 }
 0xd5d   : > { %vm1254_vm2 = vmor %vm1252_vm0, %vm1253_vm11 }
 0xd5e   : > { %v1248_v10 = vmul.f32 %v2729_v7, %v1247_v8  ;;  %v2520_v8 = vsel %vm1212_vm8, 1.0, %v3098_v38 }
 0xd60   : > { %v1249_v11 = vmul.f32 0.5, %v1248_v10 }
 0xd62   : > { %v1250_v12 = vsub.f32 1.5, %v1249_v11 }
 0xd64   : > { %v1251_v13 = vmul.f32 %v2729_v7, %v1250_v12 }
 0xd66   : > { %v1255_v19 = vsel %vm1254_vm2, %v2729_v7, %v1251_v13 }
 0xd67   : > { %v1256_v20 = vmul.f32 %v1255_v19, %v1240_v61 }
 0xd69   : > { %v1257_v22 = vmul.f32 %v3385_v29, %v1256_v20 }
 0xd6b   : > { %v1258_v14 = vadd.f32 %v3390_v32, %v1257_v22 }
 0xd6d   : > { %v1259_v48 = vadd.f32 %v2522_v23, %v1258_v14 }
 0xd6f   : > { %2730 = vtanh.f32 %v1259_v48  ;;  %v2523_v26 = vmul.f32 -1.442695, %v1259_v48 }
 0xd71   : > { %2732 = vpow2.f32 %v2523_v26 }
 0xd75   : > { %v2731_v24 = vpop.eup %2730 }
 0xd76   : > { %1286 = vrot.lane.b32.xlu1 %v2731_v24, %s3093_s5 }
 0xd77   : > { %v2733_v27 = vpop.eup %2732 }
 0xd78   : > { %v1263_v28 = vadd.f32 1.0, %v2733_v27 }
 0xd7a   : > { %2734 = vrcp.f32 %v1263_v28  ;;  %v1275_v39 = vand.u32 2147483648, %v1263_v28  ;;  %vm1269_vm4 = vweird.f32 %v1263_v28  ;;  %v1273_v42 = vand.u32 2147483647, %v1263_v28 }
 0xd7c   : > { %v1276_v46 = vor.u32 1.1754944e-38, %v1275_v39  ;;  %vm1274_vm6 = vcmp.eq.f32.partialorder %v1273_v42, 8.507059e+37 }
 0xd7e   : > { %1281 = vrot.lane.b32.xlu1 %v1217_v25, %s3988_s26 }
 0xd80   : > { %v2735_v31 = vpop.eup %2734 }
 0xd81   : > { %v1265_v34 = vmul.f32 %v2735_v31, %v1263_v28  ;;  %vm1270_vm3 = vweird.f32 %v2735_v31 }
 0xd82   : > { %vm1271_vm5 = vmor %vm1269_vm4, %vm1270_vm3 }
 0xd83   : > { %v1266_v36 = vsub.f32 1.0, %v1265_v34 }
 0xd85   : > { %v1267_v37 = vmul.f32 %v2735_v31, %v1266_v36 }
 0xd87   : > { %v1268_v21 = vadd.f32 %v2735_v31, %v1267_v37 }
 0xd89   : > { %v1272_v57 = vsel %vm1271_vm5, %v2735_v31, %v1268_v21  ;;  %v1350_v31 = vld [vmem:[#allocation2 + $0x8] sm:$0xff] }
 0xd8a   : > { %v1277_v30 = vsel %vm1274_vm6, %v1276_v46, %v1272_v57  ;;  %v1372_v34 = vpack.c.bf16 %v1350_v31, %v1350_v31 }
 0xd8c   : > { %2525 = vmatmul.msk.bf16.vlgmr.msrb.gmra.mxu1 %vm775_vm1, %v1372_v34 }
 0xde8   : > { %v1287_v47 = vpop.permute.xlu1 %1286 }
 0xde9   : > { %v1289_v49 = vmul.f32 %v1287_v47, %v1277_v30 }
 0xdeb   : > { %1291 = vrot.lane.b32.xlu2 %v1289_v49, %s3988_s26 }
 0xdf0   : > { %v1282_v53 = vpop.permute.xlu1 %1281 }
 0xdf1   : > { %v1284_v54 = vmul.f32 %v1282_v53, %v1277_v30 }
 0xe09   : > { %v1385_v57 = vpop.f32.mrf.mxu1 }
 0xe0a   : > { %v1386_v46 = vadd.f32 %v3474_v51, %v1385_v57 }
 0xe11   : > { %v1387_v47 = vpop.f32.mrf.mxu1 }
 0xe45   : > { %v1292_v52 = vpop.permute.xlu2 %1291 }
 0xe46   : > { %v3584_v58 = vadd.f32 %v1292_v52, %v1284_v54  ;;  %v1351_v52 = vld [vmem:[#allocation3 + $0x8] sm:$0xff] }
 0xe48   : > { %2736 = vtanh.f32 %v3584_v58 }
 0xe4e   : > { %v2737_v59 = vpop.eup %2736 }
 0xe4f   : > { %1297 = vrot.lane.b32.xlu2 %v2737_v59, %s3989_s27 }
 0xea9   : > { %v1298_v60 = vpop.permute.xlu2 %1297 }
 0xeaa   : > { %v1300_v61 = vsel %vm775_vm1, %v1298_v60, 0.0 }
 0xeab   : > { %1301 = vadd.xlane.f32.xlu0 %v1300_v61 }
 0xf1e   : > { %v1302_v0 = vpop.xlane.xlu0 %1301 }
 0xf1f   : > { %v1303_v3 = vmul.f32 %v1302_v0, %v3407_v6 }
 0xf21   : > { %v1304_v4 = vsub.f32 %v2737_v59, %v1303_v3 }
 0xf23   : > { %v1305_v7 = vmul.f32 %v1304_v4, %v1304_v4 }
 0xf25   : > { %1307 = vrot.lane.b32.xlu1 %v1305_v7, %s3989_s27 }
 0xf2d   : > { %1335 = vperm.xlu1 %2726, %v2520_v8  }
 0xf97   : > { %v1308_v10 = vpop.permute.xlu1 %1307 }
 0xf98   : > { %v1310_v11 = vsel %vm775_vm1, %v1308_v10, 0.0 }
 0xf99   : > { %1311 = vadd.xlane.f32.xlu2 %v1310_v11 }
 0xf9f   : > { %v3605_v21 = vpop.permute.xlu1 %1335 }
0x100c   : > { %v1312_v12 = vpop.xlane.xlu2 %1311 }
0x100d   : > { %v1313_v13 = vmul.f32 %v1312_v12, %v3407_v6 }
0x100f   : > { %v1314_v19 = vadd.f32 1e-05, %v1313_v13 }
0x1011   : > { %2738 = vrsqrt.f32 %v1314_v19  ;;  %vm1321_vm10 = vweird.f32 %v1314_v19 }
0x1017   : > { %v2739_v20 = vpop.eup %2738 }
0x1018   : > { %v1316_v22 = vmul.f32 %v2739_v20, %v1314_v19  ;;  %vm1322_vm9 = vweird.f32 %v2739_v20 }
0x1019   : > { %vm1323_vm12 = vmor %vm1321_vm10, %vm1322_vm9 }
0x101a   : > { %v1317_v23 = vmul.f32 %v2739_v20, %v1316_v22 }
0x101c   : > { %v1318_v14 = vmul.f32 0.5, %v1317_v23 }
0x101e   : > { %v1319_v48 = vsub.f32 1.5, %v1318_v14 }
0x1020   : > { %v1320_v24 = vmul.f32 %v2739_v20, %v1319_v48 }
0x1022   : > { %v1324_v25 = vsel %vm1323_vm12, %v2739_v20, %v1320_v24 }
0x1023   : > { %v1325_v26 = vmul.f32 %v1324_v25, %v1304_v4 }
0x1025   : > { %v1326_v27 = vmul.f32 %v1325_v26, %v3440_v33 }
0x1027   : > { %v1327_v28 = vadd.f32 %v1326_v27, %v3442_v35 }
0x1029   : > { %1329 = vrot.lane.b32.xlu0 %v1327_v28, %s3093_s5 }
0x1053   : > { %1391 = vadd.xlane.f32.xlu0 %v1386_v46 }
0x109b   : > { %v1330_v36 = vpop.permute.xlu0 %1329 }
0x109c   : > { %v1332_v37 = vmul.f32 %v1330_v36, %v1277_v30 }
0x109e   : > { %v3608_v39 = vmul.f32 %v3605_v21, %v1332_v37 }
0x10a0   : > { %v1352_v42 = vpack.c.bf16 %v3608_v39, %v3608_v39 }
0x10a2   : > { %1354 = vrot.lane.b32.xlu1 %v1352_v42, %s3988_s26 }
0x10c6   : > { %v1392_v61 = vpop.xlane.xlu0 %1391 }
0x10c7   : > { %v1394_v3 = vmul.f32 %v1392_v61, %v3378_v15 }
0x10c9   : > { %v1396_v7 = vsub.f32 %v1386_v46, %v1394_v3 }
0x10cb   : > { %v1398_v8 = vmul.f32 %v1396_v7, %v1396_v7 }
0x1114   : > { %v1355_v49 = vpop.permute.xlu1 %1354 }
0x1115   : > { %2524 = vmatmul.msk.bf16.vlgmr.msrb.gmra.mxu0 %vm775_vm1, %v1355_v49 }
0x1192   : > { %v1368_v53 = vpop.f32.mrf.mxu0 }
0x1193   : > { %v1369_v30 = vadd.f32 %v3481_v56, %v1368_v53 }
0x1195   : > { %1389 = vadd.xlane.f32.xlu1 %v1369_v30 }
0x119a   : > { %v1370_v54 = vpop.f32.mrf.mxu0 }
0x11ae   : > { %1454 = vrot.lane.b32.xlu1 %v1351_v52, %s3988_s26 }
0x1208   : > { %v1390_v59 = vpop.xlane.xlu1 %1389 }
0x1209   : > { %v1393_v60 = vmul.f32 %v1390_v59, %v3378_v15 }
0x120b   : > { %v1395_v0 = vsub.f32 %v1369_v30, %v1393_v60 }
0x120d   : > { %v1397_v4 = vmul.f32 %v1395_v0, %v1395_v0 }
0x120f   : > { %1399 = vadd.xlane.f32.xlu2 %v1397_v4 }
0x1217   : > { %1401 = vadd.xlane.f32.xlu2 %v1398_v8 }
0x1282   : > { %v1400_v10 = vpop.xlane.xlu2 %1399 }
0x1283   : > { %v1403_v11 = vmul.f32 %v1400_v10, %v3378_v15 }
0x1285   : > { %v1405_v12 = vadd.f32 1e-05, %v1403_v11 }
0x1287   : > { %2740 = vrsqrt.f32 %v1405_v12  ;;  %vm1413_vm14 = vweird.f32 %v1405_v12 }
0x128a   : > { %v1402_v13 = vpop.xlane.xlu2 %1401 }
0x128b   : > { %v1404_v19 = vmul.f32 %v1402_v13, %v3378_v15 }
0x128d   : > { %v2741_v20 = vpop.eup %2740  ;;  %v1406_v22 = vadd.f32 1e-05, %v1404_v19 }
0x128e   : > { %v1408_v23 = vmul.f32 %v2741_v20, %v1405_v12  ;;  %vm1414_vm13 = vweird.f32 %v2741_v20 }
0x128f   : > { %2742 = vrsqrt.f32 %v1406_v22  ;;  %vm1415_vm15 = vmor %vm1413_vm14, %vm1414_vm13  ;;  %vm1423_vm0 = vweird.f32 %v1406_v22 }
0x1290   : > { %v1409_v14 = vmul.f32 %v2741_v20, %v1408_v23 }
0x1292   : > { %v1410_v48 = vmul.f32 0.5, %v1409_v14 }
0x1294   : > { %v1411_v24 = vsub.f32 1.5, %v1410_v48 }
0x1295   : > { %v2743_v25 = vpop.eup %2742 }
0x1296   : > { %v1418_v26 = vmul.f32 %v2743_v25, %v1406_v22  ;;  %v1412_v27 = vmul.f32 %v2741_v20, %v1411_v24  ;;  %vm1424_vm11 = vweird.f32 %v2743_v25  ;;  %v1455_v22 = vpop.permute.xlu1 %1454 }
0x1297   : > { %vm1425_vm2 = vmor %vm1423_vm0, %vm1424_vm11 }
0x1298   : > { %v1419_v28 = vmul.f32 %v2743_v25, %v1418_v26  ;;  %v1416_v34 = vsel %vm1415_vm15, %v2741_v20, %v1412_v27 }
0x1299   : > { %v1427_v42 = vmul.f32 %v1416_v34, %v1395_v0 }
0x129a   : > { %v1420_v31 = vmul.f32 0.5, %v1419_v28 }
0x129b   : > { %v1429_v47 = vmul.f32 %v3498_v43, %v1427_v42 }
0x129c   : > { %v1421_v36 = vsub.f32 1.5, %v1420_v31 }
0x129e   : > { %v1422_v37 = vmul.f32 %v2743_v25, %v1421_v36 }
0x12a0   : > { %v1426_v57 = vsel %vm1425_vm2, %v2743_v25, %v1422_v37 }
0x12a1   : > { %v1428_v46 = vmul.f32 %v1426_v57, %v1396_v7 }
0x12a3   : > { %v1430_v49 = vmul.f32 %v3503_v50, %v1428_v46 }
0x12a5   : > { %v1431_v53 = vadd.f32 %v1430_v49, %v1429_v47 }
0x12a7   : > { %v1432_v30 = vadd.f32 %v1431_v53, %v3506_v55 }
0x12a9   : > { %2744 = vtanh.f32 %v1432_v30  ;;  %v2526_v52 = vmul.f32 -1.442695, %v1432_v30 }
0x12ab   : > { %2746 = vpow2.f32 %v2526_v52 }
0x12af   : > { %v2745_v54 = vpop.eup %2744 }
0x12b0   : > { %1459 = vrot.lane.b32.xlu2 %v2745_v54, %s3093_s5 }
0x12b1   : > { %v2747_v59 = vpop.eup %2746 }
0x12b2   : > { %v1436_v60 = vadd.f32 1.0, %v2747_v59 }
0x12b4   : > { %2748 = vrcp.f32 %v1436_v60  ;;  %v1448_v8 = vand.u32 2147483648, %v1436_v60  ;;  %vm1442_vm4 = vweird.f32 %v1436_v60  ;;  %v1446_v10 = vand.u32 2147483647, %v1436_v60 }
0x12b6   : > { %v1449_v12 = vor.u32 1.1754944e-38, %v1448_v8  ;;  %vm1447_vm6 = vcmp.eq.f32.partialorder %v1446_v10, 8.507059e+37 }
0x12ba   : > { %v2749_v61 = vpop.eup %2748 }
0x12bb   : > { %v1438_v0 = vmul.f32 %v2749_v61, %v1436_v60  ;;  %vm1443_vm3 = vweird.f32 %v2749_v61 }
0x12bc   : > { %vm1444_vm5 = vmor %vm1442_vm4, %vm1443_vm3 }
0x12bd   : > { %v1439_v3 = vsub.f32 1.0, %v1438_v0 }
0x12bf   : > { %v1440_v4 = vmul.f32 %v2749_v61, %v1439_v3  ;;  %v1339_v3 = vmul.f32 %v3605_v21, %v3584_v58 }
0x12c1   : > { %v1441_v7 = vadd.f32 %v2749_v61, %v1440_v4 }
0x12c3   : > { %v1445_v11 = vsel %vm1444_vm5, %v2749_v61, %v1441_v7 }
0x12c4   : > { %v1450_v13 = vsel %vm1447_vm6, %v1449_v12, %v1445_v11 }
0x12c5   : > { %v1457_v23 = vmul.f32 %v1455_v22, %v1450_v13 }
0x130a   : > { %v1460_v19 = vpop.permute.xlu2 %1459 }
0x130b   : > { %v1462_v20 = vmul.f32 %v1460_v19, %v1450_v13 }
0x130d   : > { %1464 = vrot.lane.b32.xlu0 %v1462_v20, %s3988_s26 }
0x137f   : > { %v1465_v14 = vpop.permute.xlu0 %1464 }
0x1380   : > { %v1467_v48 = vadd.f32 %v1465_v14, %v1457_v23 }
0x1382   : > { %2750 = vtanh.f32 %v1467_v48  ;;  %v1507_v11 = vmul.f32 %v1467_v48, %v3605_v21 }
0x1388   : > { %v2751_v24 = vpop.eup %2750 }
0x1389   : > { %1470 = vrot.lane.b32.xlu2 %v2751_v24, %s3989_s27 }
0x13e3   : > { %v1471_v25 = vpop.permute.xlu2 %1470 }
0x13e4   : > { %v1473_v26 = vsel %vm775_vm1, %v1471_v25, 0.0 }
0x13e5   : > { %1474 = vadd.xlane.f32.xlu2 %v1473_v26 }
0x1458   : > { %v1475_v27 = vpop.xlane.xlu2 %1474 }
0x1459   : > { %v1476_v28 = vmul.f32 %v1475_v27, %v3407_v6 }
0x145b   : > { %v1477_v31 = vsub.f32 %v2751_v24, %v1476_v28 }
0x145d   : > { %v1478_v34 = vmul.f32 %v1477_v31, %v1477_v31 }
0x145f   : > { %1480 = vrot.lane.b32.xlu0 %v1478_v34, %s3989_s27 }
0x14d1   : > { %v1481_v36 = vpop.permute.xlu0 %1480 }
0x14d2   : > { %v1483_v37 = vsel %vm775_vm1, %v1481_v36, 0.0 }
0x14d3   : > { %1484 = vadd.xlane.f32.xlu1 %v1483_v37 }
0x1546   : > { %v1485_v42 = vpop.xlane.xlu1 %1484 }
0x1547   : > { %v1486_v57 = vmul.f32 %v1485_v42, %v3407_v6 }
0x1549   : > { %v1487_v46 = vadd.f32 1e-05, %v1486_v57 }
0x154b   : > { %2752 = vrsqrt.f32 %v1487_v46  ;;  %vm1494_vm9 = vweird.f32 %v1487_v46 }
0x1551   : > { %v2753_v47 = vpop.eup %2752 }
0x1552   : > { %v1489_v49 = vmul.f32 %v2753_v47, %v1487_v46  ;;  %vm1495_vm8 = vweird.f32 %v2753_v47 }
0x1553   : > { %vm1496_vm10 = vmor %vm1494_vm9, %vm1495_vm8 }
0x1554   : > { %v1490_v53 = vmul.f32 %v2753_v47, %v1489_v49 }
0x1556   : > { %v1491_v30 = vmul.f32 0.5, %v1490_v53 }
0x1558   : > { %v1492_v54 = vsub.f32 1.5, %v1491_v30 }
0x155a   : > { %v1493_v52 = vmul.f32 %v2753_v47, %v1492_v54 }
0x155c   : > { %v1497_v59 = vsel %vm1496_vm10, %v2753_v47, %v1493_v52 }
0x155d   : > { %v1498_v60 = vmul.f32 %v1497_v59, %v1477_v31 }
0x155f   : > { %v1499_v61 = vmul.f32 %v1498_v60, %v3538_v62 }
0x1561   : > { %v1500_v0 = vadd.f32 %v1499_v61, %v3540_v9 }
0x1563   : > { %1502 = vrot.lane.b32.xlu0 %v1500_v0, %s3093_s5 }
0x156b   : > { %1341 = vrot.lane.b32.xlu0 %v3608_v39, %s3988_s26 }
0x1573   : > { %1346 = vrot.lane.b32.xlu0 %v1339_v3, %s3989_s27 }
0x15d5   : > { %v1503_v4 = vpop.permute.xlu0 %1502 }
0x15d6   : > { %v1505_v7 = vmul.f32 %v1503_v4, %v1450_v13 }
0x15d8   : > { %v1506_v8 = vmul.f32 %v1505_v7, %v3605_v21 }
0x15da   : > { %1509 = vrot.lane.b32.xlu0 %v1506_v8, %s3988_s26 }
0x15dd   : > { %v1342_v10 = vpop.permute.xlu0 %1341 }
0x15de   : > { %1344 = vst.msk [vmem:[#allocation2] sm:$0xff] %vm775_vm1, %v1342_v10 }
0x15e2   : > { %1514 = vrot.lane.b32.xlu0 %v1507_v11, %s3989_s27 }
0x15e5   : > { %v1347_v12 = vpop.permute.xlu0 %1346 }
0x15e6   : > { %1349 = vst.msk [vmem:[#allocation3] sm:$0xff] %vm775_vm1, %v1347_v12 }
0x164c   : > { %v1510_v19 = vpop.permute.xlu0 %1509 }
0x164d   : > { %1512 = vst.msk [vmem:[#allocation2 + $0x8] sm:$0xff] %vm775_vm1, %v1510_v19 }
0x164e   : > { %2527 = vst.msk [vmem:[%s3358_s10 + $0x8] sm:$0xff] %vm775_vm1, %v1510_v19 }
0x1651   : > { %1522 = sbr.rel (%p2519_p1) target bundleno = 5959 (0x1747), region = 120 }
0x1654   : > { %v1515_v58 = vpop.permute.xlu0 %1514 }
0x1655   : > { %1517 = vst.msk [vmem:[#allocation3 + $0x8] sm:$0xff] %vm775_vm1, %v1515_v58 }
0x1656   : > { %v1539_v13 = vld [vmem:[#allocation17] sm:$0xff]  ;;  %v3103_v21 = vmov 0   ;;  %v1563_v22 = vld [vmem:[#allocation17 + $0x8] sm:$0xff]  ;;  %v1551_v23 = vld [vmem:[#allocation15 + $0x8] sm:$0xff] }
0x1657   : > { %1541 = vrot.lane.b32.xlu1 %v1539_v13, %s3102_s9  ;;  %2754 = vset.pattern.permute.xlu0 %v3103_v21  ;;  %v1524_v20 = vsel %vm1215_vm7, 1, %v3103_v21  ;;  %v1523_v14 = vld [vmem:[#allocation15] sm:$0xff] }
0x1658   : > { %1526 = vperm.xlu0 %2754, %v1524_v20   ;;  %1565 = vrot.lane.b32.xlu2 %v1563_v22, %s3102_s9 }
0x165f   : > { %1553 = vrot.lane.b32.xlu1 %v1551_v23, %s3104_s25 }
0x1660   : > { %1530 = vrot.lane.b32.xlu0 %v1523_v14, %s3104_s25 }
0x16b2   : > { %v1566_v63 = vpop.permute.xlu2 %1565 }
0x16c9   : > { %v1542_v48 = vpop.permute.xlu1 %1541 }
0x16ca   : > { %v1527_v24 = vpop.permute.xlu0 %1526 }
0x16cb   : > { %vm1528_vm12 = vcmp.eq.s32.totalorder %v1527_v24, 1 }
0x16cc   : > { %v1544_v25 = vsel %vm1528_vm12, %v1339_v3, %v1542_v48  ;;  %v1568_v34 = vsel %vm1528_vm12, %v1507_v11, %v1566_v63 }
0x16cd   : > { %1546 = vrot.lane.b32.xlu0 %v1544_v25, %s3104_s25 }
0x16d1   : > { %v1554_v26 = vpop.permute.xlu1 %1553 }
0x16d2   : > { %v1556_v27 = vsel %vm1528_vm12, %v1506_v8, %v1554_v26  ;;  %v1531_v28 = vpop.permute.xlu0 %1530 }
0x16d3   : > { %v1533_v31 = vsel %vm1528_vm12, %v3608_v39, %v1531_v28  ;;  %1558 = vrot.lane.b32.xlu1 %v1556_v27, %s3102_s9 }
0x16d4   : > { %1535 = vrot.lane.b32.xlu2 %v1533_v31, %s3102_s9 }
0x16dc   : > { %1570 = vrot.lane.b32.xlu2 %v1568_v34, %s3104_s25 }
0x172e   : > { %v1536_v36 = vpop.permute.xlu2 %1535 }
0x172f   : > { %1538 = vst.msk [vmem:[#allocation15] sm:$0xff] %vm775_vm1, %v1536_v36 }
0x1736   : > { %v1571_v37 = vpop.permute.xlu2 %1570 }
0x1737   : > { %1573 = vst.msk [vmem:[#allocation17 + $0x8] sm:$0xff] %vm775_vm1, %v1571_v37 }
0x173f   : > { %v1547_v42 = vpop.permute.xlu0 %1546 }
0x1740   : > { %1549 = vst.msk [vmem:[#allocation17] sm:$0xff] %vm775_vm1, %v1547_v42 }
0x1745   : > { %v1559_v57 = vpop.permute.xlu1 %1558 }
0x1746   : > { %1561 = vst.msk [vmem:[#allocation15 + $0x8] sm:$0xff] %vm775_vm1, %v1559_v57 }
0x1747 PF: > { %1592 = vmatpush.bf16.msrb.mxu2 %v3365_v1  ;;  %v1580_v39 = vld [vmem:[#allocation2] sm:$0xff]  ;;  %2755 = vset.pattern.permute.xlu1 %v3097_v17  ;;  %v2531_v13 = vld [vmem:[%s3344_s29 + $0x10] sm:$0xff]  ;;  %s3990_s3 = smov 32   ;;  %s3991_s2 = smov 96  }
0x1748   : > { %1746 = vmatpush.bf16.msra.mxu0 %v3449_v40  ;;  %1729 = vmatpush.bf16.msrb.mxu3 %v3456_v44  ;;  %v1582_v46 = vpack.c.bf16 %v1580_v39, %v1580_v39  ;;  %v1581_v23 = vld [vmem:[#allocation3] sm:$0xff]  ;;  %s1574_s19 = sadd.s32 2, %s3421_s22  ;;  %s3105_s4 = smov (!%p2519_p1), 32  }
0x1749   : > { %2756 = vset.pattern.permute.xlu0 %v3097_v17  ;;  %s3107_s26 = smov (!%p2519_p1), 96  }
0x174b   : > { %1593 = vmatpush.bf16.msrb.mxu2 %v3367_v2 }
0x174c   : > { %1747 = vmatpush.bf16.msra.mxu0 %v3452_v41  ;;  %1730 = vmatpush.bf16.msrb.mxu3 %v3459_v45 }
0x174e   : > { %2530 = vmatmul.msk.bf16.vlgmr.msrb.gmra.mxu2 %vm775_vm1, %v1582_v46 }
0x17d1   : > { %v1595_v47 = vpop.f32.mrf.mxu2 }
0x17d2   : > { %v1596_v49 = vadd.f32 %v3375_v5, %v1595_v47 }
0x17d4   : > { %1601 = vadd.xlane.f32.xlu0 %v1596_v49 }
0x17d9   : > { %v1597_v53 = vpop.f32.mrf.mxu2 }
0x1847   : > { %v1602_v30 = vpop.xlane.xlu0 %1601 }
0x1848   : > { %v1603_v54 = vmul.f32 %v1602_v30, %v3378_v15 }
0x184a   : > { %v1604_v52 = vsub.f32 %v1596_v49, %v1603_v54 }
0x184c   : > { %v1605_v59 = vmul.f32 %v1604_v52, %v1604_v52 }
0x184e   : > { %1606 = vadd.xlane.f32.xlu0 %v1605_v59  ;;  %v3684_v59 = vstv %s1574_s19 }
0x184f   : > { %vm1579_vm3 = vcmp.eq.s32.totalorder %v3684_v59, %v3430_v18  ;;  %vm1576_vm4 = vcmp.lt.s32.totalorder %v3684_v59, %v3426_v16 }
0x18c1   : > { %v1607_v60 = vpop.xlane.xlu0 %1606 }
0x18c2   : > { %v1608_v61 = vmul.f32 %v1607_v60, %v3378_v15 }
0x18c4   : > { %v1609_v0 = vadd.f32 1e-05, %v1608_v61 }
0x18c6   : > { %2757 = vrsqrt.f32 %v1609_v0  ;;  %vm1616_vm13 = vweird.f32 %v1609_v0 }
0x18cc   : > { %v2758_v3 = vpop.eup %2757 }
0x18cd   : > { %v1611_v4 = vmul.f32 %v2758_v3, %v1609_v0  ;;  %vm1617_vm7 = vweird.f32 %v2758_v3 }
0x18ce   : > { %vm1618_vm14 = vmor %vm1616_vm13, %vm1617_vm7 }
0x18cf   : > { %v1612_v7 = vmul.f32 %v2758_v3, %v1611_v4  ;;  %v2529_v4 = vsel %vm1576_vm4, 1.0, %v3098_v38 }
0x18d1   : > { %v1613_v8 = vmul.f32 0.5, %v1612_v7 }
0x18d3   : > { %v1614_v10 = vsub.f32 1.5, %v1613_v8 }
0x18d5   : > { %v1615_v11 = vmul.f32 %v2758_v3, %v1614_v10 }
0x18d7   : > { %v1619_v12 = vsel %vm1618_vm14, %v2758_v3, %v1615_v11 }
0x18d8   : > { %v1620_v19 = vmul.f32 %v1619_v12, %v1604_v52 }
0x18da   : > { %v1621_v58 = vmul.f32 %v3385_v29, %v1620_v19 }
0x18dc   : > { %v1622_v21 = vadd.f32 %v3390_v32, %v1621_v58 }
0x18de   : > { %v1623_v20 = vadd.f32 %v2531_v13, %v1622_v21 }
0x18e0   : > { %2759 = vtanh.f32 %v1623_v20  ;;  %v2532_v14 = vmul.f32 -1.442695, %v1623_v20 }
0x18e2   : > { %2761 = vpow2.f32 %v2532_v14 }
0x18e6   : > { %v2760_v22 = vpop.eup %2759 }
0x18e7   : > { %1650 = vrot.lane.b32.xlu1 %v2760_v22, %s3093_s5 }
0x18e8   : > { %v2762_v48 = vpop.eup %2761 }
0x18e9   : > { %v1627_v24 = vadd.f32 1.0, %v2762_v48 }
0x18eb   : > { %2763 = vrcp.f32 %v1627_v24  ;;  %v1639_v63 = vand.u32 2147483648, %v1627_v24  ;;  %vm1633_vm11 = vweird.f32 %v1627_v24  ;;  %v1637_v34 = vand.u32 2147483647, %v1627_v24 }
0x18ed   : > { %v1640_v37 = vor.u32 1.1754944e-38, %v1639_v63  ;;  %vm1638_vm2 = vcmp.eq.f32.partialorder %v1637_v34, 8.507059e+37 }
0x18ef   : > { %1645 = vrot.lane.b32.xlu1 %v1581_v23, %s3990_s3 }
0x18f1   : > { %v2764_v25 = vpop.eup %2763 }
0x18f2   : > { %v1629_v26 = vmul.f32 %v2764_v25, %v1627_v24  ;;  %vm1634_vm15 = vweird.f32 %v2764_v25 }
0x18f3   : > { %vm1635_vm0 = vmor %vm1633_vm11, %vm1634_vm15 }
0x18f4   : > { %v1630_v27 = vsub.f32 1.0, %v1629_v26 }
0x18f6   : > { %v1631_v28 = vmul.f32 %v2764_v25, %v1630_v27 }
0x18f8   : > { %v1632_v31 = vadd.f32 %v2764_v25, %v1631_v28 }
0x18fa   : > { %v1636_v36 = vsel %vm1635_vm0, %v2764_v25, %v1632_v31  ;;  %v1714_v25 = vld [vmem:[#allocation2 + $0x8] sm:$0xff] }
0x18fb   : > { %v1641_v57 = vsel %vm1638_vm2, %v1640_v37, %v1636_v36  ;;  %v1736_v26 = vpack.c.bf16 %v1714_v25, %v1714_v25 }
0x18fd   : > { %2534 = vmatmul.msk.bf16.vlgmr.msra.gmra.mxu0 %vm775_vm1, %v1736_v26 }
0x1959   : > { %v1651_v42 = vpop.permute.xlu1 %1650 }
0x195a   : > { %v1653_v39 = vmul.f32 %v1651_v42, %v1641_v57 }
0x195c   : > { %1655 = vrot.lane.b32.xlu2 %v1653_v39, %s3990_s3 }
0x1961   : > { %v1646_v46 = vpop.permute.xlu1 %1645 }
0x1962   : > { %v1648_v47 = vmul.f32 %v1646_v46, %v1641_v57 }
0x197a   : > { %v1749_v36 = vpop.f32.mrf.mxu0 }
0x197b   : > { %v1750_v37 = vadd.f32 %v3474_v51, %v1749_v36 }
0x1982   : > { %v1751_v42 = vpop.f32.mrf.mxu0 }
0x19b6   : > { %v1656_v49 = vpop.permute.xlu2 %1655 }
0x19b7   : > { %v3678_v53 = vadd.f32 %v1656_v49, %v1648_v47  ;;  %v1715_v49 = vld [vmem:[#allocation3 + $0x8] sm:$0xff] }
0x19b9   : > { %2765 = vtanh.f32 %v3678_v53 }
0x19bf   : > { %v2766_v30 = vpop.eup %2765 }
0x19c0   : > { %1661 = vrot.lane.b32.xlu2 %v2766_v30, %s3991_s2 }
0x1a1a   : > { %v1662_v54 = vpop.permute.xlu2 %1661 }
0x1a1b   : > { %v1664_v52 = vsel %vm775_vm1, %v1662_v54, 0.0 }
0x1a1c   : > { %1665 = vadd.xlane.f32.xlu0 %v1664_v52 }
0x1a8f   : > { %v1666_v60 = vpop.xlane.xlu0 %1665 }
0x1a90   : > { %v1667_v61 = vmul.f32 %v1666_v60, %v3407_v6 }
0x1a92   : > { %v1668_v0 = vsub.f32 %v2766_v30, %v1667_v61 }
0x1a94   : > { %v1669_v3 = vmul.f32 %v1668_v0, %v1668_v0 }
0x1a96   : > { %1671 = vrot.lane.b32.xlu1 %v1669_v3, %s3991_s2 }
0x1a9e   : > { %1699 = vperm.xlu1 %2755, %v2529_v4  }
0x1b08   : > { %v1672_v7 = vpop.permute.xlu1 %1671 }
0x1b09   : > { %v1674_v8 = vsel %vm775_vm1, %v1672_v7, 0.0 }
0x1b0a   : > { %1675 = vadd.xlane.f32.xlu2 %v1674_v8 }
0x1b10   : > { %v3699_v31 = vpop.permute.xlu1 %1699 }
0x1b7d   : > { %v1676_v10 = vpop.xlane.xlu2 %1675 }
0x1b7e   : > { %v1677_v11 = vmul.f32 %v1676_v10, %v3407_v6 }
0x1b80   : > { %v1678_v12 = vadd.f32 1e-05, %v1677_v11 }
0x1b82   : > { %2767 = vrsqrt.f32 %v1678_v12  ;;  %vm1685_vm6 = vweird.f32 %v1678_v12 }
0x1b88   : > { %v2768_v19 = vpop.eup %2767 }
0x1b89   : > { %v1680_v58 = vmul.f32 %v2768_v19, %v1678_v12  ;;  %vm1686_vm5 = vweird.f32 %v2768_v19 }
0x1b8a   : > { %vm1687_vm8 = vmor %vm1685_vm6, %vm1686_vm5 }
0x1b8b   : > { %v1681_v13 = vmul.f32 %v2768_v19, %v1680_v58 }
0x1b8d   : > { %v1682_v21 = vmul.f32 0.5, %v1681_v13 }
0x1b8f   : > { %v1683_v20 = vsub.f32 1.5, %v1682_v21 }
0x1b91   : > { %v1684_v22 = vmul.f32 %v2768_v19, %v1683_v20 }
0x1b93   : > { %v1688_v23 = vsel %vm1687_vm8, %v2768_v19, %v1684_v22 }
0x1b94   : > { %v1689_v14 = vmul.f32 %v1688_v23, %v1668_v0 }
0x1b96   : > { %v1690_v48 = vmul.f32 %v1689_v14, %v3440_v33 }
0x1b98   : > { %v1691_v24 = vadd.f32 %v1690_v48, %v3442_v35 }
0x1b9a   : > { %1693 = vrot.lane.b32.xlu0 %v1691_v24, %s3093_s5 }
0x1bc4   : > { %1755 = vadd.xlane.f32.xlu0 %v1750_v37 }
0x1c0c   : > { %v1694_v27 = vpop.permute.xlu0 %1693 }
0x1c0d   : > { %v1696_v28 = vmul.f32 %v1694_v27, %v1641_v57 }
0x1c0f   : > { %v3702_v63 = vmul.f32 %v3699_v31, %v1696_v28 }
0x1c11   : > { %v1716_v34 = vpack.c.bf16 %v3702_v63, %v3702_v63 }
0x1c13   : > { %1718 = vrot.lane.b32.xlu1 %v1716_v34, %s3990_s3 }
0x1c37   : > { %v1756_v52 = vpop.xlane.xlu0 %1755 }
0x1c38   : > { %v1758_v61 = vmul.f32 %v1756_v52, %v3378_v15 }
0x1c3a   : > { %v1760_v3 = vsub.f32 %v1750_v37, %v1758_v61 }
0x1c3c   : > { %v1762_v4 = vmul.f32 %v1760_v3, %v1760_v3 }
0x1c85   : > { %v1719_v39 = vpop.permute.xlu1 %1718 }
0x1c86   : > { %2533 = vmatmul.msk.bf16.vlgmr.msrb.gmra.mxu3 %vm775_vm1, %v1719_v39 }
0x1d09   : > { %v1732_v46 = vpop.f32.mrf.mxu3 }
0x1d0a   : > { %v1733_v57 = vadd.f32 %v3481_v56, %v1732_v46 }
0x1d0c   : > { %1753 = vadd.xlane.f32.xlu1 %v1733_v57 }
0x1d11   : > { %v1734_v47 = vpop.f32.mrf.mxu3 }
0x1d25   : > { %1818 = vrot.lane.b32.xlu1 %v1715_v49, %s3990_s3 }
0x1d7f   : > { %v1754_v30 = vpop.xlane.xlu1 %1753 }
0x1d80   : > { %v1757_v54 = vmul.f32 %v1754_v30, %v3378_v15 }
0x1d82   : > { %v1759_v60 = vsub.f32 %v1733_v57, %v1757_v54 }
0x1d84   : > { %v1761_v0 = vmul.f32 %v1759_v60, %v1759_v60 }
0x1d86   : > { %1763 = vadd.xlane.f32.xlu2 %v1761_v0 }
0x1d8e   : > { %1765 = vadd.xlane.f32.xlu2 %v1762_v4 }
0x1df9   : > { %v1764_v7 = vpop.xlane.xlu2 %1763 }
0x1dfa   : > { %v1767_v8 = vmul.f32 %v1764_v7, %v3378_v15 }
0x1dfc   : > { %v1769_v10 = vadd.f32 1e-05, %v1767_v8 }
0x1dfe   : > { %2769 = vrsqrt.f32 %v1769_v10  ;;  %vm1777_vm10 = vweird.f32 %v1769_v10 }
0x1e01   : > { %v1766_v11 = vpop.xlane.xlu2 %1765 }
0x1e02   : > { %v1768_v12 = vmul.f32 %v1766_v11, %v3378_v15 }
0x1e04   : > { %v2770_v19 = vpop.eup %2769  ;;  %v1770_v58 = vadd.f32 1e-05, %v1768_v12 }
0x1e05   : > { %v1772_v13 = vmul.f32 %v2770_v19, %v1769_v10  ;;  %vm1778_vm9 = vweird.f32 %v2770_v19 }
0x1e06   : > { %2771 = vrsqrt.f32 %v1770_v58  ;;  %vm1779_vm12 = vmor %vm1777_vm10, %vm1778_vm9  ;;  %vm1787_vm13 = vweird.f32 %v1770_v58 }
0x1e07   : > { %v1773_v21 = vmul.f32 %v2770_v19, %v1772_v13 }
0x1e09   : > { %v1774_v20 = vmul.f32 0.5, %v1773_v21 }
0x1e0b   : > { %v1775_v22 = vsub.f32 1.5, %v1774_v20 }
0x1e0c   : > { %v2772_v23 = vpop.eup %2771 }
0x1e0d   : > { %v1782_v14 = vmul.f32 %v2772_v23, %v1770_v58  ;;  %v1776_v48 = vmul.f32 %v2770_v19, %v1775_v22  ;;  %vm1788_vm7 = vweird.f32 %v2772_v23  ;;  %v1819_v58 = vpop.permute.xlu1 %1818 }
0x1e0e   : > { %vm1789_vm14 = vmor %vm1787_vm13, %vm1788_vm7 }
0x1e0f   : > { %v1783_v24 = vmul.f32 %v2772_v23, %v1782_v14  ;;  %v1780_v26 = vsel %vm1779_vm12, %v2770_v19, %v1776_v48 }
0x1e10   : > { %v1791_v34 = vmul.f32 %v1780_v26, %v1759_v60 }
0x1e11   : > { %v1784_v25 = vmul.f32 0.5, %v1783_v24 }
0x1e12   : > { %v1793_v42 = vmul.f32 %v3498_v43, %v1791_v34 }
0x1e13   : > { %v1785_v27 = vsub.f32 1.5, %v1784_v25 }
0x1e15   : > { %v1786_v28 = vmul.f32 %v2772_v23, %v1785_v27 }
0x1e17   : > { %v1790_v36 = vsel %vm1789_vm14, %v2772_v23, %v1786_v28 }
0x1e18   : > { %v1792_v37 = vmul.f32 %v1790_v36, %v1760_v3 }
0x1e1a   : > { %v1794_v39 = vmul.f32 %v3503_v50, %v1792_v37 }
0x1e1c   : > { %v1795_v46 = vadd.f32 %v1794_v39, %v1793_v42 }
0x1e1e   : > { %v1796_v57 = vadd.f32 %v1795_v46, %v3506_v55 }
0x1e20   : > { %2773 = vtanh.f32 %v1796_v57  ;;  %v2535_v49 = vmul.f32 -1.442695, %v1796_v57 }
0x1e22   : > { %2775 = vpow2.f32 %v2535_v49 }
0x1e26   : > { %v2774_v47 = vpop.eup %2773 }
0x1e27   : > { %1823 = vrot.lane.b32.xlu2 %v2774_v47, %s3093_s5 }
0x1e28   : > { %v2776_v30 = vpop.eup %2775 }
0x1e29   : > { %v1800_v54 = vadd.f32 1.0, %v2776_v30 }
0x1e2b   : > { %2777 = vrcp.f32 %v1800_v54  ;;  %v1812_v4 = vand.u32 2147483648, %v1800_v54  ;;  %vm1806_vm11 = vweird.f32 %v1800_v54  ;;  %v1810_v7 = vand.u32 2147483647, %v1800_v54 }
0x1e2d   : > { %v1813_v10 = vor.u32 1.1754944e-38, %v1812_v4  ;;  %vm1811_vm2 = vcmp.eq.f32.partialorder %v1810_v7, 8.507059e+37 }
0x1e31   : > { %v2778_v52 = vpop.eup %2777 }
0x1e32   : > { %v1802_v60 = vmul.f32 %v2778_v52, %v1800_v54  ;;  %vm1807_vm15 = vweird.f32 %v2778_v52 }
0x1e33   : > { %vm1808_vm0 = vmor %vm1806_vm11, %vm1807_vm15 }
0x1e34   : > { %v1803_v61 = vsub.f32 1.0, %v1802_v60 }
0x1e36   : > { %v1804_v0 = vmul.f32 %v2778_v52, %v1803_v61  ;;  %v1703_v61 = vmul.f32 %v3699_v31, %v3678_v53 }
0x1e38   : > { %v1805_v3 = vadd.f32 %v2778_v52, %v1804_v0 }
0x1e3a   : > { %v1809_v8 = vsel %vm1808_vm0, %v2778_v52, %v1805_v3 }
0x1e3b   : > { %v1814_v11 = vsel %vm1811_vm2, %v1813_v10, %v1809_v8 }
0x1e3c   : > { %v1821_v13 = vmul.f32 %v1819_v58, %v1814_v11 }
0x1e81   : > { %v1824_v12 = vpop.permute.xlu2 %1823 }
0x1e82   : > { %v1826_v19 = vmul.f32 %v1824_v12, %v1814_v11 }
0x1e84   : > { %1828 = vrot.lane.b32.xlu0 %v1826_v19, %s3990_s3 }
0x1ef6   : > { %v1829_v21 = vpop.permute.xlu0 %1828 }
0x1ef7   : > { %v1831_v20 = vadd.f32 %v1829_v21, %v1821_v13 }
0x1ef9   : > { %2779 = vtanh.f32 %v1831_v20  ;;  %v1871_v8 = vmul.f32 %v1831_v20, %v3699_v31 }
0x1eff   : > { %v2780_v22 = vpop.eup %2779 }
0x1f00   : > { %1834 = vrot.lane.b32.xlu2 %v2780_v22, %s3991_s2 }
0x1f5a   : > { %v1835_v23 = vpop.permute.xlu2 %1834 }
0x1f5b   : > { %v1837_v14 = vsel %vm775_vm1, %v1835_v23, 0.0 }
0x1f5c   : > { %1838 = vadd.xlane.f32.xlu2 %v1837_v14 }
0x1fcf   : > { %v1839_v48 = vpop.xlane.xlu2 %1838 }
0x1fd0   : > { %v1840_v24 = vmul.f32 %v1839_v48, %v3407_v6 }
0x1fd2   : > { %v1841_v25 = vsub.f32 %v2780_v22, %v1840_v24 }
0x1fd4   : > { %v1842_v26 = vmul.f32 %v1841_v25, %v1841_v25 }
0x1fd6   : > { %1844 = vrot.lane.b32.xlu0 %v1842_v26, %s3991_s2 }
0x2048   : > { %v1845_v27 = vpop.permute.xlu0 %1844 }
0x2049   : > { %v1847_v28 = vsel %vm775_vm1, %v1845_v27, 0.0 }
0x204a   : > { %1848 = vadd.xlane.f32.xlu1 %v1847_v28 }
0x20bd   : > { %v1849_v34 = vpop.xlane.xlu1 %1848 }
0x20be   : > { %v1850_v36 = vmul.f32 %v1849_v34, %v3407_v6 }
0x20c0   : > { %v1851_v37 = vadd.f32 1e-05, %v1850_v36 }
0x20c2   : > { %2781 = vrsqrt.f32 %v1851_v37  ;;  %vm1858_vm5 = vweird.f32 %v1851_v37 }
0x20c8   : > { %v2782_v42 = vpop.eup %2781 }
0x20c9   : > { %v1853_v39 = vmul.f32 %v2782_v42, %v1851_v37  ;;  %vm1859_vm4 = vweird.f32 %v2782_v42 }
0x20ca   : > { %vm1860_vm6 = vmor %vm1858_vm5, %vm1859_vm4 }
0x20cb   : > { %v1854_v46 = vmul.f32 %v2782_v42, %v1853_v39 }
0x20cd   : > { %v1855_v57 = vmul.f32 0.5, %v1854_v46 }
0x20cf   : > { %v1856_v47 = vsub.f32 1.5, %v1855_v57 }
0x20d1   : > { %v1857_v49 = vmul.f32 %v2782_v42, %v1856_v47 }
0x20d3   : > { %v1861_v30 = vsel %vm1860_vm6, %v2782_v42, %v1857_v49 }
0x20d4   : > { %v1862_v54 = vmul.f32 %v1861_v30, %v1841_v25 }
0x20d6   : > { %v1863_v52 = vmul.f32 %v1862_v54, %v3538_v62 }
0x20d8   : > { %v1864_v60 = vadd.f32 %v1863_v52, %v3540_v9 }
0x20da   : > { %1866 = vrot.lane.b32.xlu0 %v1864_v60, %s3093_s5 }
0x20e2   : > { %1705 = vrot.lane.b32.xlu0 %v3702_v63, %s3990_s3 }
0x20ea   : > { %1710 = vrot.lane.b32.xlu0 %v1703_v61, %s3991_s2 }
0x214c   : > { %v1867_v0 = vpop.permute.xlu0 %1866 }
0x214d   : > { %v1869_v3 = vmul.f32 %v1867_v0, %v1814_v11 }
0x214f   : > { %v1870_v4 = vmul.f32 %v1869_v3, %v3699_v31 }
0x2151   : > { %1873 = vrot.lane.b32.xlu0 %v1870_v4, %s3990_s3 }
0x2154   : > { %v1706_v7 = vpop.permute.xlu0 %1705 }
0x2155   : > { %1708 = vst.msk [vmem:[#allocation2] sm:$0xff] %vm775_vm1, %v1706_v7 }
0x2159   : > { %1878 = vrot.lane.b32.xlu0 %v1871_v8, %s3991_s2 }
0x215c   : > { %v1711_v10 = vpop.permute.xlu0 %1710 }
0x215d   : > { %1713 = vst.msk [vmem:[#allocation3] sm:$0xff] %vm775_vm1, %v1711_v10 }
0x21c3   : > { %v1874_v12 = vpop.permute.xlu0 %1873 }
0x21c4   : > { %1876 = vst.msk [vmem:[#allocation2 + $0x8] sm:$0xff] %vm775_vm1, %v1874_v12 }
0x21c5   : > { %2536 = vst.msk [vmem:[%s3358_s10 + $0x10] sm:$0xff] %vm775_vm1, %v1874_v12 }
0x21c8   : > { %1886 = sbr.rel (%p2519_p1) target bundleno = 8894 (0x22be), region = 124 }
0x21cb   : > { %v1879_v53 = vpop.permute.xlu0 %1878 }
0x21cc   : > { %1881 = vst.msk [vmem:[#allocation3 + $0x8] sm:$0xff] %vm775_vm1, %v1879_v53 }
0x21cd   : > { %v1903_v11 = vld [vmem:[#allocation17] sm:$0xff]  ;;  %v3106_v31 = vmov 0   ;;  %v1927_v58 = vld [vmem:[#allocation17 + $0x8] sm:$0xff]  ;;  %v1915_v13 = vld [vmem:[#allocation15 + $0x8] sm:$0xff] }
0x21ce   : > { %1905 = vrot.lane.b32.xlu1 %v1903_v11, %s3105_s4  ;;  %2783 = vset.pattern.permute.xlu0 %v3106_v31  ;;  %v1888_v19 = vsel %vm1579_vm3, 1, %v3106_v31  ;;  %v1887_v21 = vld [vmem:[#allocation15] sm:$0xff] }
0x21cf   : > { %1890 = vperm.xlu0 %2783, %v1888_v19   ;;  %1929 = vrot.lane.b32.xlu2 %v1927_v58, %s3105_s4 }
0x21d6   : > { %1917 = vrot.lane.b32.xlu1 %v1915_v13, %s3107_s26 }
0x21d7   : > { %1894 = vrot.lane.b32.xlu0 %v1887_v21, %s3107_s26 }
0x2229   : > { %v1930_v59 = vpop.permute.xlu2 %1929 }
0x2240   : > { %v1906_v20 = vpop.permute.xlu1 %1905 }
0x2241   : > { %v1891_v22 = vpop.permute.xlu0 %1890 }
0x2242   : > { %vm1892_vm8 = vcmp.eq.s32.totalorder %v1891_v22, 1 }
0x2243   : > { %v1908_v23 = vsel %vm1892_vm8, %v1703_v61, %v1906_v20  ;;  %v1932_v26 = vsel %vm1892_vm8, %v1871_v8, %v1930_v59 }
0x2244   : > { %1910 = vrot.lane.b32.xlu0 %v1908_v23, %s3107_s26 }
0x2248   : > { %v1918_v14 = vpop.permute.xlu1 %1917 }
0x2249   : > { %v1920_v48 = vsel %vm1892_vm8, %v1870_v4, %v1918_v14  ;;  %v1895_v24 = vpop.permute.xlu0 %1894 }
0x224a   : > { %v1897_v25 = vsel %vm1892_vm8, %v3702_v63, %v1895_v24  ;;  %1922 = vrot.lane.b32.xlu1 %v1920_v48, %s3105_s4 }
0x224b   : > { %1899 = vrot.lane.b32.xlu2 %v1897_v25, %s3105_s4 }
0x2253   : > { %1934 = vrot.lane.b32.xlu2 %v1932_v26, %s3107_s26 }
0x22a5   : > { %v1900_v27 = vpop.permute.xlu2 %1899 }
0x22a6   : > { %1902 = vst.msk [vmem:[#allocation15] sm:$0xff] %vm775_vm1, %v1900_v27 }
0x22ad   : > { %v1935_v28 = vpop.permute.xlu2 %1934 }
0x22ae   : > { %1937 = vst.msk [vmem:[#allocation17 + $0x8] sm:$0xff] %vm775_vm1, %v1935_v28 }
0x22b6   : > { %v1911_v34 = vpop.permute.xlu0 %1910 }
0x22b7   : > { %1913 = vst.msk [vmem:[#allocation17] sm:$0xff] %vm775_vm1, %v1911_v34 }
0x22bc   : > { %v1923_v36 = vpop.permute.xlu1 %1922 }
0x22bd   : > { %1925 = vst.msk [vmem:[#allocation15 + $0x8] sm:$0xff] %vm775_vm1, %v1923_v36 }
0x22be PF: > { %1956 = vmatpush.bf16.msra.mxu1 %v3365_v1  ;;  %v1944_v63 = vld [vmem:[#allocation2] sm:$0xff]  ;;  %2784 = vset.pattern.permute.xlu1 %v3097_v17  ;;  %v2540_v0 = vld [vmem:[%s3344_s29 + $0x18] sm:$0xff]  ;;  %v1945_v8 = vld [vmem:[#allocation3] sm:$0xff]  ;;  %s3992_s27 = smov 32   ;;  %s3993_s29 = smov 96  }
0x22bf   : > { %2110 = vmatpush.bf16.msra.mxu3 %v3449_v40  ;;  %2093 = vmatpush.bf16.msra.mxu2 %v3456_v44  ;;  %v1946_v37 = vpack.c.bf16 %v1944_v63, %v1944_v63  ;;  %s1938_s24 = sadd.s32 3, %s3421_s22  ;;  %s3110_s22 = smov (!%p2519_p1), 96  }
0x22c0   : > { %2785 = vset.pattern.permute.xlu0 %v3097_v17  ;;  %v3778_v34 = vstv %s1938_s24 }
0x22c1   : > { %vm1943_vm15 = vcmp.eq.s32.totalorder %v3778_v34, %v3430_v18  ;;  %vm1940_vm11 = vcmp.lt.s32.totalorder %v3778_v34, %v3426_v16 }
0x22c2   : > { %1957 = vmatpush.bf16.msra.mxu1 %v3367_v2 }
0x22c3   : > { %2111 = vmatpush.bf16.msra.mxu3 %v3452_v41  ;;  %2094 = vmatpush.bf16.msra.mxu2 %v3459_v45 }
0x22c5   : > { %2539 = vmatmul.msk.bf16.vlgmr.msra.gmra.mxu1 %vm775_vm1, %v1946_v37 }
0x2342   : > { %v1959_v42 = vpop.f32.mrf.mxu1 }
0x2343   : > { %v1960_v1 = vadd.f32 %v3375_v5, %v1959_v42 }
0x2345   : > { %1965 = vadd.xlane.f32.xlu0 %v1960_v1 }
0x234a   : > { %v1961_v39 = vpop.f32.mrf.mxu1 }
0x23b8   : > { %v1966_v46 = vpop.xlane.xlu0 %1965 }
0x23b9   : > { %v1967_v40 = vmul.f32 %v1966_v46, %v3378_v15 }
0x23bb   : > { %v1968_v44 = vsub.f32 %v1960_v1, %v1967_v40  ;;  %v2538_v1 = vsel %vm1940_vm11, 1.0, %v3098_v38 }
0x23bd   : > { %v1969_v57 = vmul.f32 %v1968_v44, %v1968_v44 }
0x23bf   : > { %1970 = vadd.xlane.f32.xlu0 %v1969_v57 }
0x2432   : > { %v1971_v17 = vpop.xlane.xlu0 %1970 }
0x2433   : > { %v1972_v2 = vmul.f32 %v1971_v17, %v3378_v15 }
0x2435   : > { %v1973_v41 = vadd.f32 1e-05, %v1972_v2 }
0x2437   : > { %2786 = vrsqrt.f32 %v1973_v41  ;;  %vm1980_vm9 = vweird.f32 %v1973_v41 }
0x243d   : > { %v2787_v45 = vpop.eup %2786 }
0x243e   : > { %v1975_v47 = vmul.f32 %v2787_v45, %v1973_v41  ;;  %vm1981_vm3 = vweird.f32 %v2787_v45 }
0x243f   : > { %vm1982_vm10 = vmor %vm1980_vm9, %vm1981_vm3 }
0x2440   : > { %v1976_v49 = vmul.f32 %v2787_v45, %v1975_v47 }
0x2442   : > { %v1977_v30 = vmul.f32 0.5, %v1976_v49 }
0x2444   : > { %v1978_v54 = vsub.f32 1.5, %v1977_v30 }
0x2446   : > { %v1979_v5 = vmul.f32 %v2787_v45, %v1978_v54 }
0x2448   : > { %v1983_v52 = vsel %vm1982_vm10, %v2787_v45, %v1979_v5  ;;  %v2078_v5 = vld [vmem:[#allocation2 + $0x8] sm:$0xff] }
0x2449   : > { %v1984_v60 = vmul.f32 %v1983_v52, %v1968_v44  ;;  %v2100_v52 = vpack.c.bf16 %v2078_v5, %v2078_v5 }
0x244b   : > { %v1985_v61 = vmul.f32 %v3385_v29, %v1984_v60  ;;  %2543 = vmatmul.msk.bf16.vlgmr.msra.gmra.mxu3 %vm775_vm1, %v2100_v52 }
0x244d   : > { %v1986_v3 = vadd.f32 %v3390_v32, %v1985_v61 }
0x244f   : > { %v1987_v4 = vadd.f32 %v2540_v0, %v1986_v3 }
0x2451   : > { %2788 = vtanh.f32 %v1987_v4  ;;  %v2541_v10 = vmul.f32 -1.442695, %v1987_v4 }
0x2453   : > { %2790 = vpow2.f32 %v2541_v10 }
0x2457   : > { %v2789_v7 = vpop.eup %2788 }
0x2458   : > { %2014 = vrot.lane.b32.xlu1 %v2789_v7, %s3093_s5 }
0x2459   : > { %v2791_v12 = vpop.eup %2790 }
0x245a   : > { %v1991_v53 = vadd.f32 1.0, %v2791_v12 }
0x245c   : > { %2792 = vrcp.f32 %v1991_v53  ;;  %v2003_v32 = vand.u32 2147483648, %v1991_v53  ;;  %vm1997_vm7 = vweird.f32 %v1991_v53  ;;  %v2001_v13 = vand.u32 2147483647, %v1991_v53 }
0x245e   : > { %v2004_v20 = vor.u32 1.1754944e-38, %v2003_v32  ;;  %vm2002_vm14 = vcmp.eq.f32.partialorder %v2001_v13, 8.507059e+37 }
0x2460   : > { %2009 = vrot.lane.b32.xlu1 %v1945_v8, %s3992_s27 }
0x2462   : > { %v2793_v11 = vpop.eup %2792 }
0x2463   : > { %v1993_v31 = vmul.f32 %v2793_v11, %v1991_v53  ;;  %vm1998_vm12 = vweird.f32 %v2793_v11 }
0x2464   : > { %vm1999_vm13 = vmor %vm1997_vm7, %vm1998_vm12 }
0x2465   : > { %v1994_v19 = vsub.f32 1.0, %v1993_v31 }
0x2467   : > { %v1995_v29 = vmul.f32 %v2793_v11, %v1994_v19 }
0x2469   : > { %v1996_v58 = vadd.f32 %v2793_v11, %v1995_v29 }
0x246b   : > { %v2000_v21 = vsel %vm1999_vm13, %v2793_v11, %v1996_v58  ;;  %v2079_v11 = vld [vmem:[#allocation3 + $0x8] sm:$0xff] }
0x246c   : > { %v2005_v23 = vsel %vm2002_vm14, %v2004_v20, %v2000_v21 }
0x24ca   : > { %v2015_v22 = vpop.permute.xlu1 %2014 }
0x24cb   : > { %v2017_v14 = vmul.f32 %v2015_v22, %v2005_v23 }
0x24cd   : > { %2019 = vrot.lane.b32.xlu2 %v2017_v14, %s3992_s27 }
0x24d2   : > { %v2010_v48 = vpop.permute.xlu1 %2009 }
0x24d3   : > { %v2012_v24 = vmul.f32 %v2010_v48, %v2005_v23 }
0x2527   : > { %v2020_v25 = vpop.permute.xlu2 %2019 }
0x2528   : > { %v3772_v59 = vadd.f32 %v2020_v25, %v2012_v24 }
0x252a   : > { %2794 = vtanh.f32 %v3772_v59 }
0x2530   : > { %v2795_v26 = vpop.eup %2794 }
0x2531   : > { %2025 = vrot.lane.b32.xlu2 %v2795_v26, %s3993_s29 }
0x258b   : > { %v2026_v27 = vpop.permute.xlu2 %2025 }
0x258c   : > { %v2028_v28 = vsel %vm775_vm1, %v2026_v27, 0.0 }
0x258d   : > { %2029 = vadd.xlane.f32.xlu0 %v2028_v28 }
0x2600   : > { %v2030_v36 = vpop.xlane.xlu0 %2029 }
0x2601   : > { %v2031_v63 = vmul.f32 %v2030_v36, %v3407_v6 }
0x2603   : > { %v2032_v37 = vsub.f32 %v2795_v26, %v2031_v63 }
0x2605   : > { %v2033_v42 = vmul.f32 %v2032_v37, %v2032_v37 }
0x2607   : > { %2035 = vrot.lane.b32.xlu1 %v2033_v42, %s3993_s29 }
0x260f   : > { %2063 = vperm.xlu1 %2784, %v2538_v1  }
0x2679   : > { %v2036_v39 = vpop.permute.xlu1 %2035 }
0x267a   : > { %v2038_v46 = vsel %vm775_vm1, %v2036_v39, 0.0 }
0x267b   : > { %2039 = vadd.xlane.f32.xlu2 %v2038_v46 }
0x2681   : > { %v3793_v0 = vpop.permute.xlu1 %2063 }
0x26ee   : > { %v2040_v40 = vpop.xlane.xlu2 %2039 }
0x26ef   : > { %v2041_v44 = vmul.f32 %v2040_v40, %v3407_v6 }
0x26f1   : > { %v2042_v57 = vadd.f32 1e-05, %v2041_v44 }
0x26f3   : > { %2796 = vrsqrt.f32 %v2042_v57  ;;  %vm2049_vm2 = vweird.f32 %v2042_v57 }
0x26f9   : > { %v2797_v17 = vpop.eup %2796 }
0x26fa   : > { %v2044_v2 = vmul.f32 %v2797_v17, %v2042_v57  ;;  %vm2050_vm0 = vweird.f32 %v2797_v17 }
0x26fb   : > { %vm2051_vm4 = vmor %vm2049_vm2, %vm2050_vm0 }
0x26fc   : > { %v2045_v41 = vmul.f32 %v2797_v17, %v2044_v2 }
0x26fe   : > { %v2046_v45 = vmul.f32 0.5, %v2045_v41 }
0x2700   : > { %v2047_v47 = vsub.f32 1.5, %v2046_v45 }
0x2702   : > { %v2048_v16 = vmul.f32 %v2797_v17, %v2047_v47 }
0x2704   : > { %v2052_v38 = vsel %vm2051_vm4, %v2797_v17, %v2048_v16 }
0x2705   : > { %v2053_v49 = vmul.f32 %v2052_v38, %v2032_v37 }
0x2707   : > { %v2054_v30 = vmul.f32 %v2053_v49, %v3440_v33  ;;  %v2113_v33 = vpop.f32.mrf.mxu3 }
0x2709   : > { %v2055_v54 = vadd.f32 %v2054_v30, %v3442_v35  ;;  %v2114_v35 = vadd.f32 %v3474_v51, %v2113_v33 }
0x270b   : > { %2057 = vrot.lane.b32.xlu0 %v2055_v54, %s3093_s5 }
0x270f   : > { %v2115_v7 = vpop.f32.mrf.mxu3 }
0x2735   : > { %2119 = vadd.xlane.f32.xlu0 %v2114_v35 }
0x277d   : > { %v2058_v60 = vpop.permute.xlu0 %2057 }
0x277e   : > { %v2060_v61 = vmul.f32 %v2058_v60, %v2005_v23 }
0x2780   : > { %v3796_v3 = vmul.f32 %v3793_v0, %v2060_v61 }
0x2782   : > { %v2080_v4 = vpack.c.bf16 %v3796_v3, %v3796_v3 }
0x2784   : > { %2082 = vrot.lane.b32.xlu1 %v2080_v4, %s3992_s27 }
0x27a8   : > { %v2120_v29 = vpop.xlane.xlu0 %2119 }
0x27a9   : > { %v2122_v51 = vmul.f32 %v2120_v29, %v3378_v15 }
0x27ab   : > { %v2124_v13 = vsub.f32 %v2114_v35, %v2122_v51 }
0x27ad   : > { %v2126_v21 = vmul.f32 %v2124_v13, %v2124_v13 }
0x27f6   : > { %v2083_v8 = vpop.permute.xlu1 %2082 }
0x27f7   : > { %2542 = vmatmul.msk.bf16.vlgmr.msra.gmra.mxu2 %vm775_vm1, %v2083_v8 }
0x287a   : > { %v2096_v10 = vpop.f32.mrf.mxu2 }
0x287b   : > { %v2097_v12 = vadd.f32 %v3481_v56, %v2096_v10 }
0x287d   : > { %2117 = vadd.xlane.f32.xlu1 %v2097_v12 }
0x2882   : > { %v2098_v53 = vpop.f32.mrf.mxu2 }
0x2896   : > { %2182 = vrot.lane.b32.xlu1 %v2079_v11, %s3992_s27 }
0x28f0   : > { %v2118_v31 = vpop.xlane.xlu1 %2117 }
0x28f1   : > { %v2121_v19 = vmul.f32 %v2118_v31, %v3378_v15 }
0x28f3   : > { %v2123_v58 = vsub.f32 %v2097_v12, %v2121_v19 }
0x28f5   : > { %v2125_v32 = vmul.f32 %v2123_v58, %v2123_v58 }
0x28f7   : > { %2127 = vadd.xlane.f32.xlu2 %v2125_v32 }
0x28ff   : > { %2129 = vadd.xlane.f32.xlu2 %v2126_v21 }
0x2908   : > { %v2183_v7 = vpop.permute.xlu1 %2182 }
0x296a   : > { %v2128_v20 = vpop.xlane.xlu2 %2127 }
0x296b   : > { %v2131_v56 = vmul.f32 %v2128_v20, %v3378_v15 }
0x296d   : > { %v2133_v22 = vadd.f32 1e-05, %v2131_v56 }
0x296f   : > { %2798 = vrsqrt.f32 %v2133_v22  ;;  %vm2141_vm6 = vweird.f32 %v2133_v22 }
0x2972   : > { %v2130_v23 = vpop.xlane.xlu2 %2129 }
0x2973   : > { %v2132_v14 = vmul.f32 %v2130_v23, %v3378_v15 }
0x2975   : > { %v2799_v48 = vpop.eup %2798  ;;  %v2134_v24 = vadd.f32 1e-05, %v2132_v14 }
0x2976   : > { %v2136_v25 = vmul.f32 %v2799_v48, %v2133_v22  ;;  %vm2142_vm5 = vweird.f32 %v2799_v48 }
0x2977   : > { %2800 = vrsqrt.f32 %v2134_v24  ;;  %vm2143_vm8 = vmor %vm2141_vm6, %vm2142_vm5  ;;  %vm2151_vm9 = vweird.f32 %v2134_v24 }
0x2978   : > { %v2137_v26 = vmul.f32 %v2799_v48, %v2136_v25 }
0x297a   : > { %v2138_v27 = vmul.f32 0.5, %v2137_v26 }
0x297c   : > { %v2139_v28 = vsub.f32 1.5, %v2138_v27 }
0x297d   : > { %v2801_v36 = vpop.eup %2800 }
0x297e   : > { %v2146_v63 = vmul.f32 %v2801_v36, %v2134_v24  ;;  %v2140_v37 = vmul.f32 %v2799_v48, %v2139_v28  ;;  %vm2152_vm3 = vweird.f32 %v2801_v36 }
0x297f   : > { %vm2153_vm10 = vmor %vm2151_vm9, %vm2152_vm3 }
0x2980   : > { %v2147_v42 = vmul.f32 %v2801_v36, %v2146_v63  ;;  %v2144_v39 = vsel %vm2143_vm8, %v2799_v48, %v2140_v37 }
0x2981   : > { %v2155_v15 = vmul.f32 %v2144_v39, %v2123_v58 }
0x2982   : > { %v2148_v1 = vmul.f32 0.5, %v2147_v42 }
0x2983   : > { %v2157_v17 = vmul.f32 %v3498_v43, %v2155_v15 }
0x2984   : > { %v2149_v46 = vsub.f32 1.5, %v2148_v1 }
0x2986   : > { %v2150_v40 = vmul.f32 %v2801_v36, %v2149_v46 }
0x2988   : > { %v2154_v44 = vsel %vm2153_vm10, %v2801_v36, %v2150_v40 }
0x2989   : > { %v2156_v57 = vmul.f32 %v2154_v44, %v2124_v13 }
0x298b   : > { %v2158_v2 = vmul.f32 %v3503_v50, %v2156_v57 }
0x298d   : > { %v2159_v41 = vadd.f32 %v2158_v2, %v2157_v17 }
0x298f   : > { %v2160_v45 = vadd.f32 %v2159_v41, %v3506_v55 }
0x2991   : > { %2802 = vtanh.f32 %v2160_v45  ;;  %v2544_v16 = vmul.f32 -1.442695, %v2160_v45 }
0x2993   : > { %2804 = vpow2.f32 %v2544_v16 }
0x2997   : > { %v2803_v47 = vpop.eup %2802 }
0x2998   : > { %2187 = vrot.lane.b32.xlu2 %v2803_v47, %s3093_s5 }
0x2999   : > { %v2805_v38 = vpop.eup %2804 }
0x299a   : > { %v2164_v49 = vadd.f32 1.0, %v2805_v38 }
0x299c   : > { %2806 = vrcp.f32 %v2164_v49  ;;  %v2176_v43 = vand.u32 2147483648, %v2164_v49  ;;  %vm2170_vm7 = vweird.f32 %v2164_v49  ;;  %v2174_v50 = vand.u32 2147483647, %v2164_v49 }
0x299e   : > { %v2177_v61 = vor.u32 1.1754944e-38, %v2176_v43  ;;  %vm2175_vm14 = vcmp.eq.f32.partialorder %v2174_v50, 8.507059e+37 }
0x29a2   : > { %v2807_v30 = vpop.eup %2806 }
0x29a3   : > { %v2166_v54 = vmul.f32 %v2807_v30, %v2164_v49  ;;  %vm2171_vm12 = vweird.f32 %v2807_v30 }
0x29a4   : > { %vm2172_vm13 = vmor %vm2170_vm7, %vm2171_vm12 }
0x29a5   : > { %v2167_v5 = vsub.f32 1.0, %v2166_v54 }
0x29a7   : > { %v2168_v52 = vmul.f32 %v2807_v30, %v2167_v5 }
0x29a9   : > { %v2169_v60 = vadd.f32 %v2807_v30, %v2168_v52 }
0x29ab   : > { %v2173_v55 = vsel %vm2172_vm13, %v2807_v30, %v2169_v60 }
0x29ac   : > { %v2178_v4 = vsel %vm2175_vm14, %v2177_v61, %v2173_v55 }
0x29ad   : > { %v2185_v8 = vmul.f32 %v2183_v7, %v2178_v4 }
0x29f2   : > { %v2188_v33 = vpop.permute.xlu2 %2187 }
0x29f3   : > { %v2190_v35 = vmul.f32 %v2188_v33, %v2178_v4 }
0x29f5   : > { %2192 = vrot.lane.b32.xlu0 %v2190_v35, %s3992_s27 }
0x2a67   : > { %v2193_v10 = vpop.permute.xlu0 %2192 }
0x2a68   : > { %v2195_v12 = vadd.f32 %v2193_v10, %v2185_v8 }
0x2a6a   : > { %2808 = vtanh.f32 %v2195_v12 }
0x2a70   : > { %v2809_v53 = vpop.eup %2808 }
0x2a71   : > { %2198 = vrot.lane.b32.xlu2 %v2809_v53, %s3993_s29 }
0x2acb   : > { %v2199_v11 = vpop.permute.xlu2 %2198 }
0x2acc   : > { %v2201_v31 = vsel %vm775_vm1, %v2199_v11, 0.0 }
0x2acd   : > { %2202 = vadd.xlane.f32.xlu2 %v2201_v31 }
0x2b40   : > { %v2203_v19 = vpop.xlane.xlu2 %2202 }
0x2b41   : > { %v2204_v29 = vmul.f32 %v2203_v19, %v3407_v6 }
0x2b43   : > { %v2205_v58 = vsub.f32 %v2809_v53, %v2204_v29 }
0x2b45   : > { %v2206_v51 = vmul.f32 %v2205_v58, %v2205_v58 }
0x2b47   : > { %2208 = vrot.lane.b32.xlu0 %v2206_v51, %s3993_s29 }
0x2bb9   : > { %v2209_v32 = vpop.permute.xlu0 %2208 }
0x2bba   : > { %v2211_v13 = vsel %vm775_vm1, %v2209_v32, 0.0 }
0x2bbb   : > { %2212 = vadd.xlane.f32.xlu1 %v2211_v13 }
0x2c2e   : > { %v2213_v21 = vpop.xlane.xlu1 %2212 }
0x2c2f   : > { %v2214_v20 = vmul.f32 %v2213_v21, %v3407_v6  ;;  %v2067_v6 = vmul.f32 %v3793_v0, %v3772_v59 }
0x2c31   : > { %v2215_v56 = vadd.f32 1e-05, %v2214_v20 }
0x2c33   : > { %2810 = vrsqrt.f32 %v2215_v56  ;;  %vm2222_vm0 = vweird.f32 %v2215_v56 }
0x2c39   : > { %v2811_v22 = vpop.eup %2810 }
0x2c3a   : > { %v2217_v23 = vmul.f32 %v2811_v22, %v2215_v56  ;;  %vm2223_vm11 = vweird.f32 %v2811_v22 }
0x2c3b   : > { %vm2224_vm2 = vmor %vm2222_vm0, %vm2223_vm11 }
0x2c3c   : > { %v2218_v14 = vmul.f32 %v2811_v22, %v2217_v23 }
0x2c3e   : > { %v2219_v48 = vmul.f32 0.5, %v2218_v14 }
0x2c40   : > { %v2220_v24 = vsub.f32 1.5, %v2219_v48 }
0x2c42   : > { %v2221_v25 = vmul.f32 %v2811_v22, %v2220_v24 }
0x2c44   : > { %v2225_v26 = vsel %vm2224_vm2, %v2811_v22, %v2221_v25 }
0x2c45   : > { %v2226_v27 = vmul.f32 %v2225_v26, %v2205_v58 }
0x2c47   : > { %v2227_v28 = vmul.f32 %v2226_v27, %v3538_v62 }
0x2c49   : > { %v2228_v36 = vadd.f32 %v2227_v28, %v3540_v9  ;;  %v2235_v9 = vmul.f32 %v2195_v12, %v3793_v0 }
0x2c4b   : > { %2230 = vrot.lane.b32.xlu0 %v2228_v36, %s3093_s5  ;;  %s3108_s5 = smov (!%p2519_p1), 32  }
0x2c53   : > { %2069 = vrot.lane.b32.xlu0 %v3796_v3, %s3992_s27 }
0x2c5b   : > { %2074 = vrot.lane.b32.xlu0 %v2067_v6, %s3993_s29 }
0x2cbd   : > { %v2231_v63 = vpop.permute.xlu0 %2230 }
0x2cbe   : > { %v2233_v37 = vmul.f32 %v2231_v63, %v2178_v4 }
0x2cc0   : > { %v2234_v42 = vmul.f32 %v2233_v37, %v3793_v0 }
0x2cc2   : > { %2237 = vrot.lane.b32.xlu0 %v2234_v42, %s3992_s27 }
0x2cc5   : > { %v2070_v62 = vpop.permute.xlu0 %2069 }
0x2cc6   : > { %2072 = vst.msk [vmem:[#allocation2] sm:$0xff] %vm775_vm1, %v2070_v62 }
0x2cca   : > { %2242 = vrot.lane.b32.xlu0 %v2235_v9, %s3993_s29 }
0x2ccd   : > { %v2075_v1 = vpop.permute.xlu0 %2074 }
0x2cce   : > { %2077 = vst.msk [vmem:[#allocation3] sm:$0xff] %vm775_vm1, %v2075_v1 }
0x2d34   : > { %v2238_v39 = vpop.permute.xlu0 %2237 }
0x2d35   : > { %2240 = vst.msk [vmem:[#allocation2 + $0x8] sm:$0xff] %vm775_vm1, %v2238_v39 }
0x2d36   : > { %2545 = vst.msk [vmem:[%s3358_s10 + $0x18] sm:$0xff] %vm775_vm1, %v2238_v39 }
0x2d39   : > { %2250 = sbr.rel (%p2519_p1) target bundleno = 11823 (0x2e2f), region = 128 }
0x2d3c   : > { %v2243_v59 = vpop.permute.xlu0 %2242 }
0x2d3d   : > { %2245 = vst.msk [vmem:[#allocation3 + $0x8] sm:$0xff] %vm775_vm1, %v2243_v59 }
0x2d3e   : > { %v2267_v46 = vld [vmem:[#allocation17] sm:$0xff]  ;;  %v3109_v0 = vmov 0   ;;  %v2291_v15 = vld [vmem:[#allocation17 + $0x8] sm:$0xff]  ;;  %v2279_v44 = vld [vmem:[#allocation15 + $0x8] sm:$0xff] }
0x2d3f   : > { %2269 = vrot.lane.b32.xlu1 %v2267_v46, %s3108_s5  ;;  %2812 = vset.pattern.permute.xlu0 %v3109_v0  ;;  %v2252_v40 = vsel %vm1943_vm15, 1, %v3109_v0  ;;  %v2251_v57 = vld [vmem:[#allocation15] sm:$0xff] }
0x2d40   : > { %2254 = vperm.xlu0 %2812, %v2252_v40   ;;  %2293 = vrot.lane.b32.xlu2 %v2291_v15, %s3108_s5 }
0x2d47   : > { %2281 = vrot.lane.b32.xlu1 %v2279_v44, %s3110_s22 }
0x2d48   : > { %2258 = vrot.lane.b32.xlu0 %v2251_v57, %s3110_s22 }
0x2d9a   : > { %v2294_v18 = vpop.permute.xlu2 %2293 }
0x2db1   : > { %v2270_v17 = vpop.permute.xlu1 %2269 }
0x2db2   : > { %v2255_v2 = vpop.permute.xlu0 %2254 }
0x2db3   : > { %vm2256_vm4 = vcmp.eq.s32.totalorder %v2255_v2, 1 }
0x2db4   : > { %v2272_v41 = vsel %vm2256_vm4, %v2067_v6, %v2270_v17  ;;  %v2296_v34 = vsel %vm2256_vm4, %v2235_v9, %v2294_v18 }
0x2db5   : > { %2274 = vrot.lane.b32.xlu0 %v2272_v41, %s3110_s22 }
0x2db9   : > { %v2282_v45 = vpop.permute.xlu1 %2281 }
0x2dba   : > { %v2284_v47 = vsel %vm2256_vm4, %v2234_v42, %v2282_v45  ;;  %v2259_v16 = vpop.permute.xlu0 %2258 }
0x2dbb   : > { %v2261_v38 = vsel %vm2256_vm4, %v3796_v3, %v2259_v16  ;;  %2286 = vrot.lane.b32.xlu1 %v2284_v47, %s3108_s5 }
0x2dbc   : > { %2263 = vrot.lane.b32.xlu2 %v2261_v38, %s3108_s5 }
0x2dc4   : > { %2298 = vrot.lane.b32.xlu2 %v2296_v34, %s3110_s22 }
0x2e16   : > { %v2264_v49 = vpop.permute.xlu2 %2263 }
0x2e17   : > { %2266 = vst.msk [vmem:[#allocation15] sm:$0xff] %vm775_vm1, %v2264_v49 }
0x2e1e   : > { %v2299_v30 = vpop.permute.xlu2 %2298 }
0x2e1f   : > { %2301 = vst.msk [vmem:[#allocation17 + $0x8] sm:$0xff] %vm775_vm1, %v2299_v30 }
0x2e27   : > { %v2275_v54 = vpop.permute.xlu0 %2274 }
0x2e28   : > { %2277 = vst.msk [vmem:[#allocation17] sm:$0xff] %vm775_vm1, %v2275_v54 }
0x2e2d   : > { %v2287_v5 = vpop.permute.xlu1 %2286 }
0x2e2e   : > { %2289 = vst.msk [vmem:[#allocation15 + $0x8] sm:$0xff] %vm775_vm1, %v2287_v5 }
0x2e2f PF: > { %s3111_s30 = smov [#allocation15]   ;;  %s2331_s2 = sshll.u32 %s3925_s20, 4  ;;  %s2332_s2 = int_to_ptr.hbm [resolvable:$true] %s2331_s2 }
0x2e30   : > { %s2329_s9 = sshll.u32 %s3111_s30, 4  ;;  %s3946_s19 = smov 128   ;;  %s2330_s9 = int_to_ptr.vmem [resolvable:$true] %s2329_s9 }
0x2e31   : > { %s3113_s4 = smov 8   ;;  %p3994_p4 = scmp.eq.s32.totalorder %s3249_s15, 1 }
0x2e32   : > { %s2563_s26 = sshll.u32 %s3249_s15, 5  ;;  %s3995_s24 = sld [smem:[#allocation40_spill]] }
0x2e33   : > { %2580 = dma.vmem_to_hbm [thread:$0]  (%p3994_p4), %s2330_s9, 256, %s2332_s2, [#allocation16], %s3946_s19, %s3946_s19, %s3113_s4  }
0x2e34   : > { %s2315_s22 = sshll.u32 %s3358_s10, 4  ;;  %s2303_s25 = scalar_lea.sflag [#allocation8], %s3340_s23  ;;  %s2316_s22 = int_to_ptr.vmem [resolvable:$true] %s2315_s22 }
0x2e38   : > { %s2314_s5 = scalar_lea.hbm %s3995_s24, %s2563_s26  ;;  %s2993_s9 = scalar_lea.hbm %s3995_s24, 64 }
0x2e39   : > { %s2317_s30 = sshll.u32 %s2314_s5, 4  ;;  %s2318_s30 = int_to_ptr.hbm [resolvable:$true] %s2317_s30 }
0x2e3a   : > { %s2987_s3 = sshra.s32 %s2318_s30, 4  ;;  %s2988_s3 = int_to_ptr.hbm [resolvable:$true] %s2987_s3 }
0x2e3b   : > { %s2989_s1 = scalar_lea.hbm %s2988_s3, 32  ;;  %p2994_p11 = scmp.lt.s32.totalorder %s2988_s3, %s3995_s24 }
0x2e3c   : > { %p2990_p8 = scmp.ne.s32.totalorder %s2988_s3, %s2989_s1  ;;  %p2995_p13 = scmp.lt.s32.totalorder %s2993_s9, %s2989_s1 }
0x2e3e   : > { %p2991_p9 = pnand %p2990_p8, %p3312_p10  ;;  %p2996_p0 = por %p2995_p13, %p2994_p11 }
0x2e40   : > { %p2992_p12 = pneg %p2991_p9 }
0x2e42   : > { %p2997_p3 = pnand %p2996_p0, %p2992_p12 }
0x2e44   : > { %3000 = shalt.err (!%p2997_p3)
}
0x2e45   : > { %s3996_s23 = smov 128   ;;  %s3114_s10 = smov [#allocation17]  }
0x2e46   : > { %2578 = dma.vmem_to_hbm [thread:$0]  (%p3312_p10), %s2316_s22, 512, %s2318_s30, %s2303_s25, %s3996_s23, %s3996_s23, %s3113_s4  }
0x2e47   : > { %s2343_s26 = sshll.u32 %s3114_s10, 4  ;;  %s3997_s27 = sld [smem:[#allocation41_spill]]  ;;  %s2344_s26 = int_to_ptr.vmem [resolvable:$true] %s2343_s26 }
0x2e48   : > { %p3998_p5 = pmov %p3994_p4  ;;  %p3999_p7 = pmov %p3994_p4 }
0x2e4d   : > { %s2345_s29 = sshll.u32 %s3997_s27, 4  ;;  %s2346_s29 = int_to_ptr.hbm [resolvable:$true] %s2345_s29 }
0x2e4e   : > { %2582 = dma.vmem_to_hbm [thread:$0]  (%p3998_p5), %s2344_s26, 256, %s2346_s29, [#allocation16], %s3996_s23, %s3996_s23, %s3113_s4  }
0x2e4f   : > { %3060 = dma.done.wait (%p3999_p7), [#allocation16], 512   ;;  %p4000_p2 = pmov %p3994_p4 }
0x2e51   : > { %3062 = vsyncadd (%p4000_p2), [#allocation16], 4294966784 }
0x2e52 PF: > { %s4001_s21 = sld [smem:[#allocation24_spill]]  ;;  %p4003_p10 = scmp.ge.s32.totalorder %s3081_s0, 2 }
0x2e54   : > { %p2603_p1 = pnand %p4003_p10, %p3263_p6 }
0x2e56   : > { %p2604_p4 = pneg %p2603_p1 }
0x2e58   : > { %s2370_s19 = sand.u32 1, %s4001_s21  }
0x2e59   : > { %s2371_s5 = scalar_lea.sflag [#allocation8], %s2370_s19 }
0x2e5a   : > { %3064 = dma.done.wait (%p2604_p4), %s2371_s5, 512  }
0x2e5b   : > { %3066 = vsyncadd (%p2604_p4), %s2371_s5, 4294966784  ;;  %s4004_s0 = sld [smem:[#allocation27_spill]]  ;;  %s4007_s3 = smov %s3073_s28 }
0x2e5c   : > { %s4005_s4 = sld [smem:[#allocation25_spill]] }
0x2e5d   : > { %s4006_s29 = sld [smem:[#allocation28_spill]] }
0x2e61   : > { %p46_p8 = scmp.ge.s32.totalorder %s4004_s0, 4  }
0x2e62   : > { %s4008_s28 = smov %s4005_s4 }
0x2e63   :  { %48 = sbr.rel (!%p46_p8) target bundleno = 33 (0x21), region = 201 }
0x2e68   :  { %2377 = vsyncpa [#allocation7], 1 }
0x2e69   :  { %2379 = vsyncpa [#allocation7 + $0x1], 1 }
0x2e6a   :  { %2380 = vsyncpa [#allocation10], 1 }
0x2e6b   :  { %2381 = vsyncpa [#allocation13], 1 }
0x2e6c   :  { %2382 = vsyncpa [#allocation8], 1 }
0x2e6d   :  { %2384 = vsyncpa [#allocation8 + $0x1], 1 }
0x2e6e   :  { %2385 = vsyncpa [#allocation16], 1 }

</bundles_post_ra>
